<compile_context>
chip_gen: v5e
topology: v5e:2x2
jax: 0.10.0
libtpu: 0.0.40
codegen_flags: <defaults>
</compile_context>

<pallas_src>
import jax
import jax.numpy as jnp
from jax import lax
from jax.experimental import pallas as pl
from jax.experimental.pallas import tpu as pltpu

EPS = 1e-5                        # nn.BatchNorm2d default
VMEM_LIMIT = 32 * 1024 * 1024     # raises v5e's 16 MiB default; == v6e/v7x default


def _pick_tm(m):
    """Largest M tile (multiple of 128) that divides M, capped at 1024."""
    for tm in (1024, 512, 256, 128):
        if m % tm == 0:
            return tm
    return m                      # fallback: gridless (full-extent block)


# ------------------------------ Pallas kernels --------------------------------
def _make_conv_bn_stats_kernel(eps, tm, m_total):
    """Kernel A: per M-tile conv + exact streaming BN statistics.

    acc = w (C,K) @ cols (K,TM) on the MXU (bf16 operands, f32 accumulator).
    The raw f32 tile is written out; per-channel (mean, M2) are combined across
    tiles with Chan's parallel-variance update (all tiles have equal size TM).
    At the last tile gamma/beta are folded into scale/shift outputs.
    """
    inv_tm = 1.0 / tm
    inv_m = 1.0 / m_total

    def kernel(cols_ref, w_ref, gamma_ref, beta_ref,
               raw_ref, scale_ref, shift_ref, mean_sc, m2_sc):
        i = pl.program_id(0)
        acc = jnp.dot(w_ref[...], cols_ref[...],
                      preferred_element_type=jnp.float32)          # (C, TM) f32
        raw_ref[...] = acc.astype(raw_ref.dtype)

        tile_mean = jnp.sum(acc, axis=1, keepdims=True) * inv_tm   # (C, 1)
        d = acc - tile_mean
        tile_m2 = jnp.sum(d * d, axis=1, keepdims=True)            # (C, 1)

        @pl.when(i == 0)
        def _():
            mean_sc[...] = tile_mean
            m2_sc[...] = tile_m2

        @pl.when(i > 0)
        def _():
            i_f = i.astype(jnp.float32)
            w_new = 1.0 / (i_f + 1.0)            # = tm / ((i + 1) * tm)
            delta = tile_mean - mean_sc[...]
            mean_sc[...] = mean_sc[...] + delta * w_new
            m2_sc[...] = m2_sc[...] + tile_m2 + (delta * delta) * (tm * i_f * w_new)

        @pl.when(i == pl.num_programs(0) - 1)
        def _():
            var = m2_sc[...] * inv_m             # biased var (training-mode BN)
            scale = gamma_ref[...] * lax.rsqrt(var + eps)
            scale_ref[...] = scale
            shift_ref[...] = beta_ref[...] - mean_sc[...] * scale

    return kernel


def _make_norm_act_kernel(apply_prelu, add_residual):
    """Kernel B: fused scale/shift (+PReLU) (+residual) over (C, TM) tiles."""

    def kernel(*refs):
        it = iter(refs)
        raw_ref = next(it)                       # (C, TM) f32
        scale_ref = next(it)                     # (C, 1)  f32
        shift_ref = next(it)                     # (C, 1)  f32
        alpha_ref = next(it) if apply_prelu else None   # (1,) f32 in SMEM
        res_ref = next(it) if add_residual else None    # (C, TM) bf16
        o_ref = next(it)                         # (C, TM) bf16

        y = raw_ref[...].astype(jnp.float32) * scale_ref[...] + shift_ref[...]
        if apply_prelu:
            a = alpha_ref[0]                     # scalar read from SMEM
            y = jnp.where(y > 0, y, a * y)
        if add_residual:
            y = y + res_ref[...].astype(jnp.float32)
        o_ref[...] = y.astype(o_ref.dtype)

    return kernel


def _make_head_kernel(c_mu):
    """Fused mu / Softplus(logvar) head: one MXU dot; softplus only on the
    logvar rows [c_mu, 2*c_mu)."""

    def kernel(cols_ref, w_ref, o_ref):
        acc = jnp.dot(w_ref[...], cols_ref[...],
                      preferred_element_type=jnp.float32)          # (2C, TM)
        mu = acc[:c_mu, :]
        lv = acc[c_mu:, :]
        sp = jnp.maximum(lv, 0.0) + jnp.log1p(jnp.exp(-jnp.abs(lv)))
        o_ref[:c_mu, :] = mu.astype(o_ref.dtype)
        o_ref[c_mu:, :] = sp.astype(o_ref.dtype)

    return kernel


# ---------------------------- pallas_call wrappers -----------------------------
def conv_bn_act(cols, w, gamma, beta, alpha=None, residual=None, eps=EPS):
    """cols: (K, M) bf16; w: (C, K) bf16; gamma/beta: (C,) f32; alpha: scalar
    PReLU weight or None; residual: (C, M) bf16 or None.  Returns (C, M) bf16."""
    k_dim, m = cols.shape
    c = w.shape[0]
    tm = _pick_tm(m)
    nm = m // tm

    g2 = gamma.reshape(c, 1).astype(jnp.float32)
    b2 = beta.reshape(c, 1).astype(jnp.float32)

    # ---- kernel A: conv + raw tiles + BN statistics (sequential over M) ------
    raw, scale, shift = pl.pallas_call(
        _make_conv_bn_stats_kernel(eps, tm, m),
        grid=(nm,),
        in_specs=[
            pl.BlockSpec((k_dim, tm), lambda i: (0, i)),
            pl.BlockSpec((c, k_dim), lambda i: (0, 0)),
            pl.BlockSpec((c, 1), lambda i: (0, 0)),
            pl.BlockSpec((c, 1), lambda i: (0, 0)),
        ],
        out_specs=(
            pl.BlockSpec((c, tm), lambda i: (0, i)),
            pl.BlockSpec((c, 1), lambda i: (0, 0)),
            pl.BlockSpec((c, 1), lambda i: (0, 0)),
        ),
        out_shape=(
            jax.ShapeDtypeStruct((c, m), jnp.float32),   # raw conv output
            jax.ShapeDtypeStruct((c, 1), jnp.float32),   # BN scale
            jax.ShapeDtypeStruct((c, 1), jnp.float32),   # BN shift
        ),
        scratch_shapes=[pltpu.VMEM((c, 1), jnp.float32),
                        pltpu.VMEM((c, 1), jnp.float32)],
        compiler_params=pltpu.CompilerParams(
            dimension_semantics=("arbitrary",),          # stats accumulate over M
            vmem_limit_bytes=VMEM_LIMIT),
    )(cols, w, g2, b2)

    # ---- kernel B: fused normalize (+PReLU) (+residual), parallel over M -----
    apply_prelu = alpha is not None
    add_residual = residual is not None
    inputs = [raw, scale, shift]
    in_specs = [
        pl.BlockSpec((c, tm), lambda i: (0, i)),
        pl.BlockSpec((c, 1), lambda i: (0, 0)),
        pl.BlockSpec((c, 1), lambda i: (0, 0)),
    ]
    if apply_prelu:
        inputs.append(jnp.reshape(alpha, (1,)).astype(jnp.float32))
        in_specs.append(pl.BlockSpec(memory_space=pltpu.MemorySpace.SMEM))
    if add_residual:
        inputs.append(residual.astype(jnp.bfloat16))
        in_specs.append(pl.BlockSpec((c, tm), lambda i: (0, i)))

    return pl.pallas_call(
        _make_norm_act_kernel(apply_prelu, add_residual),
        grid=(nm,),
        in_specs=in_specs,
        out_specs=pl.BlockSpec((c, tm), lambda i: (0, i)),
        out_shape=jax.ShapeDtypeStruct((c, m), jnp.bfloat16),
        compiler_params=pltpu.CompilerParams(
            dimension_semantics=("parallel",),
            vmem_limit_bytes=VMEM_LIMIT),
    )(*inputs)


def conv_head(cols, w_cat, c_mu):
    """Shared mu / Softplus(logvar) head.  cols: (K, M) bf16; w_cat: (2C, K)
    bf16.  Returns (2C, M) f32: rows [0,C)=mu, rows [C,2C)=softplus(logvar)."""
    k_dim, m = cols.shape
    c2 = w_cat.shape[0]
    tm = _pick_tm(m)
    nm = m // tm
    return pl.pallas_call(
        _make_head_kernel(c_mu),
        grid=(nm,),
        in_specs=[
            pl.BlockSpec((k_dim, tm), lambda i: (0, i)),
            pl.BlockSpec((c2, k_dim), lambda i: (0, 0)),
        ],
        out_specs=pl.BlockSpec((c2, tm), lambda i: (0, i)),
        out_shape=jax.ShapeDtypeStruct((c2, m), jnp.float32),
        compiler_params=pltpu.CompilerParams(
            dimension_semantics=("parallel",),
            vmem_limit_bytes=VMEM_LIMIT),
    )(cols, w_cat)


# --------------------------------- JAX glue ------------------------------------
def _im2col_cm(y_cnhw, kh, pad, pad_mode, stride):
    """Channel-major im2col: (C, N, H, W) -> cols (kh*kh*C, N*oh*ow) with the K
    rows ordered (ky, kx, c), matching the (O, Kh, Kw, I) weight packing."""
    c, n, h, w = y_cnhw.shape
    yp = jnp.pad(y_cnhw, ((0, 0), (0, 0), (pad, pad), (pad, pad)),
                 mode=pad_mode) if pad else y_cnhw
    oh = (h + 2 * pad - kh) // stride + 1
    ow = (w + 2 * pad - kh) // stride + 1
    slabs = []
    for ky in range(kh):
        for kx in range(kh):
            s = yp[:, :, ky:ky + stride * oh:stride, kx:kx + stride * ow:stride]
            slabs.append(s.reshape(c, n * oh * ow))
    return jnp.concatenate(slabs, axis=0), oh, ow


def encoder_forward(x_nchw, params):
    n = x_nchw.shape[0]
    # channel-major (C, N, H, W) activations, bf16 at every layer boundary
    y = jnp.transpose(x_nchw, (1, 0, 2, 3)).astype(jnp.bfloat16)

    def layer(y_cm, w, kh, pad, pad_mode, stride, gamma, beta,
              alpha=None, residual=None):
        cols, oh, ow = _im2col_cm(y_cm, kh, pad, pad_mode, stride)
        out = conv_bn_act(cols, w, gamma, beta, alpha=alpha, residual=residual)
        return out.reshape(w.shape[0], n, oh, ow)

    # --- stem: ReflectionPad2d(3) + Conv7x7 + BN + PReLU ----------------------
    st = params['stem']
    y = layer(y, st['w'], 7, 3, 'reflect', 1, st['g'], st['b'], alpha=st['a'])

    # --- two stride-2 downsampling convs (zero pad 1) + BN + PReLU ------------
    for d in params['down']:
        y = layer(y, d['w'], 3, 1, 'constant', 2, d['g'], d['b'], alpha=d['a'])

    # --- ResnetBlocks (reflect pad; n_domains=0 -> no context channels) -------
    for blk in params['blocks']:
        t = layer(y, blk['w1'], 3, 1, 'reflect', 1, blk['g1'], blk['b1'],
                  alpha=blk['a1'])
        y = layer(t, blk['w2'], 3, 1, 'reflect', 1, blk['g2'], blk['b2'],
                  residual=y.reshape(y.shape[0], -1))

    # --- fused mu / Softplus(logvar) head (one kernel, shared im2col read) ----
    c = y.shape[0]
    cols, oh, ow = _im2col_cm(y, 3, 1, 'constant', 1)
    out = conv_head(cols, params['head']['w_cat'], c)       # (2C, M) f32
    out = out.reshape(2 * c, n, oh, ow)
    mu = jnp.transpose(out[:c], (1, 0, 2, 3))               # back to NCHW
    logvar = jnp.transpose(out[c:], (1, 0, 2, 3))
    return mu, logvar


# ------------------------------ parameter init ---------------------------------
def init_params(key, input_nc, ngf=64, n_blocks=2, w_std=0.03):
    ngf4 = ngf // 4                    # the module does ngf = ngf // 4
    dim = ngf4 * 4                     # channels after 2 downsamplings

    def conv_w(k, cout, cin, ks):
        return w_std * jax.random.normal(k, (cout, cin, ks, ks), jnp.float32)

    def pack(w_oihw):
        # (O, I, Kh, Kw) -> (O, Kh*Kw*I) bf16, K ordered (ky, kx, c)
        o, i, kh, kw = w_oihw.shape
        return jnp.transpose(w_oihw, (0, 2, 3, 1)).reshape(o, kh * kw * i) \
                  .astype(jnp.bfloat16)

    def bn_p(k, c):
        kg, kb = jax.random.split(k)
        return (1.0 + 0.1 * jax.random.normal(kg, (c,), jnp.float32),
                0.1 * jax.random.normal(kb, (c,), jnp.float32))

    params = {}
    key, k1, k2 = jax.random.split(key, 3)
    w = conv_w(k1, ngf4, input_nc, 7)
    g, b = bn_p(k2, ngf4)
    params['stem'] = dict(w_oihw=w, w=pack(w), g=g, b=b, a=jnp.float32(0.25))

    downs, cin = [], ngf4
    for _ in range(2):
        cout = cin * 2
        key, k1, k2 = jax.random.split(key, 3)
        w = conv_w(k1, cout, cin, 3)
        g, b = bn_p(k2, cout)
        downs.append(dict(w_oihw=w, w=pack(w), g=g, b=b, a=jnp.float32(0.25)))
        cin = cout
    params['down'] = downs

    blocks = []
    for _ in range(n_blocks):
        key, k1, k2, k3, k4 = jax.random.split(key, 5)
        w1 = conv_w(k1, dim, dim, 3); g1, b1 = bn_p(k2, dim)
        w2 = conv_w(k3, dim, dim, 3); g2, b2 = bn_p(k4, dim)
        blocks.append(dict(w1_oihw=w1, w1=pack(w1), g1=g1, b1=b1,
                           a1=jnp.float32(0.25),
                           w2_oihw=w2, w2=pack(w2), g2=g2, b2=b2))
    params['blocks'] = blocks

    key, k1, k2 = jax.random.split(key, 3)
    wmu = conv_w(k1, dim, dim, 3)
    wlv = conv_w(k2, dim, dim, 3)
    params['head'] = dict(mu_w_oihw=wmu, lv_w_oihw=wlv,
                          w_cat=jnp.concatenate([pack(wmu), pack(wlv)], axis=0))
    return params


# ---------------------------- pure-JAX f32 reference ----------------------------
def ref_forward(x_nchw, params, eps=EPS):
    x = x_nchw.astype(jnp.float32)

    def bn(y, g, b):
        m = jnp.mean(y, axis=(0, 2, 3), keepdims=True)
        v = jnp.mean(jnp.square(y - m), axis=(0, 2, 3), keepdims=True)
        return (y - m) * lax.rsqrt(v + eps) * g[None, :, None, None] \
            + b[None, :, None, None]

    def conv(h, w, stride=1, padding='VALID'):
        return lax.conv_general_dilated(
            h, w, (stride, stride), padding,
            dimension_numbers=('NCHW', 'OIHW', 'NCHW'),
            precision=lax.Precision.HIGHEST)

    def prelu(y, a):
        return jnp.where(y > 0, y, a * y)

    st = params['stem']
    h = jnp.pad(x, ((0, 0), (0, 0), (3, 3), (3, 3)), mode='reflect')
    y = prelu(bn(conv(h, st['w_oihw']), st['g'], st['b']), st['a'])
    for d in params['down']:
        y = prelu(bn(conv(y, d['w_oihw'], stride=2, padding=((1, 1), (1, 1))),
                     d['g'], d['b']), d['a'])
    for blk in params['blocks']:
        h = jnp.pad(y, ((0, 0), (0, 0), (1, 1), (1, 1)), mode='reflect')
        t = prelu(bn(conv(h, blk['w1_oihw']), blk['g1'], blk['b1']), blk['a1'])
        h = jnp.pad(t, ((0, 0), (0, 0), (1, 1), (1, 1)), mode='reflect')
        y = y + bn(conv(h, blk['w2_oihw']), blk['g2'], blk['b2'])
    mu = conv(y, params['head']['mu_w_oihw'], padding=((1, 1), (1, 1)))
    lv = jax.nn.softplus(conv(y, params['head']['lv_w_oihw'],
                              padding=((1, 1), (1, 1))))
    return mu, lv


# -------------------------------------- main ------------------------------------
if __name__ == "__main__":
    key = jax.random.PRNGKey(0)
    kx, kp = jax.random.split(key)

    N, C_IN, H, W = 2, 3, 32, 32
    NGF, N_BLOCKS = 64, 2               # internal ngf = 16, bottleneck dim = 64

    x = jax.random.normal(kx, (N, C_IN, H, W), jnp.float32)
    params = init_params(kp, C_IN, NGF, N_BLOCKS)

    fwd = jax.jit(encoder_forward)
    mu, logvar = fwd(x, params)
    mu, logvar = jax.block_until_ready((mu, logvar))

    mu_ref, lv_ref = ref_forward(x, params)
    assert mu.shape == mu_ref.shape == (N, 64, H // 4, W // 4)
    assert logvar.shape == lv_ref.shape

    # Tolerance for bf16 matmul operands + bf16 layer-boundary activations.
    def close(a, b, atol=8e-2, rtol=3e-2):
        return bool(jnp.all(jnp.abs(a - b) <= atol + rtol * jnp.abs(b)))

    assert close(mu, mu_ref), f"mu max err {float(jnp.max(jnp.abs(mu - mu_ref)))}"
    assert close(logvar, lv_ref), \
        f"logvar max err {float(jnp.max(jnp.abs(logvar - lv_ref)))}"

    print("KERNEL_OK")
</pallas_src>

<mosaic_0001>
module attributes {stable_mosaic.version = 11 : i64} {
  func.func @kernel(%arg0: i32, %arg1: memref<147x1024xbf16, #tpu.memory_space<vmem>>, %arg2: memref<16x147xbf16, #tpu.memory_space<vmem>>, %arg3: memref<16x1xf32, #tpu.memory_space<vmem>>, %arg4: memref<16x1xf32, #tpu.memory_space<vmem>>, %arg5: memref<16x1024xf32, #tpu.memory_space<vmem>>, %arg6: memref<16x1xf32, #tpu.memory_space<vmem>>, %arg7: memref<16x1xf32, #tpu.memory_space<vmem>>, %arg8: memref<16x1xf32, #tpu.memory_space<vmem>>, %arg9: memref<16x1xf32, #tpu.memory_space<vmem>>) attributes {dimension_semantics = [#tpu.dimension_semantics<arbitrary>], iteration_bounds = array<i64: 2>, scalar_prefetch = 0 : i64, scratch_operands = 2 : i64, tpu.core_type = #tpu.core_type<tc>, window_params = [{transform_indices = @transform_0, window_bounds = array<i64: 147, 1024>}, {pipeline_mode = #tpu.pipeline_mode<synchronous>, transform_indices = @transform_1, window_bounds = array<i64: 16, 147>}, {pipeline_mode = #tpu.pipeline_mode<synchronous>, transform_indices = @transform_2, window_bounds = array<i64: 16, 1>}, {pipeline_mode = #tpu.pipeline_mode<synchronous>, transform_indices = @transform_3, window_bounds = array<i64: 16, 1>}, {transform_indices = @transform_4, window_bounds = array<i64: 16, 1024>}, {pipeline_mode = #tpu.pipeline_mode<synchronous>, transform_indices = @transform_5, window_bounds = array<i64: 16, 1>}, {pipeline_mode = #tpu.pipeline_mode<synchronous>, transform_indices = @transform_6, window_bounds = array<i64: 16, 1>}]} {
    %c0 = arith.constant 0 : index
    %c0_0 = arith.constant 0 : index
    %0 = vector.load %arg2[%c0, %c0_0] : memref<16x147xbf16, #tpu.memory_space<vmem>>, vector<16x147xbf16>
    %c0_1 = arith.constant 0 : index
    %c0_2 = arith.constant 0 : index
    %1 = vector.load %arg1[%c0_1, %c0_2] : memref<147x1024xbf16, #tpu.memory_space<vmem>>, vector<147x1024xbf16>
    %cst = arith.constant dense<0.000000e+00> : vector<16x1024xf32>
    %2 = tpu.matmul %0, %1, %cst {dimension_numbers = #tpu.dot_dimension_numbers<[1], [0], [0], [1], [0, 0, 1, 1], [], []>} : vector<16x147xbf16>, vector<147x1024xbf16>, vector<16x1024xf32> -> vector<16x1024xf32>
    %c0_3 = arith.constant 0 : index
    %c0_4 = arith.constant 0 : index
    %3 = vector.load %arg5[%c0_3, %c0_4] : memref<16x1024xf32, #tpu.memory_space<vmem>>, vector<16x1024xf32>
    tpu.vector_store %arg5[%c0_3, %c0_4], %2 {strides = array<i32>} : memref<16x1024xf32, #tpu.memory_space<vmem>>, vector<16x1024xf32>,
    %cst_5 = arith.constant dense<0.000000e+00> : vector<16xf32>
    %4 = vector.multi_reduction <add>, %2, %cst_5 [1] : vector<16x1024xf32> to vector<16xf32>
    %5 = vector.shape_cast %4 : vector<16xf32> to vector<16x1xf32>
    %cst_6 = arith.constant 9.765625E-4 : f32
    %6 = vector.broadcast %cst_6 : f32 to vector<16x1xf32>
    %7 = arith.mulf %5, %6 : vector<16x1xf32>
    %8 = vector.broadcast %7 : vector<16x1xf32> to vector<16x1024xf32>
    %9 = arith.subf %2, %8 : vector<16x1024xf32>
    %10 = arith.mulf %9, %9 : vector<16x1024xf32>
    %cst_7 = arith.constant dense<0.000000e+00> : vector<16xf32>
    %11 = vector.multi_reduction <add>, %10, %cst_7 [1] : vector<16x1024xf32> to vector<16xf32>
    %12 = vector.shape_cast %11 : vector<16xf32> to vector<16x1xf32>
    %c0_i32 = arith.constant 0 : i32
    %13 = arith.cmpi eq, %arg0, %c0_i32 : i32
    %14 = arith.extui %13 : i1 to i32
    %c0_i32_8 = arith.constant 0 : i32
    %15 = arith.cmpi ne, %14, %c0_i32_8 : i32
    scf.if %15 {
      %c0_12 = arith.constant 0 : index
      %c0_13 = arith.constant 0 : index
      %22 = vector.load %arg8[%c0_12, %c0_13] : memref<16x1xf32, #tpu.memory_space<vmem>>, vector<16x1xf32>
      tpu.vector_store %arg8[%c0_12, %c0_13], %7 {strides = array<i32>} : memref<16x1xf32, #tpu.memory_space<vmem>>, vector<16x1xf32>,
      %c0_14 = arith.constant 0 : index
      %c0_15 = arith.constant 0 : index
      %23 = vector.load %arg9[%c0_14, %c0_15] : memref<16x1xf32, #tpu.memory_space<vmem>>, vector<16x1xf32>
      tpu.vector_store %arg9[%c0_14, %c0_15], %12 {strides = array<i32>} : memref<16x1xf32, #tpu.memory_space<vmem>>, vector<16x1xf32>,
    } else {
    }
    %c0_i32_9 = arith.constant 0 : i32
    %16 = arith.cmpi sgt, %arg0, %c0_i32_9 : i32
    %17 = arith.extui %16 : i1 to i32
    %c0_i32_10 = arith.constant 0 : i32
    %18 = arith.cmpi ne, %17, %c0_i32_10 : i32
    scf.if %18 {
      %22 = arith.sitofp %arg0 : i32 to f32
      %cst_12 = arith.constant 1.000000e+00 : f32
      %23 = arith.addf %22, %cst_12 : f32
      %cst_13 = arith.constant 1.000000e+00 : f32
      %24 = arith.divf %cst_13, %23 : f32
      %c0_14 = arith.constant 0 : index
      %c0_15 = arith.constant 0 : index
      %25 = vector.load %arg8[%c0_14, %c0_15] : memref<16x1xf32, #tpu.memory_space<vmem>>, vector<16x1xf32>
      %26 = arith.subf %7, %25 : vector<16x1xf32>
      %c0_16 = arith.constant 0 : index
      %c0_17 = arith.constant 0 : index
      %27 = vector.load %arg8[%c0_16, %c0_17] : memref<16x1xf32, #tpu.memory_space<vmem>>, vector<16x1xf32>
      %28 = vector.broadcast %24 : f32 to vector<16x1xf32>
      %29 = arith.mulf %26, %28 : vector<16x1xf32>
      %30 = arith.addf %27, %29 : vector<16x1xf32>
      %c0_18 = arith.constant 0 : index
      %c0_19 = arith.constant 0 : index
      %31 = vector.load %arg8[%c0_18, %c0_19] : memref<16x1xf32, #tpu.memory_space<vmem>>, vector<16x1xf32>
      tpu.vector_store %arg8[%c0_18, %c0_19], %30 {strides = array<i32>} : memref<16x1xf32, #tpu.memory_space<vmem>>, vector<16x1xf32>,
      %c0_20 = arith.constant 0 : index
      %c0_21 = arith.constant 0 : index
      %32 = vector.load %arg9[%c0_20, %c0_21] : memref<16x1xf32, #tpu.memory_space<vmem>>, vector<16x1xf32>
      %33 = arith.addf %32, %12 : vector<16x1xf32>
      %34 = arith.mulf %26, %26 : vector<16x1xf32>
      %cst_22 = arith.constant 1.024000e+03 : f32
      %35 = arith.mulf %cst_22, %22 : f32
      %36 = arith.mulf %35, %24 : f32
      %37 = vector.broadcast %36 : f32 to vector<16x1xf32>
      %38 = arith.mulf %34, %37 : vector<16x1xf32>
      %39 = arith.addf %33, %38 : vector<16x1xf32>
      %c0_23 = arith.constant 0 : index
      %c0_24 = arith.constant 0 : index
      %40 = vector.load %arg9[%c0_23, %c0_24] : memref<16x1xf32, #tpu.memory_space<vmem>>, vector<16x1xf32>
      tpu.vector_store %arg9[%c0_23, %c0_24], %39 {strides = array<i32>} : memref<16x1xf32, #tpu.memory_space<vmem>>, vector<16x1xf32>,
    } else {
    }
    %c1_i32 = arith.constant 1 : i32
    %19 = arith.cmpi eq, %arg0, %c1_i32 : i32
    %20 = arith.extui %19 : i1 to i32
    %c0_i32_11 = arith.constant 0 : i32
    %21 = arith.cmpi ne, %20, %c0_i32_11 : i32
    scf.if %21 {
      %c0_12 = arith.constant 0 : index
      %c0_13 = arith.constant 0 : index
      %22 = vector.load %arg9[%c0_12, %c0_13] : memref<16x1xf32, #tpu.memory_space<vmem>>, vector<16x1xf32>
      %cst_14 = arith.constant 4.8828125E-4 : f32
      %23 = vector.broadcast %cst_14 : f32 to vector<16x1xf32>
      %24 = arith.mulf %22, %23 : vector<16x1xf32>
      %c0_15 = arith.constant 0 : index
      %c0_16 = arith.constant 0 : index
      %25 = vector.load %arg3[%c0_15, %c0_16] : memref<16x1xf32, #tpu.memory_space<vmem>>, vector<16x1xf32>
      %cst_17 = arith.constant 9.99999974E-6 : f32
      %26 = vector.broadcast %cst_17 : f32 to vector<16x1xf32>
      %27 = arith.addf %24, %26 : vector<16x1xf32>
      %28 = math.rsqrt %27 : vector<16x1xf32>
      %29 = arith.mulf %25, %28 : vector<16x1xf32>
      %c0_18 = arith.constant 0 : index
      %c0_19 = arith.constant 0 : index
      %30 = vector.load %arg6[%c0_18, %c0_19] : memref<16x1xf32, #tpu.memory_space<vmem>>, vector<16x1xf32>
      tpu.vector_store %arg6[%c0_18, %c0_19], %29 {strides = array<i32>} : memref<16x1xf32, #tpu.memory_space<vmem>>, vector<16x1xf32>,
      %c0_20 = arith.constant 0 : index
      %c0_21 = arith.constant 0 : index
      %31 = vector.load %arg4[%c0_20, %c0_21] : memref<16x1xf32, #tpu.memory_space<vmem>>, vector<16x1xf32>
      %c0_22 = arith.constant 0 : index
      %c0_23 = arith.constant 0 : index
      %32 = vector.load %arg8[%c0_22, %c0_23] : memref<16x1xf32, #tpu.memory_space<vmem>>, vector<16x1xf32>
      %33 = arith.mulf %32, %29 : vector<16x1xf32>
      %34 = arith.subf %31, %33 : vector<16x1xf32>
      %c0_24 = arith.constant 0 : index
      %c0_25 = arith.constant 0 : index
      %35 = vector.load %arg7[%c0_24, %c0_25] : memref<16x1xf32, #tpu.memory_space<vmem>>, vector<16x1xf32>
      tpu.vector_store %arg7[%c0_24, %c0_25], %34 {strides = array<i32>} : memref<16x1xf32, #tpu.memory_space<vmem>>, vector<16x1xf32>,
    } else {
    }
    return
  }
  func.func @transform_0(%arg0: i32) -> (i32, i32) {
    %c0_i32 = arith.constant 0 : i32
    %c0_i32_0 = arith.constant 0 : i32
    return %c0_i32, %arg0 : i32, i32
  }
  func.func @transform_1(%arg0: i32) -> (i32, i32) {
    %c0_i32 = arith.constant 0 : i32
    %c0_i32_0 = arith.constant 0 : i32
    %c0_i32_1 = arith.constant 0 : i32
    return %c0_i32, %c0_i32_0 : i32, i32
  }
  func.func @transform_2(%arg0: i32) -> (i32, i32) {
    %c0_i32 = arith.constant 0 : i32
    %c0_i32_0 = arith.constant 0 : i32
    %c0_i32_1 = arith.constant 0 : i32
    return %c0_i32, %c0_i32_0 : i32, i32
  }
  func.func @transform_3(%arg0: i32) -> (i32, i32) {
    %c0_i32 = arith.constant 0 : i32
    %c0_i32_0 = arith.constant 0 : i32
    %c0_i32_1 = arith.constant 0 : i32
    return %c0_i32, %c0_i32_0 : i32, i32
  }
  func.func @transform_4(%arg0: i32) -> (i32, i32) {
    %c0_i32 = arith.constant 0 : i32
    %c0_i32_0 = arith.constant 0 : i32
    return %c0_i32, %arg0 : i32, i32
  }
  func.func @transform_5(%arg0: i32) -> (i32, i32) {
    %c0_i32 = arith.constant 0 : i32
    %c0_i32_0 = arith.constant 0 : i32
    %c0_i32_1 = arith.constant 0 : i32
    return %c0_i32, %c0_i32_0 : i32, i32
  }
  func.func @transform_6(%arg0: i32) -> (i32, i32) {
    %c0_i32 = arith.constant 0 : i32
    %c0_i32_0 = arith.constant 0 : i32
    %c0_i32_1 = arith.constant 0 : i32
    return %c0_i32, %c0_i32_0 : i32, i32
  }
}

module attributes {stable_mosaic.version = 11 : i64} {
  func.func @kernel(%arg0: i32, %arg1: memref<16x1024xf32, #tpu.memory_space<vmem>>, %arg2: memref<16x1xf32, #tpu.memory_space<vmem>>, %arg3: memref<16x1xf32, #tpu.memory_space<vmem>>, %arg4: memref<1xf32, #tpu.memory_space<smem>>, %arg5: memref<16x1024xbf16, #tpu.memory_space<vmem>>) attributes {dimension_semantics = [#tpu.dimension_semantics<parallel>], iteration_bounds = array<i64: 2>, scalar_prefetch = 0 : i64, scratch_operands = 0 : i64, tpu.core_type = #tpu.core_type<tc>, window_params = [{transform_indices = @transform_0, window_bounds = array<i64: 16, 1024>}, {pipeline_mode = #tpu.pipeline_mode<synchronous>, transform_indices = @transform_1, window_bounds = array<i64: 16, 1>}, {pipeline_mode = #tpu.pipeline_mode<synchronous>, transform_indices = @transform_2, window_bounds = array<i64: 16, 1>}, {transform_indices = @transform_3, window_bounds = array<i64: 1>}, {transform_indices = @transform_4, window_bounds = array<i64: 16, 1024>}]} {
    %c0 = arith.constant 0 : index
    %c0_0 = arith.constant 0 : index
    %0 = vector.load %arg1[%c0, %c0_0] : memref<16x1024xf32, #tpu.memory_space<vmem>>, vector<16x1024xf32>
    %c0_1 = arith.constant 0 : index
    %c0_2 = arith.constant 0 : index
    %1 = vector.load %arg2[%c0_1, %c0_2] : memref<16x1xf32, #tpu.memory_space<vmem>>, vector<16x1xf32>
    %2 = vector.broadcast %1 : vector<16x1xf32> to vector<16x1024xf32>
    %3 = arith.mulf %0, %2 : vector<16x1024xf32>
    %c0_3 = arith.constant 0 : index
    %c0_4 = arith.constant 0 : index
    %4 = vector.load %arg3[%c0_3, %c0_4] : memref<16x1xf32, #tpu.memory_space<vmem>>, vector<16x1xf32>
    %5 = vector.broadcast %4 : vector<16x1xf32> to vector<16x1024xf32>
    %6 = arith.addf %3, %5 : vector<16x1024xf32>
    %c0_5 = arith.constant 0 : index
    %7 = memref.load %arg4[%c0_5] : memref<1xf32, #tpu.memory_space<smem>>
    %cst = arith.constant 0.000000e+00 : f32
    %8 = vector.broadcast %cst : f32 to vector<16x1024xf32>
    %9 = arith.cmpf ogt, %6, %8 : vector<16x1024xf32>
    %10 = vector.broadcast %7 : f32 to vector<16x1024xf32>
    %11 = arith.mulf %10, %6 : vector<16x1024xf32>
    %12 = arith.select %9, %6, %11 : vector<16x1024xi1>, vector<16x1024xf32>
    %13 = arith.truncf %12 : vector<16x1024xf32> to vector<16x1024xbf16>
    %c0_6 = arith.constant 0 : index
    %c0_7 = arith.constant 0 : index
    %14 = vector.load %arg5[%c0_6, %c0_7] : memref<16x1024xbf16, #tpu.memory_space<vmem>>, vector<16x1024xbf16>
    tpu.vector_store %arg5[%c0_6, %c0_7], %13 {strides = array<i32>} : memref<16x1024xbf16, #tpu.memory_space<vmem>>, vector<16x1024xbf16>,
    return
  }
  func.func @transform_0(%arg0: i32) -> (i32, i32) {
    %c0_i32 = arith.constant 0 : i32
    %c0_i32_0 = arith.constant 0 : i32
    return %c0_i32, %arg0 : i32, i32
  }
  func.func @transform_1(%arg0: i32) -> (i32, i32) {
    %c0_i32 = arith.constant 0 : i32
    %c0_i32_0 = arith.constant 0 : i32
    %c0_i32_1 = arith.constant 0 : i32
    return %c0_i32, %c0_i32_0 : i32, i32
  }
  func.func @transform_2(%arg0: i32) -> (i32, i32) {
    %c0_i32 = arith.constant 0 : i32
    %c0_i32_0 = arith.constant 0 : i32
    %c0_i32_1 = arith.constant 0 : i32
    return %c0_i32, %c0_i32_0 : i32, i32
  }
  func.func @transform_3(%arg0: i32) -> i32 {
    %c0_i32 = arith.constant 0 : i32
    %c0_i32_0 = arith.constant 0 : i32
    return %c0_i32 : i32
  }
  func.func @transform_4(%arg0: i32) -> (i32, i32) {
    %c0_i32 = arith.constant 0 : i32
    %c0_i32_0 = arith.constant 0 : i32
    return %c0_i32, %arg0 : i32, i32
  }
}

module attributes {stable_mosaic.version = 11 : i64} {
  func.func @kernel(%arg0: i32, %arg1: memref<32x512xf32, #tpu.memory_space<vmem>>, %arg2: memref<32x1xf32, #tpu.memory_space<vmem>>, %arg3: memref<32x1xf32, #tpu.memory_space<vmem>>, %arg4: memref<1xf32, #tpu.memory_space<smem>>, %arg5: memref<32x512xbf16, #tpu.memory_space<vmem>>) attributes {dimension_semantics = [#tpu.dimension_semantics<parallel>], iteration_bounds = array<i64: 1>, scalar_prefetch = 0 : i64, scratch_operands = 0 : i64, tpu.core_type = #tpu.core_type<tc>, window_params = [{transform_indices = @transform_0, window_bounds = array<i64: 32, 512>}, {pipeline_mode = #tpu.pipeline_mode<synchronous>, transform_indices = @transform_1, window_bounds = array<i64: 32, 1>}, {pipeline_mode = #tpu.pipeline_mode<synchronous>, transform_indices = @transform_2, window_bounds = array<i64: 32, 1>}, {transform_indices = @transform_3, window_bounds = array<i64: 1>}, {transform_indices = @transform_4, window_bounds = array<i64: 32, 512>}]} {
    %c0 = arith.constant 0 : index
    %c0_0 = arith.constant 0 : index
    %0 = vector.load %arg1[%c0, %c0_0] : memref<32x512xf32, #tpu.memory_space<vmem>>, vector<32x512xf32>
    %c0_1 = arith.constant 0 : index
    %c0_2 = arith.constant 0 : index
    %1 = vector.load %arg2[%c0_1, %c0_2] : memref<32x1xf32, #tpu.memory_space<vmem>>, vector<32x1xf32>
    %2 = vector.broadcast %1 : vector<32x1xf32> to vector<32x512xf32>
    %3 = arith.mulf %0, %2 : vector<32x512xf32>
    %c0_3 = arith.constant 0 : index
    %c0_4 = arith.constant 0 : index
    %4 = vector.load %arg3[%c0_3, %c0_4] : memref<32x1xf32, #tpu.memory_space<vmem>>, vector<32x1xf32>
    %5 = vector.broadcast %4 : vector<32x1xf32> to vector<32x512xf32>
    %6 = arith.addf %3, %5 : vector<32x512xf32>
    %c0_5 = arith.constant 0 : index
    %7 = memref.load %arg4[%c0_5] : memref<1xf32, #tpu.memory_space<smem>>
    %cst = arith.constant 0.000000e+00 : f32
    %8 = vector.broadcast %cst : f32 to vector<32x512xf32>
    %9 = arith.cmpf ogt, %6, %8 : vector<32x512xf32>
    %10 = vector.broadcast %7 : f32 to vector<32x512xf32>
    %11 = arith.mulf %10, %6 : vector<32x512xf32>
    %12 = arith.select %9, %6, %11 : vector<32x512xi1>, vector<32x512xf32>
    %13 = arith.truncf %12 : vector<32x512xf32> to vector<32x512xbf16>
    %c0_6 = arith.constant 0 : index
    %c0_7 = arith.constant 0 : index
    %14 = vector.load %arg5[%c0_6, %c0_7] : memref<32x512xbf16, #tpu.memory_space<vmem>>, vector<32x512xbf16>
    tpu.vector_store %arg5[%c0_6, %c0_7], %13 {strides = array<i32>} : memref<32x512xbf16, #tpu.memory_space<vmem>>, vector<32x512xbf16>,
    return
  }
  func.func @transform_0(%arg0: i32) -> (i32, i32) {
    %c0_i32 = arith.constant 0 : i32
    %c0_i32_0 = arith.constant 0 : i32
    return %c0_i32, %arg0 : i32, i32
  }
  func.func @transform_1(%arg0: i32) -> (i32, i32) {
    %c0_i32 = arith.constant 0 : i32
    %c0_i32_0 = arith.constant 0 : i32
    %c0_i32_1 = arith.constant 0 : i32
    return %c0_i32, %c0_i32_0 : i32, i32
  }
  func.func @transform_2(%arg0: i32) -> (i32, i32) {
    %c0_i32 = arith.constant 0 : i32
    %c0_i32_0 = arith.constant 0 : i32
    %c0_i32_1 = arith.constant 0 : i32
    return %c0_i32, %c0_i32_0 : i32, i32
  }
  func.func @transform_3(%arg0: i32) -> i32 {
    %c0_i32 = arith.constant 0 : i32
    %c0_i32_0 = arith.constant 0 : i32
    return %c0_i32 : i32
  }
  func.func @transform_4(%arg0: i32) -> (i32, i32) {
    %c0_i32 = arith.constant 0 : i32
    %c0_i32_0 = arith.constant 0 : i32
    return %c0_i32, %arg0 : i32, i32
  }
}

module attributes {stable_mosaic.version = 11 : i64} {
  func.func @kernel(%arg0: i32, %arg1: memref<144x512xbf16, #tpu.memory_space<vmem>>, %arg2: memref<32x144xbf16, #tpu.memory_space<vmem>>, %arg3: memref<32x1xf32, #tpu.memory_space<vmem>>, %arg4: memref<32x1xf32, #tpu.memory_space<vmem>>, %arg5: memref<32x512xf32, #tpu.memory_space<vmem>>, %arg6: memref<32x1xf32, #tpu.memory_space<vmem>>, %arg7: memref<32x1xf32, #tpu.memory_space<vmem>>, %arg8: memref<32x1xf32, #tpu.memory_space<vmem>>, %arg9: memref<32x1xf32, #tpu.memory_space<vmem>>) attributes {dimension_semantics = [#tpu.dimension_semantics<arbitrary>], iteration_bounds = array<i64: 1>, scalar_prefetch = 0 : i64, scratch_operands = 2 : i64, tpu.core_type = #tpu.core_type<tc>, window_params = [{transform_indices = @transform_0, window_bounds = array<i64: 144, 512>}, {pipeline_mode = #tpu.pipeline_mode<synchronous>, transform_indices = @transform_1, window_bounds = array<i64: 32, 144>}, {pipeline_mode = #tpu.pipeline_mode<synchronous>, transform_indices = @transform_2, window_bounds = array<i64: 32, 1>}, {pipeline_mode = #tpu.pipeline_mode<synchronous>, transform_indices = @transform_3, window_bounds = array<i64: 32, 1>}, {transform_indices = @transform_4, window_bounds = array<i64: 32, 512>}, {pipeline_mode = #tpu.pipeline_mode<synchronous>, transform_indices = @transform_5, window_bounds = array<i64: 32, 1>}, {pipeline_mode = #tpu.pipeline_mode<synchronous>, transform_indices = @transform_6, window_bounds = array<i64: 32, 1>}]} {
    %c0 = arith.constant 0 : index
    %c0_0 = arith.constant 0 : index
    %0 = vector.load %arg2[%c0, %c0_0] : memref<32x144xbf16, #tpu.memory_space<vmem>>, vector<32x144xbf16>
    %c0_1 = arith.constant 0 : index
    %c0_2 = arith.constant 0 : index
    %1 = vector.load %arg1[%c0_1, %c0_2] : memref<144x512xbf16, #tpu.memory_space<vmem>>, vector<144x512xbf16>
    %cst = arith.constant dense<0.000000e+00> : vector<32x512xf32>
    %2 = tpu.matmul %0, %1, %cst {dimension_numbers = #tpu.dot_dimension_numbers<[1], [0], [0], [1], [0, 0, 1, 1], [], []>} : vector<32x144xbf16>, vector<144x512xbf16>, vector<32x512xf32> -> vector<32x512xf32>
    %c0_3 = arith.constant 0 : index
    %c0_4 = arith.constant 0 : index
    %3 = vector.load %arg5[%c0_3, %c0_4] : memref<32x512xf32, #tpu.memory_space<vmem>>, vector<32x512xf32>
    tpu.vector_store %arg5[%c0_3, %c0_4], %2 {strides = array<i32>} : memref<32x512xf32, #tpu.memory_space<vmem>>, vector<32x512xf32>,
    %cst_5 = arith.constant dense<0.000000e+00> : vector<32xf32>
    %4 = vector.multi_reduction <add>, %2, %cst_5 [1] : vector<32x512xf32> to vector<32xf32>
    %5 = vector.shape_cast %4 : vector<32xf32> to vector<32x1xf32>
    %cst_6 = arith.constant 0.001953125 : f32
    %6 = vector.broadcast %cst_6 : f32 to vector<32x1xf32>
    %7 = arith.mulf %5, %6 : vector<32x1xf32>
    %8 = vector.broadcast %7 : vector<32x1xf32> to vector<32x512xf32>
    %9 = arith.subf %2, %8 : vector<32x512xf32>
    %10 = arith.mulf %9, %9 : vector<32x512xf32>
    %cst_7 = arith.constant dense<0.000000e+00> : vector<32xf32>
    %11 = vector.multi_reduction <add>, %10, %cst_7 [1] : vector<32x512xf32> to vector<32xf32>
    %12 = vector.shape_cast %11 : vector<32xf32> to vector<32x1xf32>
    %c0_i32 = arith.constant 0 : i32
    %13 = arith.cmpi eq, %arg0, %c0_i32 : i32
    %14 = arith.extui %13 : i1 to i32
    %c0_i32_8 = arith.constant 0 : i32
    %15 = arith.cmpi ne, %14, %c0_i32_8 : i32
    scf.if %15 {
      %c0_13 = arith.constant 0 : index
      %c0_14 = arith.constant 0 : index
      %22 = vector.load %arg8[%c0_13, %c0_14] : memref<32x1xf32, #tpu.memory_space<vmem>>, vector<32x1xf32>
      tpu.vector_store %arg8[%c0_13, %c0_14], %7 {strides = array<i32>} : memref<32x1xf32, #tpu.memory_space<vmem>>, vector<32x1xf32>,
      %c0_15 = arith.constant 0 : index
      %c0_16 = arith.constant 0 : index
      %23 = vector.load %arg9[%c0_15, %c0_16] : memref<32x1xf32, #tpu.memory_space<vmem>>, vector<32x1xf32>
      tpu.vector_store %arg9[%c0_15, %c0_16], %12 {strides = array<i32>} : memref<32x1xf32, #tpu.memory_space<vmem>>, vector<32x1xf32>,
    } else {
    }
    %c0_i32_9 = arith.constant 0 : i32
    %16 = arith.cmpi sgt, %arg0, %c0_i32_9 : i32
    %17 = arith.extui %16 : i1 to i32
    %c0_i32_10 = arith.constant 0 : i32
    %18 = arith.cmpi ne, %17, %c0_i32_10 : i32
    scf.if %18 {
      %22 = arith.sitofp %arg0 : i32 to f32
      %cst_13 = arith.constant 1.000000e+00 : f32
      %23 = arith.addf %22, %cst_13 : f32
      %cst_14 = arith.constant 1.000000e+00 : f32
      %24 = arith.divf %cst_14, %23 : f32
      %c0_15 = arith.constant 0 : index
      %c0_16 = arith.constant 0 : index
      %25 = vector.load %arg8[%c0_15, %c0_16] : memref<32x1xf32, #tpu.memory_space<vmem>>, vector<32x1xf32>
      %26 = arith.subf %7, %25 : vector<32x1xf32>
      %c0_17 = arith.constant 0 : index
      %c0_18 = arith.constant 0 : index
      %27 = vector.load %arg8[%c0_17, %c0_18] : memref<32x1xf32, #tpu.memory_space<vmem>>, vector<32x1xf32>
      %28 = vector.broadcast %24 : f32 to vector<32x1xf32>
      %29 = arith.mulf %26, %28 : vector<32x1xf32>
      %30 = arith.addf %27, %29 : vector<32x1xf32>
      %c0_19 = arith.constant 0 : index
      %c0_20 = arith.constant 0 : index
      %31 = vector.load %arg8[%c0_19, %c0_20] : memref<32x1xf32, #tpu.memory_space<vmem>>, vector<32x1xf32>
      tpu.vector_store %arg8[%c0_19, %c0_20], %30 {strides = array<i32>} : memref<32x1xf32, #tpu.memory_space<vmem>>, vector<32x1xf32>,
      %c0_21 = arith.constant 0 : index
      %c0_22 = arith.constant 0 : index
      %32 = vector.load %arg9[%c0_21, %c0_22] : memref<32x1xf32, #tpu.memory_space<vmem>>, vector<32x1xf32>
      %33 = arith.addf %32, %12 : vector<32x1xf32>
      %34 = arith.mulf %26, %26 : vector<32x1xf32>
      %cst_23 = arith.constant 5.120000e+02 : f32
      %35 = arith.mulf %cst_23, %22 : f32
      %36 = arith.mulf %35, %24 : f32
      %37 = vector.broadcast %36 : f32 to vector<32x1xf32>
      %38 = arith.mulf %34, %37 : vector<32x1xf32>
      %39 = arith.addf %33, %38 : vector<32x1xf32>
      %c0_24 = arith.constant 0 : index
      %c0_25 = arith.constant 0 : index
      %40 = vector.load %arg9[%c0_24, %c0_25] : memref<32x1xf32, #tpu.memory_space<vmem>>, vector<32x1xf32>
      tpu.vector_store %arg9[%c0_24, %c0_25], %39 {strides = array<i32>} : memref<32x1xf32, #tpu.memory_space<vmem>>, vector<32x1xf32>,
    } else {
    }
    %c0_i32_11 = arith.constant 0 : i32
    %19 = arith.cmpi eq, %arg0, %c0_i32_11 : i32
    %20 = arith.extui %19 : i1 to i32
    %c0_i32_12 = arith.constant 0 : i32
    %21 = arith.cmpi ne, %20, %c0_i32_12 : i32
    scf.if %21 {
      %c0_13 = arith.constant 0 : index
      %c0_14 = arith.constant 0 : index
      %22 = vector.load %arg9[%c0_13, %c0_14] : memref<32x1xf32, #tpu.memory_space<vmem>>, vector<32x1xf32>
      %cst_15 = arith.constant 0.001953125 : f32
      %23 = vector.broadcast %cst_15 : f32 to vector<32x1xf32>
      %24 = arith.mulf %22, %23 : vector<32x1xf32>
      %c0_16 = arith.constant 0 : index
      %c0_17 = arith.constant 0 : index
      %25 = vector.load %arg3[%c0_16, %c0_17] : memref<32x1xf32, #tpu.memory_space<vmem>>, vector<32x1xf32>
      %cst_18 = arith.constant 9.99999974E-6 : f32
      %26 = vector.broadcast %cst_18 : f32 to vector<32x1xf32>
      %27 = arith.addf %24, %26 : vector<32x1xf32>
      %28 = math.rsqrt %27 : vector<32x1xf32>
      %29 = arith.mulf %25, %28 : vector<32x1xf32>
      %c0_19 = arith.constant 0 : index
      %c0_20 = arith.constant 0 : index
      %30 = vector.load %arg6[%c0_19, %c0_20] : memref<32x1xf32, #tpu.memory_space<vmem>>, vector<32x1xf32>
      tpu.vector_store %arg6[%c0_19, %c0_20], %29 {strides = array<i32>} : memref<32x1xf32, #tpu.memory_space<vmem>>, vector<32x1xf32>,
      %c0_21 = arith.constant 0 : index
      %c0_22 = arith.constant 0 : index
      %31 = vector.load %arg4[%c0_21, %c0_22] : memref<32x1xf32, #tpu.memory_space<vmem>>, vector<32x1xf32>
      %c0_23 = arith.constant 0 : index
      %c0_24 = arith.constant 0 : index
      %32 = vector.load %arg8[%c0_23, %c0_24] : memref<32x1xf32, #tpu.memory_space<vmem>>, vector<32x1xf32>
      %33 = arith.mulf %32, %29 : vector<32x1xf32>
      %34 = arith.subf %31, %33 : vector<32x1xf32>
      %c0_25 = arith.constant 0 : index
      %c0_26 = arith.constant 0 : index
      %35 = vector.load %arg7[%c0_25, %c0_26] : memref<32x1xf32, #tpu.memory_space<vmem>>, vector<32x1xf32>
      tpu.vector_store %arg7[%c0_25, %c0_26], %34 {strides = array<i32>} : memref<32x1xf32, #tpu.memory_space<vmem>>, vector<32x1xf32>,
    } else {
    }
    return
  }
  func.func @transform_0(%arg0: i32) -> (i32, i32) {
    %c0_i32 = arith.constant 0 : i32
    %c0_i32_0 = arith.constant 0 : i32
    return %c0_i32, %arg0 : i32, i32
  }
  func.func @transform_1(%arg0: i32) -> (i32, i32) {
    %c0_i32 = arith.constant 0 : i32
    %c0_i32_0 = arith.constant 0 : i32
    %c0_i32_1 = arith.constant 0 : i32
    return %c0_i32, %c0_i32_0 : i32, i32
  }
  func.func @transform_2(%arg0: i32) -> (i32, i32) {
    %c0_i32 = arith.constant 0 : i32
    %c0_i32_0 = arith.constant 0 : i32
    %c0_i32_1 = arith.constant 0 : i32
    return %c0_i32, %c0_i32_0 : i32, i32
  }
  func.func @transform_3(%arg0: i32) -> (i32, i32) {
    %c0_i32 = arith.constant 0 : i32
    %c0_i32_0 = arith.constant 0 : i32
    %c0_i32_1 = arith.constant 0 : i32
    return %c0_i32, %c0_i32_0 : i32, i32
  }
  func.func @transform_4(%arg0: i32) -> (i32, i32) {
    %c0_i32 = arith.constant 0 : i32
    %c0_i32_0 = arith.constant 0 : i32
    return %c0_i32, %arg0 : i32, i32
  }
  func.func @transform_5(%arg0: i32) -> (i32, i32) {
    %c0_i32 = arith.constant 0 : i32
    %c0_i32_0 = arith.constant 0 : i32
    %c0_i32_1 = arith.constant 0 : i32
    return %c0_i32, %c0_i32_0 : i32, i32
  }
  func.func @transform_6(%arg0: i32) -> (i32, i32) {
    %c0_i32 = arith.constant 0 : i32
    %c0_i32_0 = arith.constant 0 : i32
    %c0_i32_1 = arith.constant 0 : i32
    return %c0_i32, %c0_i32_0 : i32, i32
  }
}

module attributes {stable_mosaic.version = 11 : i64} {
  func.func @kernel(%arg0: i32, %arg1: memref<64x128xf32, #tpu.memory_space<vmem>>, %arg2: memref<64x1xf32, #tpu.memory_space<vmem>>, %arg3: memref<64x1xf32, #tpu.memory_space<vmem>>, %arg4: memref<1xf32, #tpu.memory_space<smem>>, %arg5: memref<64x128xbf16, #tpu.memory_space<vmem>>) attributes {dimension_semantics = [#tpu.dimension_semantics<parallel>], iteration_bounds = array<i64: 1>, scalar_prefetch = 0 : i64, scratch_operands = 0 : i64, tpu.core_type = #tpu.core_type<tc>, window_params = [{transform_indices = @transform_0, window_bounds = array<i64: 64, 128>}, {pipeline_mode = #tpu.pipeline_mode<synchronous>, transform_indices = @transform_1, window_bounds = array<i64: 64, 1>}, {pipeline_mode = #tpu.pipeline_mode<synchronous>, transform_indices = @transform_2, window_bounds = array<i64: 64, 1>}, {transform_indices = @transform_3, window_bounds = array<i64: 1>}, {transform_indices = @transform_4, window_bounds = array<i64: 64, 128>}]} {
    %c0 = arith.constant 0 : index
    %c0_0 = arith.constant 0 : index
    %0 = vector.load %arg1[%c0, %c0_0] : memref<64x128xf32, #tpu.memory_space<vmem>>, vector<64x128xf32>
    %c0_1 = arith.constant 0 : index
    %c0_2 = arith.constant 0 : index
    %1 = vector.load %arg2[%c0_1, %c0_2] : memref<64x1xf32, #tpu.memory_space<vmem>>, vector<64x1xf32>
    %2 = vector.broadcast %1 : vector<64x1xf32> to vector<64x128xf32>
    %3 = arith.mulf %0, %2 : vector<64x128xf32>
    %c0_3 = arith.constant 0 : index
    %c0_4 = arith.constant 0 : index
    %4 = vector.load %arg3[%c0_3, %c0_4] : memref<64x1xf32, #tpu.memory_space<vmem>>, vector<64x1xf32>
    %5 = vector.broadcast %4 : vector<64x1xf32> to vector<64x128xf32>
    %6 = arith.addf %3, %5 : vector<64x128xf32>
    %c0_5 = arith.constant 0 : index
    %7 = memref.load %arg4[%c0_5] : memref<1xf32, #tpu.memory_space<smem>>
    %cst = arith.constant 0.000000e+00 : f32
    %8 = vector.broadcast %cst : f32 to vector<64x128xf32>
    %9 = arith.cmpf ogt, %6, %8 : vector<64x128xf32>
    %10 = vector.broadcast %7 : f32 to vector<64x128xf32>
    %11 = arith.mulf %10, %6 : vector<64x128xf32>
    %12 = arith.select %9, %6, %11 : vector<64x128xi1>, vector<64x128xf32>
    %13 = arith.truncf %12 : vector<64x128xf32> to vector<64x128xbf16>
    %c0_6 = arith.constant 0 : index
    %c0_7 = arith.constant 0 : index
    %14 = vector.load %arg5[%c0_6, %c0_7] : memref<64x128xbf16, #tpu.memory_space<vmem>>, vector<64x128xbf16>
    tpu.vector_store %arg5[%c0_6, %c0_7], %13 {strides = array<i32>} : memref<64x128xbf16, #tpu.memory_space<vmem>>, vector<64x128xbf16>,
    return
  }
  func.func @transform_0(%arg0: i32) -> (i32, i32) {
    %c0_i32 = arith.constant 0 : i32
    %c0_i32_0 = arith.constant 0 : i32
    return %c0_i32, %arg0 : i32, i32
  }
  func.func @transform_1(%arg0: i32) -> (i32, i32) {
    %c0_i32 = arith.constant 0 : i32
    %c0_i32_0 = arith.constant 0 : i32
    %c0_i32_1 = arith.constant 0 : i32
    return %c0_i32, %c0_i32_0 : i32, i32
  }
  func.func @transform_2(%arg0: i32) -> (i32, i32) {
    %c0_i32 = arith.constant 0 : i32
    %c0_i32_0 = arith.constant 0 : i32
    %c0_i32_1 = arith.constant 0 : i32
    return %c0_i32, %c0_i32_0 : i32, i32
  }
  func.func @transform_3(%arg0: i32) -> i32 {
    %c0_i32 = arith.constant 0 : i32
    %c0_i32_0 = arith.constant 0 : i32
    return %c0_i32 : i32
  }
  func.func @transform_4(%arg0: i32) -> (i32, i32) {
    %c0_i32 = arith.constant 0 : i32
    %c0_i32_0 = arith.constant 0 : i32
    return %c0_i32, %arg0 : i32, i32
  }
}

module attributes {stable_mosaic.version = 11 : i64} {
  func.func @kernel(%arg0: i32, %arg1: memref<288x128xbf16, #tpu.memory_space<vmem>>, %arg2: memref<64x288xbf16, #tpu.memory_space<vmem>>, %arg3: memref<64x1xf32, #tpu.memory_space<vmem>>, %arg4: memref<64x1xf32, #tpu.memory_space<vmem>>, %arg5: memref<64x128xf32, #tpu.memory_space<vmem>>, %arg6: memref<64x1xf32, #tpu.memory_space<vmem>>, %arg7: memref<64x1xf32, #tpu.memory_space<vmem>>, %arg8: memref<64x1xf32, #tpu.memory_space<vmem>>, %arg9: memref<64x1xf32, #tpu.memory_space<vmem>>) attributes {dimension_semantics = [#tpu.dimension_semantics<arbitrary>], iteration_bounds = array<i64: 1>, scalar_prefetch = 0 : i64, scratch_operands = 2 : i64, tpu.core_type = #tpu.core_type<tc>, window_params = [{transform_indices = @transform_0, window_bounds = array<i64: 288, 128>}, {pipeline_mode = #tpu.pipeline_mode<synchronous>, transform_indices = @transform_1, window_bounds = array<i64: 64, 288>}, {pipeline_mode = #tpu.pipeline_mode<synchronous>, transform_indices = @transform_2, window_bounds = array<i64: 64, 1>}, {pipeline_mode = #tpu.pipeline_mode<synchronous>, transform_indices = @transform_3, window_bounds = array<i64: 64, 1>}, {transform_indices = @transform_4, window_bounds = array<i64: 64, 128>}, {pipeline_mode = #tpu.pipeline_mode<synchronous>, transform_indices = @transform_5, window_bounds = array<i64: 64, 1>}, {pipeline_mode = #tpu.pipeline_mode<synchronous>, transform_indices = @transform_6, window_bounds = array<i64: 64, 1>}]} {
    %c0 = arith.constant 0 : index
    %c0_0 = arith.constant 0 : index
    %0 = vector.load %arg2[%c0, %c0_0] : memref<64x288xbf16, #tpu.memory_space<vmem>>, vector<64x288xbf16>
    %c0_1 = arith.constant 0 : index
    %c0_2 = arith.constant 0 : index
    %1 = vector.load %arg1[%c0_1, %c0_2] : memref<288x128xbf16, #tpu.memory_space<vmem>>, vector<288x128xbf16>
    %cst = arith.constant dense<0.000000e+00> : vector<64x128xf32>
    %2 = tpu.matmul %0, %1, %cst {dimension_numbers = #tpu.dot_dimension_numbers<[1], [0], [0], [1], [0, 0, 1, 1], [], []>} : vector<64x288xbf16>, vector<288x128xbf16>, vector<64x128xf32> -> vector<64x128xf32>
    %c0_3 = arith.constant 0 : index
    %c0_4 = arith.constant 0 : index
    %3 = vector.load %arg5[%c0_3, %c0_4] : memref<64x128xf32, #tpu.memory_space<vmem>>, vector<64x128xf32>
    tpu.vector_store %arg5[%c0_3, %c0_4], %2 {strides = array<i32>} : memref<64x128xf32, #tpu.memory_space<vmem>>, vector<64x128xf32>,
    %cst_5 = arith.constant dense<0.000000e+00> : vector<64xf32>
    %4 = vector.multi_reduction <add>, %2, %cst_5 [1] : vector<64x128xf32> to vector<64xf32>
    %5 = vector.shape_cast %4 : vector<64xf32> to vector<64x1xf32>
    %cst_6 = arith.constant 7.812500e-03 : f32
    %6 = vector.broadcast %cst_6 : f32 to vector<64x1xf32>
    %7 = arith.mulf %5, %6 : vector<64x1xf32>
    %8 = vector.broadcast %7 : vector<64x1xf32> to vector<64x128xf32>
    %9 = arith.subf %2, %8 : vector<64x128xf32>
    %10 = arith.mulf %9, %9 : vector<64x128xf32>
    %cst_7 = arith.constant dense<0.000000e+00> : vector<64xf32>
    %11 = vector.multi_reduction <add>, %10, %cst_7 [1] : vector<64x128xf32> to vector<64xf32>
    %12 = vector.shape_cast %11 : vector<64xf32> to vector<64x1xf32>
    %c0_i32 = arith.constant 0 : i32
    %13 = arith.cmpi eq, %arg0, %c0_i32 : i32
    %14 = arith.extui %13 : i1 to i32
    %c0_i32_8 = arith.constant 0 : i32
    %15 = arith.cmpi ne, %14, %c0_i32_8 : i32
    scf.if %15 {
      %c0_13 = arith.constant 0 : index
      %c0_14 = arith.constant 0 : index
      %22 = vector.load %arg8[%c0_13, %c0_14] : memref<64x1xf32, #tpu.memory_space<vmem>>, vector<64x1xf32>
      tpu.vector_store %arg8[%c0_13, %c0_14], %7 {strides = array<i32>} : memref<64x1xf32, #tpu.memory_space<vmem>>, vector<64x1xf32>,
      %c0_15 = arith.constant 0 : index
      %c0_16 = arith.constant 0 : index
      %23 = vector.load %arg9[%c0_15, %c0_16] : memref<64x1xf32, #tpu.memory_space<vmem>>, vector<64x1xf32>
      tpu.vector_store %arg9[%c0_15, %c0_16], %12 {strides = array<i32>} : memref<64x1xf32, #tpu.memory_space<vmem>>, vector<64x1xf32>,
    } else {
    }
    %c0_i32_9 = arith.constant 0 : i32
    %16 = arith.cmpi sgt, %arg0, %c0_i32_9 : i32
    %17 = arith.extui %16 : i1 to i32
    %c0_i32_10 = arith.constant 0 : i32
    %18 = arith.cmpi ne, %17, %c0_i32_10 : i32
    scf.if %18 {
      %22 = arith.sitofp %arg0 : i32 to f32
      %cst_13 = arith.constant 1.000000e+00 : f32
      %23 = arith.addf %22, %cst_13 : f32
      %cst_14 = arith.constant 1.000000e+00 : f32
      %24 = arith.divf %cst_14, %23 : f32
      %c0_15 = arith.constant 0 : index
      %c0_16 = arith.constant 0 : index
      %25 = vector.load %arg8[%c0_15, %c0_16] : memref<64x1xf32, #tpu.memory_space<vmem>>, vector<64x1xf32>
      %26 = arith.subf %7, %25 : vector<64x1xf32>
      %c0_17 = arith.constant 0 : index
      %c0_18 = arith.constant 0 : index
      %27 = vector.load %arg8[%c0_17, %c0_18] : memref<64x1xf32, #tpu.memory_space<vmem>>, vector<64x1xf32>
      %28 = vector.broadcast %24 : f32 to vector<64x1xf32>
      %29 = arith.mulf %26, %28 : vector<64x1xf32>
      %30 = arith.addf %27, %29 : vector<64x1xf32>
      %c0_19 = arith.constant 0 : index
      %c0_20 = arith.constant 0 : index
      %31 = vector.load %arg8[%c0_19, %c0_20] : memref<64x1xf32, #tpu.memory_space<vmem>>, vector<64x1xf32>
      tpu.vector_store %arg8[%c0_19, %c0_20], %30 {strides = array<i32>} : memref<64x1xf32, #tpu.memory_space<vmem>>, vector<64x1xf32>,
      %c0_21 = arith.constant 0 : index
      %c0_22 = arith.constant 0 : index
      %32 = vector.load %arg9[%c0_21, %c0_22] : memref<64x1xf32, #tpu.memory_space<vmem>>, vector<64x1xf32>
      %33 = arith.addf %32, %12 : vector<64x1xf32>
      %34 = arith.mulf %26, %26 : vector<64x1xf32>
      %cst_23 = arith.constant 1.280000e+02 : f32
      %35 = arith.mulf %cst_23, %22 : f32
      %36 = arith.mulf %35, %24 : f32
      %37 = vector.broadcast %36 : f32 to vector<64x1xf32>
      %38 = arith.mulf %34, %37 : vector<64x1xf32>
      %39 = arith.addf %33, %38 : vector<64x1xf32>
      %c0_24 = arith.constant 0 : index
      %c0_25 = arith.constant 0 : index
      %40 = vector.load %arg9[%c0_24, %c0_25] : memref<64x1xf32, #tpu.memory_space<vmem>>, vector<64x1xf32>
      tpu.vector_store %arg9[%c0_24, %c0_25], %39 {strides = array<i32>} : memref<64x1xf32, #tpu.memory_space<vmem>>, vector<64x1xf32>,
    } else {
    }
    %c0_i32_11 = arith.constant 0 : i32
    %19 = arith.cmpi eq, %arg0, %c0_i32_11 : i32
    %20 = arith.extui %19 : i1 to i32
    %c0_i32_12 = arith.constant 0 : i32
    %21 = arith.cmpi ne, %20, %c0_i32_12 : i32
    scf.if %21 {
      %c0_13 = arith.constant 0 : index
      %c0_14 = arith.constant 0 : index
      %22 = vector.load %arg9[%c0_13, %c0_14] : memref<64x1xf32, #tpu.memory_space<vmem>>, vector<64x1xf32>
      %cst_15 = arith.constant 7.812500e-03 : f32
      %23 = vector.broadcast %cst_15 : f32 to vector<64x1xf32>
      %24 = arith.mulf %22, %23 : vector<64x1xf32>
      %c0_16 = arith.constant 0 : index
      %c0_17 = arith.constant 0 : index
      %25 = vector.load %arg3[%c0_16, %c0_17] : memref<64x1xf32, #tpu.memory_space<vmem>>, vector<64x1xf32>
      %cst_18 = arith.constant 9.99999974E-6 : f32
      %26 = vector.broadcast %cst_18 : f32 to vector<64x1xf32>
      %27 = arith.addf %24, %26 : vector<64x1xf32>
      %28 = math.rsqrt %27 : vector<64x1xf32>
      %29 = arith.mulf %25, %28 : vector<64x1xf32>
      %c0_19 = arith.constant 0 : index
      %c0_20 = arith.constant 0 : index
      %30 = vector.load %arg6[%c0_19, %c0_20] : memref<64x1xf32, #tpu.memory_space<vmem>>, vector<64x1xf32>
      tpu.vector_store %arg6[%c0_19, %c0_20], %29 {strides = array<i32>} : memref<64x1xf32, #tpu.memory_space<vmem>>, vector<64x1xf32>,
      %c0_21 = arith.constant 0 : index
      %c0_22 = arith.constant 0 : index
      %31 = vector.load %arg4[%c0_21, %c0_22] : memref<64x1xf32, #tpu.memory_space<vmem>>, vector<64x1xf32>
      %c0_23 = arith.constant 0 : index
      %c0_24 = arith.constant 0 : index
      %32 = vector.load %arg8[%c0_23, %c0_24] : memref<64x1xf32, #tpu.memory_space<vmem>>, vector<64x1xf32>
      %33 = arith.mulf %32, %29 : vector<64x1xf32>
      %34 = arith.subf %31, %33 : vector<64x1xf32>
      %c0_25 = arith.constant 0 : index
      %c0_26 = arith.constant 0 : index
      %35 = vector.load %arg7[%c0_25, %c0_26] : memref<64x1xf32, #tpu.memory_space<vmem>>, vector<64x1xf32>
      tpu.vector_store %arg7[%c0_25, %c0_26], %34 {strides = array<i32>} : memref<64x1xf32, #tpu.memory_space<vmem>>, vector<64x1xf32>,
    } else {
    }
    return
  }
  func.func @transform_0(%arg0: i32) -> (i32, i32) {
    %c0_i32 = arith.constant 0 : i32
    %c0_i32_0 = arith.constant 0 : i32
    return %c0_i32, %arg0 : i32, i32
  }
  func.func @transform_1(%arg0: i32) -> (i32, i32) {
    %c0_i32 = arith.constant 0 : i32
    %c0_i32_0 = arith.constant 0 : i32
    %c0_i32_1 = arith.constant 0 : i32
    return %c0_i32, %c0_i32_0 : i32, i32
  }
  func.func @transform_2(%arg0: i32) -> (i32, i32) {
    %c0_i32 = arith.constant 0 : i32
    %c0_i32_0 = arith.constant 0 : i32
    %c0_i32_1 = arith.constant 0 : i32
    return %c0_i32, %c0_i32_0 : i32, i32
  }
  func.func @transform_3(%arg0: i32) -> (i32, i32) {
    %c0_i32 = arith.constant 0 : i32
    %c0_i32_0 = arith.constant 0 : i32
    %c0_i32_1 = arith.constant 0 : i32
    return %c0_i32, %c0_i32_0 : i32, i32
  }
  func.func @transform_4(%arg0: i32) -> (i32, i32) {
    %c0_i32 = arith.constant 0 : i32
    %c0_i32_0 = arith.constant 0 : i32
    return %c0_i32, %arg0 : i32, i32
  }
  func.func @transform_5(%arg0: i32) -> (i32, i32) {
    %c0_i32 = arith.constant 0 : i32
    %c0_i32_0 = arith.constant 0 : i32
    %c0_i32_1 = arith.constant 0 : i32
    return %c0_i32, %c0_i32_0 : i32, i32
  }
  func.func @transform_6(%arg0: i32) -> (i32, i32) {
    %c0_i32 = arith.constant 0 : i32
    %c0_i32_0 = arith.constant 0 : i32
    %c0_i32_1 = arith.constant 0 : i32
    return %c0_i32, %c0_i32_0 : i32, i32
  }
}

module attributes {stable_mosaic.version = 11 : i64} {
  func.func @kernel(%arg0: i32, %arg1: memref<64x128xf32, #tpu.memory_space<vmem>>, %arg2: memref<64x1xf32, #tpu.memory_space<vmem>>, %arg3: memref<64x1xf32, #tpu.memory_space<vmem>>, %arg4: memref<64x128xbf16, #tpu.memory_space<vmem>>, %arg5: memref<64x128xbf16, #tpu.memory_space<vmem>>) attributes {dimension_semantics = [#tpu.dimension_semantics<parallel>], iteration_bounds = array<i64: 1>, scalar_prefetch = 0 : i64, scratch_operands = 0 : i64, tpu.core_type = #tpu.core_type<tc>, window_params = [{transform_indices = @transform_0, window_bounds = array<i64: 64, 128>}, {pipeline_mode = #tpu.pipeline_mode<synchronous>, transform_indices = @transform_1, window_bounds = array<i64: 64, 1>}, {pipeline_mode = #tpu.pipeline_mode<synchronous>, transform_indices = @transform_2, window_bounds = array<i64: 64, 1>}, {transform_indices = @transform_3, window_bounds = array<i64: 64, 128>}, {transform_indices = @transform_4, window_bounds = array<i64: 64, 128>}]} {
    %c0 = arith.constant 0 : index
    %c0_0 = arith.constant 0 : index
    %0 = vector.load %arg1[%c0, %c0_0] : memref<64x128xf32, #tpu.memory_space<vmem>>, vector<64x128xf32>
    %c0_1 = arith.constant 0 : index
    %c0_2 = arith.constant 0 : index
    %1 = vector.load %arg2[%c0_1, %c0_2] : memref<64x1xf32, #tpu.memory_space<vmem>>, vector<64x1xf32>
    %2 = vector.broadcast %1 : vector<64x1xf32> to vector<64x128xf32>
    %3 = arith.mulf %0, %2 : vector<64x128xf32>
    %c0_3 = arith.constant 0 : index
    %c0_4 = arith.constant 0 : index
    %4 = vector.load %arg3[%c0_3, %c0_4] : memref<64x1xf32, #tpu.memory_space<vmem>>, vector<64x1xf32>
    %5 = vector.broadcast %4 : vector<64x1xf32> to vector<64x128xf32>
    %6 = arith.addf %3, %5 : vector<64x128xf32>
    %c0_5 = arith.constant 0 : index
    %c0_6 = arith.constant 0 : index
    %7 = vector.load %arg4[%c0_5, %c0_6] : memref<64x128xbf16, #tpu.memory_space<vmem>>, vector<64x128xbf16>
    %8 = arith.extf %7 : vector<64x128xbf16> to vector<64x128xf32>
    %9 = arith.addf %6, %8 : vector<64x128xf32>
    %10 = arith.truncf %9 : vector<64x128xf32> to vector<64x128xbf16>
    %c0_7 = arith.constant 0 : index
    %c0_8 = arith.constant 0 : index
    %11 = vector.load %arg5[%c0_7, %c0_8] : memref<64x128xbf16, #tpu.memory_space<vmem>>, vector<64x128xbf16>
    tpu.vector_store %arg5[%c0_7, %c0_8], %10 {strides = array<i32>} : memref<64x128xbf16, #tpu.memory_space<vmem>>, vector<64x128xbf16>,
    return
  }
  func.func @transform_0(%arg0: i32) -> (i32, i32) {
    %c0_i32 = arith.constant 0 : i32
    %c0_i32_0 = arith.constant 0 : i32
    return %c0_i32, %arg0 : i32, i32
  }
  func.func @transform_1(%arg0: i32) -> (i32, i32) {
    %c0_i32 = arith.constant 0 : i32
    %c0_i32_0 = arith.constant 0 : i32
    %c0_i32_1 = arith.constant 0 : i32
    return %c0_i32, %c0_i32_0 : i32, i32
  }
  func.func @transform_2(%arg0: i32) -> (i32, i32) {
    %c0_i32 = arith.constant 0 : i32
    %c0_i32_0 = arith.constant 0 : i32
    %c0_i32_1 = arith.constant 0 : i32
    return %c0_i32, %c0_i32_0 : i32, i32
  }
  func.func @transform_3(%arg0: i32) -> (i32, i32) {
    %c0_i32 = arith.constant 0 : i32
    %c0_i32_0 = arith.constant 0 : i32
    return %c0_i32, %arg0 : i32, i32
  }
  func.func @transform_4(%arg0: i32) -> (i32, i32) {
    %c0_i32 = arith.constant 0 : i32
    %c0_i32_0 = arith.constant 0 : i32
    return %c0_i32, %arg0 : i32, i32
  }
}

module attributes {stable_mosaic.version = 11 : i64} {
  func.func @kernel(%arg0: i32, %arg1: memref<576x128xbf16, #tpu.memory_space<vmem>>, %arg2: memref<64x576xbf16, #tpu.memory_space<vmem>>, %arg3: memref<64x1xf32, #tpu.memory_space<vmem>>, %arg4: memref<64x1xf32, #tpu.memory_space<vmem>>, %arg5: memref<64x128xf32, #tpu.memory_space<vmem>>, %arg6: memref<64x1xf32, #tpu.memory_space<vmem>>, %arg7: memref<64x1xf32, #tpu.memory_space<vmem>>, %arg8: memref<64x1xf32, #tpu.memory_space<vmem>>, %arg9: memref<64x1xf32, #tpu.memory_space<vmem>>) attributes {dimension_semantics = [#tpu.dimension_semantics<arbitrary>], iteration_bounds = array<i64: 1>, scalar_prefetch = 0 : i64, scratch_operands = 2 : i64, tpu.core_type = #tpu.core_type<tc>, window_params = [{transform_indices = @transform_0, window_bounds = array<i64: 576, 128>}, {pipeline_mode = #tpu.pipeline_mode<synchronous>, transform_indices = @transform_1, window_bounds = array<i64: 64, 576>}, {pipeline_mode = #tpu.pipeline_mode<synchronous>, transform_indices = @transform_2, window_bounds = array<i64: 64, 1>}, {pipeline_mode = #tpu.pipeline_mode<synchronous>, transform_indices = @transform_3, window_bounds = array<i64: 64, 1>}, {transform_indices = @transform_4, window_bounds = array<i64: 64, 128>}, {pipeline_mode = #tpu.pipeline_mode<synchronous>, transform_indices = @transform_5, window_bounds = array<i64: 64, 1>}, {pipeline_mode = #tpu.pipeline_mode<synchronous>, transform_indices = @transform_6, window_bounds = array<i64: 64, 1>}]} {
    %c0 = arith.constant 0 : index
    %c0_0 = arith.constant 0 : index
    %0 = vector.load %arg2[%c0, %c0_0] : memref<64x576xbf16, #tpu.memory_space<vmem>>, vector<64x576xbf16>
    %c0_1 = arith.constant 0 : index
    %c0_2 = arith.constant 0 : index
    %1 = vector.load %arg1[%c0_1, %c0_2] : memref<576x128xbf16, #tpu.memory_space<vmem>>, vector<576x128xbf16>
    %cst = arith.constant dense<0.000000e+00> : vector<64x128xf32>
    %2 = tpu.matmul %0, %1, %cst {dimension_numbers = #tpu.dot_dimension_numbers<[1], [0], [0], [1], [0, 0, 1, 1], [], []>} : vector<64x576xbf16>, vector<576x128xbf16>, vector<64x128xf32> -> vector<64x128xf32>
    %c0_3 = arith.constant 0 : index
    %c0_4 = arith.constant 0 : index
    %3 = vector.load %arg5[%c0_3, %c0_4] : memref<64x128xf32, #tpu.memory_space<vmem>>, vector<64x128xf32>
    tpu.vector_store %arg5[%c0_3, %c0_4], %2 {strides = array<i32>} : memref<64x128xf32, #tpu.memory_space<vmem>>, vector<64x128xf32>,
    %cst_5 = arith.constant dense<0.000000e+00> : vector<64xf32>
    %4 = vector.multi_reduction <add>, %2, %cst_5 [1] : vector<64x128xf32> to vector<64xf32>
    %5 = vector.shape_cast %4 : vector<64xf32> to vector<64x1xf32>
    %cst_6 = arith.constant 7.812500e-03 : f32
    %6 = vector.broadcast %cst_6 : f32 to vector<64x1xf32>
    %7 = arith.mulf %5, %6 : vector<64x1xf32>
    %8 = vector.broadcast %7 : vector<64x1xf32> to vector<64x128xf32>
    %9 = arith.subf %2, %8 : vector<64x128xf32>
    %10 = arith.mulf %9, %9 : vector<64x128xf32>
    %cst_7 = arith.constant dense<0.000000e+00> : vector<64xf32>
    %11 = vector.multi_reduction <add>, %10, %cst_7 [1] : vector<64x128xf32> to vector<64xf32>
    %12 = vector.shape_cast %11 : vector<64xf32> to vector<64x1xf32>
    %c0_i32 = arith.constant 0 : i32
    %13 = arith.cmpi eq, %arg0, %c0_i32 : i32
    %14 = arith.extui %13 : i1 to i32
    %c0_i32_8 = arith.constant 0 : i32
    %15 = arith.cmpi ne, %14, %c0_i32_8 : i32
    scf.if %15 {
      %c0_13 = arith.constant 0 : index
      %c0_14 = arith.constant 0 : index
      %22 = vector.load %arg8[%c0_13, %c0_14] : memref<64x1xf32, #tpu.memory_space<vmem>>, vector<64x1xf32>
      tpu.vector_store %arg8[%c0_13, %c0_14], %7 {strides = array<i32>} : memref<64x1xf32, #tpu.memory_space<vmem>>, vector<64x1xf32>,
      %c0_15 = arith.constant 0 : index
      %c0_16 = arith.constant 0 : index
      %23 = vector.load %arg9[%c0_15, %c0_16] : memref<64x1xf32, #tpu.memory_space<vmem>>, vector<64x1xf32>
      tpu.vector_store %arg9[%c0_15, %c0_16], %12 {strides = array<i32>} : memref<64x1xf32, #tpu.memory_space<vmem>>, vector<64x1xf32>,
    } else {
    }
    %c0_i32_9 = arith.constant 0 : i32
    %16 = arith.cmpi sgt, %arg0, %c0_i32_9 : i32
    %17 = arith.extui %16 : i1 to i32
    %c0_i32_10 = arith.constant 0 : i32
    %18 = arith.cmpi ne, %17, %c0_i32_10 : i32
    scf.if %18 {
      %22 = arith.sitofp %arg0 : i32 to f32
      %cst_13 = arith.constant 1.000000e+00 : f32
      %23 = arith.addf %22, %cst_13 : f32
      %cst_14 = arith.constant 1.000000e+00 : f32
      %24 = arith.divf %cst_14, %23 : f32
      %c0_15 = arith.constant 0 : index
      %c0_16 = arith.constant 0 : index
      %25 = vector.load %arg8[%c0_15, %c0_16] : memref<64x1xf32, #tpu.memory_space<vmem>>, vector<64x1xf32>
      %26 = arith.subf %7, %25 : vector<64x1xf32>
      %c0_17 = arith.constant 0 : index
      %c0_18 = arith.constant 0 : index
      %27 = vector.load %arg8[%c0_17, %c0_18] : memref<64x1xf32, #tpu.memory_space<vmem>>, vector<64x1xf32>
      %28 = vector.broadcast %24 : f32 to vector<64x1xf32>
      %29 = arith.mulf %26, %28 : vector<64x1xf32>
      %30 = arith.addf %27, %29 : vector<64x1xf32>
      %c0_19 = arith.constant 0 : index
      %c0_20 = arith.constant 0 : index
      %31 = vector.load %arg8[%c0_19, %c0_20] : memref<64x1xf32, #tpu.memory_space<vmem>>, vector<64x1xf32>
      tpu.vector_store %arg8[%c0_19, %c0_20], %30 {strides = array<i32>} : memref<64x1xf32, #tpu.memory_space<vmem>>, vector<64x1xf32>,
      %c0_21 = arith.constant 0 : index
      %c0_22 = arith.constant 0 : index
      %32 = vector.load %arg9[%c0_21, %c0_22] : memref<64x1xf32, #tpu.memory_space<vmem>>, vector<64x1xf32>
      %33 = arith.addf %32, %12 : vector<64x1xf32>
      %34 = arith.mulf %26, %26 : vector<64x1xf32>
      %cst_23 = arith.constant 1.280000e+02 : f32
      %35 = arith.mulf %cst_23, %22 : f32
      %36 = arith.mulf %35, %24 : f32
      %37 = vector.broadcast %36 : f32 to vector<64x1xf32>
      %38 = arith.mulf %34, %37 : vector<64x1xf32>
      %39 = arith.addf %33, %38 : vector<64x1xf32>
      %c0_24 = arith.constant 0 : index
      %c0_25 = arith.constant 0 : index
      %40 = vector.load %arg9[%c0_24, %c0_25] : memref<64x1xf32, #tpu.memory_space<vmem>>, vector<64x1xf32>
      tpu.vector_store %arg9[%c0_24, %c0_25], %39 {strides = array<i32>} : memref<64x1xf32, #tpu.memory_space<vmem>>, vector<64x1xf32>,
    } else {
    }
    %c0_i32_11 = arith.constant 0 : i32
    %19 = arith.cmpi eq, %arg0, %c0_i32_11 : i32
    %20 = arith.extui %19 : i1 to i32
    %c0_i32_12 = arith.constant 0 : i32
    %21 = arith.cmpi ne, %20, %c0_i32_12 : i32
    scf.if %21 {
      %c0_13 = arith.constant 0 : index
      %c0_14 = arith.constant 0 : index
      %22 = vector.load %arg9[%c0_13, %c0_14] : memref<64x1xf32, #tpu.memory_space<vmem>>, vector<64x1xf32>
      %cst_15 = arith.constant 7.812500e-03 : f32
      %23 = vector.broadcast %cst_15 : f32 to vector<64x1xf32>
      %24 = arith.mulf %22, %23 : vector<64x1xf32>
      %c0_16 = arith.constant 0 : index
      %c0_17 = arith.constant 0 : index
      %25 = vector.load %arg3[%c0_16, %c0_17] : memref<64x1xf32, #tpu.memory_space<vmem>>, vector<64x1xf32>
      %cst_18 = arith.constant 9.99999974E-6 : f32
      %26 = vector.broadcast %cst_18 : f32 to vector<64x1xf32>
      %27 = arith.addf %24, %26 : vector<64x1xf32>
      %28 = math.rsqrt %27 : vector<64x1xf32>
      %29 = arith.mulf %25, %28 : vector<64x1xf32>
      %c0_19 = arith.constant 0 : index
      %c0_20 = arith.constant 0 : index
      %30 = vector.load %arg6[%c0_19, %c0_20] : memref<64x1xf32, #tpu.memory_space<vmem>>, vector<64x1xf32>
      tpu.vector_store %arg6[%c0_19, %c0_20], %29 {strides = array<i32>} : memref<64x1xf32, #tpu.memory_space<vmem>>, vector<64x1xf32>,
      %c0_21 = arith.constant 0 : index
      %c0_22 = arith.constant 0 : index
      %31 = vector.load %arg4[%c0_21, %c0_22] : memref<64x1xf32, #tpu.memory_space<vmem>>, vector<64x1xf32>
      %c0_23 = arith.constant 0 : index
      %c0_24 = arith.constant 0 : index
      %32 = vector.load %arg8[%c0_23, %c0_24] : memref<64x1xf32, #tpu.memory_space<vmem>>, vector<64x1xf32>
      %33 = arith.mulf %32, %29 : vector<64x1xf32>
      %34 = arith.subf %31, %33 : vector<64x1xf32>
      %c0_25 = arith.constant 0 : index
      %c0_26 = arith.constant 0 : index
      %35 = vector.load %arg7[%c0_25, %c0_26] : memref<64x1xf32, #tpu.memory_space<vmem>>, vector<64x1xf32>
      tpu.vector_store %arg7[%c0_25, %c0_26], %34 {strides = array<i32>} : memref<64x1xf32, #tpu.memory_space<vmem>>, vector<64x1xf32>,
    } else {
    }
    return
  }
  func.func @transform_0(%arg0: i32) -> (i32, i32) {
    %c0_i32 = arith.constant 0 : i32
    %c0_i32_0 = arith.constant 0 : i32
    return %c0_i32, %arg0 : i32, i32
  }
  func.func @transform_1(%arg0: i32) -> (i32, i32) {
    %c0_i32 = arith.constant 0 : i32
    %c0_i32_0 = arith.constant 0 : i32
    %c0_i32_1 = arith.constant 0 : i32
    return %c0_i32, %c0_i32_0 : i32, i32
  }
  func.func @transform_2(%arg0: i32) -> (i32, i32) {
    %c0_i32 = arith.constant 0 : i32
    %c0_i32_0 = arith.constant 0 : i32
    %c0_i32_1 = arith.constant 0 : i32
    return %c0_i32, %c0_i32_0 : i32, i32
  }
  func.func @transform_3(%arg0: i32) -> (i32, i32) {
    %c0_i32 = arith.constant 0 : i32
    %c0_i32_0 = arith.constant 0 : i32
    %c0_i32_1 = arith.constant 0 : i32
    return %c0_i32, %c0_i32_0 : i32, i32
  }
  func.func @transform_4(%arg0: i32) -> (i32, i32) {
    %c0_i32 = arith.constant 0 : i32
    %c0_i32_0 = arith.constant 0 : i32
    return %c0_i32, %arg0 : i32, i32
  }
  func.func @transform_5(%arg0: i32) -> (i32, i32) {
    %c0_i32 = arith.constant 0 : i32
    %c0_i32_0 = arith.constant 0 : i32
    %c0_i32_1 = arith.constant 0 : i32
    return %c0_i32, %c0_i32_0 : i32, i32
  }
  func.func @transform_6(%arg0: i32) -> (i32, i32) {
    %c0_i32 = arith.constant 0 : i32
    %c0_i32_0 = arith.constant 0 : i32
    %c0_i32_1 = arith.constant 0 : i32
    return %c0_i32, %c0_i32_0 : i32, i32
  }
}

module attributes {stable_mosaic.version = 11 : i64} {
  func.func @kernel(%arg0: i32, %arg1: memref<576x128xbf16, #tpu.memory_space<vmem>>, %arg2: memref<128x576xbf16, #tpu.memory_space<vmem>>, %arg3: memref<128x128xf32, #tpu.memory_space<vmem>>) attributes {dimension_semantics = [#tpu.dimension_semantics<parallel>], iteration_bounds = array<i64: 1>, scalar_prefetch = 0 : i64, scratch_operands = 0 : i64, tpu.core_type = #tpu.core_type<tc>, window_params = [{transform_indices = @transform_0, window_bounds = array<i64: 576, 128>}, {pipeline_mode = #tpu.pipeline_mode<synchronous>, transform_indices = @transform_1, window_bounds = array<i64: 128, 576>}, {transform_indices = @transform_2, window_bounds = array<i64: 128, 128>}]} {
    %c0 = arith.constant 0 : index
    %c0_0 = arith.constant 0 : index
    %0 = vector.load %arg2[%c0, %c0_0] : memref<128x576xbf16, #tpu.memory_space<vmem>>, vector<128x576xbf16>
    %c0_1 = arith.constant 0 : index
    %c0_2 = arith.constant 0 : index
    %1 = vector.load %arg1[%c0_1, %c0_2] : memref<576x128xbf16, #tpu.memory_space<vmem>>, vector<576x128xbf16>
    %cst = arith.constant dense<0.000000e+00> : vector<128x128xf32>
    %2 = tpu.matmul %0, %1, %cst {dimension_numbers = #tpu.dot_dimension_numbers<[1], [0], [0], [1], [0, 0, 1, 1], [], []>} : vector<128x576xbf16>, vector<576x128xbf16>, vector<128x128xf32> -> vector<128x128xf32>
    %3 = vector.extract_strided_slice %2 {offsets = [0, 0], sizes = [64, 128], strides = [1, 1]} : vector<128x128xf32> to vector<64x128xf32>
    %4 = vector.extract_strided_slice %2 {offsets = [64, 0], sizes = [64, 128], strides = [1, 1]} : vector<128x128xf32> to vector<64x128xf32>
    %cst_3 = arith.constant 0.000000e+00 : f32
    %5 = vector.broadcast %cst_3 : f32 to vector<64x128xf32>
    %6 = arith.maximumf %4, %5 : vector<64x128xf32>
    %7 = math.absf %4 : vector<64x128xf32>
    %cst_4 = arith.constant 0.000000e+00 : f32
    %8 = vector.broadcast %cst_4 : f32 to vector<64x128xf32>
    %9 = arith.subf %8, %7 : vector<64x128xf32>
    %10 = math.exp %9 : vector<64x128xf32>
    %11 = math.log1p %10 : vector<64x128xf32>
    %12 = arith.addf %6, %11 : vector<64x128xf32>
    %c0_5 = arith.constant 0 : index
    %c0_6 = arith.constant 0 : index
    %13 = vector.load %arg3[%c0_5, %c0_6] : memref<128x128xf32, #tpu.memory_space<vmem>>, vector<64x128xf32>
    tpu.vector_store %arg3[%c0_5, %c0_6], %3 {strides = array<i32>} : memref<128x128xf32, #tpu.memory_space<vmem>>, vector<64x128xf32>,
    %c64 = arith.constant 64 : index
    %c0_7 = arith.constant 0 : index
    %14 = vector.load %arg3[%c64, %c0_7] : memref<128x128xf32, #tpu.memory_space<vmem>>, vector<64x128xf32>
    tpu.vector_store %arg3[%c64, %c0_7], %12 {strides = array<i32>} : memref<128x128xf32, #tpu.memory_space<vmem>>, vector<64x128xf32>,
    return
  }
  func.func @transform_0(%arg0: i32) -> (i32, i32) {
    %c0_i32 = arith.constant 0 : i32
    %c0_i32_0 = arith.constant 0 : i32
    return %c0_i32, %arg0 : i32, i32
  }
  func.func @transform_1(%arg0: i32) -> (i32, i32) {
    %c0_i32 = arith.constant 0 : i32
    %c0_i32_0 = arith.constant 0 : i32
    %c0_i32_1 = arith.constant 0 : i32
    return %c0_i32, %c0_i32_0 : i32, i32
  }
  func.func @transform_2(%arg0: i32) -> (i32, i32) {
    %c0_i32 = arith.constant 0 : i32
    %c0_i32_0 = arith.constant 0 : i32
    return %c0_i32, %arg0 : i32, i32
  }
}

</mosaic_0001>

<bundles_post_ra>
// kernel: encoder_forward.16
= control target key start
LH: loop header
LB: loop body
LE: loop exit
PB: predicated region body
PF: predicated region fallthrough
CT: control target
= control target key end

     0   :  { %s744_s0 = inlined_call_operand.vmem [shape: f32[16,2048], index: 0, kind: input, shape index: {}]   ;;  %s745_s1 = inlined_call_operand.vmem [shape: f32[16,1], index: 1, kind: input, shape index: {}]   ;;  %s746_s2 = inlined_call_operand.vmem [shape: f32[16,1], index: 2, kind: input, shape index: {}]   ;;  %s747_s3 = inlined_call_operand.<no memory space> [shape: f32[1], index: 3, kind: input, shape index: {}]   ;;  %s748_s4 = inlined_call_operand.vmem [shape: bf16[16,2048], index: 4, kind: output, shape index: {}]  }
   0x1   :  { %9 = sst [smem:[#allocation2]] %s747_s3 }
   0x2   :  { %s577_s17 = smov 0   ;;  %s579_s18 = smov 0  }
   0x3   :  { %s581_s19 = smov 0  }
   0x4 LB: > { %s480_s3 = sadd.s32 4294967295, %s546_s19   ;;  %s594_s20 = sadd.s32 1, %s546_s19   ;;  %s546_s19 = sphi %s581_s19, %s752_s19   ;;  %s542_s18 = sphi %s579_s18, %s751_s18   ;;  %s538_s17 = sphi %s577_s17, %s750_s17  }
   0x5   : > { %s19_s21 = ssub.s32 %s546_s19, %s594_s20  ;;  %s22_s22 = sadd.s32 1, %s542_s18 }
   0x6   : > { %p20_p0 = scmp.eq.s32.totalorder %s19_s21, 0  ;;  %p29_p1 = scmp.ne.s32.totalorder %s542_s18, %s538_s17 }
   0x7   : > { %p30_p2 = scmp.eq.s32.totalorder %s546_s19, 0  ;;  %p122_p3 = scmp.eq.s32.totalorder %s480_s3, 1 }
   0x8   : > { %s605_s23 = scalar_select %p20_p0, %s542_s18, %s22_s22  }
   0x9   : > { %p31_p4 = por %p30_p2, %p29_p1  ;;  %p607_p5 = por %p122_p3, %p29_p1 }
   0xa   : > { %p483_p6 = scmp.ge.s32.totalorder %s546_s19, 2 }
   0xc   : > { %153 = sbr.rel (%p483_p6) target bundleno = 37 (0x25), region = 28 }
  0x11   : > { %156 = sbr.rel (!%p31_p4) target bundleno = 37 (0x25), region = 32  ;;  %s158_s25 = sand.u32 (%p31_p4), 1, %s542_s18  }
  0x12   : > { %s495_s26 = sshll.u32 (%p31_p4), %s546_s19, 6  ;;  %s484_s27 = sshll.u32 (%p31_p4), %s158_s25, 7 }
  0x13   : > { %s617_s30 = scalar_lea.vmem (%p31_p4), %s744_s0, %s495_s26  ;;  %s160_s5 = scalar_lea.vmem (%p31_p4), [#allocation3], %s484_s27 }
  0x14   : > { %v176_v0 = vld [vmem:[%s617_s30] sm:$0xff] (%p31_p4)  ;;  %v178_v1 = vld [vmem:[%s617_s30 + $0x8] sm:$0xff] (%p31_p4)  ;;  %v180_v2 = vld [vmem:[%s617_s30 + $0x10] sm:$0xff] (%p31_p4) }
  0x15   : > { %177 = vst [vmem:[%s160_s5] sm:$0xff] (%p31_p4), %v176_v0  ;;  %v182_v3 = vld [vmem:[%s617_s30 + $0x18] sm:$0xff] (%p31_p4)  ;;  %v184_v4 = vld [vmem:[%s617_s30 + $0x20] sm:$0xff] (%p31_p4)  ;;  %v186_v5 = vld [vmem:[%s617_s30 + $0x28] sm:$0xff] (%p31_p4) }
  0x16   : > { %179 = vst [vmem:[%s160_s5 + $0x8] sm:$0xff] %v178_v1  ;;  %v188_v6 = vld [vmem:[%s617_s30 + $0x30] sm:$0xff]  ;;  %v190_v7 = vld [vmem:[%s617_s30 + $0x38] sm:$0xff]  ;;  %v192_v8 = vld [vmem:[%s617_s30 + $0x80] sm:$0xff] }
  0x17   : > { %181 = vst [vmem:[%s160_s5 + $0x10] sm:$0xff] %v180_v2  ;;  %v194_v9 = vld [vmem:[%s617_s30 + $0x88] sm:$0xff]  ;;  %v196_v10 = vld [vmem:[%s617_s30 + $0x90] sm:$0xff]  ;;  %v198_v11 = vld [vmem:[%s617_s30 + $0x98] sm:$0xff] }
  0x18   : > { %183 = vst [vmem:[%s160_s5 + $0x18] sm:$0xff] %v182_v3  ;;  %v200_v12 = vld [vmem:[%s617_s30 + $0xa0] sm:$0xff]  ;;  %v202_v13 = vld [vmem:[%s617_s30 + $0xa8] sm:$0xff]  ;;  %v204_v14 = vld [vmem:[%s617_s30 + $0xb0] sm:$0xff] }
  0x19   : > { %185 = vst [vmem:[%s160_s5 + $0x20] sm:$0xff] %v184_v4  ;;  %v206_v15 = vld [vmem:[%s617_s30 + $0xb8] sm:$0xff] }
  0x1a   : > { %187 = vst [vmem:[%s160_s5 + $0x28] sm:$0xff] %v186_v5 }
  0x1b   : > { %189 = vst [vmem:[%s160_s5 + $0x30] sm:$0xff] %v188_v6 }
  0x1c   : > { %191 = vst [vmem:[%s160_s5 + $0x38] sm:$0xff] %v190_v7 }
  0x1d   : > { %193 = vst [vmem:[%s160_s5 + $0x40] sm:$0xff] %v192_v8 }
  0x1e   : > { %195 = vst [vmem:[%s160_s5 + $0x48] sm:$0xff] %v194_v9 }
  0x1f   : > { %197 = vst [vmem:[%s160_s5 + $0x50] sm:$0xff] %v196_v10 }
  0x20   : > { %199 = vst [vmem:[%s160_s5 + $0x58] sm:$0xff] %v198_v11 }
  0x21   : > { %201 = vst [vmem:[%s160_s5 + $0x60] sm:$0xff] %v200_v12 }
  0x22   : > { %203 = vst [vmem:[%s160_s5 + $0x68] sm:$0xff] %v202_v13 }
  0x23   : > { %205 = vst [vmem:[%s160_s5 + $0x70] sm:$0xff] %v204_v14 }
  0x24   : > { %207 = vst [vmem:[%s160_s5 + $0x78] sm:$0xff] %v206_v15 }
  0x25 PF: > { %p487_p7 = scmp.ge.s32.totalorder %s546_s19, 1  ;;  %p212_p8 = scmp.lt.s32.totalorder %s546_s19, 3 }
  0x27   : > { %p213_p9 = pnand %p487_p7, %p212_p8 }
  0x28   : > { %s219_s14 = sand.u32 (!%p213_p9), 1, %s538_s17   ;;  %s317_s16 = sld [smem:[#allocation2]] (!%p213_p9) }
  0x29   : > { %216 = sbr.rel (%p213_p9) target bundleno = 198 (0xc6), region = 55  ;;  %s488_s15 = sshll.u32 (!%p213_p9), %s219_s14, 7 }
  0x2a   : > { %s652_s21 = scalar_lea.vmem (!%p213_p9), [#allocation3], %s488_s15  ;;  %s666_s22 = sshll.u32 (!%p213_p9), %s219_s14, 6 }
  0x2b   : > { %s693_s17 = scalar_lea.vmem (!%p213_p9), [#allocation4], %s666_s22 }
  0x2e   : > { %v289_v16 = vld [vmem:[%s746_s2] sm:$0xff]  ;;  %v548_v18 = vmov 0   ;;  %v290_v19 = vld [vmem:[%s746_s2 + $0x8] sm:$0xff]  ;;  %v247_v23 = vld [vmem:[%s652_s21 + $0x10] sm:$0xff]  ;;  %v662_v29 = vstv %s317_s16  ;;  %s496_s25 = sshll.u32 (%p607_p5), %s480_s3, 5 }
  0x2f   : > { %v261_v17 = vld [vmem:[%s745_s1] sm:$0xff]  ;;  %523 = vset.pattern.permute.xlu1 %v548_v18  ;;  %522 = vset.pattern.permute.xlu0 %v548_v18  ;;  %v262_v20 = vld [vmem:[%s745_s1 + $0x8] sm:$0xff]  ;;  %v248_v24 = vld [vmem:[%s652_s21 + $0x18] sm:$0xff]  ;;  %s392_s28 = scalar_lea.vmem (%p607_p5), %s748_s4, %s496_s25 }
  0x30   : > { %293 = vperm.xlu1 %523, %v289_v16   ;;  %265 = vperm.xlu0 %522, %v261_v17   ;;  %v245_v21 = vld [vmem:[%s652_s21] sm:$0xff]  ;;  %v246_v22 = vld [vmem:[%s652_s21 + $0x8] sm:$0xff]  ;;  %v251_v27 = vld [vmem:[%s652_s21 + $0x30] sm:$0xff] }
  0x31   : > { %v249_v25 = vld [vmem:[%s652_s21 + $0x20] sm:$0xff]  ;;  %v250_v26 = vld [vmem:[%s652_s21 + $0x28] sm:$0xff]  ;;  %v252_v28 = vld [vmem:[%s652_s21 + $0x38] sm:$0xff] }
  0x32   : > { %v253_v56 = vld [vmem:[%s652_s21 + $0x40] sm:$0xff]  ;;  %v254_v57 = vld [vmem:[%s652_s21 + $0x48] sm:$0xff]  ;;  %v255_v63 = vld [vmem:[%s652_s21 + $0x50] sm:$0xff] }
  0x33   : > { %v256_v0 = vld [vmem:[%s652_s21 + $0x58] sm:$0xff]  ;;  %v257_v1 = vld [vmem:[%s652_s21 + $0x60] sm:$0xff]  ;;  %v258_v6 = vld [vmem:[%s652_s21 + $0x68] sm:$0xff] }
  0x34   : > { %v259_v7 = vld [vmem:[%s652_s21 + $0x70] sm:$0xff]  ;;  %v260_v8 = vld [vmem:[%s652_s21 + $0x78] sm:$0xff] }
  0x38   : > { %298 = vperm.xlu1 %523, %v290_v19   ;;  %270 = vperm.xlu0 %522, %v262_v20  }
  0xa2   : > { %v266_v30 = vpop.permute.xlu0 %265  ;;  %v294_v35 = vpop.permute.xlu1 %293 }
  0xa3   : > { %v273_v31 = vmul.f32 %v266_v30, %v245_v21  ;;  %v274_v32 = vmul.f32 %v266_v30, %v246_v22  ;;  %v275_v33 = vmul.f32 %v266_v30, %v247_v23  ;;  %v276_v34 = vmul.f32 %v266_v30, %v248_v24 }
  0xa4   : > { %v277_v36 = vmul.f32 %v266_v30, %v249_v25  ;;  %v278_v37 = vmul.f32 %v266_v30, %v250_v26  ;;  %v279_v38 = vmul.f32 %v266_v30, %v251_v27  ;;  %v280_v39 = vmul.f32 %v266_v30, %v252_v28 }
  0xa5   : > { %v301_v40 = vadd.f32 %v294_v35, %v273_v31  ;;  %v302_v41 = vadd.f32 %v294_v35, %v274_v32  ;;  %v303_v42 = vadd.f32 %v294_v35, %v275_v33  ;;  %v304_v43 = vadd.f32 %v294_v35, %v276_v34 }
  0xa6   : > { %v305_v44 = vadd.f32 %v294_v35, %v277_v36  ;;  %v306_v45 = vadd.f32 %v294_v35, %v278_v37  ;;  %v307_v46 = vadd.f32 %v294_v35, %v279_v38  ;;  %v308_v47 = vadd.f32 %v294_v35, %v280_v39 }
  0xa7   : > { %vm318_vm0 = vcmp.gt.f32.partialorder %v301_v40, 0.0  ;;  %vm319_vm1 = vcmp.gt.f32.partialorder %v302_v41, 0.0  ;;  %vm320_vm2 = vcmp.gt.f32.partialorder %v303_v42, 0.0  ;;  %vm321_vm3 = vcmp.gt.f32.partialorder %v304_v43, 0.0 }
  0xa8   : > { %vm322_vm4 = vcmp.gt.f32.partialorder %v305_v44, 0.0  ;;  %vm323_vm5 = vcmp.gt.f32.partialorder %v306_v45, 0.0  ;;  %vm324_vm6 = vcmp.gt.f32.partialorder %v307_v46, 0.0  ;;  %vm325_vm7 = vcmp.gt.f32.partialorder %v308_v47, 0.0 }
  0xa9   : > { %v335_v48 = vmul.f32 %v662_v29, %v301_v40  ;;  %v336_v49 = vmul.f32 %v662_v29, %v302_v41  ;;  %v337_v50 = vmul.f32 %v662_v29, %v303_v42  ;;  %v338_v51 = vmul.f32 %v662_v29, %v304_v43 }
  0xaa   : > { %v339_v52 = vmul.f32 %v662_v29, %v305_v44  ;;  %v340_v53 = vmul.f32 %v662_v29, %v306_v45  ;;  %v341_v54 = vmul.f32 %v662_v29, %v307_v46  ;;  %v342_v55 = vmul.f32 %v662_v29, %v308_v47  ;;  %v271_v62 = vpop.permute.xlu0 %270  ;;  %v299_v17 = vpop.permute.xlu1 %298 }
  0xab   : > { %v351_v58 = vsel %vm318_vm0, %v301_v40, %v335_v48  ;;  %v352_v59 = vsel %vm319_vm1, %v302_v41, %v336_v49  ;;  %v353_v60 = vsel %vm320_vm2, %v303_v42, %v337_v50  ;;  %v354_v61 = vsel %vm321_vm3, %v304_v43, %v338_v51 }
  0xac   : > { %v355_v2 = vsel %vm322_vm4, %v305_v44, %v339_v52  ;;  %v356_v3 = vsel %vm323_vm5, %v306_v45, %v340_v53  ;;  %v357_v4 = vsel %vm324_vm6, %v307_v46, %v341_v54  ;;  %v358_v5 = vsel %vm325_vm7, %v308_v47, %v342_v55 }
  0xad   : > { %v367_v9 = vpack.c.bf16 %v352_v59, %v351_v58  ;;  %v368_v10 = vpack.c.bf16 %v354_v61, %v353_v60  ;;  %v369_v11 = vpack.c.bf16 %v356_v3, %v355_v2  ;;  %v370_v12 = vpack.c.bf16 %v358_v5, %v357_v4 }
  0xae   : > { %v281_v13 = vmul.f32 %v271_v62, %v253_v56  ;;  %v282_v14 = vmul.f32 %v271_v62, %v254_v57  ;;  %v283_v15 = vmul.f32 %v271_v62, %v255_v63  ;;  %v284_v16 = vmul.f32 %v271_v62, %v256_v0 }
  0xaf   : > { %375 = vst [vmem:[%s693_s17] sm:$0xff] %v367_v9  ;;  %v285_v18 = vmul.f32 %v271_v62, %v257_v1  ;;  %v286_v19 = vmul.f32 %v271_v62, %v258_v6  ;;  %v287_v20 = vmul.f32 %v271_v62, %v259_v7  ;;  %v288_v21 = vmul.f32 %v271_v62, %v260_v8 }
  0xb0   : > { %376 = vst [vmem:[%s693_s17 + $0x8] sm:$0xff] %v368_v10  ;;  %v309_v22 = vadd.f32 %v299_v17, %v281_v13  ;;  %v310_v23 = vadd.f32 %v299_v17, %v282_v14  ;;  %v311_v24 = vadd.f32 %v299_v17, %v283_v15  ;;  %v312_v25 = vadd.f32 %v299_v17, %v284_v16 }
  0xb1   : > { %377 = vst [vmem:[%s693_s17 + $0x10] sm:$0xff] %v369_v11  ;;  %v313_v26 = vadd.f32 %v299_v17, %v285_v18  ;;  %v314_v27 = vadd.f32 %v299_v17, %v286_v19  ;;  %v315_v28 = vadd.f32 %v299_v17, %v287_v20  ;;  %v316_v30 = vadd.f32 %v299_v17, %v288_v21 }
  0xb2   : > { %378 = vst [vmem:[%s693_s17 + $0x18] sm:$0xff] %v370_v12  ;;  %vm326_vm8 = vcmp.gt.f32.partialorder %v309_v22, 0.0  ;;  %vm327_vm9 = vcmp.gt.f32.partialorder %v310_v23, 0.0  ;;  %vm328_vm10 = vcmp.gt.f32.partialorder %v311_v24, 0.0  ;;  %vm329_vm11 = vcmp.gt.f32.partialorder %v312_v25, 0.0 }
  0xb3   : > { %vm330_vm12 = vcmp.gt.f32.partialorder %v313_v26, 0.0  ;;  %vm331_vm13 = vcmp.gt.f32.partialorder %v314_v27, 0.0  ;;  %vm332_vm14 = vcmp.gt.f32.partialorder %v315_v28, 0.0  ;;  %vm333_vm15 = vcmp.gt.f32.partialorder %v316_v30, 0.0 }
  0xb4   : > { %v343_v31 = vmul.f32 %v662_v29, %v309_v22  ;;  %v344_v32 = vmul.f32 %v662_v29, %v310_v23  ;;  %v345_v33 = vmul.f32 %v662_v29, %v311_v24  ;;  %v346_v34 = vmul.f32 %v662_v29, %v312_v25 }
  0xb5   : > { %v347_v35 = vmul.f32 %v662_v29, %v313_v26  ;;  %v348_v36 = vmul.f32 %v662_v29, %v314_v27  ;;  %v349_v37 = vmul.f32 %v662_v29, %v315_v28  ;;  %v350_v38 = vmul.f32 %v662_v29, %v316_v30 }
  0xb6   : > { %v359_v39 = vsel %vm326_vm8, %v309_v22, %v343_v31  ;;  %v360_v40 = vsel %vm327_vm9, %v310_v23, %v344_v32  ;;  %v361_v41 = vsel %vm328_vm10, %v311_v24, %v345_v33  ;;  %v362_v42 = vsel %vm329_vm11, %v312_v25, %v346_v34  ;;  %v405_v50 = vld [vmem:[%s693_s17] sm:$0xff] (%p607_p5) }
  0xb7   : > { %v363_v43 = vsel %vm330_vm12, %v313_v26, %v347_v35  ;;  %v364_v44 = vsel %vm331_vm13, %v314_v27, %v348_v36  ;;  %v365_v45 = vsel %vm332_vm14, %v315_v28, %v349_v37  ;;  %v366_v46 = vsel %vm333_vm15, %v316_v30, %v350_v38  ;;  %v407_v51 = vld [vmem:[%s693_s17 + $0x8] sm:$0xff] (%p607_p5)  ;;  %406 = vst [vmem:[%s392_s28] sm:$0xff] (%p607_p5), %v405_v50 }
  0xb8   : > { %v371_v47 = vpack.c.bf16 %v360_v40, %v359_v39  ;;  %v372_v48 = vpack.c.bf16 %v362_v42, %v361_v41  ;;  %v373_v29 = vpack.c.bf16 %v364_v44, %v363_v43  ;;  %v374_v49 = vpack.c.bf16 %v366_v46, %v365_v45  ;;  %v409_v52 = vld [vmem:[%s693_s17 + $0x10] sm:$0xff] (%p607_p5)  ;;  %408 = vst [vmem:[%s392_s28 + $0x8] sm:$0xff] (%p607_p5), %v407_v51 }
  0xb9   : > { %389 = sbr.rel (!%p607_p5) target bundleno = 198 (0xc6), region = 63  ;;  %v411_v53 = vld [vmem:[%s693_s17 + $0x18] sm:$0xff] (%p607_p5)  ;;  %410 = vst [vmem:[%s392_s28 + $0x10] sm:$0xff] (%p607_p5), %v409_v52 }
  0xba   : > { %379 = vst [vmem:[%s693_s17 + $0x20] sm:$0xff] %v371_v47 }
  0xbb   : > { %380 = vst [vmem:[%s693_s17 + $0x28] sm:$0xff] %v372_v48 }
  0xbc   : > { %381 = vst [vmem:[%s693_s17 + $0x30] sm:$0xff] %v373_v29 }
  0xbd   : > { %382 = vst [vmem:[%s693_s17 + $0x38] sm:$0xff] %v374_v49 }
  0xbe   : > { %412 = vst [vmem:[%s392_s28 + $0x18] sm:$0xff] %v411_v53 }
  0xc1   : > { %v413_v54 = vld [vmem:[%s693_s17 + $0x20] sm:$0xff] }
  0xc2   : > { %v415_v55 = vld [vmem:[%s693_s17 + $0x28] sm:$0xff]  ;;  %414 = vst [vmem:[%s392_s28 + $0x40] sm:$0xff] %v413_v54 }
  0xc3   : > { %v417_v56 = vld [vmem:[%s693_s17 + $0x30] sm:$0xff]  ;;  %416 = vst [vmem:[%s392_s28 + $0x48] sm:$0xff] %v415_v55 }
  0xc4   : > { %v419_v57 = vld [vmem:[%s693_s17 + $0x38] sm:$0xff]  ;;  %418 = vst [vmem:[%s392_s28 + $0x50] sm:$0xff] %v417_v56 }
  0xc5   : > { %420 = vst [vmem:[%s392_s28 + $0x58] sm:$0xff] %v419_v57 }
  0xc6 PF: > { %p12_p10 = scmp.ge.s32.totalorder %s594_s20, 4   ;;  %s750_s17 = smov %s542_s18 }
  0xc7   : > { %s751_s18 = smov %s605_s23  ;;  %s752_s19 = smov %s594_s20 }
  0xc8   :  { %14 = sbr.rel (!%p12_p10) target bundleno = 4 (0x4), region = 117 }

// kernel: encoder_forward.15
= control target key start
LH: loop header
LB: loop body
LE: loop exit
PB: predicated region body
PF: predicated region fallthrough
CT: control target
= control target key end

     0   :  { %s1944_s21 = smov 0   ;;  %s1946_s22 = smov 0   ;;  %s2494_s0 = inlined_call_operand.vmem [shape: bf16[147,2048], index: 0, kind: input, shape index: {}]   ;;  %s2495_s1 = inlined_call_operand.vmem [shape: bf16[16,147], index: 1, kind: input, shape index: {}]   ;;  %s2496_s2 = inlined_call_operand.vmem [shape: f32[16,1], index: 2, kind: input, shape index: {}]   ;;  %s2497_s3 = inlined_call_operand.vmem [shape: f32[16,1], index: 3, kind: input, shape index: {}]   ;;  %s2498_s4 = inlined_call_operand.vmem [shape: f32[16,2048], index: 4, kind: output, shape index: {0}]   ;;  %s2499_s5 = inlined_call_operand.vmem [shape: f32[16,1], index: 5, kind: output, shape index: {1}]   ;;  %s2500_s6 = inlined_call_operand.vmem [shape: f32[16,1], index: 6, kind: output, shape index: {2}]  }
   0x1   :  { %s1948_s23 = smov 0  }
   0x2 LB: > { %s1960_s24 = sadd.s32 4294967295, %s1906_s23   ;;  %s1963_s25 = sadd.s32 1, %s1906_s23   ;;  %s1906_s23 = sphi %s1948_s23, %s2504_s23   ;;  %s1902_s22 = sphi %s1946_s22, %s2503_s22   ;;  %s1898_s21 = sphi %s1944_s21, %s2502_s21  }
   0x3   : > { %s21_s26 = ssub.s32 %s1906_s23, %s1963_s25  ;;  %s24_s27 = sadd.s32 1, %s1902_s22 }
   0x4   : > { %p22_p0 = scmp.eq.s32.totalorder %s21_s26, 0  ;;  %p31_p1 = scmp.ne.s32.totalorder %s1902_s22, %s1898_s21 }
   0x5   : > { %p32_p2 = scmp.eq.s32.totalorder %s1906_s23, 0  ;;  %p124_p3 = scmp.eq.s32.totalorder %s1960_s24, 1 }
   0x6   : > { %s1973_s28 = scalar_select %p22_p0, %s1902_s22, %s24_s27  }
   0x7   : > { %p33_p4 = por %p32_p2, %p31_p1  ;;  %p1975_p5 = por %p124_p3, %p31_p1 }
   0x8   : > { %p1456_p6 = scmp.ge.s32.totalorder %s1906_s23, 2 }
   0xa   : > { %197 = sbr.rel (%p1456_p6) target bundleno = 95 (0x5f), region = 28 }
   0xf   : > { %200 = sbr.rel (!%p33_p4) target bundleno = 95 (0x5f), region = 32  ;;  %s202_s30 = sand.u32 (%p33_p4), 1, %s1902_s22  }
  0x10   : > { %s1773_s7 = sshll.u32 (%p33_p4), %s1906_s23, 5  ;;  %s1849_s8 = smul.u32 (%p33_p4), 608, %s202_s30 }
  0x11   : > { %s1985_s11 = scalar_lea.vmem (%p33_p4), %s2494_s0, %s1773_s7 }
  0x12   : > { %v220_v0 = vld [vmem:[%s1985_s11] sm:$0xff] (%p33_p4)  ;;  %v222_v1 = vld [vmem:[%s1985_s11 + $0x8] sm:$0xff] (%p33_p4)  ;;  %v224_v2 = vld [vmem:[%s1985_s11 + $0x10] sm:$0xff] (%p33_p4)  ;;  %s1990_s12 = scalar_lea.vmem (%p33_p4), [#allocation4], %s1849_s8 }
  0x13   : > { %221 = vst [vmem:[%s1990_s12] sm:$0xff] (%p33_p4), %v220_v0  ;;  %v226_v3 = vld [vmem:[%s1985_s11 + $0x18] sm:$0xff] (%p33_p4)  ;;  %v228_v4 = vld [vmem:[%s1985_s11 + $0x40] sm:$0xff] (%p33_p4)  ;;  %v230_v5 = vld [vmem:[%s1985_s11 + $0x48] sm:$0xff] (%p33_p4) }
  0x14   : > { %223 = vst [vmem:[%s1990_s12 + $0x8] sm:$0xff] %v222_v1  ;;  %v232_v6 = vld [vmem:[%s1985_s11 + $0x50] sm:$0xff]  ;;  %v234_v7 = vld [vmem:[%s1985_s11 + $0x58] sm:$0xff]  ;;  %v236_v8 = vld [vmem:[%s1985_s11 + $0x80] sm:$0xff] }
  0x15   : > { %225 = vst [vmem:[%s1990_s12 + $0x10] sm:$0xff] %v224_v2  ;;  %v238_v9 = vld [vmem:[%s1985_s11 + $0x88] sm:$0xff]  ;;  %v240_v10 = vld [vmem:[%s1985_s11 + $0x90] sm:$0xff]  ;;  %v242_v11 = vld [vmem:[%s1985_s11 + $0x98] sm:$0xff] }
  0x16   : > { %227 = vst [vmem:[%s1990_s12 + $0x18] sm:$0xff] %v226_v3  ;;  %v244_v12 = vld [vmem:[%s1985_s11 + $0xc0] sm:$0xff]  ;;  %v246_v13 = vld [vmem:[%s1985_s11 + $0xc8] sm:$0xff]  ;;  %v248_v14 = vld [vmem:[%s1985_s11 + $0xd0] sm:$0xff] }
  0x17   : > { %229 = vst [vmem:[%s1990_s12 + $0x20] sm:$0xff] %v228_v4  ;;  %v250_v15 = vld [vmem:[%s1985_s11 + $0xd8] sm:$0xff]  ;;  %v252_v16 = vld [vmem:[%s1985_s11 + $0x100] sm:$0xff]  ;;  %v254_v17 = vld [vmem:[%s1985_s11 + $0x108] sm:$0xff] }
  0x18   : > { %231 = vst [vmem:[%s1990_s12 + $0x28] sm:$0xff] %v230_v5  ;;  %v256_v18 = vld [vmem:[%s1985_s11 + $0x110] sm:$0xff]  ;;  %v258_v19 = vld [vmem:[%s1985_s11 + $0x118] sm:$0xff]  ;;  %v260_v20 = vld [vmem:[%s1985_s11 + $0x140] sm:$0xff] }
  0x19   : > { %233 = vst [vmem:[%s1990_s12 + $0x30] sm:$0xff] %v232_v6  ;;  %v262_v21 = vld [vmem:[%s1985_s11 + $0x148] sm:$0xff]  ;;  %v264_v22 = vld [vmem:[%s1985_s11 + $0x150] sm:$0xff]  ;;  %v266_v23 = vld [vmem:[%s1985_s11 + $0x158] sm:$0xff] }
  0x1a   : > { %235 = vst [vmem:[%s1990_s12 + $0x38] sm:$0xff] %v234_v7  ;;  %v268_v24 = vld [vmem:[%s1985_s11 + $0x180] sm:$0xff]  ;;  %v270_v25 = vld [vmem:[%s1985_s11 + $0x188] sm:$0xff]  ;;  %v272_v26 = vld [vmem:[%s1985_s11 + $0x190] sm:$0xff] }
  0x1b   : > { %237 = vst [vmem:[%s1990_s12 + $0x40] sm:$0xff] %v236_v8  ;;  %v274_v27 = vld [vmem:[%s1985_s11 + $0x198] sm:$0xff]  ;;  %v276_v28 = vld [vmem:[%s1985_s11 + $0x1c0] sm:$0xff]  ;;  %v278_v29 = vld [vmem:[%s1985_s11 + $0x1c8] sm:$0xff] }
  0x1c   : > { %239 = vst [vmem:[%s1990_s12 + $0x48] sm:$0xff] %v238_v9  ;;  %v280_v30 = vld [vmem:[%s1985_s11 + $0x1d0] sm:$0xff]  ;;  %v282_v31 = vld [vmem:[%s1985_s11 + $0x1d8] sm:$0xff]  ;;  %v284_v32 = vld [vmem:[%s1985_s11 + $0x200] sm:$0xff] }
  0x1d   : > { %241 = vst [vmem:[%s1990_s12 + $0x50] sm:$0xff] %v240_v10  ;;  %v286_v33 = vld [vmem:[%s1985_s11 + $0x208] sm:$0xff]  ;;  %v288_v34 = vld [vmem:[%s1985_s11 + $0x210] sm:$0xff]  ;;  %v290_v35 = vld [vmem:[%s1985_s11 + $0x218] sm:$0xff] }
  0x1e   : > { %243 = vst [vmem:[%s1990_s12 + $0x58] sm:$0xff] %v242_v11  ;;  %v292_v36 = vld [vmem:[%s1985_s11 + $0x240] sm:$0xff]  ;;  %v294_v37 = vld [vmem:[%s1985_s11 + $0x248] sm:$0xff]  ;;  %v296_v38 = vld [vmem:[%s1985_s11 + $0x250] sm:$0xff] }
  0x1f   : > { %245 = vst [vmem:[%s1990_s12 + $0x60] sm:$0xff] %v244_v12  ;;  %v298_v39 = vld [vmem:[%s1985_s11 + $0x258] sm:$0xff]  ;;  %v300_v40 = vld [vmem:[%s1985_s11 + $0x280] sm:$0xff]  ;;  %v302_v41 = vld [vmem:[%s1985_s11 + $0x288] sm:$0xff] }
  0x20   : > { %247 = vst [vmem:[%s1990_s12 + $0x68] sm:$0xff] %v246_v13  ;;  %v304_v42 = vld [vmem:[%s1985_s11 + $0x290] sm:$0xff]  ;;  %v306_v43 = vld [vmem:[%s1985_s11 + $0x298] sm:$0xff]  ;;  %v308_v44 = vld [vmem:[%s1985_s11 + $0x2c0] sm:$0xff] }
  0x21   : > { %249 = vst [vmem:[%s1990_s12 + $0x70] sm:$0xff] %v248_v14  ;;  %v310_v45 = vld [vmem:[%s1985_s11 + $0x2c8] sm:$0xff]  ;;  %v312_v46 = vld [vmem:[%s1985_s11 + $0x2d0] sm:$0xff]  ;;  %v314_v47 = vld [vmem:[%s1985_s11 + $0x2d8] sm:$0xff] }
  0x22   : > { %251 = vst [vmem:[%s1990_s12 + $0x78] sm:$0xff] %v250_v15  ;;  %v316_v48 = vld [vmem:[%s1985_s11 + $0x300] sm:$0xff]  ;;  %v318_v49 = vld [vmem:[%s1985_s11 + $0x308] sm:$0xff]  ;;  %v320_v50 = vld [vmem:[%s1985_s11 + $0x310] sm:$0xff] }
  0x23   : > { %253 = vst [vmem:[%s1990_s12 + $0x80] sm:$0xff] %v252_v16  ;;  %v322_v51 = vld [vmem:[%s1985_s11 + $0x318] sm:$0xff]  ;;  %v324_v52 = vld [vmem:[%s1985_s11 + $0x340] sm:$0xff]  ;;  %v326_v53 = vld [vmem:[%s1985_s11 + $0x348] sm:$0xff] }
  0x24   : > { %255 = vst [vmem:[%s1990_s12 + $0x88] sm:$0xff] %v254_v17  ;;  %v328_v54 = vld [vmem:[%s1985_s11 + $0x350] sm:$0xff]  ;;  %v330_v55 = vld [vmem:[%s1985_s11 + $0x358] sm:$0xff]  ;;  %v332_v56 = vld [vmem:[%s1985_s11 + $0x380] sm:$0xff] }
  0x25   : > { %257 = vst [vmem:[%s1990_s12 + $0x90] sm:$0xff] %v256_v18  ;;  %v334_v57 = vld [vmem:[%s1985_s11 + $0x388] sm:$0xff]  ;;  %v336_v58 = vld [vmem:[%s1985_s11 + $0x390] sm:$0xff]  ;;  %v338_v59 = vld [vmem:[%s1985_s11 + $0x398] sm:$0xff] }
  0x26   : > { %259 = vst [vmem:[%s1990_s12 + $0x98] sm:$0xff] %v258_v19  ;;  %v340_v60 = vld [vmem:[%s1985_s11 + $0x3c0] sm:$0xff]  ;;  %v342_v61 = vld [vmem:[%s1985_s11 + $0x3c8] sm:$0xff]  ;;  %v344_v62 = vld [vmem:[%s1985_s11 + $0x3d0] sm:$0xff] }
  0x27   : > { %261 = vst [vmem:[%s1990_s12 + $0xa0] sm:$0xff] %v260_v20  ;;  %v346_v63 = vld [vmem:[%s1985_s11 + $0x3d8] sm:$0xff]  ;;  %v348_v0 = vld [vmem:[%s1985_s11 + $0x400] sm:$0xff]  ;;  %v350_v1 = vld [vmem:[%s1985_s11 + $0x408] sm:$0xff] }
  0x28   : > { %263 = vst [vmem:[%s1990_s12 + $0xa8] sm:$0xff] %v262_v21  ;;  %v352_v2 = vld [vmem:[%s1985_s11 + $0x410] sm:$0xff]  ;;  %v354_v3 = vld [vmem:[%s1985_s11 + $0x418] sm:$0xff]  ;;  %v356_v4 = vld [vmem:[%s1985_s11 + $0x440] sm:$0xff] }
  0x29   : > { %265 = vst [vmem:[%s1990_s12 + $0xb0] sm:$0xff] %v264_v22  ;;  %v358_v5 = vld [vmem:[%s1985_s11 + $0x448] sm:$0xff]  ;;  %v360_v6 = vld [vmem:[%s1985_s11 + $0x450] sm:$0xff]  ;;  %v362_v7 = vld [vmem:[%s1985_s11 + $0x458] sm:$0xff] }
  0x2a   : > { %267 = vst [vmem:[%s1990_s12 + $0xb8] sm:$0xff] %v266_v23  ;;  %v364_v8 = vld [vmem:[%s1985_s11 + $0x480] sm:$0xff]  ;;  %v366_v9 = vld [vmem:[%s1985_s11 + $0x488] sm:$0xff]  ;;  %v368_v10 = vld [vmem:[%s1985_s11 + $0x490] sm:$0xff] }
  0x2b   : > { %269 = vst [vmem:[%s1990_s12 + $0xc0] sm:$0xff] %v268_v24  ;;  %v370_v11 = vld [vmem:[%s1985_s11 + $0x498] sm:$0xff] }
  0x2c   : > { %271 = vst [vmem:[%s1990_s12 + $0xc8] sm:$0xff] %v270_v25 }
  0x2d   : > { %273 = vst [vmem:[%s1990_s12 + $0xd0] sm:$0xff] %v272_v26 }
  0x2e   : > { %275 = vst [vmem:[%s1990_s12 + $0xd8] sm:$0xff] %v274_v27 }
  0x2f   : > { %277 = vst [vmem:[%s1990_s12 + $0xe0] sm:$0xff] %v276_v28 }
  0x30   : > { %279 = vst [vmem:[%s1990_s12 + $0xe8] sm:$0xff] %v278_v29 }
  0x31   : > { %281 = vst [vmem:[%s1990_s12 + $0xf0] sm:$0xff] %v280_v30 }
  0x32   : > { %283 = vst [vmem:[%s1990_s12 + $0xf8] sm:$0xff] %v282_v31 }
  0x33   : > { %285 = vst [vmem:[%s1990_s12 + $0x100] sm:$0xff] %v284_v32 }
  0x34   : > { %287 = vst [vmem:[%s1990_s12 + $0x108] sm:$0xff] %v286_v33 }
  0x35   : > { %289 = vst [vmem:[%s1990_s12 + $0x110] sm:$0xff] %v288_v34 }
  0x36   : > { %291 = vst [vmem:[%s1990_s12 + $0x118] sm:$0xff] %v290_v35 }
  0x37   : > { %293 = vst [vmem:[%s1990_s12 + $0x120] sm:$0xff] %v292_v36 }
  0x38   : > { %295 = vst [vmem:[%s1990_s12 + $0x128] sm:$0xff] %v294_v37 }
  0x39   : > { %297 = vst [vmem:[%s1990_s12 + $0x130] sm:$0xff] %v296_v38 }
  0x3a   : > { %299 = vst [vmem:[%s1990_s12 + $0x138] sm:$0xff] %v298_v39 }
  0x3b   : > { %301 = vst [vmem:[%s1990_s12 + $0x140] sm:$0xff] %v300_v40 }
  0x3c   : > { %303 = vst [vmem:[%s1990_s12 + $0x148] sm:$0xff] %v302_v41 }
  0x3d   : > { %305 = vst [vmem:[%s1990_s12 + $0x150] sm:$0xff] %v304_v42 }
  0x3e   : > { %307 = vst [vmem:[%s1990_s12 + $0x158] sm:$0xff] %v306_v43 }
  0x3f   : > { %309 = vst [vmem:[%s1990_s12 + $0x160] sm:$0xff] %v308_v44 }
  0x40   : > { %311 = vst [vmem:[%s1990_s12 + $0x168] sm:$0xff] %v310_v45 }
  0x41   : > { %313 = vst [vmem:[%s1990_s12 + $0x170] sm:$0xff] %v312_v46 }
  0x42   : > { %315 = vst [vmem:[%s1990_s12 + $0x178] sm:$0xff] %v314_v47 }
  0x43   : > { %317 = vst [vmem:[%s1990_s12 + $0x180] sm:$0xff] %v316_v48 }
  0x44   : > { %319 = vst [vmem:[%s1990_s12 + $0x188] sm:$0xff] %v318_v49 }
  0x45   : > { %321 = vst [vmem:[%s1990_s12 + $0x190] sm:$0xff] %v320_v50 }
  0x46   : > { %323 = vst [vmem:[%s1990_s12 + $0x198] sm:$0xff] %v322_v51 }
  0x47   : > { %325 = vst [vmem:[%s1990_s12 + $0x1a0] sm:$0xff] %v324_v52 }
  0x48   : > { %327 = vst [vmem:[%s1990_s12 + $0x1a8] sm:$0xff] %v326_v53 }
  0x49   : > { %329 = vst [vmem:[%s1990_s12 + $0x1b0] sm:$0xff] %v328_v54 }
  0x4a   : > { %331 = vst [vmem:[%s1990_s12 + $0x1b8] sm:$0xff] %v330_v55 }
  0x4b   : > { %333 = vst [vmem:[%s1990_s12 + $0x1c0] sm:$0xff] %v332_v56 }
  0x4c   : > { %335 = vst [vmem:[%s1990_s12 + $0x1c8] sm:$0xff] %v334_v57 }
  0x4d   : > { %337 = vst [vmem:[%s1990_s12 + $0x1d0] sm:$0xff] %v336_v58 }
  0x4e   : > { %339 = vst [vmem:[%s1990_s12 + $0x1d8] sm:$0xff] %v338_v59 }
  0x4f   : > { %341 = vst [vmem:[%s1990_s12 + $0x1e0] sm:$0xff] %v340_v60 }
  0x50   : > { %343 = vst [vmem:[%s1990_s12 + $0x1e8] sm:$0xff] %v342_v61 }
  0x51   : > { %345 = vst [vmem:[%s1990_s12 + $0x1f0] sm:$0xff] %v344_v62 }
  0x52   : > { %347 = vst [vmem:[%s1990_s12 + $0x1f8] sm:$0xff] %v346_v63 }
  0x53   : > { %349 = vst [vmem:[%s1990_s12 + $0x200] sm:$0xff] %v348_v0 }
  0x54   : > { %351 = vst [vmem:[%s1990_s12 + $0x208] sm:$0xff] %v350_v1 }
  0x55   : > { %353 = vst [vmem:[%s1990_s12 + $0x210] sm:$0xff] %v352_v2 }
  0x56   : > { %355 = vst [vmem:[%s1990_s12 + $0x218] sm:$0xff] %v354_v3 }
  0x57   : > { %357 = vst [vmem:[%s1990_s12 + $0x220] sm:$0xff] %v356_v4 }
  0x58   : > { %359 = vst [vmem:[%s1990_s12 + $0x228] sm:$0xff] %v358_v5 }
  0x59   : > { %361 = vst [vmem:[%s1990_s12 + $0x230] sm:$0xff] %v360_v6 }
  0x5a   : > { %363 = vst [vmem:[%s1990_s12 + $0x238] sm:$0xff] %v362_v7 }
  0x5b   : > { %365 = vst [vmem:[%s1990_s12 + $0x240] sm:$0xff] %v364_v8 }
  0x5c   : > { %367 = vst [vmem:[%s1990_s12 + $0x248] sm:$0xff] %v366_v9 }
  0x5d   : > { %369 = vst [vmem:[%s1990_s12 + $0x250] sm:$0xff] %v368_v10 }
  0x5e   : > { %371 = vst [vmem:[%s1990_s12 + $0x258] sm:$0xff] %v370_v11 }
  0x5f PF: > { %p1459_p7 = scmp.ge.s32.totalorder %s1906_s23, 1  ;;  %p376_p8 = scmp.lt.s32.totalorder %s1906_s23, 3 }
  0x61   : > { %p377_p9 = pnand %p1459_p7, %p376_p8 }
  0x62   : > { %s383_s13 = sand.u32 (!%p377_p9), 1, %s1898_s21   ;;  %p1765_p10 = scmp.ne.s32.totalorder (!%p377_p9), %s1960_s24, 0 }
  0x63   : > { %380 = sbr.rel (%p377_p9) target bundleno = 743 (0x2e7), region = 55  ;;  %s1460_s30 = sshll.u32 (!%p377_p9), %s383_s13, 7 }
  0x64   : > { %s1850_s14 = smul.u32 (!%p377_p9), 608, %s383_s13  ;;  %s2356_s7 = scalar_lea.vmem (!%p377_p9), [#allocation5], %s1460_s30 }
  0x66   : > { %s2146_s15 = scalar_lea.vmem (!%p377_p9), [#allocation4], %s1850_s14 }
  0x68   : > { %vm885_vm0 = vcmask 1040384   ;;  %vm886_vm1 = vcmask 1041408   ;;  %v1908_v12 = vmov 65535   ;;  %v1695_v14 = vld [vmem:[%s2146_s15 + $0x1c0] sm:$0xf]  ;;  %vm881_vm2 = vcmask 154624  }
  0x69   : > { %v887_v13 = vsel %vm885_vm0, 4294967295, %v1908_v12  ;;  %v1836_v15 = vld [vmem:[%s2146_s15 + $0x1dc] sm:$0xf0]  ;;  %v1703_v20 = vld [vmem:[%s2146_s15 + $0x1c8] sm:$0xf] }
  0x6a   : > { %v488_v16 = vld [vmem:[%s2146_s15 + $0x240] sm:$0x33]  ;;  %v1696_v17 = vor.u32 %v1836_v15, %v1695_v14  ;;  %v1837_v21 = vld [vmem:[%s2146_s15 + $0x1e4] sm:$0xf0]  ;;  %v2154_v23 = vsel %vm886_vm1, %v887_v13, 0 }
  0x6b   : > { %v721_v18 = vunpack.c.l.b16 %v488_v16  ;;  %v722_v19 = vunpack.c.h.b16 %v488_v16  ;;  %v1663_v22 = vld [vmem:[%s2146_s15 + $0x180] sm:$0xf]  ;;  %v1704_v24 = vor.u32 %v1837_v21, %v1703_v20  ;;  %v1840_v30 = vld [vmem:[%s2146_s15 + $0x204] sm:$0xf]  ;;  %v2162_v33 = vld [vmem:[%s2146_s15 + $0x248] sm:$0x33] }
  0x6c   : > { %v1828_v25 = vld [vmem:[%s2146_s15 + $0x19c] sm:$0xf0]  ;;  %913 = vmatpush.bf16.msra.mxu0 %v1696_v17  ;;  %v1729_v32 = vld [vmem:[%s2146_s15 + $0x220] sm:$0xf0]  ;;  %v1671_v34 = vld [vmem:[%s2146_s15 + $0x188] sm:$0xf]  ;;  %v723_v39 = vunpack.c.l.b16 %v2162_v33 }
  0x6d   : > { %v801_v26 = vpack.c.b16 %v721_v18, %v721_v18  ;;  %v802_v27 = vpack.c.b16 %v722_v19, %v722_v19  ;;  %v1727_v28 = vld [vmem:[%s2146_s15 + $0x200] sm:$0xf]  ;;  %969 = vmatpush.bf16.msra.mxu1 %v1704_v24  ;;  %v1664_v31 = vor.u32 %v1828_v25, %v1663_v22  ;;  %v1832_v37 = vld [vmem:[%s2146_s15 + $0x1c4] sm:$0xf]  ;;  %v1829_v40 = vld [vmem:[%s2146_s15 + $0x1a4] sm:$0xf0]  ;;  %v1732_v46 = vor.u32 %v1840_v30, %v1729_v32 }
  0x6e   : > { %v1844_v29 = vld [vmem:[%s2146_s15 + $0x21c] sm:$0xf0]  ;;  %v1697_v38 = vld [vmem:[%s2146_s15 + $0x1e0] sm:$0xf0]  ;;  %v1672_v41 = vor.u32 %v1829_v40, %v1671_v34  ;;  %v803_v47 = vpack.c.b16 %v723_v39, %v723_v39  ;;  %v1465_v48 = vld [vmem:[%s2495_s1 + $0x8] sm:$0xf0]  ;;  %v724_v39 = vunpack.c.h.b16 %v2162_v33 }
  0x6f   : > { %v890_v35 = vand.u32 %v2154_v23, %v801_v26  ;;  %v893_v36 = vand.u32 %v2154_v23, %v802_v27  ;;  %v1631_v42 = vld [vmem:[%s2146_s15 + $0x140] sm:$0xf]  ;;  %v1774_v44 = vld [vmem:[%s2495_s1 + $0x4] sm:$0xf]  ;;  %v1728_v45 = vor.u32 %v1844_v29, %v1727_v28  ;;  %v1639_v49 = vld [vmem:[%s2146_s15 + $0x148] sm:$0xf]  ;;  %v1700_v51 = vor.u32 %v1832_v37, %v1697_v38 }
  0x70   : > { %v1820_v43 = vld [vmem:[%s2146_s15 + $0x15c] sm:$0xf0]  ;;  %v1821_v50 = vld [vmem:[%s2146_s15 + $0x164] sm:$0xf0]  ;;  %914 = vmatpush.bf16.msra.mxu0 %v1664_v31  ;;  %v1824_v52 = vld [vmem:[%s2146_s15 + $0x184] sm:$0xf]  ;;  %v896_v54 = vand.u32 %v2154_v23, %v803_v47  ;;  %v2187_v60 = vor.u32 %v1774_v44, %v1465_v48 }
  0x71   : > { %933 = vmatpush.bf16.msra.mxu2 %v890_v35  ;;  %961 = vmatpush.bf16.msra.mxu3 %v893_v36  ;;  %v1665_v53 = vld [vmem:[%s2146_s15 + $0x1a0] sm:$0xf0]  ;;  %v1632_v55 = vor.u32 %v1820_v43, %v1631_v42  ;;  %v1735_v56 = vld [vmem:[%s2146_s15 + $0x208] sm:$0xf]  ;;  %v1640_v58 = vor.u32 %v1821_v50, %v1639_v49  ;;  %v1833_v59 = vld [vmem:[%s2146_s15 + $0x1cc] sm:$0xf] }
  0x72   : > { %970 = vmatpush.bf16.msra.mxu1 %v1672_v41  ;;  %v1845_v57 = vld [vmem:[%s2146_s15 + $0x224] sm:$0xf0]  ;;  %v1705_v61 = vld [vmem:[%s2146_s15 + $0x1e8] sm:$0xf0]  ;;  %v1599_v62 = vld [vmem:[%s2146_s15 + $0x100] sm:$0xf]  ;;  %v1668_v2 = vor.u32 %v1824_v52, %v1665_v53 }
  0x73   : > { %v1812_v63 = vld [vmem:[%s2146_s15 + $0x11c] sm:$0xf0]  ;;  %v1607_v0 = vld [vmem:[%s2146_s15 + $0x108] sm:$0xf]  ;;  %v1736_v3 = vor.u32 %v1845_v57, %v1735_v56  ;;  %v1708_v4 = vor.u32 %v1833_v59, %v1705_v61  ;;  %v1816_v6 = vld [vmem:[%s2146_s15 + $0x144] sm:$0xf] }
  0x74   : > { %v1813_v1 = vld [vmem:[%s2146_s15 + $0x124] sm:$0xf0]  ;;  %915 = vmatpush.bf16.msra.mxu0 %v1632_v55  ;;  %v1600_v5 = vor.u32 %v1812_v63, %v1599_v62  ;;  %v1633_v7 = vld [vmem:[%s2146_s15 + $0x160] sm:$0xf0]  ;;  %v1825_v8 = vld [vmem:[%s2146_s15 + $0x18c] sm:$0xf] }
  0x75   : > { %934 = vmatpush.bf16.msra.mxu2 %v1728_v45  ;;  %962 = vmatpush.bf16.msra.mxu3 %v1732_v46  ;;  %v1608_v9 = vor.u32 %v1813_v1, %v1607_v0  ;;  %v1673_v10 = vld [vmem:[%s2146_s15 + $0x1a8] sm:$0xf0]  ;;  %v1567_v11 = vld [vmem:[%s2146_s15 + $0xc0] sm:$0xf]  ;;  %v1575_v13 = vld [vmem:[%s2146_s15 + $0xc8] sm:$0xf]  ;;  %v1636_v15 = vor.u32 %v1816_v6, %v1633_v7 }
  0x76   : > { %971 = vmatpush.bf16.msra.mxu1 %v1640_v58  ;;  %v1804_v12 = vld [vmem:[%s2146_s15 + $0xdc] sm:$0xf0]  ;;  %v1805_v14 = vld [vmem:[%s2146_s15 + $0xe4] sm:$0xf0]  ;;  %v1676_v16 = vor.u32 %v1825_v8, %v1673_v10  ;;  %v1808_v18 = vld [vmem:[%s2146_s15 + $0x104] sm:$0xf] }
  0x77   : > { %v1568_v17 = vor.u32 %v1804_v12, %v1567_v11  ;;  %v1601_v19 = vld [vmem:[%s2146_s15 + $0x120] sm:$0xf0]  ;;  %v1817_v20 = vld [vmem:[%s2146_s15 + $0x14c] sm:$0xf]  ;;  %v1576_v21 = vor.u32 %v1805_v14, %v1575_v13  ;;  %v1535_v24 = vld [vmem:[%s2146_s15 + $0x80] sm:$0xf] }
  0x78   : > { %1758 = vmatmul.msk.bf16.vlgmr.msra.gmra.mxu3 %vm881_vm2, %v2187_v60  ;;  %1757 = vmatmul.msk.bf16.vlgmr.msra.gmra.mxu2 %vm881_vm2, %v2187_v60  ;;  %v1641_v22 = vld [vmem:[%s2146_s15 + $0x168] sm:$0xf0]  ;;  %v1796_v25 = vld [vmem:[%s2146_s15 + $0x9c] sm:$0xf0]  ;;  %v1543_v26 = vld [vmem:[%s2146_s15 + $0x88] sm:$0xf]  ;;  %v1604_v28 = vor.u32 %v1808_v18, %v1601_v19 }
  0x79   : > { %941 = vmatpush.bf16.msrb.mxu2 %v1700_v51  ;;  %989 = vmatpush.bf16.msrb.mxu3 %v896_v54  ;;  %v1797_v27 = vld [vmem:[%s2146_s15 + $0xa4] sm:$0xf0]  ;;  %v1644_v29 = vor.u32 %v1817_v20, %v1641_v22  ;;  %v1536_v30 = vor.u32 %v1796_v25, %v1535_v24  ;;  %v1800_v31 = vld [vmem:[%s2146_s15 + $0xc4] sm:$0xf]  ;;  %v1809_v34 = vld [vmem:[%s2146_s15 + $0x10c] sm:$0xf]  ;;  %v804_v51 = vpack.c.b16 %v724_v39, %v724_v39 }
  0x7a   : > { %916 = vmatpush.bf16.msra.mxu0 %v1600_v5  ;;  %972 = vmatpush.bf16.msra.mxu1 %v1608_v9  ;;  %v1569_v32 = vld [vmem:[%s2146_s15 + $0xe0] sm:$0xf0]  ;;  %v1544_v35 = vor.u32 %v1797_v27, %v1543_v26  ;;  %v1609_v36 = vld [vmem:[%s2146_s15 + $0x128] sm:$0xf0]  ;;  %v1503_v37 = vld [vmem:[%s2146_s15 + $0x40] sm:$0xf] }
  0x7b   : > { %v1788_v38 = vld [vmem:[%s2146_s15 + $0x5c] sm:$0xf0]  ;;  %v1511_v40 = vld [vmem:[%s2146_s15 + $0x48] sm:$0xf]  ;;  %v1572_v42 = vor.u32 %v1800_v31, %v1569_v32  ;;  %v1612_v43 = vor.u32 %v1809_v34, %v1609_v36  ;;  %v1792_v45 = vld [vmem:[%s2146_s15 + $0x84] sm:$0xf]  ;;  %v899_v1 = vand.u32 %v2154_v23, %v804_v51 }
  0x7c   : > { %v1789_v41 = vld [vmem:[%s2146_s15 + $0x64] sm:$0xf0]  ;;  %v1504_v44 = vor.u32 %v1788_v38, %v1503_v37  ;;  %v1537_v46 = vld [vmem:[%s2146_s15 + $0xa0] sm:$0xf0]  ;;  %v1801_v47 = vld [vmem:[%s2146_s15 + $0xcc] sm:$0xf] }
  0x7d   : > { %942 = vmatpush.bf16.msrb.mxu2 %v1668_v2  ;;  %990 = vmatpush.bf16.msrb.mxu3 %v1736_v3  ;;  %v1512_v48 = vor.u32 %v1789_v41, %v1511_v40  ;;  %v1577_v33 = vld [vmem:[%s2146_s15 + $0xe8] sm:$0xf0]  ;;  %v1471_v49 = vld [vmem:[%s2146_s15] sm:$0xf]  ;;  %v1479_v52 = vld [vmem:[%s2146_s15 + $0x8] sm:$0xf]  ;;  %v1540_v54 = vor.u32 %v1792_v45, %v1537_v46 }
  0x7e   : > { %917 = vmatpush.bf16.msra.mxu0 %v1568_v17  ;;  %973 = vmatpush.bf16.msra.mxu1 %v1576_v21  ;;  %v1780_v50 = vld [vmem:[%s2146_s15 + $0x1c] sm:$0xf0]  ;;  %v1781_v53 = vld [vmem:[%s2146_s15 + $0x24] sm:$0xf0]  ;;  %v1784_v55 = vld [vmem:[%s2146_s15 + $0x44] sm:$0xf]  ;;  %v1580_v57 = vor.u32 %v1801_v47, %v1577_v33 }
  0x7f   : > { %v490_v56 = vld [vmem:[%s2146_s15 + $0x250] sm:$0x33]  ;;  %v1472_v58 = vor.u32 %v1780_v50, %v1471_v49  ;;  %v1505_v59 = vld [vmem:[%s2146_s15 + $0x60] sm:$0xf0]  ;;  %v1463_v61 = vld [vmem:[%s2495_s1] sm:$0xf]  ;;  %v1480_v2 = vor.u32 %v1781_v53, %v1479_v52 }
  0x80   : > { %v1775_v62 = vld [vmem:[%s2495_s1 + $0x4] sm:$0xf0]  ;;  %v725_v63 = vunpack.c.l.b16 %v490_v56  ;;  %v726_v0 = vunpack.c.h.b16 %v490_v56  ;;  %v1793_v3 = vld [vmem:[%s2146_s15 + $0x8c] sm:$0xf]  ;;  %v1834_v7 = vld [vmem:[%s2146_s15 + $0x1d4] sm:$0xf]  ;;  %v1508_v9 = vor.u32 %v1784_v55, %v1505_v59 }
  0x81   : > { %997 = vmatpush.bf16.msra.mxu3 %v1708_v4  ;;  %943 = vmatpush.bf16.msrb.mxu2 %v1636_v15  ;;  %v1545_v4 = vld [vmem:[%s2146_s15 + $0xa8] sm:$0xf0]  ;;  %v2248_v10 = vor.u32 %v1775_v62, %v1463_v61  ;;  %v1713_v11 = vld [vmem:[%s2146_s15 + $0x1f0] sm:$0xf0]  ;;  %v1743_v13 = vld [vmem:[%s2146_s15 + $0x210] sm:$0xf] }
  0x82   : > { %918 = vmatpush.bf16.msra.mxu0 %v1536_v30  ;;  %974 = vmatpush.bf16.msra.mxu1 %v1544_v35  ;;  %v1841_v5 = vld [vmem:[%s2146_s15 + $0x20c] sm:$0xf]  ;;  %v805_v8 = vpack.c.b16 %v725_v63, %v725_v63  ;;  %v806_v12 = vpack.c.b16 %v726_v0, %v726_v0  ;;  %v1846_v14 = vld [vmem:[%s2146_s15 + $0x22c] sm:$0xf0]  ;;  %v1548_v15 = vor.u32 %v1793_v3, %v1545_v4  ;;  %v1473_v17 = vld [vmem:[%s2146_s15 + $0x20] sm:$0xf0] }
  0x83   : > { %v1737_v6 = vld [vmem:[%s2146_s15 + $0x228] sm:$0xf0]  ;;  %v1711_v22 = vld [vmem:[%s2146_s15 + $0x1d0] sm:$0xf]  ;;  %v1716_v25 = vor.u32 %v1834_v7, %v1713_v11  ;;  %v1744_v26 = vor.u32 %v1846_v14, %v1743_v13  ;;  %v1842_v35 = vld [vmem:[%s2146_s15 + $0x214] sm:$0xf] }
  0x84   : > { %v1785_v18 = vld [vmem:[%s2146_s15 + $0x4c] sm:$0xf]  ;;  %v902_v19 = vand.u32 %v2154_v23, %v805_v8  ;;  %v1740_v20 = vor.u32 %v1841_v5, %v1737_v6  ;;  %v1838_v24 = vld [vmem:[%s2146_s15 + $0x1ec] sm:$0xf0]  ;;  %v905_v30 = vand.u32 %v2154_v23, %v806_v12  ;;  %v1745_v36 = vld [vmem:[%s2146_s15 + $0x230] sm:$0xf0] }
  0x85   : > { %998 = vmatpush.bf16.msra.mxu3 %v1676_v16  ;;  %944 = vmatpush.bf16.msrb.mxu2 %v1604_v28  ;;  %v1776_v16 = vld [vmem:[%s2146_s15 + $0x4] sm:$0xf]  ;;  %v1513_v21 = vld [vmem:[%s2146_s15 + $0x68] sm:$0xf0]  ;;  %v1826_v28 = vld [vmem:[%s2146_s15 + $0x194] sm:$0xf]  ;;  %v1712_v32 = vor.u32 %v1838_v24, %v1711_v22  ;;  %v1748_v45 = vor.u32 %v1842_v35, %v1745_v36 }
  0x86   : > { %919 = vmatpush.bf16.msra.mxu0 %v1504_v44  ;;  %975 = vmatpush.bf16.msra.mxu1 %v1512_v48  ;;  %v1476_v27 = vor.u32 %v1776_v16, %v1473_v17  ;;  %v1516_v31 = vor.u32 %v1785_v18, %v1513_v21  ;;  %v1777_v34 = vld [vmem:[%s2146_s15 + $0xc] sm:$0xf]  ;;  %v1679_v38 = vld [vmem:[%s2146_s15 + $0x190] sm:$0xf]  ;;  %v1719_v41 = vld [vmem:[%s2146_s15 + $0x1d8] sm:$0xf] }
  0x87   : > { %v1481_v37 = vld [vmem:[%s2146_s15 + $0x28] sm:$0xf0]  ;;  %v1830_v39 = vld [vmem:[%s2146_s15 + $0x1ac] sm:$0xf0]  ;;  %v1649_v44 = vld [vmem:[%s2146_s15 + $0x170] sm:$0xf0] }
  0x88   : > { %1759 = vmatmul.msk.bf16.vlgmr.msrb.gmra.mxu3 %vm881_vm2, %v2187_v60  ;;  %v1484_v46 = vor.u32 %v1777_v34, %v1481_v37  ;;  %v1680_v47 = vor.u32 %v1830_v39, %v1679_v38  ;;  %v1647_v48 = vld [vmem:[%s2146_s15 + $0x150] sm:$0xf]  ;;  %v1687_v51 = vld [vmem:[%s2146_s15 + $0x198] sm:$0xf]  ;;  %v1810_v53 = vld [vmem:[%s2146_s15 + $0x114] sm:$0xf] }
  0x89   : > { %999 = vmatpush.bf16.msra.mxu3 %v1644_v29  ;;  %945 = vmatpush.bf16.msrb.mxu2 %v1572_v42  ;;  %v1681_v29 = vld [vmem:[%s2146_s15 + $0x1b0] sm:$0xf0]  ;;  %v1839_v42 = vld [vmem:[%s2146_s15 + $0x1f4] sm:$0xf0]  ;;  %v1822_v33 = vld [vmem:[%s2146_s15 + $0x16c] sm:$0xf0] }
  0x8a   : > { %920 = vmatpush.bf16.msra.mxu0 %v1472_v58  ;;  %976 = vmatpush.bf16.msra.mxu1 %v1480_v2  ;;  %v1684_v40 = vor.u32 %v1826_v28, %v1681_v29  ;;  %v1720_v49 = vor.u32 %v1839_v42, %v1719_v41  ;;  %v1831_v52 = vld [vmem:[%s2146_s15 + $0x1b4] sm:$0xf0]  ;;  %v1648_v55 = vor.u32 %v1822_v33, %v1647_v48  ;;  %v1615_v56 = vld [vmem:[%s2146_s15 + $0x110] sm:$0xf]  ;;  %v1835_v63 = vld [vmem:[%s2146_s15 + $0x1dc] sm:$0xf] }
  0x8b   : > { %v1688_v58 = vor.u32 %v1831_v52, %v1687_v51  ;;  %v1655_v59 = vld [vmem:[%s2146_s15 + $0x158] sm:$0xf]  ;;  %v1721_v0 = vld [vmem:[%s2146_s15 + $0x1f8] sm:$0xf0]  ;;  %v1585_v2 = vld [vmem:[%s2146_s15 + $0xf0] sm:$0xf0] }
  0x8c   : > { %v1823_v62 = vld [vmem:[%s2146_s15 + $0x174] sm:$0xf0]  ;;  %v1583_v4 = vld [vmem:[%s2146_s15 + $0xd0] sm:$0xf]  ;;  %v1724_v7 = vor.u32 %v1835_v63, %v1721_v0  ;;  %v1827_v12 = vld [vmem:[%s2146_s15 + $0x19c] sm:$0xf] }
  0x8d   : > { %1000 = vmatpush.bf16.msra.mxu3 %v1612_v43  ;;  %946 = vmatpush.bf16.msrb.mxu2 %v1540_v54  ;;  %v1818_v43 = vld [vmem:[%s2146_s15 + $0x154] sm:$0xf]  ;;  %v1806_v5 = vld [vmem:[%s2146_s15 + $0xec] sm:$0xf0]  ;;  %v1656_v6 = vor.u32 %v1823_v62, %v1655_v59  ;;  %v1623_v8 = vld [vmem:[%s2146_s15 + $0x118] sm:$0xf] }
  0x8e   : > { %1017 = vmatpush.bf16.msrb.mxu0 %v899_v1  ;;  %1045 = vmatpush.bf16.msrb.mxu1 %v902_v19  ;;  %v1652_v50 = vor.u32 %v1818_v43, %v1649_v44  ;;  %v1617_v54 = vld [vmem:[%s2146_s15 + $0x130] sm:$0xf0]  ;;  %v1815_v11 = vld [vmem:[%s2146_s15 + $0x134] sm:$0xf0]  ;;  %v1689_v13 = vld [vmem:[%s2146_s15 + $0x1b8] sm:$0xf0]  ;;  %v1584_v16 = vor.u32 %v1806_v5, %v1583_v4 }
  0x8f   : > { %921 = vmatmul.bf16.vlgmr.msra.gmra.mxu0 %v2248_v10  ;;  %977 = vmatmul.bf16.vlgmr.msra.gmra.mxu1 %v2248_v10  ;;  %v1620_v61 = vor.u32 %v1810_v53, %v1617_v54  ;;  %v1802_v1 = vld [vmem:[%s2146_s15 + $0xd4] sm:$0xf]  ;;  %v491_v17 = vld [vmem:[%s2146_s15 + $0x258] sm:$0x33]  ;;  %v1551_v18 = vld [vmem:[%s2146_s15 + $0x90] sm:$0xf]  ;;  %v1692_v21 = vor.u32 %v1827_v12, %v1689_v13 }
  0x90   : > { %v1794_v14 = vld [vmem:[%s2146_s15 + $0x94] sm:$0xf]  ;;  %v1798_v19 = vld [vmem:[%s2146_s15 + $0xac] sm:$0xf0]  ;;  %v1591_v22 = vld [vmem:[%s2146_s15 + $0xd8] sm:$0xf]  ;;  %v727_v38 = vunpack.c.l.b16 %v491_v17 }
  0x91   : > { %1001 = vmatpush.bf16.msra.mxu3 %v1580_v57  ;;  %947 = vmatpush.bf16.msrb.mxu2 %v1508_v9  ;;  %v1814_v57 = vld [vmem:[%s2146_s15 + $0x12c] sm:$0xf0]  ;;  %v1588_v9 = vor.u32 %v1802_v1, %v1585_v2  ;;  %v1786_v28 = vld [vmem:[%s2146_s15 + $0x54] sm:$0xf]  ;;  %v1559_v37 = vld [vmem:[%s2146_s15 + $0x98] sm:$0xf] }
  0x92   : > { %1018 = vmatpush.bf16.msrb.mxu0 %v1740_v20  ;;  %1046 = vmatpush.bf16.msrb.mxu1 %v1744_v26  ;;  %v1616_v3 = vor.u32 %v1814_v57, %v1615_v56  ;;  %v1624_v20 = vor.u32 %v1815_v11, %v1623_v8  ;;  %v1819_v26 = vld [vmem:[%s2146_s15 + $0x15c] sm:$0xf]  ;;  %v1521_v29 = vld [vmem:[%s2146_s15 + $0x70] sm:$0xf0]  ;;  %v1790_v34 = vld [vmem:[%s2146_s15 + $0x6c] sm:$0xf0] }
  0x93   : > { %v1524_v39 = vor.u32 %v1786_v28, %v1521_v29  ;;  %v1811_v41 = vld [vmem:[%s2146_s15 + $0x11c] sm:$0xf]  ;;  %v1778_v43 = vld [vmem:[%s2146_s15 + $0x14] sm:$0xf]  ;;  %v1782_v48 = vld [vmem:[%s2146_s15 + $0x2c] sm:$0xf0] }
  0x94   : > { %v1625_v42 = vld [vmem:[%s2146_s15 + $0x138] sm:$0xf0]  ;;  %v1489_v44 = vld [vmem:[%s2146_s15 + $0x30] sm:$0xf0]  ;;  %v1527_v52 = vld [vmem:[%s2146_s15 + $0x58] sm:$0xf] }
  0x95   : > { %1002 = vmatpush.bf16.msra.mxu3 %v1548_v15  ;;  %948 = vmatpush.bf16.msrb.mxu2 %v1476_v27  ;;  %v1553_v15 = vld [vmem:[%s2146_s15 + $0xb0] sm:$0xf0]  ;;  %v1657_v27 = vld [vmem:[%s2146_s15 + $0x178] sm:$0xf0]  ;;  %v1492_v51 = vor.u32 %v1778_v43, %v1489_v44  ;;  %v1791_v53 = vld [vmem:[%s2146_s15 + $0x74] sm:$0xf0] }
  0x96   : > { %1053 = vmatpush.bf16.msra.mxu0 %v1716_v25  ;;  %1073 = vmatpush.bf16.msra.mxu1 %v905_v30  ;;  %v1556_v24 = vor.u32 %v1794_v14, %v1553_v15  ;;  %v1807_v25 = vld [vmem:[%s2146_s15 + $0xf4] sm:$0xf0]  ;;  %v728_v30 = vunpack.c.h.b16 %v491_v17  ;;  %v1660_v36 = vor.u32 %v1819_v26, %v1657_v27  ;;  %v1803_v54 = vld [vmem:[%s2146_s15 + $0xdc] sm:$0xf]  ;;  %v1528_v62 = vor.u32 %v1791_v53, %v1527_v52 }
  0x97   : > { %v1592_v35 = vor.u32 %v1807_v25, %v1591_v22  ;;  %v1753_v59 = vld [vmem:[%s2146_s15 + $0x238] sm:$0xf0]  ;;  %v1495_v0 = vld [vmem:[%s2146_s15 + $0x18] sm:$0xf] }
  0x98   : > { %949 = vmatmul.bf16.vlgmr.msrb.gmra.mxu2 %v2248_v10  ;;  %v1751_v1 = vld [vmem:[%s2146_s15 + $0x218] sm:$0xf]  ;;  %v1795_v4 = vld [vmem:[%s2146_s15 + $0x9c] sm:$0xf] }
  0x99   : > { %1003 = vmatpush.bf16.msra.mxu3 %v1516_v31  ;;  %1025 = vmatpush.bf16.msra.mxu2 %v1712_v32  ;;  %v1552_v31 = vor.u32 %v1798_v19, %v1551_v18  ;;  %v1519_v32 = vld [vmem:[%s2146_s15 + $0x50] sm:$0xf]  ;;  %v1847_v2 = vld [vmem:[%s2146_s15 + $0x234] sm:$0xf0]  ;;  %v1561_v5 = vld [vmem:[%s2146_s15 + $0xb8] sm:$0xf0] }
  0x9a   : > { %1054 = vmatpush.bf16.msra.mxu0 %v1684_v40  ;;  %1074 = vmatpush.bf16.msra.mxu1 %v1748_v45  ;;  %v1799_v40 = vld [vmem:[%s2146_s15 + $0xb4] sm:$0xf0]  ;;  %v808_v45 = vpack.c.b16 %v728_v30, %v728_v30  ;;  %v1564_v8 = vor.u32 %v1795_v4, %v1561_v5  ;;  %v1529_v11 = vld [vmem:[%s2146_s15 + $0x78] sm:$0xf0] }
  0x9b   : > { %v1560_v33 = vor.u32 %v1799_v40, %v1559_v37  ;;  %v1779_v13 = vld [vmem:[%s2146_s15 + $0x1c] sm:$0xf] }
  0x9c   : > { %v911_v56 = vand.u32 %v2154_v23, %v808_v45  ;;  %v1497_v14 = vld [vmem:[%s2146_s15 + $0x38] sm:$0xf0] }
  0x9d   : > { %1004 = vmatpush.bf16.msra.mxu3 %v1484_v46  ;;  %1026 = vmatpush.bf16.msra.mxu2 %v1680_v47  ;;  %v1520_v46 = vor.u32 %v1790_v34, %v1519_v32  ;;  %v1487_v47 = vld [vmem:[%s2146_s15 + $0x10] sm:$0xf]  ;;  %v1500_v15 = vor.u32 %v1779_v13, %v1497_v14 }
  0x9e   : > { %1055 = vmatpush.bf16.msra.mxu0 %v1652_v50  ;;  %v807_v50 = vpack.c.b16 %v727_v38, %v727_v38  ;;  %v1488_v57 = vor.u32 %v1782_v48, %v1487_v47 }
  0x9f   : > { %1760 = vmatmul.msk.bf16.vlgmr.msrb.gmra.mxu0 %vm881_vm2, %v2187_v60  ;;  %1761 = vmatmul.msk.bf16.vlgmr.msrb.gmra.mxu1 %vm881_vm2, %v2187_v60 }
  0xa0   : > { %1005 = vmatmul.bf16.vlgmr.msra.gmra.mxu3 %v2248_v10  ;;  %1109 = vmatpush.bf16.msrb.mxu1 %v1724_v7 }
  0xa1   : > { %1081 = vmatpush.bf16.msrb.mxu3 %v1720_v49  ;;  %1027 = vmatpush.bf16.msra.mxu2 %v1648_v55  ;;  %v1628_v49 = vor.u32 %v1811_v41, %v1625_v42  ;;  %v1593_v55 = vld [vmem:[%s2146_s15 + $0xf8] sm:$0xf0] }
  0xa2   : > { %1056 = vmatpush.bf16.msra.mxu0 %v1620_v61  ;;  %v908_v61 = vand.u32 %v2154_v23, %v807_v50  ;;  %v1596_v63 = vor.u32 %v1803_v54, %v1593_v55  ;;  %v1752_v23 = vor.u32 %v1847_v2, %v1751_v1 }
  0xa4   : > { %1110 = vmatpush.bf16.msrb.mxu1 %v1692_v21 }
  0xa5   : > { %1082 = vmatpush.bf16.msrb.mxu3 %v1688_v58  ;;  %1028 = vmatpush.bf16.msra.mxu2 %v1616_v3  ;;  %v1843_v58 = vld [vmem:[%s2146_s15 + $0x21c] sm:$0xf]  ;;  %v1783_v3 = vld [vmem:[%s2146_s15 + $0x34] sm:$0xf0] }
  0xa6   : > { %1057 = vmatpush.bf16.msra.mxu0 %v1588_v9  ;;  %v1496_v7 = vor.u32 %v1783_v3, %v1495_v0  ;;  %v1787_v9 = vld [vmem:[%s2146_s15 + $0x5c] sm:$0xf] }
  0xa7   : > { %v1532_v12 = vor.u32 %v1787_v9, %v1529_v11 }
  0xa8   : > { %1111 = vmatpush.bf16.msrb.mxu1 %v1660_v36 }
  0xa9   : > { %1083 = vmatpush.bf16.msrb.mxu3 %v1656_v6  ;;  %1029 = vmatpush.bf16.msra.mxu2 %v1584_v16  ;;  %v1756_v6 = vor.u32 %v1843_v58, %v1753_v59 }
  0xaa   : > { %1058 = vmatpush.bf16.msra.mxu0 %v1556_v24 }
  0xac   : > { %1112 = vmatpush.bf16.msrb.mxu1 %v1628_v49 }
  0xad   : > { %1084 = vmatpush.bf16.msrb.mxu3 %v1624_v20  ;;  %1030 = vmatpush.bf16.msra.mxu2 %v1552_v31 }
  0xae   : > { %1059 = vmatpush.bf16.msra.mxu0 %v1524_v39 }
  0xaf   : > { %1762 = vmatmul.msk.bf16.vlgmr.msra.gmra.mxu1 %vm881_vm2, %v2187_v60 }
  0xb0   : > { %1113 = vmatpush.bf16.msrb.mxu1 %v1596_v63 }
  0xb1   : > { %1085 = vmatpush.bf16.msrb.mxu3 %v1592_v35  ;;  %1031 = vmatpush.bf16.msra.mxu2 %v1520_v46 }
  0xb2   : > { %1060 = vmatpush.bf16.msra.mxu0 %v1492_v51 }
  0xb4   : > { %1114 = vmatpush.bf16.msrb.mxu1 %v1564_v8 }
  0xb5   : > { %1086 = vmatpush.bf16.msrb.mxu3 %v1560_v33  ;;  %1032 = vmatpush.bf16.msra.mxu2 %v1488_v57 }
  0xb6   : > { %1129 = vmatpush.bf16.msrb.mxu0 %v911_v56 }
  0xb7   : > { %1061 = vmatmul.bf16.vlgmr.msra.gmra.mxu0 %v2248_v10 }
  0xb8   : > { %1033 = vmatmul.bf16.vlgmr.msra.gmra.mxu2 %v2248_v10  ;;  %1115 = vmatpush.bf16.msrb.mxu1 %v1532_v12 }
  0xb9   : > { %1101 = vmatpush.bf16.msrb.mxu2 %v908_v61  ;;  %1087 = vmatpush.bf16.msrb.mxu3 %v1528_v62 }
  0xba   : > { %1130 = vmatpush.bf16.msrb.mxu0 %v1756_v6 }
  0xbc   : > { %1116 = vmatpush.bf16.msrb.mxu1 %v1500_v15 }
  0xbd   : > { %1102 = vmatpush.bf16.msrb.mxu2 %v1752_v23  ;;  %1088 = vmatpush.bf16.msrb.mxu3 %v1496_v7 }
  0xbf   : > { %1117 = vmatmul.bf16.vlgmr.msrb.gmra.mxu1 %v2248_v10 }
  0xc0   : > { %1089 = vmatmul.bf16.vlgmr.msrb.gmra.mxu3 %v2248_v10 }
  0xc7   : > { %1764 = vmatmul.msk.bf16.vlgmr.msrb.gmra.mxu0 %vm881_vm2, %v2187_v60 }
  0xc8   : > { %1763 = vmatmul.msk.bf16.vlgmr.msrb.gmra.mxu2 %vm881_vm2, %v2187_v60 }
  0xfb   : > { %v964_v16 = vpop.f32.mrf.mxu3  ;;  %v936_v18 = vpop.f32.mrf.mxu2 }
 0x103   : > { %v966_v17 = vpop.f32.mrf.mxu3  ;;  %v938_v60 = vpop.f32.mrf.mxu2 }
 0x10b   : > { %v992_v20 = vpop.f32.mrf.mxu3 }
 0x10c   : > { %v922_v19 = vpop.f32.mrf.mxu0  ;;  %v978_v22 = vpop.f32.mrf.mxu1 }
 0x10d   : > { %v2352_v21 = vadd.f32 %v936_v18, %v922_v19  ;;  %v2354_v24 = vadd.f32 %v992_v20, %v978_v22 }
 0x10f   : > { %1137 = vst [vmem:[%s2356_s7] sm:$0xff] %v2352_v21 }
 0x110   : > { %1139 = vst [vmem:[%s2356_s7 + $0x10] sm:$0xff] %v2354_v24 }
 0x113   : > { %v994_v25 = vpop.f32.mrf.mxu3 }
 0x114   : > { %v924_v10 = vpop.f32.mrf.mxu0  ;;  %v980_v27 = vpop.f32.mrf.mxu1 }
 0x115   : > { %v2362_v26 = vadd.f32 %v938_v60, %v924_v10  ;;  %v2364_v28 = vadd.f32 %v994_v25, %v980_v27 }
 0x117   : > { %1145 = vst [vmem:[%s2356_s7 + $0x40] sm:$0xff] %v2362_v26 }
 0x118   : > { %1147 = vst [vmem:[%s2356_s7 + $0x50] sm:$0xff] %v2364_v28 }
 0x11b   : > { %v950_v29 = vpop.f32.mrf.mxu2 }
 0x11c   : > { %v2370_v30 = vadd.f32 %v964_v16, %v950_v29  ;;  %v1020_v31 = vpop.f32.mrf.mxu0  ;;  %v1048_v32 = vpop.f32.mrf.mxu1 }
 0x11e   : > { %1138 = vst [vmem:[%s2356_s7 + $0x8] sm:$0xff] %v2370_v30  ;;  %v1153_v49 = vadd.f32 %v2370_v30, %v2352_v21 }
 0x120   : > { %v1154_v50 = vadd.f32 %v1153_v49, %v2354_v24 }
 0x123   : > { %v1006_v34 = vpop.f32.mrf.mxu3  ;;  %v952_v36 = vpop.f32.mrf.mxu2 }
 0x124   : > { %v1021_v35 = vadd.f32 %v1020_v31, %v1006_v34  ;;  %v2375_v37 = vadd.f32 %v966_v17, %v952_v36  ;;  %v1022_v38 = vpop.f32.mrf.mxu0  ;;  %v1050_v39 = vpop.f32.mrf.mxu1 }
 0x126   : > { %1140 = vst [vmem:[%s2356_s7 + $0x18] sm:$0xff] %v1021_v35  ;;  %v1155_v56 = vadd.f32 %v1154_v50, %v1021_v35  ;;  %v1162_v57 = vadd.f32 %v2375_v37, %v2362_v26 }
 0x127   : > { %1146 = vst [vmem:[%s2356_s7 + $0x48] sm:$0xff] %v2375_v37 }
 0x128   : > { %v1163_v61 = vadd.f32 %v1162_v57, %v2364_v28 }
 0x12b   : > { %v1008_v40 = vpop.f32.mrf.mxu3 }
 0x12c   : > { %v2379_v41 = vadd.f32 %v1022_v38, %v1008_v40  ;;  %v1076_v42 = vpop.f32.mrf.mxu1 }
 0x12e   : > { %1148 = vst [vmem:[%s2356_s7 + $0x58] sm:$0xff] %v2379_v41  ;;  %v1164_v4 = vadd.f32 %v1163_v61, %v2379_v41 }
 0x134   : > { %v1062_v43 = vpop.f32.mrf.mxu0  ;;  %v1078_v45 = vpop.f32.mrf.mxu1 }
 0x135   : > { %v1077_v44 = vadd.f32 %v1076_v42, %v1062_v43 }
 0x137   : > { %1142 = vst [vmem:[%s2356_s7 + $0x28] sm:$0xff] %v1077_v44 }
 0x13b   : > { %v1034_v46 = vpop.f32.mrf.mxu2 }
 0x13c   : > { %v1064_v47 = vpop.f32.mrf.mxu0  ;;  %v1049_v48 = vadd.f32 %v1048_v32, %v1034_v46  ;;  %v1118_v52 = vpop.f32.mrf.mxu1 }
 0x13d   : > { %v2384_v33 = vadd.f32 %v1078_v45, %v1064_v47 }
 0x13e   : > { %1141 = vst [vmem:[%s2356_s7 + $0x20] sm:$0xff] %v1049_v48  ;;  %v1156_v58 = vadd.f32 %v1155_v56, %v1049_v48 }
 0x13f   : > { %1150 = vst [vmem:[%s2356_s7 + $0x68] sm:$0xff] %v2384_v33 }
 0x140   : > { %v1157_v2 = vadd.f32 %v1156_v58, %v1077_v44 }
 0x143   : > { %v1036_v51 = vpop.f32.mrf.mxu2  ;;  %v1090_v59 = vpop.f32.mrf.mxu3 }
 0x144   : > { %v1051_v53 = vadd.f32 %v1050_v39, %v1036_v51  ;;  %v1132_v54 = vpop.f32.mrf.mxu0  ;;  %v1120_v63 = vpop.f32.mrf.mxu1 }
 0x145   : > { %v1133_v55 = vadd.f32 %v1132_v54, %v1118_v52 }
 0x146   : > { %1149 = vst [vmem:[%s2356_s7 + $0x60] sm:$0xff] %v1051_v53  ;;  %v1165_v6 = vadd.f32 %v1164_v4, %v1051_v53 }
 0x147   : > { %1144 = vst [vmem:[%s2356_s7 + $0x38] sm:$0xff] %v1133_v55 }
 0x148   : > { %v1166_v11 = vadd.f32 %v1165_v6, %v2384_v33 }
 0x14b   : > { %v1104_v62 = vpop.f32.mrf.mxu2  ;;  %v1092_v7 = vpop.f32.mrf.mxu3 }
 0x14c   : > { %v1105_v0 = vadd.f32 %v1104_v62, %v1090_v59  ;;  %v1134_v1 = vpop.f32.mrf.mxu0 }
 0x14d   : > { %v1135_v3 = vadd.f32 %v1134_v1, %v1120_v63 }
 0x14e   : > { %1143 = vst [vmem:[%s2356_s7 + $0x30] sm:$0xff] %v1105_v0  ;;  %v1158_v5 = vadd.f32 %v1157_v2, %v1105_v0 }
 0x14f   : > { %1152 = vst [vmem:[%s2356_s7 + $0x78] sm:$0xff] %v1135_v3 }
 0x150   : > { %v1159_v23 = vadd.f32 %v1158_v5, %v1133_v55 }
 0x152   : > { %1160 = vadd.xlane.f32.xlu0 %v1159_v23 }
 0x153   : > { %v1106_v8 = vpop.f32.mrf.mxu2 }
 0x154   : > { %v1107_v9 = vadd.f32 %v1106_v8, %v1092_v7 }
 0x156   : > { %1151 = vst [vmem:[%s2356_s7 + $0x70] sm:$0xff] %v1107_v9  ;;  %v1167_v12 = vadd.f32 %v1166_v11, %v1107_v9 }
 0x158   : > { %v1168_v13 = vadd.f32 %v1167_v12, %v1135_v3 }
 0x15a   : > { %1169 = vadd.xlane.f32.xlu0 %v1168_v13 }
 0x1c5   : > { %v1161_v14 = vpop.xlane.xlu0 %1160 }
 0x1c6   : > { %v2402_v15 = vmul.f32 0.0009765625, %v1161_v14 }
 0x1c8   : > { %v1173_v16 = vsub.f32 %v2352_v21, %v2402_v15  ;;  %v1174_v17 = vsub.f32 %v2370_v30, %v2402_v15  ;;  %v1175_v18 = vsub.f32 %v2354_v24, %v2402_v15  ;;  %v1176_v19 = vsub.f32 %v1021_v35, %v2402_v15 }
 0x1c9   : > { %v1177_v60 = vsub.f32 %v1049_v48, %v2402_v15  ;;  %v1178_v29 = vsub.f32 %v1077_v44, %v2402_v15  ;;  %v1179_v30 = vsub.f32 %v1105_v0, %v2402_v15  ;;  %v1180_v39 = vsub.f32 %v1133_v55, %v2402_v15 }
 0x1ca   : > { %v1189_v20 = vmul.f32 %v1173_v16, %v1173_v16  ;;  %v1190_v22 = vmul.f32 %v1174_v17, %v1174_v17  ;;  %v1191_v10 = vmul.f32 %v1175_v18, %v1175_v18  ;;  %v1192_v21 = vmul.f32 %v1176_v19, %v1176_v19 }
 0x1cb   : > { %v1193_v34 = vmul.f32 %v1177_v60, %v1177_v60  ;;  %v1194_v40 = vmul.f32 %v1178_v29, %v1178_v29  ;;  %v1195_v46 = vmul.f32 %v1179_v30, %v1179_v30  ;;  %v1196_v50 = vmul.f32 %v1180_v39, %v1180_v39 }
 0x1cc   : > { %v1205_v25 = vadd.f32 %v1190_v22, %v1189_v20 }
 0x1cd   : > { %v1170_v27 = vpop.xlane.xlu0 %1169 }
 0x1ce   : > { %v2413_v31 = vmul.f32 0.0009765625, %v1170_v27  ;;  %v1206_v32 = vadd.f32 %v1205_v25, %v1191_v10 }
 0x1d0   : > { %v1207_v36 = vadd.f32 %v1206_v32, %v1192_v21  ;;  %v1181_v24 = vsub.f32 %v2362_v26, %v2413_v31  ;;  %v1182_v35 = vsub.f32 %v2375_v37, %v2413_v31  ;;  %v1183_v38 = vsub.f32 %v2364_v28, %v2413_v31 }
 0x1d1   : > { %v1184_v43 = vsub.f32 %v2379_v41, %v2413_v31  ;;  %v1185_v48 = vsub.f32 %v1051_v53, %v2413_v31  ;;  %v1186_v28 = vsub.f32 %v2384_v33, %v2413_v31  ;;  %v1187_v55 = vsub.f32 %v1107_v9, %v2413_v31 }
 0x1d2   : > { %v1208_v42 = vadd.f32 %v1207_v36, %v1193_v34  ;;  %v1197_v44 = vmul.f32 %v1181_v24, %v1181_v24  ;;  %v1198_v45 = vmul.f32 %v1182_v35, %v1182_v35  ;;  %v1199_v26 = vmul.f32 %v1183_v38, %v1183_v38 }
 0x1d3   : > { %v1200_v51 = vmul.f32 %v1184_v43, %v1184_v43  ;;  %v1201_v56 = vmul.f32 %v1185_v48, %v1185_v48  ;;  %v1188_v57 = vsub.f32 %v1135_v3, %v2413_v31  ;;  %v1202_v58 = vmul.f32 %v1186_v28, %v1186_v28 }
 0x1d4   : > { %v1209_v47 = vadd.f32 %v1208_v42, %v1194_v40  ;;  %v1214_v49 = vadd.f32 %v1198_v45, %v1197_v44  ;;  %v1203_v53 = vmul.f32 %v1187_v55, %v1187_v55 }
 0x1d5   : > { %v1204_v62 = vmul.f32 %v1188_v57, %v1188_v57 }
 0x1d6   : > { %v1210_v37 = vadd.f32 %v1209_v47, %v1195_v46  ;;  %v1215_v52 = vadd.f32 %v1214_v49, %v1199_v26 }
 0x1d8   : > { %v1211_v54 = vadd.f32 %v1210_v37, %v1196_v50  ;;  %v1216_v41 = vadd.f32 %v1215_v52, %v1200_v51 }
 0x1da   : > { %1212 = vadd.xlane.f32.xlu1 %v1211_v54  ;;  %v1217_v59 = vadd.f32 %v1216_v41, %v1201_v56 }
 0x1dc   : > { %v1218_v61 = vadd.f32 %v1217_v59, %v1202_v58 }
 0x1de   : > { %v1219_v63 = vadd.f32 %v1218_v61, %v1203_v53 }
 0x1e0   : > { %v1220_v0 = vadd.f32 %v1219_v63, %v1204_v62 }
 0x1e2   : > { %1221 = vadd.xlane.f32.xlu1 %v1220_v0 }
 0x24d   : > { %v1213_v1 = vpop.xlane.xlu1 %1212 }
 0x251   : > { %1226 = sbr.rel (%p1765_p10) target bundleno = 603 (0x25b), region = 63 }
 0x255   : > { %v1222_v33 = vpop.xlane.xlu1 %1221 }
 0x256   : > { %vm1227_vm3 = vcmask 7168  }
 0x257   : > { %1228 = vst.msk [vmem:[#allocation2] sm:$0xff] %vm1227_vm3, %v2402_v15 }
 0x258   : > { %1229 = vst.msk [vmem:[#allocation2 + $0x8] sm:$0xff] %vm1227_vm3, %v2413_v31 }
 0x259   : > { %1230 = vst.msk [vmem:[#allocation3] sm:$0xff] %vm1227_vm3, %v1213_v1 }
 0x25a   : > { %1231 = vst.msk [vmem:[#allocation3 + $0x8] sm:$0xff] %vm1227_vm3, %v1222_v33 }
 0x25b PF: > { %p1766_p11 = scmp.le.s32.totalorder %s1960_s24, 0 }
 0x25c   : > { %s1236_s21 = scvt.s32.f32 (!%p1766_p11), %s1960_s24 }
 0x25d   : > { %1235 = sbr.rel (%p1766_p11) target bundleno = 687 (0x2af), region = 67 }
 0x25e   : > { %s1237_s8 = sadd.f32 (!%p1766_p11), 1.0, %s1236_s21  ;;  %s1272_s9 = smul.f32 (!%p1766_p11), 1024.0, %s1236_s21 }
 0x262   : > { %v1238_v2 = vstv %s1237_s8  ;;  %v1254_v13 = vld [vmem:[#allocation2] sm:$0xff]  ;;  %v1255_v14 = vld [vmem:[#allocation2 + $0x8] sm:$0xff]  ;;  %v1266_v18 = vld [vmem:[#allocation3] sm:$0xff]  ;;  %vm1263_vm8 = vcmask 7168  }
 0x263   : > { %1878 = vrcp.f32 %v1238_v2  ;;  %v1250_v5 = vand.u32 2147483648, %v1238_v2  ;;  %vm1244_vm4 = vweird.f32 %v1238_v2  ;;  %v1248_v23 = vand.u32 2147483647, %v1238_v2  ;;  %v1267_v19 = vld [vmem:[#allocation3 + $0x8] sm:$0xff] }
 0x264   : > { %v1256_v16 = vsub.f32 %v2402_v15, %v1254_v13  ;;  %v1257_v17 = vsub.f32 %v2413_v31, %v1255_v14  ;;  %v1268_v27 = vadd.f32 %v1266_v18, %v1213_v1  ;;  %v1269_v29 = vadd.f32 %v1267_v19, %v1222_v33 }
 0x265   : > { %v1251_v8 = vor.u32 1.1754944e-38, %v1250_v5  ;;  %vm1249_vm7 = vcmp.eq.f32.partialorder %v1248_v23, 8.507059e+37 }
 0x266   : > { %v1270_v20 = vmul.f32 %v1256_v16, %v1256_v16  ;;  %v1271_v22 = vmul.f32 %v1257_v17, %v1257_v17 }
 0x269   : > { %v1879_v3 = vpop.eup %1878 }
 0x26a   : > { %v1240_v4 = vmul.f32 %v1879_v3, %v1238_v2  ;;  %vm1245_vm5 = vweird.f32 %v1879_v3 }
 0x26b   : > { %vm1246_vm6 = vmor %vm1244_vm4, %vm1245_vm5 }
 0x26c   : > { %v1241_v6 = vsub.f32 1.0, %v1240_v4 }
 0x26e   : > { %v1242_v7 = vmul.f32 %v1879_v3, %v1241_v6 }
 0x270   : > { %v1243_v9 = vadd.f32 %v1879_v3, %v1242_v7 }
 0x272   : > { %v1247_v11 = vsel %vm1246_vm6, %v1879_v3, %v1243_v9 }
 0x273   : > { %v1252_v12 = vsel %vm1249_vm7, %v1251_v8, %v1247_v11 }
 0x274   : > { %1851 = vpush %v1252_v12 }
 0x2a5   : > { %s1852_s10 = spop %1851 }
 0x2a6   : > { %v1258_v60 = vstv %s1852_s10  ;;  %s1273_s11 = smul.f32 %s1852_s10, %s1272_s9 }
 0x2a7   : > { %v1259_v10 = vmul.f32 %v1258_v60, %v1256_v16  ;;  %v1260_v25 = vmul.f32 %v1258_v60, %v1257_v17 }
 0x2a8   : > { %v1274_v21 = vstv %s1273_s11 }
 0x2a9   : > { %v1261_v32 = vadd.f32 %v1259_v10, %v1254_v13  ;;  %v1262_v30 = vadd.f32 %v1260_v25, %v1255_v14  ;;  %v1275_v34 = vmul.f32 %v1274_v21, %v1270_v20  ;;  %v1276_v15 = vmul.f32 %v1274_v21, %v1271_v22 }
 0x2ab   : > { %1264 = vst.msk [vmem:[#allocation2] sm:$0xff] %vm1263_vm8, %v1261_v32  ;;  %v1277_v31 = vadd.f32 %v1275_v34, %v1268_v27  ;;  %v1278_v36 = vadd.f32 %v1276_v15, %v1269_v29 }
 0x2ac   : > { %1265 = vst.msk [vmem:[#allocation2 + $0x8] sm:$0xff] %vm1263_vm8, %v1262_v30 }
 0x2ad   : > { %1279 = vst.msk [vmem:[#allocation3] sm:$0xff] %vm1263_vm8, %v1277_v31 }
 0x2ae   : > { %1280 = vst.msk [vmem:[#allocation3 + $0x8] sm:$0xff] %vm1263_vm8, %v1278_v36 }
 0x2af PF: > { %p1767_p12 = scmp.ne.s32.totalorder %s1960_s24, 1 }
 0x2b1   : > { %1284 = sbr.rel (%p1767_p12) target bundleno = 725 (0x2d5), region = 71 }
 0x2b6   : > { %v1285_v24 = vld [vmem:[#allocation3] sm:$0xff]  ;;  %v1286_v35 = vld [vmem:[#allocation3 + $0x8] sm:$0xff]  ;;  %v1289_v28 = vld [vmem:[%s2496_s2] sm:$0xff]  ;;  %vm1315_vm15 = vcmask 7168  }
 0x2b7   : > { %v1287_v38 = vmul.f32 0.00048828125, %v1285_v24  ;;  %v1288_v39 = vmul.f32 0.00048828125, %v1286_v35  ;;  %v1290_v52 = vld [vmem:[%s2496_s2 + $0x8] sm:$0xff]  ;;  %v1320_v56 = vld [vmem:[#allocation2] sm:$0xff] }
 0x2b8   : > { %v1321_v58 = vld [vmem:[#allocation2 + $0x8] sm:$0xff]  ;;  %v1318_v53 = vld [vmem:[%s2497_s3] sm:$0xff] }
 0x2b9   : > { %v1291_v40 = vadd.f32 1e-05, %v1287_v38  ;;  %v1292_v42 = vadd.f32 1e-05, %v1288_v39  ;;  %v1319_v62 = vld [vmem:[%s2497_s3 + $0x8] sm:$0xff] }
 0x2bb   : > { %1880 = vrsqrt.f32 %v1291_v40  ;;  %vm1299_vm9 = vweird.f32 %v1291_v40  ;;  %vm1309_vm11 = vweird.f32 %v1292_v42 }
 0x2bc   : > { %1882 = vrsqrt.f32 %v1292_v42 }
 0x2c1   : > { %v1881_v43 = vpop.eup %1880 }
 0x2c2   : > { %v1883_v44 = vpop.eup %1882  ;;  %v1294_v45 = vmul.f32 %v1881_v43, %v1291_v40  ;;  %vm1300_vm10 = vweird.f32 %v1881_v43 }
 0x2c3   : > { %v1304_v46 = vmul.f32 %v1883_v44, %v1292_v42  ;;  %vm1310_vm12 = vweird.f32 %v1883_v44  ;;  %vm1301_vm13 = vmor %vm1299_vm9, %vm1300_vm10 }
 0x2c4   : > { %v1295_v47 = vmul.f32 %v1881_v43, %v1294_v45  ;;  %vm1311_vm14 = vmor %vm1309_vm11, %vm1310_vm12 }
 0x2c5   : > { %v1305_v48 = vmul.f32 %v1883_v44, %v1304_v46 }
 0x2c6   : > { %v1296_v26 = vmul.f32 0.5, %v1295_v47 }
 0x2c7   : > { %v1306_v49 = vmul.f32 0.5, %v1305_v48 }
 0x2c8   : > { %v1297_v50 = vsub.f32 1.5, %v1296_v26 }
 0x2c9   : > { %v1307_v37 = vsub.f32 1.5, %v1306_v49 }
 0x2ca   : > { %v1298_v51 = vmul.f32 %v1881_v43, %v1297_v50 }
 0x2cb   : > { %v1308_v54 = vmul.f32 %v1883_v44, %v1307_v37 }
 0x2cc   : > { %v1302_v55 = vsel %vm1301_vm13, %v1881_v43, %v1298_v51 }
 0x2cd   : > { %v1313_v41 = vmul.f32 %v1302_v55, %v1289_v28  ;;  %v1312_v57 = vsel %vm1311_vm14, %v1883_v44, %v1308_v54 }
 0x2ce   : > { %v1314_v59 = vmul.f32 %v1312_v57, %v1290_v52 }
 0x2cf   : > { %1316 = vst.msk [vmem:[%s2499_s5] sm:$0xff] %vm1315_vm15, %v1313_v41  ;;  %v1322_v61 = vmul.f32 %v1320_v56, %v1313_v41 }
 0x2d0   : > { %1317 = vst.msk [vmem:[%s2499_s5 + $0x8] sm:$0xff] %vm1315_vm15, %v1314_v59  ;;  %v1323_v63 = vmul.f32 %v1321_v58, %v1314_v59 }
 0x2d1   : > { %v1324_v0 = vsub.f32 %v1318_v53, %v1322_v61 }
 0x2d2   : > { %v1325_v1 = vsub.f32 %v1319_v62, %v1323_v63 }
 0x2d3   : > { %1326 = vst.msk [vmem:[%s2500_s6] sm:$0xff] %vm1315_vm15, %v1324_v0 }
 0x2d4   : > { %1327 = vst.msk [vmem:[%s2500_s6 + $0x8] sm:$0xff] %vm1315_vm15, %v1325_v1 }
 0x2d5 PF: > { %1334 = sbr.rel (!%p1975_p5) target bundleno = 743 (0x2e7), region = 75  ;;  %s1848_s10 = sshll.u32 (%p1975_p5), %s1960_s24, 6  ;;  %v1350_v33 = vld [vmem:[%s2356_s7] sm:$0xff] (%p1975_p5)  ;;  %v1352_v2 = vld [vmem:[%s2356_s7 + $0x8] sm:$0xff] (%p1975_p5)  ;;  %v1354_v3 = vld [vmem:[%s2356_s7 + $0x10] sm:$0xff] (%p1975_p5) }
 0x2d6   : > { %s1337_s13 = scalar_lea.vmem (%p1975_p5), %s2498_s4, %s1848_s10  ;;  %v1356_v4 = vld [vmem:[%s2356_s7 + $0x18] sm:$0xff] (%p1975_p5)  ;;  %v1358_v5 = vld [vmem:[%s2356_s7 + $0x20] sm:$0xff] (%p1975_p5)  ;;  %v1360_v6 = vld [vmem:[%s2356_s7 + $0x28] sm:$0xff] (%p1975_p5) }
 0x2d7   : > { %1351 = vst [vmem:[%s1337_s13] sm:$0xff] (%p1975_p5), %v1350_v33  ;;  %v1362_v23 = vld [vmem:[%s2356_s7 + $0x30] sm:$0xff] (%p1975_p5)  ;;  %v1364_v7 = vld [vmem:[%s2356_s7 + $0x38] sm:$0xff] (%p1975_p5)  ;;  %v1366_v8 = vld [vmem:[%s2356_s7 + $0x40] sm:$0xff] (%p1975_p5) }
 0x2d8   : > { %1353 = vst [vmem:[%s1337_s13 + $0x8] sm:$0xff] (%p1975_p5), %v1352_v2  ;;  %v1368_v9 = vld [vmem:[%s2356_s7 + $0x48] sm:$0xff] (%p1975_p5)  ;;  %v1370_v11 = vld [vmem:[%s2356_s7 + $0x50] sm:$0xff] (%p1975_p5)  ;;  %v1372_v12 = vld [vmem:[%s2356_s7 + $0x58] sm:$0xff] (%p1975_p5) }
 0x2d9   : > { %1355 = vst [vmem:[%s1337_s13 + $0x10] sm:$0xff] (%p1975_p5), %v1354_v3  ;;  %v1374_v13 = vld [vmem:[%s2356_s7 + $0x60] sm:$0xff] (%p1975_p5)  ;;  %v1376_v14 = vld [vmem:[%s2356_s7 + $0x68] sm:$0xff] (%p1975_p5)  ;;  %v1378_v16 = vld [vmem:[%s2356_s7 + $0x70] sm:$0xff] (%p1975_p5) }
 0x2da   : > { %1357 = vst [vmem:[%s1337_s13 + $0x18] sm:$0xff] %v1356_v4  ;;  %v1380_v17 = vld [vmem:[%s2356_s7 + $0x78] sm:$0xff] }
 0x2db   : > { %1359 = vst [vmem:[%s1337_s13 + $0x20] sm:$0xff] %v1358_v5 }
 0x2dc   : > { %1361 = vst [vmem:[%s1337_s13 + $0x28] sm:$0xff] %v1360_v6 }
 0x2dd   : > { %1363 = vst [vmem:[%s1337_s13 + $0x30] sm:$0xff] %v1362_v23 }
 0x2de   : > { %1365 = vst [vmem:[%s1337_s13 + $0x38] sm:$0xff] %v1364_v7 }
 0x2df   : > { %1367 = vst [vmem:[%s1337_s13 + $0x80] sm:$0xff] %v1366_v8 }
 0x2e0   : > { %1369 = vst [vmem:[%s1337_s13 + $0x88] sm:$0xff] %v1368_v9 }
 0x2e1   : > { %1371 = vst [vmem:[%s1337_s13 + $0x90] sm:$0xff] %v1370_v11 }
 0x2e2   : > { %1373 = vst [vmem:[%s1337_s13 + $0x98] sm:$0xff] %v1372_v12 }
 0x2e3   : > { %1375 = vst [vmem:[%s1337_s13 + $0xa0] sm:$0xff] %v1374_v13 }
 0x2e4   : > { %1377 = vst [vmem:[%s1337_s13 + $0xa8] sm:$0xff] %v1376_v14 }
 0x2e5   : > { %1379 = vst [vmem:[%s1337_s13 + $0xb0] sm:$0xff] %v1378_v16 }
 0x2e6   : > { %1381 = vst [vmem:[%s1337_s13 + $0xb8] sm:$0xff] %v1380_v17 }
 0x2e7 PF: > { %p14_p13 = scmp.ge.s32.totalorder %s1963_s25, 4   ;;  %s2502_s21 = smov %s1902_s22 }
 0x2e8   : > { %s2503_s22 = smov %s1973_s28  ;;  %s2504_s23 = smov %s1963_s25 }
 0x2e9   :  { %16 = sbr.rel (!%p14_p13) target bundleno = 2 (0x2), region = 145 }

// kernel: encoder_forward.18
= control target key start
LH: loop header
LB: loop body
LE: loop exit
PB: predicated region body
PF: predicated region fallthrough
CT: control target
= control target key end

     0   :  { %v188_v0 = vmov 0   ;;  %s331_s1 = inlined_call_operand.vmem [shape: f32[32,1], index: 1, kind: input, shape index: {}]   ;;  %s332_s2 = inlined_call_operand.vmem [shape: f32[32,1], index: 2, kind: input, shape index: {}]   ;;  %s333_s0 = inlined_call_operand.vmem [shape: f32[32,512], index: 0, kind: input, shape index: {}]   ;;  %s334_s3 = inlined_call_operand.<no memory space> [shape: f32[1], index: 3, kind: input, shape index: {}]   ;;  %s335_s4 = inlined_call_operand.vmem [shape: bf16[32,512], index: 4, kind: output, shape index: {}]  }
   0x1   :  { %186 = vset.pattern.permute.xlu1 %v188_v0  ;;  %185 = vset.pattern.permute.xlu0 %v188_v0  ;;  %v36_v1 = vld [vmem:[%s331_s1 + $0x10] sm:$0xff]  ;;  %v34_v2 = vld [vmem:[%s331_s1] sm:$0xff]  ;;  %v37_v4 = vld [vmem:[%s331_s1 + $0x18] sm:$0xff]  ;;  %v253_v20 = vstv %s334_s3 }
   0x2   :  { %50 = vperm.xlu1 %186, %v36_v1   ;;  %40 = vperm.xlu0 %185, %v34_v2   ;;  %v74_v3 = vld [vmem:[%s332_s2] sm:$0xff]  ;;  %v35_v5 = vld [vmem:[%s331_s1 + $0x8] sm:$0xff]  ;;  %v77_v7 = vld [vmem:[%s332_s2 + $0x18] sm:$0xff] }
   0x3   :  { %187 = vset.pattern.permute.xlu2 %v188_v0  ;;  %v75_v6 = vld [vmem:[%s332_s2 + $0x8] sm:$0xff]  ;;  %v76_v8 = vld [vmem:[%s332_s2 + $0x10] sm:$0xff]  ;;  %v18_v9 = vld [vmem:[%s333_s0] sm:$0xff] }
   0x4   :  { %80 = vperm.xlu2 %187, %v74_v3   ;;  %v19_v10 = vld [vmem:[%s333_s0 + $0x8] sm:$0xff]  ;;  %v20_v11 = vld [vmem:[%s333_s0 + $0x10] sm:$0xff]  ;;  %v21_v12 = vld [vmem:[%s333_s0 + $0x18] sm:$0xff] }
   0x5   :  { %v22_v29 = vld [vmem:[%s333_s0 + $0x20] sm:$0xff]  ;;  %v23_v30 = vld [vmem:[%s333_s0 + $0x28] sm:$0xff]  ;;  %v24_v31 = vld [vmem:[%s333_s0 + $0x30] sm:$0xff] }
   0x6   :  { %v25_v32 = vld [vmem:[%s333_s0 + $0x38] sm:$0xff]  ;;  %v26_v33 = vld [vmem:[%s333_s0 + $0x40] sm:$0xff]  ;;  %v27_v40 = vld [vmem:[%s333_s0 + $0x48] sm:$0xff] }
   0x7   :  { %v28_v41 = vld [vmem:[%s333_s0 + $0x50] sm:$0xff]  ;;  %v30_v46 = vld [vmem:[%s333_s0 + $0x60] sm:$0xff]  ;;  %v29_v47 = vld [vmem:[%s333_s0 + $0x58] sm:$0xff] }
   0x8   :  { %v31_v58 = vld [vmem:[%s333_s0 + $0x68] sm:$0xff]  ;;  %v32_v59 = vld [vmem:[%s333_s0 + $0x70] sm:$0xff]  ;;  %v33_v0 = vld [vmem:[%s333_s0 + $0x78] sm:$0xff] }
   0xa   :  { %55 = vperm.xlu1 %186, %v37_v4   ;;  %45 = vperm.xlu0 %185, %v35_v5  }
   0xc   :  { %85 = vperm.xlu2 %187, %v75_v6  }
  0x12   :  { %95 = vperm.xlu1 %186, %v77_v7   ;;  %90 = vperm.xlu0 %185, %v76_v8  }
  0x5e   :  { %v81_v13 = vpop.permute.xlu2 %80 }
  0x66   :  { %v86_v48 = vpop.permute.xlu2 %85 }
  0x74   :  { %v51_v14 = vpop.permute.xlu1 %50  ;;  %v41_v15 = vpop.permute.xlu0 %40 }
  0x75   :  { %v58_v16 = vmul.f32 %v41_v15, %v18_v9  ;;  %v59_v17 = vmul.f32 %v41_v15, %v19_v10  ;;  %v60_v18 = vmul.f32 %v41_v15, %v20_v11  ;;  %v61_v19 = vmul.f32 %v41_v15, %v21_v12 }
  0x76   :  { %v66_v51 = vmul.f32 %v51_v14, %v26_v33  ;;  %v67_v54 = vmul.f32 %v51_v14, %v27_v40  ;;  %v68_v55 = vmul.f32 %v51_v14, %v28_v41  ;;  %v69_v61 = vmul.f32 %v51_v14, %v29_v47 }
  0x77   :  { %v98_v21 = vadd.f32 %v81_v13, %v58_v16  ;;  %v99_v22 = vadd.f32 %v81_v13, %v59_v17  ;;  %v100_v23 = vadd.f32 %v81_v13, %v60_v18  ;;  %v101_v24 = vadd.f32 %v81_v13, %v61_v19 }
  0x79   :  { %vm115_vm0 = vcmp.gt.f32.partialorder %v98_v21, 0.0  ;;  %vm116_vm1 = vcmp.gt.f32.partialorder %v99_v22, 0.0  ;;  %vm117_vm2 = vcmp.gt.f32.partialorder %v100_v23, 0.0  ;;  %vm118_vm3 = vcmp.gt.f32.partialorder %v101_v24, 0.0 }
  0x7a   :  { %v132_v25 = vmul.f32 %v253_v20, %v98_v21  ;;  %v133_v26 = vmul.f32 %v253_v20, %v99_v22  ;;  %v134_v27 = vmul.f32 %v253_v20, %v100_v23  ;;  %v135_v28 = vmul.f32 %v253_v20, %v101_v24 }
  0x7c   :  { %v148_v34 = vsel %vm115_vm0, %v98_v21, %v132_v25  ;;  %v149_v35 = vsel %vm116_vm1, %v99_v22, %v133_v26  ;;  %v150_v36 = vsel %vm117_vm2, %v100_v23, %v134_v27  ;;  %v151_v37 = vsel %vm118_vm3, %v101_v24, %v135_v28  ;;  %v56_v38 = vpop.permute.xlu1 %55  ;;  %v46_v39 = vpop.permute.xlu0 %45 }
  0x7d   :  { %v164_v42 = vpack.c.bf16 %v149_v35, %v148_v34  ;;  %v165_v43 = vpack.c.bf16 %v151_v37, %v150_v36  ;;  %v62_v44 = vmul.f32 %v46_v39, %v22_v29  ;;  %v63_v45 = vmul.f32 %v46_v39, %v23_v30 }
  0x7e   :  { %v64_v49 = vmul.f32 %v46_v39, %v24_v31  ;;  %v65_v50 = vmul.f32 %v46_v39, %v25_v32  ;;  %v70_v60 = vmul.f32 %v56_v38, %v30_v46  ;;  %v71_v5 = vmul.f32 %v56_v38, %v31_v58 }
  0x7f   :  { %172 = vst [vmem:[%s335_s4] sm:$0xff] %v164_v42  ;;  %v102_v52 = vadd.f32 %v86_v48, %v62_v44  ;;  %v103_v53 = vadd.f32 %v86_v48, %v63_v45  ;;  %v72_v6 = vmul.f32 %v56_v38, %v32_v59  ;;  %v73_v11 = vmul.f32 %v56_v38, %v33_v0 }
  0x80   :  { %173 = vst [vmem:[%s335_s4 + $0x8] sm:$0xff] %v165_v43  ;;  %v104_v56 = vadd.f32 %v86_v48, %v64_v49  ;;  %v105_v57 = vadd.f32 %v86_v48, %v65_v50 }
  0x81   :  { %vm119_vm4 = vcmp.gt.f32.partialorder %v102_v52, 0.0  ;;  %vm120_vm5 = vcmp.gt.f32.partialorder %v103_v53, 0.0  ;;  %v136_v62 = vmul.f32 %v253_v20, %v102_v52  ;;  %v137_v63 = vmul.f32 %v253_v20, %v103_v53 }
  0x82   :  { %vm121_vm6 = vcmp.gt.f32.partialorder %v104_v56, 0.0  ;;  %vm122_vm7 = vcmp.gt.f32.partialorder %v105_v57, 0.0  ;;  %v138_v1 = vmul.f32 %v253_v20, %v104_v56  ;;  %v139_v2 = vmul.f32 %v253_v20, %v105_v57 }
  0x83   :  { %v152_v3 = vsel %vm119_vm4, %v102_v52, %v136_v62  ;;  %v153_v4 = vsel %vm120_vm5, %v103_v53, %v137_v63 }
  0x84   :  { %v154_v7 = vsel %vm121_vm6, %v104_v56, %v138_v1  ;;  %v155_v8 = vsel %vm122_vm7, %v105_v57, %v139_v2  ;;  %v166_v9 = vpack.c.bf16 %v153_v4, %v152_v3  ;;  %v96_v10 = vpop.permute.xlu1 %95  ;;  %v91_v12 = vpop.permute.xlu0 %90 }
  0x85   :  { %v167_v13 = vpack.c.bf16 %v155_v8, %v154_v7  ;;  %v110_v14 = vadd.f32 %v96_v10, %v70_v60  ;;  %v111_v15 = vadd.f32 %v96_v10, %v71_v5  ;;  %v112_v16 = vadd.f32 %v96_v10, %v72_v6 }
  0x86   :  { %174 = vst [vmem:[%s335_s4 + $0x10] sm:$0xff] %v166_v9  ;;  %v113_v17 = vadd.f32 %v96_v10, %v73_v11  ;;  %v106_v18 = vadd.f32 %v91_v12, %v66_v51  ;;  %v107_v19 = vadd.f32 %v91_v12, %v67_v54  ;;  %v108_v21 = vadd.f32 %v91_v12, %v68_v55 }
  0x87   :  { %175 = vst [vmem:[%s335_s4 + $0x18] sm:$0xff] %v167_v13  ;;  %vm127_vm8 = vcmp.gt.f32.partialorder %v110_v14, 0.0  ;;  %vm128_vm9 = vcmp.gt.f32.partialorder %v111_v15, 0.0  ;;  %vm129_vm10 = vcmp.gt.f32.partialorder %v112_v16, 0.0  ;;  %v144_v22 = vmul.f32 %v253_v20, %v110_v14 }
  0x88   :  { %vm130_vm11 = vcmp.gt.f32.partialorder %v113_v17, 0.0  ;;  %v145_v23 = vmul.f32 %v253_v20, %v111_v15  ;;  %v146_v24 = vmul.f32 %v253_v20, %v112_v16  ;;  %v147_v25 = vmul.f32 %v253_v20, %v113_v17 }
  0x89   :  { %v160_v26 = vsel %vm127_vm8, %v110_v14, %v144_v22  ;;  %v109_v27 = vadd.f32 %v91_v12, %v69_v61  ;;  %vm123_vm12 = vcmp.gt.f32.partialorder %v106_v18, 0.0  ;;  %vm124_vm13 = vcmp.gt.f32.partialorder %v107_v19, 0.0 }
  0x8a   :  { %v161_v28 = vsel %vm128_vm9, %v111_v15, %v145_v23  ;;  %v162_v29 = vsel %vm129_vm10, %v112_v16, %v146_v24  ;;  %v163_v30 = vsel %vm130_vm11, %v113_v17, %v147_v25  ;;  %vm125_vm14 = vcmp.gt.f32.partialorder %v108_v21, 0.0 }
  0x8b   :  { %v170_v31 = vpack.c.bf16 %v161_v28, %v160_v26  ;;  %v171_v32 = vpack.c.bf16 %v163_v30, %v162_v29  ;;  %vm126_vm15 = vcmp.gt.f32.partialorder %v109_v27, 0.0  ;;  %v140_v33 = vmul.f32 %v253_v20, %v106_v18 }
  0x8c   :  { %v141_v34 = vmul.f32 %v253_v20, %v107_v19  ;;  %v142_v35 = vmul.f32 %v253_v20, %v108_v21  ;;  %v143_v36 = vmul.f32 %v253_v20, %v109_v27 }
  0x8d   :  { %178 = vst [vmem:[%s335_s4 + $0x30] sm:$0xff] %v170_v31  ;;  %v156_v37 = vsel %vm123_vm12, %v106_v18, %v140_v33 }
  0x8e   :  { %179 = vst [vmem:[%s335_s4 + $0x38] sm:$0xff] %v171_v32  ;;  %v157_v38 = vsel %vm124_vm13, %v107_v19, %v141_v34  ;;  %v158_v39 = vsel %vm125_vm14, %v108_v21, %v142_v35  ;;  %v159_v40 = vsel %vm126_vm15, %v109_v27, %v143_v36 }
  0x8f   :  { %v168_v41 = vpack.c.bf16 %v157_v38, %v156_v37  ;;  %v169_v42 = vpack.c.bf16 %v159_v40, %v158_v39 }
  0x91   :  { %176 = vst [vmem:[%s335_s4 + $0x20] sm:$0xff] %v168_v41 }
  0x92   :  { %177 = vst [vmem:[%s335_s4 + $0x28] sm:$0xff] %v169_v42 }

// kernel: encoder_forward.17
= control target key start
LH: loop header
LB: loop body
LE: loop exit
PB: predicated region body
PF: predicated region fallthrough
CT: control target
= control target key end

     0   :  { %vm259_vm0 = vcmask 130048   ;;  %vm514_vm1 = vcmask 7168   ;;  %s1381_s0 = inlined_call_operand.vmem [shape: bf16[144,512], index: 0, kind: input, shape index: {}]   ;;  %s1382_s1 = inlined_call_operand.vmem [shape: bf16[32,144], index: 1, kind: input, shape index: {}]   ;;  %s1383_s4 = inlined_call_operand.vmem [shape: f32[32,512], index: 4, kind: output, shape index: {0}]   ;;  %s1384_s2 = inlined_call_operand.vmem [shape: f32[32,1], index: 2, kind: input, shape index: {}]   ;;  %s1385_s3 = inlined_call_operand.vmem [shape: f32[32,1], index: 3, kind: input, shape index: {}]   ;;  %s1386_s5 = inlined_call_operand.vmem [shape: f32[32,1], index: 5, kind: output, shape index: {1}]   ;;  %s1387_s6 = inlined_call_operand.vmem [shape: f32[32,1], index: 6, kind: output, shape index: {2}]  }
   0x1   :  { %v824_v0 = vld [vmem:[%s1381_s0 + $0xe0] sm:$0xf]  ;;  %v896_v1 = vld [vmem:[%s1381_s0 + $0xec] sm:$0xf0]  ;;  %v894_v5 = vld [vmem:[%s1381_s0 + $0xe4] sm:$0xf] }
   0x2   :  { %v840_v2 = vld [vmem:[%s1381_s0 + $0x100] sm:$0xf]  ;;  %v825_v3 = vor.u32 %v896_v1, %v824_v0  ;;  %v900_v4 = vld [vmem:[%s1381_s0 + $0x10c] sm:$0xf0]  ;;  %v826_v6 = vld [vmem:[%s1381_s0 + $0xf0] sm:$0xf0] }
   0x3   :  { %v841_v7 = vor.u32 %v900_v4, %v840_v2  ;;  %v829_v8 = vor.u32 %v894_v5, %v826_v6  ;;  %v898_v9 = vld [vmem:[%s1381_s0 + $0x104] sm:$0xf]  ;;  %v842_v10 = vld [vmem:[%s1381_s0 + $0x110] sm:$0xf0]  ;;  %v698_v13 = vld [vmem:[%s1382_s1 + $0x8] sm:$0xf0] }
   0x4   :  { %v862_v11 = vld [vmem:[%s1382_s1 + $0x4] sm:$0xf]  ;;  %266 = vmatpush.bf16.msra.mxu0 %v825_v3  ;;  %v845_v12 = vor.u32 %v898_v9, %v842_v10  ;;  %v848_v14 = vld [vmem:[%s1381_s0 + $0x108] sm:$0xf]  ;;  %v901_v15 = vld [vmem:[%s1381_s0 + $0x114] sm:$0xf0] }
   0x5   :  { %292 = vmatpush.bf16.msra.mxu1 %v841_v7  ;;  %304 = vmatpush.bf16.msra.mxu2 %v829_v8  ;;  %v990_v16 = vor.u32 %v862_v11, %v698_v13  ;;  %v849_v17 = vor.u32 %v901_v15, %v848_v14  ;;  %v808_v18 = vld [vmem:[%s1381_s0 + $0xc0] sm:$0xf]  ;;  %v892_v19 = vld [vmem:[%s1381_s0 + $0xcc] sm:$0xf0]  ;;  %v890_v20 = vld [vmem:[%s1381_s0 + $0xc4] sm:$0xf] }
   0x6   :  { %330 = vmatpush.bf16.msra.mxu3 %v845_v12  ;;  %v809_v21 = vor.u32 %v892_v19, %v808_v18  ;;  %v810_v22 = vld [vmem:[%s1381_s0 + $0xd0] sm:$0xf0]  ;;  %v832_v23 = vld [vmem:[%s1381_s0 + $0xe8] sm:$0xf]  ;;  %v897_v24 = vld [vmem:[%s1381_s0 + $0xf4] sm:$0xf0] }
   0x7   :  { %v813_v25 = vor.u32 %v890_v20, %v810_v22  ;;  %v833_v26 = vor.u32 %v897_v24, %v832_v23  ;;  %v792_v27 = vld [vmem:[%s1381_s0 + $0xa0] sm:$0xf]  ;;  %v888_v28 = vld [vmem:[%s1381_s0 + $0xac] sm:$0xf0]  ;;  %v886_v29 = vld [vmem:[%s1381_s0 + $0xa4] sm:$0xf] }
   0x8   :  { %854 = vmatmul.msk.bf16.vlgmr.msra.gmra.mxu1 %vm259_vm0, %v990_v16  ;;  %267 = vmatpush.bf16.msra.mxu0 %v809_v21  ;;  %v793_v30 = vor.u32 %v888_v28, %v792_v27  ;;  %v794_v31 = vld [vmem:[%s1381_s0 + $0xb0] sm:$0xf0]  ;;  %v816_v32 = vld [vmem:[%s1381_s0 + $0xc8] sm:$0xf]  ;;  %v893_v33 = vld [vmem:[%s1381_s0 + $0xd4] sm:$0xf0] }
   0x9   :  { %856 = vmatmul.msk.bf16.vlgmr.msra.gmra.mxu3 %vm259_vm0, %v990_v16  ;;  %305 = vmatpush.bf16.msra.mxu2 %v813_v25  ;;  %v797_v34 = vor.u32 %v886_v29, %v794_v31  ;;  %v776_v35 = vld [vmem:[%s1381_s0 + $0x80] sm:$0xf]  ;;  %v884_v36 = vld [vmem:[%s1381_s0 + $0x8c] sm:$0xf0]  ;;  %v817_v37 = vor.u32 %v893_v33, %v816_v32  ;;  %v882_v38 = vld [vmem:[%s1381_s0 + $0x84] sm:$0xf] }
   0xa   :  { %368 = vmatpush.bf16.msrb.mxu3 %v849_v17  ;;  %342 = vmatpush.bf16.msrb.mxu1 %v833_v26  ;;  %v778_v39 = vld [vmem:[%s1381_s0 + $0x90] sm:$0xf0]  ;;  %v800_v40 = vld [vmem:[%s1381_s0 + $0xa8] sm:$0xf]  ;;  %v889_v41 = vld [vmem:[%s1381_s0 + $0xb4] sm:$0xf0]  ;;  %v777_v42 = vor.u32 %v884_v36, %v776_v35 }
   0xb   :  { %v781_v43 = vor.u32 %v882_v38, %v778_v39  ;;  %v760_v44 = vld [vmem:[%s1381_s0 + $0x60] sm:$0xf]  ;;  %v880_v45 = vld [vmem:[%s1381_s0 + $0x6c] sm:$0xf0]  ;;  %v801_v46 = vor.u32 %v889_v41, %v800_v40  ;;  %v878_v47 = vld [vmem:[%s1381_s0 + $0x64] sm:$0xf] }
   0xc   :  { %268 = vmatpush.bf16.msra.mxu0 %v793_v30  ;;  %v762_v48 = vld [vmem:[%s1381_s0 + $0x70] sm:$0xf0]  ;;  %v784_v49 = vld [vmem:[%s1381_s0 + $0x88] sm:$0xf]  ;;  %v885_v50 = vld [vmem:[%s1381_s0 + $0x94] sm:$0xf0]  ;;  %v761_v51 = vor.u32 %v880_v45, %v760_v44 }
   0xd   :  { %306 = vmatpush.bf16.msra.mxu2 %v797_v34  ;;  %v864_v52 = vld [vmem:[%s1382_s1 + $0x14] sm:$0xf]  ;;  %v765_v53 = vor.u32 %v878_v47, %v762_v48  ;;  %v706_v54 = vld [vmem:[%s1382_s1 + $0x18] sm:$0xf0]  ;;  %v744_v55 = vld [vmem:[%s1381_s0 + $0x40] sm:$0xf]  ;;  %v785_v57 = vor.u32 %v885_v50, %v784_v49 }
   0xe   :  { %343 = vmatpush.bf16.msrb.mxu1 %v817_v37  ;;  %v876_v56 = vld [vmem:[%s1381_s0 + $0x4c] sm:$0xf0]  ;;  %v874_v58 = vld [vmem:[%s1381_s0 + $0x44] sm:$0xf]  ;;  %v746_v59 = vld [vmem:[%s1381_s0 + $0x50] sm:$0xf0]  ;;  %v1092_v62 = vor.u32 %v864_v52, %v706_v54 }
   0xf   :  { %v768_v60 = vld [vmem:[%s1381_s0 + $0x68] sm:$0xf]  ;;  %v881_v61 = vld [vmem:[%s1381_s0 + $0x74] sm:$0xf0]  ;;  %v745_v63 = vor.u32 %v876_v56, %v744_v55  ;;  %v749_v0 = vor.u32 %v874_v58, %v746_v59  ;;  %v728_v1 = vld [vmem:[%s1381_s0 + $0x20] sm:$0xf] }
  0x10   :  { %269 = vmatpush.bf16.msra.mxu0 %v777_v42  ;;  %v872_v2 = vld [vmem:[%s1381_s0 + $0x2c] sm:$0xf0]  ;;  %v899_v3 = vld [vmem:[%s1381_s0 + $0x10c] sm:$0xf]  ;;  %v769_v4 = vor.u32 %v881_v61, %v768_v60  ;;  %v870_v5 = vld [vmem:[%s1381_s0 + $0x24] sm:$0xf] }
  0x11   :  { %307 = vmatpush.bf16.msra.mxu2 %v781_v43  ;;  %v730_v6 = vld [vmem:[%s1381_s0 + $0x30] sm:$0xf0]  ;;  %v850_v7 = vld [vmem:[%s1381_s0 + $0x118] sm:$0xf0]  ;;  %v752_v8 = vld [vmem:[%s1381_s0 + $0x48] sm:$0xf]  ;;  %v729_v10 = vor.u32 %v872_v2, %v728_v1 }
  0x12   :  { %344 = vmatpush.bf16.msrb.mxu1 %v801_v46  ;;  %v877_v9 = vld [vmem:[%s1381_s0 + $0x54] sm:$0xf0]  ;;  %v853_v11 = vor.u32 %v899_v3, %v850_v7  ;;  %v733_v12 = vor.u32 %v870_v5, %v730_v6  ;;  %v712_v13 = vld [vmem:[%s1381_s0] sm:$0xf]  ;;  %v868_v14 = vld [vmem:[%s1381_s0 + $0xc] sm:$0xf0] }
  0x13   :  { %v866_v15 = vld [vmem:[%s1381_s0 + $0x4] sm:$0xf]  ;;  %v753_v17 = vor.u32 %v877_v9, %v752_v8  ;;  %v714_v18 = vld [vmem:[%s1381_s0 + $0x10] sm:$0xf0]  ;;  %v895_v19 = vld [vmem:[%s1381_s0 + $0xec] sm:$0xf]  ;;  %v713_v23 = vor.u32 %v868_v14, %v712_v13 }
  0x14   :  { %270 = vmatpush.bf16.msra.mxu0 %v761_v51  ;;  %v834_v20 = vld [vmem:[%s1381_s0 + $0xf8] sm:$0xf0]  ;;  %910 = vmatpush.bf16.msra.mxu3 %v853_v11  ;;  %v736_v21 = vld [vmem:[%s1381_s0 + $0x28] sm:$0xf]  ;;  %v873_v22 = vld [vmem:[%s1381_s0 + $0x34] sm:$0xf0]  ;;  %v717_v26 = vor.u32 %v866_v15, %v714_v18 }
  0x15   :  { %308 = vmatpush.bf16.msra.mxu2 %v765_v53  ;;  %v696_v24 = vld [vmem:[%s1382_s1] sm:$0xf]  ;;  %v863_v25 = vld [vmem:[%s1382_s1 + $0x4] sm:$0xf0]  ;;  %v837_v27 = vor.u32 %v895_v19, %v834_v20  ;;  %v737_v28 = vor.u32 %v873_v22, %v736_v21  ;;  %v891_v29 = vld [vmem:[%s1381_s0 + $0xcc] sm:$0xf] }
  0x16   :  { %345 = vmatpush.bf16.msrb.mxu1 %v785_v57  ;;  %v818_v30 = vld [vmem:[%s1381_s0 + $0xd8] sm:$0xf0]  ;;  %v697_v31 = vor.u32 %v863_v25, %v696_v24  ;;  %v720_v32 = vld [vmem:[%s1381_s0 + $0x8] sm:$0xf]  ;;  %v869_v33 = vld [vmem:[%s1381_s0 + $0x14] sm:$0xf0] }
  0x17   :  { %v821_v34 = vor.u32 %v891_v29, %v818_v30  ;;  %v721_v35 = vor.u32 %v869_v33, %v720_v32  ;;  %v887_v36 = vld [vmem:[%s1381_s0 + $0xac] sm:$0xf]  ;;  %v802_v37 = vld [vmem:[%s1381_s0 + $0xb8] sm:$0xf0]  ;;  %v704_v44 = vld [vmem:[%s1382_s1 + $0x10] sm:$0xf] }
  0x18   :  { %855 = vmatmul.msk.bf16.gmra.mxu1 %vm259_vm0, %v1092_v62  ;;  %271 = vmatpush.bf16.msra.mxu0 %v745_v63  ;;  %v805_v38 = vor.u32 %v887_v36, %v802_v37  ;;  %v883_v39 = vld [vmem:[%s1381_s0 + $0x8c] sm:$0xf]  ;;  %v786_v40 = vld [vmem:[%s1381_s0 + $0x98] sm:$0xf0]  ;;  %v865_v45 = vld [vmem:[%s1382_s1 + $0x14] sm:$0xf0] }
  0x19   :  { %857 = vmatmul.msk.bf16.gmra.mxu3 %vm259_vm0, %v1092_v62  ;;  %309 = vmatpush.bf16.msra.mxu2 %v749_v0  ;;  %v789_v41 = vor.u32 %v883_v39, %v786_v40  ;;  %v879_v42 = vld [vmem:[%s1381_s0 + $0x6c] sm:$0xf]  ;;  %v770_v43 = vld [vmem:[%s1381_s0 + $0x78] sm:$0xf0]  ;;  %v705_v47 = vor.u32 %v865_v45, %v704_v44 }
  0x1a   :  { %346 = vmatpush.bf16.msrb.mxu1 %v769_v4  ;;  %v773_v46 = vor.u32 %v879_v42, %v770_v43  ;;  %v875_v48 = vld [vmem:[%s1381_s0 + $0x4c] sm:$0xf]  ;;  %v754_v49 = vld [vmem:[%s1381_s0 + $0x58] sm:$0xf0] }
  0x1b   :  { %v757_v50 = vor.u32 %v875_v48, %v754_v49  ;;  %v871_v51 = vld [vmem:[%s1381_s0 + $0x2c] sm:$0xf]  ;;  %v738_v52 = vld [vmem:[%s1381_s0 + $0x38] sm:$0xf0] }
  0x1c   :  { %272 = vmatpush.bf16.msra.mxu0 %v729_v10  ;;  %v741_v53 = vor.u32 %v871_v51, %v738_v52  ;;  %v867_v54 = vld [vmem:[%s1381_s0 + $0xc] sm:$0xf]  ;;  %v722_v55 = vld [vmem:[%s1381_s0 + $0x18] sm:$0xf0] }
  0x1d   :  { %310 = vmatpush.bf16.msra.mxu2 %v733_v12  ;;  %v725_v56 = vor.u32 %v867_v54, %v722_v55 }
  0x1e   :  { %347 = vmatpush.bf16.msrb.mxu1 %v753_v17 }
  0x20   :  { %273 = vmatpush.bf16.msra.mxu0 %v713_v23 }
  0x21   :  { %311 = vmatpush.bf16.msra.mxu2 %v717_v26 }
  0x22   :  { %348 = vmatpush.bf16.msrb.mxu1 %v737_v28 }
  0x23   :  { %274 = vmatmul.bf16.vlgmr.msra.gmra.mxu0 %v697_v31 }
  0x24   :  { %380 = vmatpush.bf16.msrb.mxu0 %v837_v27  ;;  %312 = vmatmul.bf16.vlgmr.msra.gmra.mxu2 %v697_v31 }
  0x25   :  { %406 = vmatpush.bf16.msrb.mxu2 %v853_v11 }
  0x26   :  { %349 = vmatpush.bf16.msrb.mxu1 %v721_v35 }
  0x28   :  { %381 = vmatpush.bf16.msrb.mxu0 %v821_v34 }
  0x29   :  { %350 = vmatmul.bf16.vlgmr.msrb.gmra.mxu1 %v697_v31  ;;  %858 = vmatmul.msk.bf16.vlgmr.msrb.gmra.mxu3 %vm259_vm0, %v990_v16 }
  0x2a   :  { %902 = vmatpush.bf16.msra.mxu1 %v837_v27 }
  0x2c   :  { %382 = vmatpush.bf16.msrb.mxu0 %v805_v38 }
  0x2e   :  { %903 = vmatpush.bf16.msra.mxu1 %v821_v34 }
  0x30   :  { %383 = vmatpush.bf16.msrb.mxu0 %v789_v41 }
  0x32   :  { %904 = vmatpush.bf16.msra.mxu1 %v805_v38 }
  0x33   :  { %279 = vmatmul.bf16.gmra.mxu0 %v705_v47 }
  0x34   :  { %384 = vmatpush.bf16.msrb.mxu0 %v773_v46  ;;  %317 = vmatmul.bf16.gmra.mxu2 %v705_v47 }
  0x36   :  { %905 = vmatpush.bf16.msra.mxu1 %v789_v41 }
  0x38   :  { %385 = vmatpush.bf16.msrb.mxu0 %v757_v50 }
  0x39   :  { %355 = vmatmul.bf16.gmra.mxu1 %v705_v47  ;;  %859 = vmatmul.msk.bf16.gmra.mxu3 %vm259_vm0, %v1092_v62 }
  0x3a   :  { %906 = vmatpush.bf16.msra.mxu1 %v773_v46 }
  0x3c   :  { %386 = vmatpush.bf16.msrb.mxu0 %v741_v53 }
  0x3e   :  { %907 = vmatpush.bf16.msra.mxu1 %v757_v50 }
  0x40   :  { %387 = vmatpush.bf16.msrb.mxu0 %v725_v56 }
  0x42   :  { %908 = vmatpush.bf16.msra.mxu1 %v741_v53 }
  0x43   :  { %388 = vmatmul.bf16.vlgmr.msrb.gmra.mxu0 %v697_v31 }
  0x44   :  { %860 = vmatmul.msk.bf16.vlgmr.msrb.gmra.mxu2 %vm259_vm0, %v990_v16 }
  0x46   :  { %909 = vmatpush.bf16.msra.mxu1 %v725_v56 }
  0x49   :  { %393 = vmatmul.bf16.vlgmr.msra.gmra.mxu1 %v705_v47  ;;  %861 = vmatmul.msk.bf16.vlgmr.msra.gmra.mxu3 %vm259_vm0, %v1092_v62 }
  0x85   :  { %v294_v57 = vpop.f32.mrf.mxu1 }
  0x8c   :  { %v332_v58 = vpop.f32.mrf.mxu3 }
  0x8d   :  { %v296_v59 = vpop.f32.mrf.mxu1 }
  0x94   :  { %v334_v60 = vpop.f32.mrf.mxu3 }
  0x95   :  { %v299_v61 = vpop.f32.mrf.mxu1 }
  0x9c   :  { %v337_v63 = vpop.f32.mrf.mxu3 }
  0x9d   :  { %v301_v0 = vpop.f32.mrf.mxu1 }
  0xa0   :  { %v275_v1 = vpop.f32.mrf.mxu0 }
  0xa1   :  { %v1214_v2 = vadd.f32 %v294_v57, %v275_v1 }
  0xa3   :  { %418 = vst [vmem:[%s1383_s4] sm:$0xff] %v1214_v2 }
  0xa4   :  { %v339_v16 = vpop.f32.mrf.mxu3 }
  0xa6   :  { %v351_v3 = vpop.f32.mrf.mxu1 }
  0xa7   :  { %v313_v4 = vpop.f32.mrf.mxu2 }
  0xa8   :  { %v1220_v5 = vadd.f32 %v332_v58, %v313_v4  ;;  %v277_v62 = vpop.f32.mrf.mxu0 }
  0xa9   :  { %v1222_v6 = vadd.f32 %v296_v59, %v277_v62 }
  0xaa   :  { %419 = vst [vmem:[%s1383_s4 + $0x8] sm:$0xff] %v1220_v5  ;;  %v434_v30 = vadd.f32 %v1220_v5, %v1214_v2 }
  0xab   :  { %422 = vst [vmem:[%s1383_s4 + $0x20] sm:$0xff] %v1222_v6 }
  0xac   :  { %v370_v7 = vpop.f32.mrf.mxu3 }
  0xad   :  { %v1232_v8 = vadd.f32 %v370_v7, %v351_v3 }
  0xae   :  { %v353_v9 = vpop.f32.mrf.mxu1 }
  0xaf   :  { %420 = vst [vmem:[%s1383_s4 + $0x10] sm:$0xff] %v1232_v8  ;;  %v315_v10 = vpop.f32.mrf.mxu2  ;;  %v435_v33 = vadd.f32 %v434_v30, %v1232_v8 }
  0xb0   :  { %v1238_v11 = vadd.f32 %v334_v60, %v315_v10  ;;  %v280_v12 = vpop.f32.mrf.mxu0 }
  0xb1   :  { %v1240_v13 = vadd.f32 %v299_v61, %v280_v12 }
  0xb2   :  { %423 = vst [vmem:[%s1383_s4 + $0x28] sm:$0xff] %v1238_v11  ;;  %v439_v40 = vadd.f32 %v1238_v11, %v1222_v6 }
  0xb3   :  { %426 = vst [vmem:[%s1383_s4 + $0x40] sm:$0xff] %v1240_v13 }
  0xb4   :  { %v372_v14 = vpop.f32.mrf.mxu3 }
  0xb5   :  { %v1250_v15 = vadd.f32 %v372_v14, %v353_v9 }
  0xb6   :  { %v356_v17 = vpop.f32.mrf.mxu1 }
  0xb7   :  { %424 = vst [vmem:[%s1383_s4 + $0x30] sm:$0xff] %v1250_v15  ;;  %v318_v18 = vpop.f32.mrf.mxu2  ;;  %v440_v45 = vadd.f32 %v439_v40, %v1250_v15 }
  0xb8   :  { %v1256_v19 = vadd.f32 %v337_v63, %v318_v18  ;;  %v282_v20 = vpop.f32.mrf.mxu0 }
  0xb9   :  { %v1258_v21 = vadd.f32 %v301_v0, %v282_v20 }
  0xba   :  { %427 = vst [vmem:[%s1383_s4 + $0x48] sm:$0xff] %v1256_v19  ;;  %v444_v36 = vadd.f32 %v1256_v19, %v1240_v13 }
  0xbb   :  { %430 = vst [vmem:[%s1383_s4 + $0x60] sm:$0xff] %v1258_v21 }
  0xbc   :  { %v375_v22 = vpop.f32.mrf.mxu3 }
  0xbd   :  { %v376_v23 = vadd.f32 %v375_v22, %v356_v17 }
  0xbe   :  { %v358_v25 = vpop.f32.mrf.mxu1 }
  0xbf   :  { %428 = vst [vmem:[%s1383_s4 + $0x50] sm:$0xff] %v376_v23  ;;  %v320_v24 = vpop.f32.mrf.mxu2  ;;  %v445_v39 = vadd.f32 %v444_v36, %v376_v23 }
  0xc0   :  { %v1271_v26 = vadd.f32 %v339_v16, %v320_v24  ;;  %v389_v29 = vpop.f32.mrf.mxu0 }
  0xc2   :  { %431 = vst [vmem:[%s1383_s4 + $0x68] sm:$0xff] %v1271_v26  ;;  %v449_v47 = vadd.f32 %v1271_v26, %v1258_v21 }
  0xc4   :  { %v377_v27 = vpop.f32.mrf.mxu3 }
  0xc5   :  { %v1277_v28 = vadd.f32 %v377_v27, %v358_v25 }
  0xc6   :  { %v394_v34 = vpop.f32.mrf.mxu1 }
  0xc7   :  { %432 = vst [vmem:[%s1383_s4 + $0x70] sm:$0xff] %v1277_v28  ;;  %v408_v31 = vpop.f32.mrf.mxu2  ;;  %v450_v51 = vadd.f32 %v449_v47, %v1277_v28 }
  0xc8   :  { %v409_v32 = vadd.f32 %v408_v31, %v389_v29  ;;  %v391_v41 = vpop.f32.mrf.mxu0 }
  0xca   :  { %421 = vst [vmem:[%s1383_s4 + $0x18] sm:$0xff] %v409_v32  ;;  %v436_v35 = vadd.f32 %v435_v33, %v409_v32 }
  0xcc   :  { %v413_v37 = vpop.f32.mrf.mxu3  ;;  %437 = vadd.xlane.f32.xlu0 %v436_v35 }
  0xcd   :  { %v414_v38 = vadd.f32 %v413_v37, %v394_v34 }
  0xce   :  { %v396_v48 = vpop.f32.mrf.mxu1 }
  0xcf   :  { %429 = vst [vmem:[%s1383_s4 + $0x58] sm:$0xff] %v414_v38  ;;  %v410_v42 = vpop.f32.mrf.mxu2  ;;  %v446_v43 = vadd.f32 %v445_v39, %v414_v38 }
  0xd0   :  { %v411_v44 = vadd.f32 %v410_v42, %v391_v41 }
  0xd1   :  { %447 = vadd.xlane.f32.xlu1 %v446_v43 }
  0xd2   :  { %425 = vst [vmem:[%s1383_s4 + $0x38] sm:$0xff] %v411_v44  ;;  %v441_v46 = vadd.f32 %v440_v45, %v411_v44 }
  0xd4   :  { %v415_v49 = vpop.f32.mrf.mxu3  ;;  %442 = vadd.xlane.f32.xlu0 %v441_v46 }
  0xd5   :  { %v416_v50 = vadd.f32 %v415_v49, %v396_v48 }
  0xd7   :  { %433 = vst [vmem:[%s1383_s4 + $0x78] sm:$0xff] %v416_v50  ;;  %v451_v52 = vadd.f32 %v450_v51, %v416_v50 }
  0xd9   :  { %452 = vadd.xlane.f32.xlu1 %v451_v52 }
 0x13f   :  { %v438_v53 = vpop.xlane.xlu0 %437 }
 0x140   :  { %v454_v54 = vmul.f32 0.001953125, %v438_v53 }
 0x142   :  { %515 = vst.msk [vmem:[#allocation2] sm:$0xff] %vm514_vm1, %v454_v54  ;;  %v458_v55 = vsub.f32 %v1214_v2, %v454_v54  ;;  %v459_v56 = vsub.f32 %v1220_v5, %v454_v54  ;;  %v460_v57 = vsub.f32 %v1232_v8, %v454_v54  ;;  %v461_v59 = vsub.f32 %v409_v32, %v454_v54 }
 0x144   :  { %v448_v58 = vpop.xlane.xlu1 %447  ;;  %v474_v60 = vmul.f32 %v458_v55, %v458_v55  ;;  %v475_v61 = vmul.f32 %v459_v56, %v459_v56  ;;  %v476_v0 = vmul.f32 %v460_v57, %v460_v57  ;;  %v477_v7 = vmul.f32 %v461_v59, %v461_v59 }
 0x145   :  { %v456_v63 = vmul.f32 0.001953125, %v448_v58 }
 0x146   :  { %v490_v1 = vadd.f32 %v475_v61, %v474_v60 }
 0x147   :  { %517 = vst.msk [vmem:[#allocation2 + $0x10] sm:$0xff] %vm514_vm1, %v456_v63  ;;  %v443_v16 = vpop.xlane.xlu0 %442  ;;  %v466_v3 = vsub.f32 %v1240_v13, %v456_v63  ;;  %v467_v4 = vsub.f32 %v1256_v19, %v456_v63  ;;  %v468_v62 = vsub.f32 %v376_v23, %v456_v63  ;;  %v469_v9 = vsub.f32 %v414_v38, %v456_v63 }
 0x148   :  { %v455_v2 = vmul.f32 0.001953125, %v443_v16  ;;  %v491_v5 = vadd.f32 %v490_v1, %v476_v0 }
 0x149   :  { %v482_v8 = vmul.f32 %v466_v3, %v466_v3  ;;  %v483_v10 = vmul.f32 %v467_v4, %v467_v4  ;;  %v484_v20 = vmul.f32 %v468_v62, %v468_v62  ;;  %v485_v27 = vmul.f32 %v469_v9, %v469_v9  ;;  %v605_v3 = vld [vmem:[%s1384_s2] sm:$0xff] }
 0x14a   :  { %516 = vst.msk [vmem:[#allocation2 + $0x8] sm:$0xff] %vm514_vm1, %v455_v2  ;;  %v492_v12 = vadd.f32 %v491_v5, %v477_v7  ;;  %v462_v14 = vsub.f32 %v1222_v6, %v455_v2  ;;  %v463_v17 = vsub.f32 %v1238_v11, %v455_v2  ;;  %v464_v18 = vsub.f32 %v1250_v15, %v455_v2 }
 0x14b   :  { %v500_v13 = vadd.f32 %v483_v10, %v482_v8  ;;  %v465_v19 = vsub.f32 %v411_v44, %v455_v2 }
 0x14c   :  { %v453_v22 = vpop.xlane.xlu1 %452  ;;  %493 = vadd.xlane.f32.xlu2 %v492_v12  ;;  %v478_v23 = vmul.f32 %v462_v14, %v462_v14  ;;  %v479_v24 = vmul.f32 %v463_v17, %v463_v17  ;;  %v480_v30 = vmul.f32 %v464_v18, %v464_v18  ;;  %v662_v12 = vld [vmem:[%s1385_s3] sm:$0xff] }
 0x14d   :  { %v457_v25 = vmul.f32 0.001953125, %v453_v22  ;;  %v501_v29 = vadd.f32 %v500_v13, %v484_v20  ;;  %v481_v33 = vmul.f32 %v465_v19, %v465_v19  ;;  %v666_v14 = vld [vmem:[#allocation2] sm:$0xff]  ;;  %v607_v20 = vld [vmem:[%s1384_s2 + $0x10] sm:$0xff] }
 0x14e   :  { %v495_v31 = vadd.f32 %v479_v24, %v478_v23 }
 0x14f   :  { %518 = vst.msk [vmem:[#allocation2 + $0x18] sm:$0xff] %vm514_vm1, %v457_v25  ;;  %v502_v32 = vadd.f32 %v501_v29, %v485_v27  ;;  %v470_v6 = vsub.f32 %v1258_v21, %v457_v25  ;;  %v471_v11 = vsub.f32 %v1271_v26, %v457_v25  ;;  %v472_v15 = vsub.f32 %v1277_v28, %v457_v25  ;;  %v606_v29 = vld [vmem:[%s1384_s2 + $0x8] sm:$0xff] }
 0x150   :  { %v496_v34 = vadd.f32 %v495_v31, %v480_v30  ;;  %v473_v35 = vsub.f32 %v416_v50, %v457_v25  ;;  %v664_v31 = vld [vmem:[%s1385_s3 + $0x10] sm:$0xff] }
 0x151   :  { %503 = vadd.xlane.f32.xlu0 %v502_v32  ;;  %v486_v36 = vmul.f32 %v470_v6, %v470_v6  ;;  %v487_v37 = vmul.f32 %v471_v11, %v471_v11  ;;  %v488_v39 = vmul.f32 %v472_v15, %v472_v15  ;;  %v668_v32 = vld [vmem:[#allocation2 + $0x10] sm:$0xff] }
 0x152   :  { %v497_v38 = vadd.f32 %v496_v34, %v481_v33  ;;  %v489_v41 = vmul.f32 %v473_v35, %v473_v35 }
 0x153   :  { %v505_v40 = vadd.f32 %v487_v37, %v486_v36  ;;  %v663_v36 = vld [vmem:[%s1385_s3 + $0x8] sm:$0xff] }
 0x154   :  { %498 = vadd.xlane.f32.xlu2 %v497_v38  ;;  %v667_v37 = vld [vmem:[#allocation2 + $0x8] sm:$0xff] }
 0x155   :  { %v506_v42 = vadd.f32 %v505_v40, %v488_v39  ;;  %v608_v39 = vld [vmem:[%s1384_s2 + $0x18] sm:$0xff] }
 0x157   :  { %v507_v43 = vadd.f32 %v506_v42, %v489_v41 }
 0x159   :  { %508 = vadd.xlane.f32.xlu1 %v507_v43 }
 0x1bf   :  { %v494_v44 = vpop.xlane.xlu2 %493 }
 0x1c0   :  { %519 = vst.msk [vmem:[#allocation3] sm:$0xff] %vm514_vm1, %v494_v44  ;;  %v665_v44 = vld [vmem:[%s1385_s3 + $0x18] sm:$0xff] }
 0x1c4   :  { %v504_v21 = vpop.xlane.xlu0 %503 }
 0x1c5   :  { %521 = vst.msk [vmem:[#allocation3 + $0x10] sm:$0xff] %vm514_vm1, %v504_v21  ;;  %v669_v21 = vld [vmem:[#allocation2 + $0x18] sm:$0xff] }
 0x1c7   :  { %v597_v26 = vld [vmem:[#allocation3] sm:$0xff]  ;;  %v499_v28 = vpop.xlane.xlu2 %498 }
 0x1c8   :  { %v601_v45 = vmul.f32 0.001953125, %v597_v26  ;;  %520 = vst.msk [vmem:[#allocation3 + $0x8] sm:$0xff] %vm514_vm1, %v499_v28 }
 0x1ca   :  { %v609_v46 = vadd.f32 1e-05, %v601_v45 }
 0x1cc   :  { %911 = vrsqrt.f32 %v609_v46  ;;  %v599_v47 = vld [vmem:[#allocation3 + $0x10] sm:$0xff]  ;;  %v509_v48 = vpop.xlane.xlu1 %508  ;;  %vm619_vm3 = vweird.f32 %v609_v46 }
 0x1cd   :  { %v603_v49 = vmul.f32 0.001953125, %v599_v47  ;;  %522 = vst.msk [vmem:[#allocation3 + $0x18] sm:$0xff] %vm514_vm1, %v509_v48 }
 0x1cf   :  { %v611_v50 = vadd.f32 1e-05, %v603_v49  ;;  %v598_v51 = vld [vmem:[#allocation3 + $0x8] sm:$0xff] }
 0x1d0   :  { %v602_v52 = vmul.f32 0.001953125, %v598_v51 }
 0x1d1   :  { %913 = vrsqrt.f32 %v611_v50  ;;  %vm639_vm6 = vweird.f32 %v611_v50 }
 0x1d2   :  { %v912_v53 = vpop.eup %911  ;;  %v610_v54 = vadd.f32 1e-05, %v602_v52 }
 0x1d3   :  { %v614_v55 = vmul.f32 %v912_v53, %v609_v46  ;;  %vm620_vm2 = vweird.f32 %v912_v53 }
 0x1d4   :  { %915 = vrsqrt.f32 %v610_v54  ;;  %v600_v56 = vld [vmem:[#allocation3 + $0x18] sm:$0xff]  ;;  %vm621_vm4 = vmor %vm619_vm3, %vm620_vm2  ;;  %vm629_vm9 = vweird.f32 %v610_v54 }
 0x1d5   :  { %v615_v57 = vmul.f32 %v912_v53, %v614_v55  ;;  %v604_v58 = vmul.f32 0.001953125, %v600_v56 }
 0x1d7   :  { %v914_v59 = vpop.eup %913  ;;  %v616_v60 = vmul.f32 0.5, %v615_v57  ;;  %v612_v61 = vadd.f32 1e-05, %v604_v58 }
 0x1d8   :  { %v634_v63 = vmul.f32 %v914_v59, %v611_v50  ;;  %vm640_vm5 = vweird.f32 %v914_v59 }
 0x1d9   :  { %v617_v0 = vsub.f32 1.5, %v616_v60  ;;  %917 = vrsqrt.f32 %v612_v61  ;;  %vm641_vm7 = vmor %vm639_vm6, %vm640_vm5  ;;  %vm649_vm12 = vweird.f32 %v612_v61 }
 0x1da   :  { %v916_v1 = vpop.eup %915  ;;  %v635_v16 = vmul.f32 %v914_v59, %v634_v63 }
 0x1db   :  { %v618_v4 = vmul.f32 %v912_v53, %v617_v0  ;;  %v624_v62 = vmul.f32 %v916_v1, %v610_v54  ;;  %vm630_vm8 = vweird.f32 %v916_v1 }
 0x1dc   :  { %v636_v2 = vmul.f32 0.5, %v635_v16  ;;  %vm631_vm10 = vmor %vm629_vm9, %vm630_vm8 }
 0x1dd   :  { %v622_v7 = vsel %vm621_vm4, %v912_v53, %v618_v4  ;;  %v625_v5 = vmul.f32 %v916_v1, %v624_v62 }
 0x1de   :  { %v653_v9 = vmul.f32 %v622_v7, %v605_v3  ;;  %v637_v8 = vsub.f32 1.5, %v636_v2 }
 0x1df   :  { %v918_v10 = vpop.eup %917  ;;  %v626_v17 = vmul.f32 0.5, %v625_v5 }
 0x1e0   :  { %658 = vst.msk [vmem:[%s1386_s5] sm:$0xff] %vm514_vm1, %v653_v9  ;;  %v670_v18 = vmul.f32 %v666_v14, %v653_v9  ;;  %v638_v13 = vmul.f32 %v914_v59, %v637_v8  ;;  %v644_v22 = vmul.f32 %v918_v10, %v612_v61  ;;  %vm650_vm11 = vweird.f32 %v918_v10 }
 0x1e1   :  { %v627_v19 = vsub.f32 1.5, %v626_v17  ;;  %vm651_vm13 = vmor %vm649_vm12, %vm650_vm11 }
 0x1e2   :  { %v674_v23 = vsub.f32 %v662_v12, %v670_v18  ;;  %v642_v24 = vsel %vm641_vm7, %v914_v59, %v638_v13  ;;  %v645_v25 = vmul.f32 %v918_v10, %v644_v22 }
 0x1e3   :  { %v655_v27 = vmul.f32 %v642_v24, %v607_v20  ;;  %v628_v30 = vmul.f32 %v916_v1, %v627_v19 }
 0x1e4   :  { %678 = vst.msk [vmem:[%s1387_s6] sm:$0xff] %vm514_vm1, %v674_v23  ;;  %v646_v6 = vmul.f32 0.5, %v645_v25 }
 0x1e5   :  { %660 = vst.msk [vmem:[%s1386_s5 + $0x10] sm:$0xff] %vm514_vm1, %v655_v27  ;;  %v672_v11 = vmul.f32 %v668_v32, %v655_v27  ;;  %v632_v15 = vsel %vm631_vm10, %v916_v1, %v628_v30 }
 0x1e6   :  { %v654_v33 = vmul.f32 %v632_v15, %v606_v29  ;;  %v647_v34 = vsub.f32 1.5, %v646_v6 }
 0x1e7   :  { %v676_v35 = vsub.f32 %v664_v31, %v672_v11 }
 0x1e8   :  { %659 = vst.msk [vmem:[%s1386_s5 + $0x8] sm:$0xff] %vm514_vm1, %v654_v33  ;;  %v671_v38 = vmul.f32 %v667_v37, %v654_v33  ;;  %v648_v40 = vmul.f32 %v918_v10, %v647_v34 }
 0x1e9   :  { %680 = vst.msk [vmem:[%s1387_s6 + $0x10] sm:$0xff] %vm514_vm1, %v676_v35 }
 0x1ea   :  { %v675_v41 = vsub.f32 %v663_v36, %v671_v38  ;;  %v652_v42 = vsel %vm651_vm13, %v918_v10, %v648_v40 }
 0x1eb   :  { %v656_v43 = vmul.f32 %v652_v42, %v608_v39 }
 0x1ec   :  { %679 = vst.msk [vmem:[%s1387_s6 + $0x8] sm:$0xff] %vm514_vm1, %v675_v41 }
 0x1ed   :  { %661 = vst.msk [vmem:[%s1386_s5 + $0x18] sm:$0xff] %vm514_vm1, %v656_v43  ;;  %v673_v26 = vmul.f32 %v669_v21, %v656_v43 }
 0x1ef   :  { %v677_v28 = vsub.f32 %v665_v44, %v673_v26 }
 0x1f1   :  { %681 = vst.msk [vmem:[%s1387_s6 + $0x18] sm:$0xff] %vm514_vm1, %v677_v28 }

// kernel: encoder_forward.20
= control target key start
LH: loop header
LB: loop body
LE: loop exit
PB: predicated region body
PF: predicated region fallthrough
CT: control target
= control target key end

     0   :  { %v211_v0 = vmov 0   ;;  %s324_s1 = inlined_call_operand.vmem [shape: f32[64,1], index: 1, kind: input, shape index: {}]   ;;  %s325_s2 = inlined_call_operand.vmem [shape: f32[64,1], index: 2, kind: input, shape index: {}]   ;;  %s326_s0 = inlined_call_operand.vmem [shape: f32[64,128], index: 0, kind: input, shape index: {}]   ;;  %s327_s3 = inlined_call_operand.<no memory space> [shape: f32[1], index: 3, kind: input, shape index: {}]   ;;  %s328_s4 = inlined_call_operand.vmem [shape: bf16[64,128], index: 4, kind: output, shape index: {}]  }
   0x1   :  { %210 = vset.pattern.permute.xlu2 %v211_v0  ;;  %209 = vset.pattern.permute.xlu1 %v211_v0  ;;  %v30_v1 = vld [vmem:[%s324_s1 + $0x20] sm:$0xff]  ;;  %v28_v2 = vld [vmem:[%s324_s1 + $0x10] sm:$0xff]  ;;  %v31_v4 = vld [vmem:[%s324_s1 + $0x28] sm:$0xff]  ;;  %v147_v35 = vstv %s327_s3 }
   0x2   :  { %v26_v3 = vld [vmem:[%s324_s1] sm:$0xff]  ;;  %208 = vset.pattern.permute.xlu0 %v211_v0  ;;  %56 = vperm.xlu2 %210, %v30_v1   ;;  %v29_v5 = vld [vmem:[%s324_s1 + $0x18] sm:$0xff]  ;;  %v27_v6 = vld [vmem:[%s324_s1 + $0x8] sm:$0xff] }
   0x3   :  { %46 = vperm.xlu1 %209, %v28_v2   ;;  %36 = vperm.xlu0 %208, %v26_v3   ;;  %v82_v7 = vld [vmem:[%s325_s2] sm:$0xff]  ;;  %v33_v8 = vld [vmem:[%s324_s1 + $0x38] sm:$0xff]  ;;  %v32_v9 = vld [vmem:[%s324_s1 + $0x30] sm:$0xff] }
   0x4   :  { %v85_v10 = vld [vmem:[%s325_s2 + $0x18] sm:$0xff]  ;;  %v84_v11 = vld [vmem:[%s325_s2 + $0x10] sm:$0xff]  ;;  %v83_v12 = vld [vmem:[%s325_s2 + $0x8] sm:$0xff] }
   0x5   :  { %v88_v13 = vld [vmem:[%s325_s2 + $0x30] sm:$0xff]  ;;  %v87_v14 = vld [vmem:[%s325_s2 + $0x28] sm:$0xff]  ;;  %v86_v15 = vld [vmem:[%s325_s2 + $0x20] sm:$0xff] }
   0x6   :  { %v89_v16 = vld [vmem:[%s325_s2 + $0x38] sm:$0xff]  ;;  %v18_v24 = vld [vmem:[%s326_s0] sm:$0xff]  ;;  %v20_v31 = vld [vmem:[%s326_s0 + $0x10] sm:$0xff] }
   0x7   :  { %v21_v25 = vld [vmem:[%s326_s0 + $0x18] sm:$0xff]  ;;  %v19_v32 = vld [vmem:[%s326_s0 + $0x8] sm:$0xff]  ;;  %v22_v46 = vld [vmem:[%s326_s0 + $0x20] sm:$0xff] }
   0x8   :  { %v23_v47 = vld [vmem:[%s326_s0 + $0x28] sm:$0xff]  ;;  %v24_v52 = vld [vmem:[%s326_s0 + $0x30] sm:$0xff]  ;;  %v25_v1 = vld [vmem:[%s326_s0 + $0x38] sm:$0xff] }
   0xa   :  { %61 = vperm.xlu2 %210, %v31_v4  }
   0xb   :  { %51 = vperm.xlu1 %209, %v29_v5   ;;  %41 = vperm.xlu0 %208, %v27_v6  }
  0x12   :  { %92 = vperm.xlu2 %210, %v82_v7  }
  0x13   :  { %71 = vperm.xlu1 %209, %v33_v8   ;;  %66 = vperm.xlu0 %208, %v32_v9  }
  0x1a   :  { %107 = vperm.xlu2 %210, %v85_v10  }
  0x1b   :  { %102 = vperm.xlu1 %209, %v84_v11   ;;  %97 = vperm.xlu0 %208, %v83_v12  }
  0x22   :  { %122 = vperm.xlu2 %210, %v88_v13  }
  0x23   :  { %117 = vperm.xlu1 %209, %v87_v14   ;;  %112 = vperm.xlu0 %208, %v86_v15  }
  0x2b   :  { %127 = vperm.xlu0 %208, %v89_v16  }
  0x5c   :  { %v57_v17 = vpop.permute.xlu2 %56 }
  0x5d   :  { %v78_v55 = vmul.f32 %v57_v17, %v22_v46 }
  0x64   :  { %v62_v18 = vpop.permute.xlu2 %61 }
  0x65   :  { %v79_v56 = vmul.f32 %v62_v18, %v23_v47 }
  0x6c   :  { %v93_v23 = vpop.permute.xlu2 %92 }
  0x74   :  { %v108_v30 = vpop.permute.xlu2 %107 }
  0x75   :  { %v47_v19 = vpop.permute.xlu1 %46  ;;  %v37_v20 = vpop.permute.xlu0 %36 }
  0x76   :  { %v74_v28 = vmul.f32 %v37_v20, %v18_v24  ;;  %v76_v36 = vmul.f32 %v47_v19, %v20_v31 }
  0x78   :  { %v130_v33 = vadd.f32 %v93_v23, %v74_v28 }
  0x7a   :  { %v148_v40 = vmul.f32 %v147_v35, %v130_v33  ;;  %vm139_vm0 = vcmp.gt.f32.partialorder %v130_v33, 0.0 }
  0x7c   :  { %v156_v50 = vsel %vm139_vm0, %v130_v33, %v148_v40  ;;  %v123_v0 = vpop.permute.xlu2 %122 }
  0x7d   :  { %v52_v21 = vpop.permute.xlu1 %51  ;;  %v42_v22 = vpop.permute.xlu0 %41 }
  0x7e   :  { %v77_v29 = vmul.f32 %v52_v21, %v21_v25  ;;  %v75_v37 = vmul.f32 %v42_v22, %v19_v32 }
  0x80   :  { %v133_v34 = vadd.f32 %v108_v30, %v77_v29 }
  0x82   :  { %v151_v41 = vmul.f32 %v147_v35, %v133_v34  ;;  %vm142_vm1 = vcmp.gt.f32.partialorder %v133_v34, 0.0 }
  0x84   :  { %v159_v49 = vsel %vm142_vm1, %v133_v34, %v151_v41 }
  0x85   :  { %v72_v26 = vpop.permute.xlu1 %71  ;;  %v67_v27 = vpop.permute.xlu0 %66 }
  0x86   :  { %v80_v59 = vmul.f32 %v67_v27, %v24_v52  ;;  %v81_v6 = vmul.f32 %v72_v26, %v25_v1 }
  0x88   :  { %v136_v2 = vadd.f32 %v123_v0, %v80_v59 }
  0x8a   :  { %v154_v8 = vmul.f32 %v147_v35, %v136_v2  ;;  %vm145_vm6 = vcmp.gt.f32.partialorder %v136_v2, 0.0 }
  0x8c   :  { %v162_v11 = vsel %vm145_vm6, %v136_v2, %v154_v8 }
  0x8d   :  { %v103_v38 = vpop.permute.xlu1 %102  ;;  %v98_v39 = vpop.permute.xlu0 %97 }
  0x8e   :  { %v132_v42 = vadd.f32 %v103_v38, %v76_v36  ;;  %v131_v43 = vadd.f32 %v98_v39, %v75_v37 }
  0x90   :  { %vm141_vm2 = vcmp.gt.f32.partialorder %v132_v42, 0.0  ;;  %v150_v44 = vmul.f32 %v147_v35, %v132_v42  ;;  %vm140_vm3 = vcmp.gt.f32.partialorder %v131_v43, 0.0  ;;  %v149_v45 = vmul.f32 %v147_v35, %v131_v43 }
  0x92   :  { %v158_v48 = vsel %vm141_vm2, %v132_v42, %v150_v44  ;;  %v157_v51 = vsel %vm140_vm3, %v131_v43, %v149_v45 }
  0x93   :  { %v192_v53 = vpack.c.bf16 %v159_v49, %v158_v48  ;;  %v187_v54 = vpack.c.bf16 %v157_v51, %v156_v50 }
  0x95   :  { %204 = vst [vmem:[%s328_s4 + $0x8] sm:$0xff] %v192_v53   ;;  %v118_v57 = vpop.permute.xlu1 %117  ;;  %v113_v58 = vpop.permute.xlu0 %112 }
  0x96   :  { %188 = vst [vmem:[%s328_s4] sm:$0xff] %v187_v54   ;;  %v135_v60 = vadd.f32 %v118_v57, %v79_v56  ;;  %v134_v61 = vadd.f32 %v113_v58, %v78_v55 }
  0x98   :  { %vm144_vm4 = vcmp.gt.f32.partialorder %v135_v60, 0.0  ;;  %v153_v62 = vmul.f32 %v147_v35, %v135_v60  ;;  %vm143_vm5 = vcmp.gt.f32.partialorder %v134_v61, 0.0  ;;  %v152_v63 = vmul.f32 %v147_v35, %v134_v61 }
  0x9a   :  { %v161_v3 = vsel %vm144_vm4, %v135_v60, %v153_v62  ;;  %v160_v4 = vsel %vm143_vm5, %v134_v61, %v152_v63 }
  0x9b   :  { %v197_v5 = vpack.c.bf16 %v161_v3, %v160_v4 }
  0x9d   :  { %205 = vst [vmem:[%s328_s4 + $0x10] sm:$0xff] %v197_v5   ;;  %v128_v7 = vpop.permute.xlu0 %127 }
  0x9e   :  { %v137_v9 = vadd.f32 %v128_v7, %v81_v6 }
  0xa0   :  { %vm146_vm7 = vcmp.gt.f32.partialorder %v137_v9, 0.0  ;;  %v155_v10 = vmul.f32 %v147_v35, %v137_v9 }
  0xa2   :  { %v163_v12 = vsel %vm146_vm7, %v137_v9, %v155_v10 }
  0xa3   :  { %v202_v13 = vpack.c.bf16 %v163_v12, %v162_v11 }
  0xa5   :  { %206 = vst [vmem:[%s328_s4 + $0x18] sm:$0xff] %v202_v13  }

// kernel: encoder_forward.19
= control target key start
LH: loop header
LB: loop body
LE: loop exit
PB: predicated region body
PF: predicated region fallthrough
CT: control target
= control target key end

     0   :  { %vm241_vm0 = vcmask 261120   ;;  %vm409_vm1 = vcmask 7168   ;;  %s1254_s0 = inlined_call_operand.vmem [shape: bf16[288,128], index: 0, kind: input, shape index: {}]   ;;  %s1255_s1 = inlined_call_operand.vmem [shape: bf16[64,288], index: 1, kind: input, shape index: {}]   ;;  %s1256_s4 = inlined_call_operand.vmem [shape: f32[64,128], index: 4, kind: output, shape index: {0}]   ;;  %s1257_s2 = inlined_call_operand.vmem [shape: f32[64,1], index: 2, kind: input, shape index: {}]   ;;  %s1258_s3 = inlined_call_operand.vmem [shape: f32[64,1], index: 3, kind: input, shape index: {}]   ;;  %s1259_s5 = inlined_call_operand.vmem [shape: f32[64,1], index: 5, kind: output, shape index: {1}]   ;;  %s1260_s6 = inlined_call_operand.vmem [shape: f32[64,1], index: 6, kind: output, shape index: {2}]  }
   0x1   :  { %v868_v0 = vld [vmem:[%s1254_s0 + $0x38] sm:$0xff]  ;;  %v878_v2 = vld [vmem:[%s1254_s0 + $0x88] sm:$0xff]  ;;  %v867_v3 = vld [vmem:[%s1254_s0 + $0x30] sm:$0xff] }
   0x2   :  { %v876_v1 = vld [vmem:[%s1254_s0 + $0x78] sm:$0xff]  ;;  %254 = vmatpush.bf16.msra.mxu0 %v868_v0  ;;  %879 = vmatpush.bf16.msra.mxu3 %v868_v0  ;;  %v875_v4 = vld [vmem:[%s1254_s0 + $0x70] sm:$0xff]  ;;  %v877_v5 = vld [vmem:[%s1254_s0 + $0x80] sm:$0xff] }
   0x3   :  { %887 = vmatpush.bf16.msra.mxu1 %v876_v1  ;;  %318 = vmatpush.bf16.msra.mxu2 %v878_v2  ;;  %v735_v6 = vld [vmem:[%s1255_s1 + $0x8] sm:$0xf]  ;;  %v851_v7 = vld [vmem:[%s1255_s1 + $0x10] sm:$0xf0]  ;;  %v865_v11 = vld [vmem:[%s1254_s0 + $0x20] sm:$0xff] }
   0x4   :  { %v866_v8 = vld [vmem:[%s1254_s0 + $0x28] sm:$0xff]  ;;  %v736_v10 = vor.u32 %v851_v7, %v735_v6  ;;  %v873_v12 = vld [vmem:[%s1254_s0 + $0x60] sm:$0xff]  ;;  %v864_v13 = vld [vmem:[%s1254_s0 + $0x18] sm:$0xff] }
   0x5   :  { %v874_v9 = vld [vmem:[%s1254_s0 + $0x68] sm:$0xff]  ;;  %v872_v14 = vld [vmem:[%s1254_s0 + $0x58] sm:$0xff]  ;;  %v863_v15 = vld [vmem:[%s1254_s0 + $0x10] sm:$0xff] }
   0x6   :  { %255 = vmatpush.bf16.msra.mxu0 %v867_v3  ;;  %880 = vmatpush.bf16.msra.mxu3 %v867_v3  ;;  %v871_v16 = vld [vmem:[%s1254_s0 + $0x50] sm:$0xff]  ;;  %v747_v17 = vld [vmem:[%s1255_s1 + $0x20] sm:$0xf]  ;;  %v854_v18 = vld [vmem:[%s1255_s1 + $0x28] sm:$0xf0] }
   0x7   :  { %888 = vmatpush.bf16.msra.mxu1 %v875_v4  ;;  %319 = vmatpush.bf16.msra.mxu2 %v877_v5  ;;  %v862_v19 = vld [vmem:[%s1254_s0 + $0x8] sm:$0xff]  ;;  %v748_v21 = vor.u32 %v854_v18, %v747_v17  ;;  %v861_v22 = vld [vmem:[%s1254_s0] sm:$0xff]  ;;  %v739_v23 = vld [vmem:[%s1255_s1 + $0x18] sm:$0xf] }
   0x8   :  { %v870_v20 = vld [vmem:[%s1254_s0 + $0x48] sm:$0xff]  ;;  %v853_v24 = vld [vmem:[%s1255_s1 + $0x20] sm:$0xf0]  ;;  %v727_v25 = vld [vmem:[%s1255_s1] sm:$0xf] }
   0x9   :  { %v850_v26 = vld [vmem:[%s1255_s1 + $0x8] sm:$0xf0]  ;;  %v869_v27 = vld [vmem:[%s1254_s0 + $0x40] sm:$0xff]  ;;  %v852_v28 = vld [vmem:[%s1255_s1 + $0x1c] sm:$0xf]  ;;  %v740_v30 = vor.u32 %v853_v24, %v739_v23 }
   0xa   :  { %256 = vmatpush.bf16.msra.mxu0 %v866_v8  ;;  %881 = vmatpush.bf16.msra.mxu3 %v866_v8  ;;  %v741_v29 = vld [vmem:[%s1255_s1 + $0x24] sm:$0xf0]  ;;  %v728_v31 = vor.u32 %v850_v26, %v727_v25  ;;  %v759_v33 = vld [vmem:[%s1255_s1 + $0x38] sm:$0xf]  ;;  %v857_v34 = vld [vmem:[%s1255_s1 + $0x40] sm:$0xf0] }
   0xb   :  { %889 = vmatpush.bf16.msra.mxu1 %v874_v9  ;;  %845 = vmatmul.msk.bf16.vlgmr.msra.gmra.mxu2 %vm241_vm0, %v736_v10  ;;  %v744_v32 = vor.u32 %v852_v28, %v741_v29  ;;  %v760_v35 = vor.u32 %v857_v34, %v759_v33  ;;  %v751_v36 = vld [vmem:[%s1255_s1 + $0x30] sm:$0xf]  ;;  %v856_v37 = vld [vmem:[%s1255_s1 + $0x38] sm:$0xf0]  ;;  %v855_v38 = vld [vmem:[%s1255_s1 + $0x34] sm:$0xf] }
   0xc   :  { %v753_v39 = vld [vmem:[%s1255_s1 + $0x3c] sm:$0xf0]  ;;  %v752_v40 = vor.u32 %v856_v37, %v751_v36  ;;  %v771_v42 = vld [vmem:[%s1255_s1 + $0x50] sm:$0xf]  ;;  %v860_v43 = vld [vmem:[%s1255_s1 + $0x58] sm:$0xf0] }
   0xd   :  { %v756_v41 = vor.u32 %v855_v38, %v753_v39  ;;  %v772_v44 = vor.u32 %v860_v43, %v771_v42  ;;  %v849_v45 = vld [vmem:[%s1255_s1 + $0x4] sm:$0xf]  ;;  %v729_v46 = vld [vmem:[%s1255_s1 + $0xc] sm:$0xf0]  ;;  %v763_v48 = vld [vmem:[%s1255_s1 + $0x48] sm:$0xf] }
   0xe   :  { %257 = vmatpush.bf16.msra.mxu0 %v865_v11  ;;  %882 = vmatpush.bf16.msra.mxu3 %v865_v11  ;;  %v732_v47 = vor.u32 %v849_v45, %v729_v46  ;;  %v859_v49 = vld [vmem:[%s1255_s1 + $0x50] sm:$0xf0]  ;;  %v858_v50 = vld [vmem:[%s1255_s1 + $0x4c] sm:$0xf]  ;;  %v765_v51 = vld [vmem:[%s1255_s1 + $0x54] sm:$0xf0] }
   0xf   :  { %890 = vmatpush.bf16.msra.mxu1 %v873_v12  ;;  %v764_v52 = vor.u32 %v859_v49, %v763_v48  ;;  %v768_v53 = vor.u32 %v858_v50, %v765_v51 }
  0x12   :  { %258 = vmatpush.bf16.msra.mxu0 %v864_v13  ;;  %883 = vmatpush.bf16.msra.mxu3 %v864_v13 }
  0x13   :  { %891 = vmatpush.bf16.msra.mxu1 %v872_v14 }
  0x16   :  { %259 = vmatpush.bf16.msra.mxu0 %v863_v15  ;;  %884 = vmatpush.bf16.msra.mxu3 %v863_v15 }
  0x17   :  { %892 = vmatpush.bf16.msra.mxu1 %v871_v16 }
  0x1a   :  { %260 = vmatpush.bf16.msra.mxu0 %v862_v19  ;;  %885 = vmatpush.bf16.msra.mxu3 %v862_v19 }
  0x1b   :  { %893 = vmatpush.bf16.msra.mxu1 %v870_v20  ;;  %846 = vmatmul.msk.bf16.gmra.mxu2 %vm241_vm0, %v748_v21 }
  0x1e   :  { %261 = vmatpush.bf16.msra.mxu0 %v861_v22  ;;  %886 = vmatpush.bf16.msra.mxu3 %v861_v22 }
  0x1f   :  { %894 = vmatpush.bf16.msra.mxu1 %v869_v27 }
  0x21   :  { %267 = vmatmul.bf16.vlgmr.msra.gmra.mxu3 %v740_v30  ;;  %262 = vmatmul.bf16.vlgmr.msra.gmra.mxu0 %v728_v31 }
  0x22   :  { %283 = vmatpush.bf16.msrb.mxu0 %v876_v1  ;;  %296 = vmatmul.bf16.vlgmr.msra.gmra.mxu1 %v744_v32 }
  0x26   :  { %284 = vmatpush.bf16.msrb.mxu0 %v875_v4 }
  0x2a   :  { %285 = vmatpush.bf16.msrb.mxu0 %v874_v9 }
  0x2b   :  { %847 = vmatmul.msk.bf16.gmra.mxu2 %vm241_vm0, %v760_v35 }
  0x2e   :  { %286 = vmatpush.bf16.msrb.mxu0 %v873_v12 }
  0x31   :  { %272 = vmatmul.bf16.gmra.mxu3 %v752_v40 }
  0x32   :  { %287 = vmatpush.bf16.msrb.mxu0 %v872_v14  ;;  %301 = vmatmul.bf16.gmra.mxu1 %v756_v41 }
  0x36   :  { %288 = vmatpush.bf16.msrb.mxu0 %v871_v16 }
  0x3a   :  { %289 = vmatpush.bf16.msrb.mxu0 %v870_v20 }
  0x3b   :  { %848 = vmatmul.msk.bf16.gmra.mxu2 %vm241_vm0, %v772_v44 }
  0x3e   :  { %290 = vmatpush.bf16.msrb.mxu0 %v869_v27 }
  0x41   :  { %291 = vmatmul.bf16.vlgmr.msrb.gmra.mxu0 %v732_v47  ;;  %277 = vmatmul.bf16.gmra.mxu3 %v764_v52 }
  0x42   :  { %306 = vmatmul.bf16.gmra.mxu1 %v768_v53 }
  0x8e   :  { %v321_v54 = vpop.f32.mrf.mxu2 }
  0x96   :  { %v323_v55 = vpop.f32.mrf.mxu2 }
  0x9e   :  { %v326_v56 = vpop.f32.mrf.mxu2  ;;  %v263_v63 = vpop.f32.mrf.mxu0 }
  0x9f   :  { %v297_v57 = vpop.f32.mrf.mxu1 }
  0xa4   :  { %v268_v58 = vpop.f32.mrf.mxu3 }
  0xa5   :  { %v298_v59 = vadd.f32 %v297_v57, %v268_v58 }
  0xa6   :  { %v328_v60 = vpop.f32.mrf.mxu2  ;;  %v265_v5 = vpop.f32.mrf.mxu0 }
  0xa7   :  { %v327_v61 = vadd.f32 %v326_v56, %v298_v59  ;;  %v299_v62 = vpop.f32.mrf.mxu1 }
  0xa9   :  { %343 = vst [vmem:[%s1256_s4 + $0x10] sm:$0xff] %v327_v61  ;;  %353 = vadd.xlane.f32.xlu1 %v327_v61 }
  0xac   :  { %v270_v0 = vpop.f32.mrf.mxu3 }
  0xad   :  { %v300_v1 = vadd.f32 %v299_v62, %v270_v0 }
  0xae   :  { %v331_v4 = vpop.f32.mrf.mxu2 }
  0xaf   :  { %v329_v2 = vadd.f32 %v328_v60, %v300_v1  ;;  %v302_v3 = vpop.f32.mrf.mxu1 }
  0xb1   :  { %344 = vst [vmem:[%s1256_s4 + $0x18] sm:$0xff] %v329_v2  ;;  %355 = vadd.xlane.f32.xlu1 %v329_v2 }
  0xb4   :  { %v273_v6 = vpop.f32.mrf.mxu3 }
  0xb5   :  { %v303_v7 = vadd.f32 %v302_v3, %v273_v6 }
  0xb6   :  { %v333_v10 = vpop.f32.mrf.mxu2 }
  0xb7   :  { %v332_v8 = vadd.f32 %v331_v4, %v303_v7  ;;  %v304_v9 = vpop.f32.mrf.mxu1 }
  0xb9   :  { %345 = vst [vmem:[%s1256_s4 + $0x20] sm:$0xff] %v332_v8  ;;  %357 = vadd.xlane.f32.xlu2 %v332_v8 }
  0xbc   :  { %v275_v13 = vpop.f32.mrf.mxu3 }
  0xbd   :  { %v305_v14 = vadd.f32 %v304_v9, %v275_v13 }
  0xbe   :  { %v292_v11 = vpop.f32.mrf.mxu0  ;;  %v336_v19 = vpop.f32.mrf.mxu2 }
  0xbf   :  { %v293_v12 = vadd.f32 %v292_v11, %v263_v63  ;;  %v334_v16 = vadd.f32 %v333_v10, %v305_v14  ;;  %v307_v17 = vpop.f32.mrf.mxu1 }
  0xc1   :  { %v322_v15 = vadd.f32 %v321_v54, %v293_v12  ;;  %346 = vst [vmem:[%s1256_s4 + $0x28] sm:$0xff] %v334_v16  ;;  %359 = vadd.xlane.f32.xlu2 %v334_v16 }
  0xc3   :  { %341 = vst [vmem:[%s1256_s4] sm:$0xff] %v322_v15  ;;  %349 = vadd.xlane.f32.xlu0 %v322_v15 }
  0xc4   :  { %v278_v21 = vpop.f32.mrf.mxu3 }
  0xc5   :  { %v308_v22 = vadd.f32 %v307_v17, %v278_v21 }
  0xc6   :  { %v294_v18 = vpop.f32.mrf.mxu0  ;;  %v338_v28 = vpop.f32.mrf.mxu2 }
  0xc7   :  { %v295_v20 = vadd.f32 %v294_v18, %v265_v5  ;;  %v337_v24 = vadd.f32 %v336_v19, %v308_v22  ;;  %v309_v25 = vpop.f32.mrf.mxu1  ;;  %v562_v18 = vld [vmem:[%s1257_s2 + $0x10] sm:$0xff] }
  0xc9   :  { %v324_v23 = vadd.f32 %v323_v55, %v295_v20  ;;  %347 = vst [vmem:[%s1256_s4 + $0x30] sm:$0xff] %v337_v24 }
  0xcb   :  { %342 = vst [vmem:[%s1256_s4 + $0x8] sm:$0xff] %v324_v23  ;;  %351 = vadd.xlane.f32.xlu0 %v324_v23 }
  0xcc   :  { %v280_v26 = vpop.f32.mrf.mxu3 }
  0xcd   :  { %v310_v27 = vadd.f32 %v309_v25, %v280_v26 }
  0xcf   :  { %v339_v29 = vadd.f32 %v338_v28, %v310_v27  ;;  %v675_v27 = vld [vmem:[%s1258_s3 + $0x10] sm:$0xff] }
  0xd1   :  { %348 = vst [vmem:[%s1256_s4 + $0x38] sm:$0xff] %v339_v29  ;;  %363 = vadd.xlane.f32.xlu1 %v339_v29 }
  0xd3   :  { %361 = vadd.xlane.f32.xlu0 %v337_v24 }
 0x11c   :  { %v354_v30 = vpop.xlane.xlu1 %353 }
 0x11d   :  { %v367_v31 = vmul.f32 0.0078125, %v354_v30 }
 0x11f   :  { %412 = vst.msk [vmem:[#allocation2 + $0x10] sm:$0xff] %vm409_vm1, %v367_v31  ;;  %v375_v32 = vsub.f32 %v327_v61, %v367_v31 }
 0x121   :  { %v383_v33 = vmul.f32 %v375_v32, %v375_v32 }
 0x123   :  { %393 = vadd.xlane.f32.xlu1 %v383_v33 }
 0x124   :  { %v356_v34 = vpop.xlane.xlu1 %355 }
 0x125   :  { %v368_v35 = vmul.f32 0.0078125, %v356_v34 }
 0x126   :  { %v683_v26 = vld [vmem:[#allocation2 + $0x10] sm:$0xff] }
 0x127   :  { %413 = vst.msk [vmem:[#allocation2 + $0x18] sm:$0xff] %vm409_vm1, %v368_v35  ;;  %v376_v36 = vsub.f32 %v329_v2, %v368_v35 }
 0x129   :  { %v384_v37 = vmul.f32 %v376_v36, %v376_v36 }
 0x12b   :  { %395 = vadd.xlane.f32.xlu2 %v384_v37 }
 0x12c   :  { %v358_v38 = vpop.xlane.xlu2 %357 }
 0x12d   :  { %v369_v39 = vmul.f32 0.0078125, %v358_v38  ;;  %v563_v38 = vld [vmem:[%s1257_s2 + $0x18] sm:$0xff] }
 0x12f   :  { %414 = vst.msk [vmem:[#allocation2 + $0x20] sm:$0xff] %vm409_vm1, %v369_v39  ;;  %v377_v40 = vsub.f32 %v332_v8, %v369_v39 }
 0x131   :  { %v385_v41 = vmul.f32 %v377_v40, %v377_v40 }
 0x133   :  { %397 = vadd.xlane.f32.xlu0 %v385_v41 }
 0x134   :  { %v360_v44 = vpop.xlane.xlu2 %359 }
 0x135   :  { %v370_v45 = vmul.f32 0.0078125, %v360_v44 }
 0x136   :  { %v350_v42 = vpop.xlane.xlu0 %349 }
 0x137   :  { %v365_v43 = vmul.f32 0.0078125, %v350_v42  ;;  %415 = vst.msk [vmem:[#allocation2 + $0x28] sm:$0xff] %vm409_vm1, %v370_v45  ;;  %v378_v47 = vsub.f32 %v334_v16, %v370_v45 }
 0x139   :  { %410 = vst.msk [vmem:[#allocation2] sm:$0xff] %vm409_vm1, %v365_v43  ;;  %v373_v46 = vsub.f32 %v322_v15, %v365_v43  ;;  %v386_v49 = vmul.f32 %v378_v47, %v378_v47  ;;  %v676_v47 = vld [vmem:[%s1258_s3 + $0x18] sm:$0xff] }
 0x13b   :  { %v381_v48 = vmul.f32 %v373_v46, %v373_v46  ;;  %399 = vadd.xlane.f32.xlu1 %v386_v49  ;;  %v684_v46 = vld [vmem:[#allocation2 + $0x18] sm:$0xff] }
 0x13d   :  { %389 = vadd.xlane.f32.xlu2 %v381_v48 }
 0x13e   :  { %v352_v50 = vpop.xlane.xlu0 %351 }
 0x13f   :  { %v366_v51 = vmul.f32 0.0078125, %v352_v50 }
 0x141   :  { %411 = vst.msk [vmem:[#allocation2 + $0x8] sm:$0xff] %vm409_vm1, %v366_v51  ;;  %v374_v52 = vsub.f32 %v324_v23, %v366_v51 }
 0x143   :  { %v382_v53 = vmul.f32 %v374_v52, %v374_v52 }
 0x144   :  { %v364_v56 = vpop.xlane.xlu1 %363 }
 0x145   :  { %391 = vadd.xlane.f32.xlu0 %v382_v53  ;;  %v372_v57 = vmul.f32 0.0078125, %v364_v56 }
 0x146   :  { %v362_v54 = vpop.xlane.xlu0 %361 }
 0x147   :  { %v371_v55 = vmul.f32 0.0078125, %v362_v54  ;;  %417 = vst.msk [vmem:[#allocation2 + $0x38] sm:$0xff] %vm409_vm1, %v372_v57  ;;  %v380_v59 = vsub.f32 %v339_v29, %v372_v57 }
 0x149   :  { %416 = vst.msk [vmem:[#allocation2 + $0x30] sm:$0xff] %vm409_vm1, %v371_v55  ;;  %v379_v58 = vsub.f32 %v337_v24, %v371_v55  ;;  %v388_v61 = vmul.f32 %v380_v59, %v380_v59 }
 0x14b   :  { %v387_v60 = vmul.f32 %v379_v58, %v379_v58  ;;  %v564_v58 = vld [vmem:[%s1257_s2 + $0x20] sm:$0xff] }
 0x14d   :  { %401 = vadd.xlane.f32.xlu2 %v387_v60  ;;  %403 = vadd.xlane.f32.xlu0 %v388_v61 }
 0x196   :  { %v394_v62 = vpop.xlane.xlu1 %393 }
 0x197   :  { %420 = vst.msk [vmem:[#allocation3 + $0x10] sm:$0xff] %vm409_vm1, %v394_v62 }
 0x19e   :  { %v546_v63 = vld [vmem:[#allocation3 + $0x10] sm:$0xff]  ;;  %v396_v0 = vpop.xlane.xlu2 %395 }
 0x19f   :  { %v554_v1 = vmul.f32 0.0078125, %v546_v63  ;;  %421 = vst.msk [vmem:[#allocation3 + $0x18] sm:$0xff] %vm409_vm1, %v396_v0 }
 0x1a1   :  { %v570_v2 = vadd.f32 1e-05, %v554_v1 }
 0x1a3   :  { %895 = vrsqrt.f32 %v570_v2  ;;  %vm602_vm3 = vweird.f32 %v570_v2 }
 0x1a6   :  { %v547_v3 = vld [vmem:[#allocation3 + $0x18] sm:$0xff]  ;;  %v398_v4 = vpop.xlane.xlu0 %397 }
 0x1a7   :  { %v555_v5 = vmul.f32 0.0078125, %v547_v3  ;;  %422 = vst.msk [vmem:[#allocation3 + $0x20] sm:$0xff] %vm409_vm1, %v398_v4  ;;  %v685_v3 = vld [vmem:[#allocation2 + $0x20] sm:$0xff] }
 0x1a8   :  { %v677_v4 = vld [vmem:[%s1258_s3 + $0x20] sm:$0xff] }
 0x1a9   :  { %v896_v6 = vpop.eup %895  ;;  %v571_v7 = vadd.f32 1e-05, %v555_v5 }
 0x1aa   :  { %v597_v8 = vmul.f32 %v896_v6, %v570_v2  ;;  %vm603_vm2 = vweird.f32 %v896_v6 }
 0x1ab   :  { %897 = vrsqrt.f32 %v571_v7  ;;  %vm604_vm4 = vmor %vm602_vm3, %vm603_vm2  ;;  %vm612_vm6 = vweird.f32 %v571_v7 }
 0x1ac   :  { %v598_v9 = vmul.f32 %v896_v6, %v597_v8 }
 0x1ae   :  { %v599_v11 = vmul.f32 0.5, %v598_v9  ;;  %v548_v12 = vld [vmem:[#allocation3 + $0x20] sm:$0xff]  ;;  %v400_v13 = vpop.xlane.xlu1 %399 }
 0x1af   :  { %v556_v14 = vmul.f32 0.0078125, %v548_v12  ;;  %423 = vst.msk [vmem:[#allocation3 + $0x28] sm:$0xff] %vm409_vm1, %v400_v13 }
 0x1b0   :  { %v390_v10 = vpop.xlane.xlu2 %389  ;;  %v600_v15 = vsub.f32 1.5, %v599_v11 }
 0x1b1   :  { %418 = vst.msk [vmem:[#allocation3] sm:$0xff] %vm409_vm1, %v390_v10  ;;  %v898_v16 = vpop.eup %897  ;;  %v1113_v17 = vadd.f32 1e-05, %v556_v14 }
 0x1b2   :  { %v601_v19 = vmul.f32 %v896_v6, %v600_v15  ;;  %v607_v20 = vmul.f32 %v898_v16, %v571_v7  ;;  %vm613_vm5 = vweird.f32 %v898_v16  ;;  %v560_v15 = vld [vmem:[%s1257_s2] sm:$0xff] }
 0x1b3   :  { %899 = vrsqrt.f32 %v1113_v17  ;;  %vm614_vm7 = vmor %vm612_vm6, %vm613_vm5  ;;  %vm622_vm9 = vweird.f32 %v1113_v17 }
 0x1b4   :  { %v605_v21 = vsel %vm604_vm4, %v896_v6, %v601_v19  ;;  %v608_v22 = vmul.f32 %v898_v16, %v607_v20 }
 0x1b5   :  { %v658_v23 = vmul.f32 %v605_v21, %v562_v18  ;;  %v565_v18 = vld [vmem:[%s1257_s2 + $0x28] sm:$0xff] }
 0x1b6   :  { %v609_v28 = vmul.f32 0.5, %v608_v22  ;;  %v549_v30 = vld [vmem:[#allocation3 + $0x28] sm:$0xff] }
 0x1b7   :  { %667 = vst.msk [vmem:[%s1259_s5 + $0x10] sm:$0xff] %vm409_vm1, %v658_v23  ;;  %v691_v31 = vmul.f32 %v683_v26, %v658_v23  ;;  %v557_v32 = vmul.f32 0.0078125, %v549_v30  ;;  %v673_v26 = vld [vmem:[%s1258_s3] sm:$0xff] }
 0x1b8   :  { %v544_v24 = vld [vmem:[#allocation3] sm:$0xff]  ;;  %v392_v25 = vpop.xlane.xlu0 %391  ;;  %v610_v33 = vsub.f32 1.5, %v609_v28 }
 0x1b9   :  { %v552_v29 = vmul.f32 0.0078125, %v544_v24  ;;  %419 = vst.msk [vmem:[#allocation3 + $0x8] sm:$0xff] %vm409_vm1, %v392_v25  ;;  %v900_v35 = vpop.eup %899  ;;  %v699_v36 = vsub.f32 %v675_v27, %v691_v31  ;;  %v1129_v37 = vadd.f32 1e-05, %v557_v32  ;;  %v681_v25 = vld [vmem:[#allocation2] sm:$0xff]  ;;  %v678_v31 = vld [vmem:[%s1258_s3 + $0x28] sm:$0xff] }
 0x1ba   :  { %v611_v39 = vmul.f32 %v898_v16, %v610_v33  ;;  %v617_v40 = vmul.f32 %v900_v35, %v1113_v17  ;;  %vm623_vm8 = vweird.f32 %v900_v35 }
 0x1bb   :  { %v1127_v34 = vadd.f32 1e-05, %v552_v29  ;;  %707 = vst.msk [vmem:[%s1260_s6 + $0x10] sm:$0xff] %vm409_vm1, %v699_v36  ;;  %vm624_vm10 = vmor %vm622_vm9, %vm623_vm8  ;;  %vm632_vm15 = vweird.f32 %v1129_v37  ;;  %v686_v29 = vld [vmem:[#allocation2 + $0x28] sm:$0xff] }
 0x1bc   :  { %v615_v41 = vsel %vm614_vm7, %v898_v16, %v611_v39  ;;  %v618_v42 = vmul.f32 %v900_v35, %v617_v40 }
 0x1bd   :  { %901 = vrsqrt.f32 %v1127_v34  ;;  %v659_v43 = vmul.f32 %v615_v41, %v563_v38  ;;  %vm582_vm13 = vweird.f32 %v1127_v34 }
 0x1be   :  { %903 = vrsqrt.f32 %v1129_v37  ;;  %v619_v48 = vmul.f32 0.5, %v618_v42 }
 0x1bf   :  { %668 = vst.msk [vmem:[%s1259_s5 + $0x18] sm:$0xff] %vm409_vm1, %v659_v43  ;;  %v692_v51 = vmul.f32 %v684_v46, %v659_v43  ;;  %v674_v46 = vld [vmem:[%s1258_s3 + $0x8] sm:$0xff] }
 0x1c0   :  { %v545_v44 = vld [vmem:[#allocation3 + $0x8] sm:$0xff]  ;;  %v402_v45 = vpop.xlane.xlu2 %401  ;;  %v404_v50 = vpop.xlane.xlu0 %403  ;;  %v620_v53 = vsub.f32 1.5, %v619_v48 }
 0x1c1   :  { %v553_v49 = vmul.f32 0.0078125, %v545_v44  ;;  %424 = vst.msk [vmem:[#allocation3 + $0x30] sm:$0xff] %vm409_vm1, %v402_v45  ;;  %v700_v56 = vsub.f32 %v676_v47, %v692_v51  ;;  %v682_v45 = vld [vmem:[#allocation2 + $0x8] sm:$0xff] }
 0x1c2   :  { %425 = vst.msk [vmem:[#allocation3 + $0x38] sm:$0xff] %vm409_vm1, %v404_v50  ;;  %v621_v59 = vmul.f32 %v900_v35, %v620_v53  ;;  %v566_v53 = vld [vmem:[%s1257_s2 + $0x30] sm:$0xff] }
 0x1c3   :  { %v902_v52 = vpop.eup %901  ;;  %v1149_v54 = vadd.f32 1e-05, %v553_v49  ;;  %708 = vst.msk [vmem:[%s1260_s6 + $0x18] sm:$0xff] %vm409_vm1, %v700_v56 }
 0x1c4   :  { %v904_v55 = vpop.eup %903  ;;  %v577_v57 = vmul.f32 %v902_v52, %v1127_v34  ;;  %v625_v62 = vsel %vm624_vm10, %v900_v35, %v621_v59  ;;  %vm583_vm11 = vweird.f32 %v902_v52 }
 0x1c5   :  { %v627_v60 = vmul.f32 %v904_v55, %v1129_v37  ;;  %905 = vrsqrt.f32 %v1149_v54  ;;  %v660_v0 = vmul.f32 %v625_v62, %v564_v58  ;;  %vm633_vm12 = vweird.f32 %v904_v55  ;;  %vm584_vm14 = vmor %vm582_vm13, %vm583_vm11  ;;  %v561_v37 = vld [vmem:[%s1257_s2 + $0x8] sm:$0xff] }
 0x1c6   :  { %v578_v61 = vmul.f32 %v902_v52, %v577_v57  ;;  %vm634_vm0 = vmor %vm632_vm15, %vm633_vm12  ;;  %vm592_vm3 = vweird.f32 %v1149_v54  ;;  %v567_v57 = vld [vmem:[%s1257_s2 + $0x38] sm:$0xff] }
 0x1c7   :  { %v628_v63 = vmul.f32 %v904_v55, %v627_v60  ;;  %669 = vst.msk [vmem:[%s1259_s5 + $0x20] sm:$0xff] %vm409_vm1, %v660_v0  ;;  %v693_v7 = vmul.f32 %v685_v3, %v660_v0  ;;  %v687_v60 = vld [vmem:[#allocation2 + $0x30] sm:$0xff] }
 0x1c8   :  { %v579_v1 = vmul.f32 0.5, %v578_v61  ;;  %v550_v2 = vld [vmem:[#allocation3 + $0x30] sm:$0xff] }
 0x1c9   :  { %v629_v5 = vmul.f32 0.5, %v628_v63  ;;  %v558_v6 = vmul.f32 0.0078125, %v550_v2  ;;  %v551_v9 = vld [vmem:[#allocation3 + $0x38] sm:$0xff]  ;;  %v701_v14 = vsub.f32 %v677_v4, %v693_v7  ;;  %v679_v61 = vld [vmem:[%s1258_s3 + $0x30] sm:$0xff] }
 0x1ca   :  { %v580_v8 = vsub.f32 1.5, %v579_v1  ;;  %v559_v13 = vmul.f32 0.0078125, %v551_v9  ;;  %v688_v1 = vld [vmem:[#allocation2 + $0x38] sm:$0xff] }
 0x1cb   :  { %v906_v10 = vpop.eup %905  ;;  %v630_v11 = vsub.f32 1.5, %v629_v5  ;;  %v1170_v12 = vadd.f32 1e-05, %v558_v6  ;;  %709 = vst.msk [vmem:[%s1260_s6 + $0x20] sm:$0xff] %vm409_vm1, %v701_v14  ;;  %v680_v2 = vld [vmem:[%s1258_s3 + $0x38] sm:$0xff] }
 0x1cc   :  { %v581_v16 = vmul.f32 %v902_v52, %v580_v8  ;;  %v587_v17 = vmul.f32 %v906_v10, %v1149_v54  ;;  %v575_v20 = vadd.f32 1e-05, %v559_v13  ;;  %vm593_vm2 = vweird.f32 %v906_v10 }
 0x1cd   :  { %v631_v19 = vmul.f32 %v904_v55, %v630_v11  ;;  %907 = vrsqrt.f32 %v1170_v12  ;;  %vm594_vm4 = vmor %vm592_vm3, %vm593_vm2  ;;  %vm642_vm6 = vweird.f32 %v1170_v12 }
 0x1ce   :  { %v585_v21 = vsel %vm584_vm14, %v902_v52, %v581_v16  ;;  %v588_v22 = vmul.f32 %v906_v10, %v587_v17  ;;  %909 = vrsqrt.f32 %v575_v20  ;;  %vm652_vm9 = vweird.f32 %v575_v20 }
 0x1cf   :  { %v656_v23 = vmul.f32 %v585_v21, %v560_v15  ;;  %v635_v24 = vsel %vm634_vm0, %v904_v55, %v631_v19 }
 0x1d0   :  { %v661_v27 = vmul.f32 %v635_v24, %v565_v18  ;;  %v589_v28 = vmul.f32 0.5, %v588_v22 }
 0x1d1   :  { %665 = vst.msk [vmem:[%s1259_s5] sm:$0xff] %vm409_vm1, %v656_v23  ;;  %v689_v30 = vmul.f32 %v681_v25, %v656_v23 }
 0x1d2   :  { %670 = vst.msk [vmem:[%s1259_s5 + $0x28] sm:$0xff] %vm409_vm1, %v661_v27  ;;  %v694_v32 = vmul.f32 %v686_v29, %v661_v27  ;;  %v590_v33 = vsub.f32 1.5, %v589_v28 }
 0x1d3   :  { %v908_v34 = vpop.eup %907  ;;  %v697_v35 = vsub.f32 %v673_v26, %v689_v30 }
 0x1d4   :  { %v702_v36 = vsub.f32 %v678_v31, %v694_v32  ;;  %v591_v38 = vmul.f32 %v906_v10, %v590_v33  ;;  %v637_v39 = vmul.f32 %v908_v34, %v1170_v12  ;;  %v910_v40 = vpop.eup %909  ;;  %vm643_vm5 = vweird.f32 %v908_v34 }
 0x1d5   :  { %705 = vst.msk [vmem:[%s1260_s6] sm:$0xff] %vm409_vm1, %v697_v35  ;;  %v647_v43 = vmul.f32 %v910_v40, %v575_v20  ;;  %vm653_vm7 = vweird.f32 %v910_v40  ;;  %vm644_vm8 = vmor %vm642_vm6, %vm643_vm5 }
 0x1d6   :  { %710 = vst.msk [vmem:[%s1260_s6 + $0x28] sm:$0xff] %vm409_vm1, %v702_v36  ;;  %v595_v41 = vsel %vm594_vm4, %v906_v10, %v591_v38  ;;  %v638_v42 = vmul.f32 %v908_v34, %v637_v39  ;;  %vm654_vm10 = vmor %vm652_vm9, %vm653_vm7 }
 0x1d7   :  { %v657_v44 = vmul.f32 %v595_v41, %v561_v37  ;;  %v648_v48 = vmul.f32 %v910_v40, %v647_v43 }
 0x1d8   :  { %v639_v47 = vmul.f32 0.5, %v638_v42 }
 0x1d9   :  { %666 = vst.msk [vmem:[%s1259_s5 + $0x8] sm:$0xff] %vm409_vm1, %v657_v44  ;;  %v690_v49 = vmul.f32 %v682_v45, %v657_v44  ;;  %v649_v51 = vmul.f32 0.5, %v648_v48 }
 0x1da   :  { %v640_v50 = vsub.f32 1.5, %v639_v47 }
 0x1db   :  { %v698_v52 = vsub.f32 %v674_v46, %v690_v49  ;;  %v650_v55 = vsub.f32 1.5, %v649_v51 }
 0x1dc   :  { %v641_v54 = vmul.f32 %v908_v34, %v640_v50 }
 0x1dd   :  { %706 = vst.msk [vmem:[%s1260_s6 + $0x8] sm:$0xff] %vm409_vm1, %v698_v52  ;;  %v651_v58 = vmul.f32 %v910_v40, %v650_v55 }
 0x1de   :  { %v645_v56 = vsel %vm644_vm8, %v908_v34, %v641_v54 }
 0x1df   :  { %v662_v59 = vmul.f32 %v645_v56, %v566_v53  ;;  %v655_v62 = vsel %vm654_vm10, %v910_v40, %v651_v58 }
 0x1e0   :  { %v663_v0 = vmul.f32 %v655_v62, %v567_v57 }
 0x1e1   :  { %671 = vst.msk [vmem:[%s1259_s5 + $0x30] sm:$0xff] %vm409_vm1, %v662_v59  ;;  %v695_v63 = vmul.f32 %v687_v60, %v662_v59 }
 0x1e2   :  { %672 = vst.msk [vmem:[%s1259_s5 + $0x38] sm:$0xff] %vm409_vm1, %v663_v0  ;;  %v696_v4 = vmul.f32 %v688_v1, %v663_v0 }
 0x1e3   :  { %v703_v3 = vsub.f32 %v679_v61, %v695_v63 }
 0x1e4   :  { %v704_v5 = vsub.f32 %v680_v2, %v696_v4 }
 0x1e5   :  { %711 = vst.msk [vmem:[%s1260_s6 + $0x30] sm:$0xff] %vm409_vm1, %v703_v3 }
 0x1e6   :  { %712 = vst.msk [vmem:[%s1260_s6 + $0x38] sm:$0xff] %vm409_vm1, %v704_v5 }

// kernel: encoder_forward.24
= control target key start
LH: loop header
LB: loop body
LE: loop exit
PB: predicated region body
PF: predicated region fallthrough
CT: control target
= control target key end

     0   :  { %v227_v0 = vmov 0   ;;  %s349_s1 = inlined_call_operand.vmem [shape: f32[64,1], index: 1, kind: input, shape index: {}]   ;;  %s350_s2 = inlined_call_operand.vmem [shape: f32[64,1], index: 2, kind: input, shape index: {}]   ;;  %s351_s0 = inlined_call_operand.vmem [shape: f32[64,128], index: 0, kind: input, shape index: {}]   ;;  %s352_s3 = inlined_call_operand.vmem [shape: bf16[64,128], index: 3, kind: input, shape index: {}]   ;;  %s353_s4 = inlined_call_operand.vmem [shape: bf16[64,128], index: 4, kind: output, shape index: {}]  }
   0x1   :  { %226 = vset.pattern.permute.xlu2 %v227_v0  ;;  %225 = vset.pattern.permute.xlu1 %v227_v0  ;;  %v29_v1 = vld [vmem:[%s349_s1 + $0x20] sm:$0xff]  ;;  %v27_v2 = vld [vmem:[%s349_s1 + $0x10] sm:$0xff]  ;;  %v30_v4 = vld [vmem:[%s349_s1 + $0x28] sm:$0xff] }
   0x2   :  { %v25_v3 = vld [vmem:[%s349_s1] sm:$0xff]  ;;  %224 = vset.pattern.permute.xlu0 %v227_v0  ;;  %55 = vperm.xlu2 %226, %v29_v1   ;;  %v28_v5 = vld [vmem:[%s349_s1 + $0x18] sm:$0xff]  ;;  %v26_v6 = vld [vmem:[%s349_s1 + $0x8] sm:$0xff] }
   0x3   :  { %45 = vperm.xlu1 %225, %v27_v2   ;;  %35 = vperm.xlu0 %224, %v25_v3   ;;  %v81_v7 = vld [vmem:[%s350_s2] sm:$0xff]  ;;  %v32_v8 = vld [vmem:[%s349_s1 + $0x38] sm:$0xff]  ;;  %v31_v9 = vld [vmem:[%s349_s1 + $0x30] sm:$0xff] }
   0x4   :  { %v84_v10 = vld [vmem:[%s350_s2 + $0x18] sm:$0xff]  ;;  %v83_v11 = vld [vmem:[%s350_s2 + $0x10] sm:$0xff]  ;;  %v82_v12 = vld [vmem:[%s350_s2 + $0x8] sm:$0xff] }
   0x5   :  { %v87_v13 = vld [vmem:[%s350_s2 + $0x30] sm:$0xff]  ;;  %v86_v14 = vld [vmem:[%s350_s2 + $0x28] sm:$0xff]  ;;  %v85_v15 = vld [vmem:[%s350_s2 + $0x20] sm:$0xff] }
   0x6   :  { %v88_v16 = vld [vmem:[%s350_s2 + $0x38] sm:$0xff]  ;;  %v17_v24 = vld [vmem:[%s351_s0] sm:$0xff]  ;;  %v217_v30 = vld [vmem:[%s352_s3 + $0x8] sm:$0xff]  }
   0x7   :  { %v20_v25 = vld [vmem:[%s351_s0 + $0x18] sm:$0xff]  ;;  %v182_v28 = vld [vmem:[%s352_s3] sm:$0xff]   ;;  %v19_v32 = vld [vmem:[%s351_s0 + $0x10] sm:$0xff]  ;;  %v188_v36 = vunpack.c.h.bf16 %v217_v30  ;;  %v187_v37 = vunpack.c.l.bf16 %v217_v30 }
   0x8   :  { %v18_v33 = vld [vmem:[%s351_s0 + $0x8] sm:$0xff]  ;;  %v183_v35 = vunpack.c.l.bf16 %v182_v28  ;;  %v184_v38 = vunpack.c.h.bf16 %v182_v28  ;;  %v21_v51 = vld [vmem:[%s351_s0 + $0x20] sm:$0xff]  ;;  %v218_v53 = vld [vmem:[%s352_s3 + $0x10] sm:$0xff]  }
   0x9   :  { %v22_v52 = vld [vmem:[%s351_s0 + $0x28] sm:$0xff]  ;;  %v192_v58 = vunpack.c.h.bf16 %v218_v53  ;;  %v191_v59 = vunpack.c.l.bf16 %v218_v53  ;;  %v23_v60 = vld [vmem:[%s351_s0 + $0x30] sm:$0xff] }
   0xa   :  { %60 = vperm.xlu2 %226, %v30_v4   ;;  %v24_v4 = vld [vmem:[%s351_s0 + $0x38] sm:$0xff] }
   0xb   :  { %50 = vperm.xlu1 %225, %v28_v5   ;;  %40 = vperm.xlu0 %224, %v26_v6   ;;  %v219_v5 = vld [vmem:[%s352_s3 + $0x18] sm:$0xff]  }
  0x12   :  { %91 = vperm.xlu2 %226, %v81_v7  }
  0x13   :  { %70 = vperm.xlu1 %225, %v32_v8   ;;  %65 = vperm.xlu0 %224, %v31_v9   ;;  %v195_v9 = vunpack.c.l.bf16 %v219_v5 }
  0x1a   :  { %106 = vperm.xlu2 %226, %v84_v10  }
  0x1b   :  { %101 = vperm.xlu1 %225, %v83_v11   ;;  %96 = vperm.xlu0 %224, %v82_v12   ;;  %v196_v11 = vunpack.c.h.bf16 %v219_v5 }
  0x22   :  { %121 = vperm.xlu2 %226, %v87_v13  }
  0x23   :  { %116 = vperm.xlu1 %225, %v86_v14   ;;  %111 = vperm.xlu0 %224, %v85_v15  }
  0x2b   :  { %126 = vperm.xlu0 %224, %v88_v16  }
  0x5c   :  { %v56_v17 = vpop.permute.xlu2 %55 }
  0x5d   :  { %v77_v56 = vmul.f32 %v56_v17, %v21_v51 }
  0x64   :  { %v61_v20 = vpop.permute.xlu2 %60 }
  0x65   :  { %v78_v57 = vmul.f32 %v61_v20, %v22_v52 }
  0x6c   :  { %v92_v23 = vpop.permute.xlu2 %91 }
  0x74   :  { %v107_v34 = vpop.permute.xlu2 %106 }
  0x75   :  { %v46_v18 = vpop.permute.xlu1 %45  ;;  %v36_v19 = vpop.permute.xlu0 %35 }
  0x76   :  { %v73_v29 = vmul.f32 %v36_v19, %v17_v24  ;;  %v75_v39 = vmul.f32 %v46_v18, %v19_v32 }
  0x78   :  { %v129_v40 = vadd.f32 %v92_v23, %v73_v29 }
  0x7a   :  { %v153_v47 = vadd.f32 %v183_v35, %v129_v40 }
  0x7c   :  { %v122_v7 = vpop.permute.xlu2 %121 }
  0x7d   :  { %v51_v21 = vpop.permute.xlu1 %50  ;;  %v41_v22 = vpop.permute.xlu0 %40 }
  0x7e   :  { %v76_v31 = vmul.f32 %v51_v21, %v20_v25  ;;  %v74_v42 = vmul.f32 %v41_v22, %v18_v33 }
  0x80   :  { %v132_v41 = vadd.f32 %v107_v34, %v76_v31 }
  0x82   :  { %v156_v48 = vadd.f32 %v188_v36, %v132_v41 }
  0x85   :  { %v71_v26 = vpop.permute.xlu1 %70  ;;  %v66_v27 = vpop.permute.xlu0 %65 }
  0x86   :  { %v79_v1 = vmul.f32 %v66_v27, %v23_v60  ;;  %v80_v8 = vmul.f32 %v71_v26, %v24_v4 }
  0x88   :  { %v135_v10 = vadd.f32 %v122_v7, %v79_v1 }
  0x8a   :  { %v159_v14 = vadd.f32 %v195_v9, %v135_v10 }
  0x8d   :  { %v102_v43 = vpop.permute.xlu1 %101  ;;  %v97_v44 = vpop.permute.xlu0 %96 }
  0x8e   :  { %v131_v45 = vadd.f32 %v102_v43, %v75_v39  ;;  %v130_v46 = vadd.f32 %v97_v44, %v74_v42 }
  0x90   :  { %v155_v49 = vadd.f32 %v187_v37, %v131_v45  ;;  %v154_v50 = vadd.f32 %v184_v38, %v130_v46 }
  0x92   :  { %v205_v54 = vpack.c.bf16 %v156_v48, %v155_v49  ;;  %v200_v55 = vpack.c.bf16 %v154_v50, %v153_v47 }
  0x94   :  { %220 = vst [vmem:[%s353_s4 + $0x8] sm:$0xff] %v205_v54  }
  0x95   :  { %201 = vst [vmem:[%s353_s4] sm:$0xff] %v200_v55   ;;  %v117_v61 = vpop.permute.xlu1 %116  ;;  %v112_v62 = vpop.permute.xlu0 %111 }
  0x96   :  { %v134_v63 = vadd.f32 %v117_v61, %v78_v57  ;;  %v133_v0 = vadd.f32 %v112_v62, %v77_v56 }
  0x98   :  { %v158_v2 = vadd.f32 %v192_v58, %v134_v63  ;;  %v157_v3 = vadd.f32 %v191_v59, %v133_v0 }
  0x9a   :  { %v210_v6 = vpack.c.bf16 %v158_v2, %v157_v3 }
  0x9c   :  { %221 = vst [vmem:[%s353_s4 + $0x10] sm:$0xff] %v210_v6  }
  0x9d   :  { %v127_v12 = vpop.permute.xlu0 %126 }
  0x9e   :  { %v136_v13 = vadd.f32 %v127_v12, %v80_v8 }
  0xa0   :  { %v160_v15 = vadd.f32 %v196_v11, %v136_v13 }
  0xa2   :  { %v215_v16 = vpack.c.bf16 %v160_v15, %v159_v14 }
  0xa4   :  { %222 = vst [vmem:[%s353_s4 + $0x18] sm:$0xff] %v215_v16  }

// kernel: encoder_forward.29
= control target key start
LH: loop header
LB: loop body
LE: loop exit
PB: predicated region body
PF: predicated region fallthrough
CT: control target
= control target key end

     0   :  { %vm548_vm0 = vcmask 523264   ;;  %s1881_s0 = inlined_call_operand.vmem [shape: bf16[576,128], index: 0, kind: input, shape index: {}]   ;;  %s1882_s1 = inlined_call_operand.vmem [shape: bf16[128,576], index: 1, kind: input, shape index: {}]   ;;  %s1883_s2 = inlined_call_operand.vmem [shape: f32[128,128], index: 2, kind: output, shape index: {}]  }
   0x1   :  { %v1317_v0 = vld [vmem:[%s1881_s0 + $0x38] sm:$0xff]  ;;  %v1316_v1 = vld [vmem:[%s1881_s0 + $0x30] sm:$0xff]  ;;  %v1315_v2 = vld [vmem:[%s1881_s0 + $0x28] sm:$0xff] }
   0x2   :  { %1346 = vmatpush.bf16.msra.mxu1 %v1317_v0  ;;  %1347 = vmatpush.bf16.msra.mxu2 %v1317_v0  ;;  %v1314_v3 = vld [vmem:[%s1881_s0 + $0x20] sm:$0xff]  ;;  %v1313_v4 = vld [vmem:[%s1881_s0 + $0x18] sm:$0xff]  ;;  %v1312_v5 = vld [vmem:[%s1881_s0 + $0x10] sm:$0xff] }
   0x3   :  { %1348 = vmatpush.bf16.msra.mxu3 %v1317_v0  ;;  %573 = vmatpush.bf16.msra.mxu0 %v1317_v0  ;;  %v1311_v6 = vld [vmem:[%s1881_s0 + $0x8] sm:$0xff]  ;;  %v1310_v7 = vld [vmem:[%s1881_s0] sm:$0xff]  ;;  %v1000_v8 = vld [vmem:[%s1882_s1 + $0x50] sm:$0xf] }
   0x4   :  { %v1282_v9 = vld [vmem:[%s1882_s1 + $0x60] sm:$0xf0]  ;;  %v1040_v10 = vld [vmem:[%s1882_s1 + $0xa0] sm:$0xf]  ;;  %v1292_v11 = vld [vmem:[%s1882_s1 + $0xb0] sm:$0xf0] }
   0x5   :  { %v1080_v12 = vld [vmem:[%s1882_s1 + $0xf0] sm:$0xf]  ;;  %v1302_v13 = vld [vmem:[%s1882_s1 + $0x100] sm:$0xf0]  ;;  %v960_v14 = vld [vmem:[%s1882_s1] sm:$0xf]  ;;  %v1001_v18 = vor.u32 %v1282_v9, %v1000_v8  ;;  %v1041_v19 = vor.u32 %v1292_v11, %v1040_v10 }
   0x6   :  { %1349 = vmatpush.bf16.msra.mxu1 %v1316_v1  ;;  %1350 = vmatpush.bf16.msra.mxu2 %v1316_v1  ;;  %v1272_v15 = vld [vmem:[%s1882_s1 + $0x10] sm:$0xf0]  ;;  %v1333_v16 = vld [vmem:[%s1881_s0 + $0xb8] sm:$0xff]  ;;  %v1081_v20 = vor.u32 %v1302_v13, %v1080_v12  ;;  %v1331_v28 = vld [vmem:[%s1881_s0 + $0xa8] sm:$0xff] }
   0x7   :  { %1351 = vmatpush.bf16.msra.mxu3 %v1316_v1  ;;  %574 = vmatpush.bf16.msra.mxu0 %v1316_v1  ;;  %v1325_v17 = vld [vmem:[%s1881_s0 + $0x78] sm:$0xff]  ;;  %v961_v21 = vor.u32 %v1272_v15, %v960_v14  ;;  %v1332_v24 = vld [vmem:[%s1881_s0 + $0xb0] sm:$0xff]  ;;  %v1323_v29 = vld [vmem:[%s1881_s0 + $0x68] sm:$0xff] }
   0x8   :  { %v1341_v22 = vld [vmem:[%s1881_s0 + $0xf8] sm:$0xff]  ;;  %v1324_v25 = vld [vmem:[%s1881_s0 + $0x70] sm:$0xff]  ;;  %v1339_v30 = vld [vmem:[%s1881_s0 + $0xe8] sm:$0xff] }
   0x9   :  { %v1345_v23 = vld [vmem:[%s1881_s0 + $0x118] sm:$0xff]  ;;  %v1340_v26 = vld [vmem:[%s1881_s0 + $0xf0] sm:$0xff]  ;;  %v1343_v31 = vld [vmem:[%s1881_s0 + $0x108] sm:$0xff] }
   0xa   :  { %1352 = vmatpush.bf16.msra.mxu1 %v1315_v2  ;;  %1353 = vmatpush.bf16.msra.mxu2 %v1315_v2  ;;  %v1344_v27 = vld [vmem:[%s1881_s0 + $0x110] sm:$0xff]  ;;  %v1330_v32 = vld [vmem:[%s1881_s0 + $0xa0] sm:$0xff]  ;;  %v1020_v35 = vld [vmem:[%s1882_s1 + $0x78] sm:$0xf] }
   0xb   :  { %1354 = vmatpush.bf16.msra.mxu3 %v1315_v2  ;;  %575 = vmatpush.bf16.msra.mxu0 %v1315_v2  ;;  %v1322_v33 = vld [vmem:[%s1881_s0 + $0x60] sm:$0xff]  ;;  %v1287_v36 = vld [vmem:[%s1882_s1 + $0x88] sm:$0xf0]  ;;  %v1060_v37 = vld [vmem:[%s1882_s1 + $0xc8] sm:$0xf] }
   0xc   :  { %v1338_v34 = vld [vmem:[%s1881_s0 + $0xe0] sm:$0xff]  ;;  %v1297_v38 = vld [vmem:[%s1882_s1 + $0xd8] sm:$0xf0]  ;;  %v1100_v39 = vld [vmem:[%s1882_s1 + $0x118] sm:$0xf]  ;;  %v1021_v46 = vor.u32 %v1287_v36, %v1020_v35 }
   0xd   :  { %v1307_v40 = vld [vmem:[%s1882_s1 + $0x128] sm:$0xf0]  ;;  %v980_v41 = vld [vmem:[%s1882_s1 + $0x28] sm:$0xf]  ;;  %v1277_v42 = vld [vmem:[%s1882_s1 + $0x38] sm:$0xf0]  ;;  %v1061_v47 = vor.u32 %v1297_v38, %v1060_v37 }
   0xe   :  { %1355 = vmatpush.bf16.msra.mxu1 %v1314_v3  ;;  %1356 = vmatpush.bf16.msra.mxu2 %v1314_v3  ;;  %v1342_v43 = vld [vmem:[%s1881_s0 + $0x100] sm:$0xff]  ;;  %v1329_v44 = vld [vmem:[%s1881_s0 + $0x98] sm:$0xff]  ;;  %v1101_v48 = vor.u32 %v1307_v40, %v1100_v39  ;;  %v981_v49 = vor.u32 %v1277_v42, %v980_v41  ;;  %v1328_v51 = vld [vmem:[%s1881_s0 + $0x90] sm:$0xff] }
   0xf   :  { %1357 = vmatpush.bf16.msra.mxu3 %v1314_v3  ;;  %576 = vmatpush.bf16.msra.mxu0 %v1314_v3  ;;  %v1321_v45 = vld [vmem:[%s1881_s0 + $0x58] sm:$0xff]  ;;  %v1320_v52 = vld [vmem:[%s1881_s0 + $0x50] sm:$0xff]  ;;  %v1327_v54 = vld [vmem:[%s1881_s0 + $0x88] sm:$0xff] }
  0x10   :  { %v1337_v50 = vld [vmem:[%s1881_s0 + $0xd8] sm:$0xff]  ;;  %v1336_v53 = vld [vmem:[%s1881_s0 + $0xd0] sm:$0xff]  ;;  %v1319_v55 = vld [vmem:[%s1881_s0 + $0x48] sm:$0xff] }
  0x11   :  { %v1335_v56 = vld [vmem:[%s1881_s0 + $0xc8] sm:$0xff]  ;;  %v1326_v57 = vld [vmem:[%s1881_s0 + $0x80] sm:$0xff]  ;;  %v962_v61 = vld [vmem:[%s1882_s1 + $0x14] sm:$0xf0] }
  0x12   :  { %1358 = vmatpush.bf16.msra.mxu1 %v1313_v4  ;;  %1359 = vmatpush.bf16.msra.mxu2 %v1313_v4  ;;  %v1318_v58 = vld [vmem:[%s1881_s0 + $0x40] sm:$0xff]  ;;  %v968_v62 = vld [vmem:[%s1882_s1 + $0x8] sm:$0xf]  ;;  %v1273_v63 = vld [vmem:[%s1882_s1 + $0x18] sm:$0xf0] }
  0x13   :  { %1360 = vmatpush.bf16.msra.mxu3 %v1313_v4  ;;  %577 = vmatpush.bf16.msra.mxu0 %v1313_v4  ;;  %v1334_v59 = vld [vmem:[%s1881_s0 + $0xc0] sm:$0xff]  ;;  %v1271_v0 = vld [vmem:[%s1882_s1 + $0xc] sm:$0xf]  ;;  %v976_v2 = vld [vmem:[%s1882_s1 + $0x10] sm:$0xf] }
  0x14   :  { %v1270_v60 = vld [vmem:[%s1882_s1 + $0x4] sm:$0xf]  ;;  %v970_v1 = vld [vmem:[%s1882_s1 + $0x1c] sm:$0xf0]  ;;  %v1275_v8 = vld [vmem:[%s1882_s1 + $0x2c] sm:$0xf] }
  0x15   :  { %v1274_v3 = vld [vmem:[%s1882_s1 + $0x20] sm:$0xf0]  ;;  %v965_v4 = vor.u32 %v1270_v60, %v962_v61  ;;  %v982_v9 = vld [vmem:[%s1882_s1 + $0x3c] sm:$0xf0]  ;;  %v988_v10 = vld [vmem:[%s1882_s1 + $0x30] sm:$0xf] }
  0x16   :  { %1361 = vmatpush.bf16.msra.mxu1 %v1312_v5  ;;  %1362 = vmatpush.bf16.msra.mxu2 %v1312_v5  ;;  %v1278_v11 = vld [vmem:[%s1882_s1 + $0x40] sm:$0xf0]  ;;  %v1276_v12 = vld [vmem:[%s1882_s1 + $0x34] sm:$0xf]  ;;  %v990_v13 = vld [vmem:[%s1882_s1 + $0x44] sm:$0xf0] }
  0x17   :  { %1363 = vmatpush.bf16.msra.mxu3 %v1312_v5  ;;  %578 = vmatpush.bf16.msra.mxu0 %v1312_v5  ;;  %v969_v5 = vor.u32 %v1273_v63, %v968_v62  ;;  %v996_v14 = vld [vmem:[%s1882_s1 + $0x38] sm:$0xf]  ;;  %v1279_v15 = vld [vmem:[%s1882_s1 + $0x48] sm:$0xf0]  ;;  %v1288_v35 = vld [vmem:[%s1882_s1 + $0x90] sm:$0xf0] }
  0x18   :  { %v1286_v36 = vld [vmem:[%s1882_s1 + $0x84] sm:$0xf]  ;;  %v1030_v37 = vld [vmem:[%s1882_s1 + $0x94] sm:$0xf0]  ;;  %v1036_v38 = vld [vmem:[%s1882_s1 + $0x88] sm:$0xf] }
  0x19   :  { %v1289_v39 = vld [vmem:[%s1882_s1 + $0x98] sm:$0xf0]  ;;  %v1033_v42 = vor.u32 %v1286_v36, %v1030_v37  ;;  %v1296_v60 = vld [vmem:[%s1882_s1 + $0xd4] sm:$0xf]  ;;  %v1070_v61 = vld [vmem:[%s1882_s1 + $0xe4] sm:$0xf0] }
  0x1a   :  { %1364 = vmatpush.bf16.msra.mxu1 %v1311_v6  ;;  %1365 = vmatpush.bf16.msra.mxu2 %v1311_v6  ;;  %v1076_v62 = vld [vmem:[%s1882_s1 + $0xd8] sm:$0xf]  ;;  %v1299_v63 = vld [vmem:[%s1882_s1 + $0xe8] sm:$0xf0] }
  0x1b   :  { %1366 = vmatpush.bf16.msra.mxu3 %v1311_v6  ;;  %579 = vmatpush.bf16.msra.mxu0 %v1311_v6  ;;  %v973_v6 = vor.u32 %v1271_v0, %v970_v1 }
  0x1e   :  { %1367 = vmatpush.bf16.msra.mxu1 %v1310_v7  ;;  %1368 = vmatpush.bf16.msra.mxu2 %v1310_v7 }
  0x1f   :  { %1369 = vmatpush.bf16.msra.mxu3 %v1310_v7  ;;  %580 = vmatpush.bf16.msra.mxu0 %v1310_v7  ;;  %v977_v7 = vor.u32 %v1274_v3, %v976_v2  ;;  %v1073_v2 = vor.u32 %v1296_v60, %v1070_v61  ;;  %v1077_v3 = vor.u32 %v1299_v63, %v1076_v62 }
  0x21   :  { %591 = vmatmul.bf16.vlgmr.msra.gmra.mxu1 %v1001_v18  ;;  %601 = vmatmul.bf16.vlgmr.msra.gmra.mxu2 %v1041_v19  ;;  %v993_v18 = vor.u32 %v1276_v12, %v990_v13  ;;  %v997_v19 = vor.u32 %v1279_v15, %v996_v14 }
  0x22   :  { %671 = vmatpush.bf16.msrb.mxu2 %v1333_v16  ;;  %622 = vmatpush.bf16.msrb.mxu1 %v1325_v17  ;;  %v985_v16 = vor.u32 %v1275_v8, %v982_v9  ;;  %v989_v17 = vor.u32 %v1278_v11, %v988_v10  ;;  %v1301_v8 = vld [vmem:[%s1882_s1 + $0xfc] sm:$0xf]  ;;  %v1090_v9 = vld [vmem:[%s1882_s1 + $0x10c] sm:$0xf0]  ;;  %v1096_v10 = vld [vmem:[%s1882_s1 + $0x100] sm:$0xf] }
  0x23   :  { %611 = vmatmul.bf16.vlgmr.msra.gmra.mxu3 %v1081_v20  ;;  %581 = vmatmul.bf16.vlgmr.msra.gmra.mxu0 %v961_v21  ;;  %v1280_v20 = vld [vmem:[%s1882_s1 + $0x54] sm:$0xf]  ;;  %v1002_v21 = vld [vmem:[%s1882_s1 + $0x64] sm:$0xf0]  ;;  %v1093_v15 = vor.u32 %v1301_v8, %v1090_v9 }
  0x24   :  { %720 = vmatpush.bf16.msrb.mxu3 %v1341_v22  ;;  %773 = vmatpush.bf16.msrb.mxu0 %v1345_v23  ;;  %v1008_v22 = vld [vmem:[%s1882_s1 + $0x58] sm:$0xf]  ;;  %v1283_v23 = vld [vmem:[%s1882_s1 + $0x68] sm:$0xf0]  ;;  %v1304_v11 = vld [vmem:[%s1882_s1 + $0x110] sm:$0xf0] }
  0x26   :  { %672 = vmatpush.bf16.msrb.mxu2 %v1332_v24  ;;  %623 = vmatpush.bf16.msrb.mxu1 %v1324_v25  ;;  %v1281_v24 = vld [vmem:[%s1882_s1 + $0x5c] sm:$0xf]  ;;  %v1010_v25 = vld [vmem:[%s1882_s1 + $0x6c] sm:$0xf0] }
  0x28   :  { %721 = vmatpush.bf16.msrb.mxu3 %v1340_v26  ;;  %774 = vmatpush.bf16.msrb.mxu0 %v1344_v27  ;;  %v1016_v26 = vld [vmem:[%s1882_s1 + $0x60] sm:$0xf]  ;;  %v1284_v27 = vld [vmem:[%s1882_s1 + $0x70] sm:$0xf0] }
  0x2a   :  { %673 = vmatpush.bf16.msrb.mxu2 %v1331_v28  ;;  %624 = vmatpush.bf16.msrb.mxu1 %v1323_v29  ;;  %v1005_v28 = vor.u32 %v1280_v20, %v1002_v21  ;;  %v1009_v29 = vor.u32 %v1283_v23, %v1008_v22  ;;  %v1305_v22 = vld [vmem:[%s1882_s1 + $0x11c] sm:$0xf]  ;;  %v1102_v23 = vld [vmem:[%s1882_s1 + $0x12c] sm:$0xf0] }
  0x2c   :  { %722 = vmatpush.bf16.msrb.mxu3 %v1339_v30  ;;  %775 = vmatpush.bf16.msrb.mxu0 %v1343_v31  ;;  %v1013_v30 = vor.u32 %v1281_v24, %v1010_v25  ;;  %v1017_v31 = vor.u32 %v1284_v27, %v1016_v26  ;;  %v1108_v24 = vld [vmem:[%s1882_s1 + $0x120] sm:$0xf]  ;;  %v1308_v25 = vld [vmem:[%s1882_s1 + $0x130] sm:$0xf0]  ;;  %v1306_v26 = vld [vmem:[%s1882_s1 + $0x124] sm:$0xf] }
  0x2d   :  { %v1110_v27 = vld [vmem:[%s1882_s1 + $0x134] sm:$0xf0] }
  0x2e   :  { %674 = vmatpush.bf16.msrb.mxu2 %v1330_v32  ;;  %625 = vmatpush.bf16.msrb.mxu1 %v1322_v33  ;;  %v1285_v32 = vld [vmem:[%s1882_s1 + $0x7c] sm:$0xf]  ;;  %v1022_v33 = vld [vmem:[%s1882_s1 + $0x8c] sm:$0xf0] }
  0x2f   :  { %v1025_v40 = vor.u32 %v1285_v32, %v1022_v33  ;;  %v1105_v32 = vor.u32 %v1305_v22, %v1102_v23  ;;  %v1109_v33 = vor.u32 %v1308_v25, %v1108_v24 }
  0x30   :  { %723 = vmatpush.bf16.msrb.mxu3 %v1338_v34  ;;  %776 = vmatpush.bf16.msrb.mxu0 %v1342_v43  ;;  %v1028_v34 = vld [vmem:[%s1882_s1 + $0x80] sm:$0xf]  ;;  %v1037_v43 = vor.u32 %v1289_v39, %v1036_v38 }
  0x31   :  { %596 = vmatmul.bf16.gmra.mxu1 %v1021_v46  ;;  %606 = vmatmul.bf16.gmra.mxu2 %v1061_v47  ;;  %v1029_v41 = vor.u32 %v1288_v35, %v1028_v34  ;;  %v1048_v46 = vld [vmem:[%s1882_s1 + $0xa8] sm:$0xf]  ;;  %v1293_v47 = vld [vmem:[%s1882_s1 + $0xb8] sm:$0xf0]  ;;  %v1113_v35 = vor.u32 %v1306_v26, %v1110_v27 }
  0x32   :  { %675 = vmatpush.bf16.msrb.mxu2 %v1329_v44  ;;  %626 = vmatpush.bf16.msrb.mxu1 %v1321_v45  ;;  %v1290_v44 = vld [vmem:[%s1882_s1 + $0xa4] sm:$0xf]  ;;  %v1042_v45 = vld [vmem:[%s1882_s1 + $0xb4] sm:$0xf0] }
  0x33   :  { %616 = vmatmul.bf16.gmra.mxu3 %v1101_v48  ;;  %586 = vmatmul.bf16.gmra.mxu0 %v981_v49  ;;  %v1291_v48 = vld [vmem:[%s1882_s1 + $0xac] sm:$0xf]  ;;  %v1050_v49 = vld [vmem:[%s1882_s1 + $0xbc] sm:$0xf0] }
  0x34   :  { %724 = vmatpush.bf16.msrb.mxu3 %v1337_v50  ;;  %v1056_v50 = vld [vmem:[%s1882_s1 + $0xb0] sm:$0xf] }
  0x36   :  { %676 = vmatpush.bf16.msrb.mxu2 %v1328_v51  ;;  %627 = vmatpush.bf16.msrb.mxu1 %v1320_v52  ;;  %v1294_v51 = vld [vmem:[%s1882_s1 + $0xc0] sm:$0xf0]  ;;  %v1045_v52 = vor.u32 %v1290_v44, %v1042_v45 }
  0x38   :  { %725 = vmatpush.bf16.msrb.mxu3 %v1336_v53  ;;  %v1049_v53 = vor.u32 %v1293_v47, %v1048_v46 }
  0x3a   :  { %677 = vmatpush.bf16.msrb.mxu2 %v1327_v54  ;;  %628 = vmatpush.bf16.msrb.mxu1 %v1319_v55  ;;  %v1053_v54 = vor.u32 %v1291_v48, %v1050_v49  ;;  %v1057_v55 = vor.u32 %v1294_v51, %v1056_v50 }
  0x3c   :  { %726 = vmatpush.bf16.msrb.mxu3 %v1335_v56  ;;  %v1295_v56 = vld [vmem:[%s1882_s1 + $0xcc] sm:$0xf] }
  0x3e   :  { %678 = vmatpush.bf16.msrb.mxu2 %v1326_v57  ;;  %629 = vmatpush.bf16.msrb.mxu1 %v1318_v58  ;;  %v1062_v57 = vld [vmem:[%s1882_s1 + $0xdc] sm:$0xf0]  ;;  %v1068_v58 = vld [vmem:[%s1882_s1 + $0xd0] sm:$0xf] }
  0x3f   :  { %v1065_v0 = vor.u32 %v1295_v56, %v1062_v57 }
  0x40   :  { %727 = vmatpush.bf16.msrb.mxu3 %v1334_v59  ;;  %v1298_v59 = vld [vmem:[%s1882_s1 + $0xe0] sm:$0xf0] }
  0x41   :  { %630 = vmatmul.bf16.vlgmr.msrb.gmra.mxu1 %v965_v4  ;;  %679 = vmatmul.bf16.vlgmr.msrb.gmra.mxu2 %v969_v5  ;;  %v1069_v1 = vor.u32 %v1298_v59, %v1068_v58  ;;  %v1300_v4 = vld [vmem:[%s1882_s1 + $0xf4] sm:$0xf]  ;;  %v1082_v5 = vld [vmem:[%s1882_s1 + $0x104] sm:$0xf0] }
  0x42   :  { %v1085_v12 = vor.u32 %v1300_v4, %v1082_v5 }
  0x43   :  { %728 = vmatmul.bf16.vlgmr.msrb.gmra.mxu3 %v973_v6  ;;  %1262 = vmatmul.msk.bf16.vlgmr.msrb.gmra.mxu0 %vm548_vm0, %v977_v7  ;;  %v1088_v6 = vld [vmem:[%s1882_s1 + $0xf8] sm:$0xf]  ;;  %v1303_v7 = vld [vmem:[%s1882_s1 + $0x108] sm:$0xf0] }
  0x44   :  { %v1089_v13 = vor.u32 %v1303_v7, %v1088_v6 }
  0x51   :  { %635 = vmatmul.bf16.gmra.mxu1 %v985_v16  ;;  %684 = vmatmul.bf16.gmra.mxu2 %v989_v17  ;;  %v1097_v16 = vor.u32 %v1304_v11, %v1096_v10 }
  0x53   :  { %733 = vmatmul.bf16.gmra.mxu3 %v993_v18  ;;  %1263 = vmatmul.msk.bf16.gmra.mxu0 %vm548_vm0, %v997_v19 }
  0x61   :  { %640 = vmatmul.bf16.gmra.mxu1 %v1005_v28  ;;  %689 = vmatmul.bf16.gmra.mxu2 %v1009_v29  ;;  %v1116_v28 = vld [vmem:[%s1882_s1 + $0x128] sm:$0xf]  ;;  %v1309_v29 = vld [vmem:[%s1882_s1 + $0x138] sm:$0xf0] }
  0x62   :  { %v1117_v36 = vor.u32 %v1309_v29, %v1116_v28 }
  0x63   :  { %738 = vmatmul.bf16.gmra.mxu3 %v1013_v30  ;;  %1264 = vmatmul.msk.bf16.gmra.mxu0 %vm548_vm0, %v1017_v31 }
  0x71   :  { %645 = vmatmul.bf16.gmra.mxu1 %v1025_v40  ;;  %694 = vmatmul.bf16.gmra.mxu2 %v1029_v41 }
  0x73   :  { %743 = vmatmul.bf16.gmra.mxu3 %v1033_v42  ;;  %1265 = vmatmul.msk.bf16.gmra.mxu0 %vm548_vm0, %v1037_v43 }
  0x81   :  { %650 = vmatmul.bf16.gmra.mxu1 %v1045_v52  ;;  %699 = vmatmul.bf16.gmra.mxu2 %v1049_v53 }
  0x83   :  { %748 = vmatmul.bf16.gmra.mxu3 %v1053_v54  ;;  %1266 = vmatmul.msk.bf16.gmra.mxu0 %vm548_vm0, %v1057_v55 }
  0x91   :  { %655 = vmatmul.bf16.gmra.mxu1 %v1065_v0  ;;  %704 = vmatmul.bf16.gmra.mxu2 %v1069_v1 }
  0x93   :  { %753 = vmatmul.bf16.gmra.mxu3 %v1073_v2  ;;  %1267 = vmatmul.msk.bf16.gmra.mxu0 %vm548_vm0, %v1077_v3 }
  0x9e   :  { %v1747_v14 = vpop.f32.mrf.mxu1 }
  0xa0   :  { %v582_v17 = vpop.f32.mrf.mxu0 }
  0xa1   :  { %660 = vmatmul.bf16.gmra.mxu1 %v1085_v12  ;;  %709 = vmatmul.bf16.gmra.mxu2 %v1089_v13 }
  0xa3   :  { %758 = vmatmul.bf16.gmra.mxu3 %v1093_v15  ;;  %1268 = vmatmul.msk.bf16.gmra.mxu0 %vm548_vm0, %v1097_v16 }
  0xa4   :  { %v1750_v18 = vpop.f32.mrf.mxu2 }
  0xa6   :  { %v1752_v19 = vpop.f32.mrf.mxu3  ;;  %v1754_v20 = vpop.f32.mrf.mxu1 }
  0xa8   :  { %v584_v21 = vpop.f32.mrf.mxu0 }
  0xac   :  { %v1780_v30 = vpop.f32.mrf.mxu2 }
  0xae   :  { %v1782_v31 = vpop.f32.mrf.mxu3  ;;  %v1784_v34 = vpop.f32.mrf.mxu1 }
  0xb0   :  { %v587_v37 = vpop.f32.mrf.mxu0 }
  0xb1   :  { %665 = vmatmul.bf16.gmra.mxu1 %v1105_v32  ;;  %714 = vmatmul.bf16.gmra.mxu2 %v1109_v33 }
  0xb3   :  { %763 = vmatmul.bf16.gmra.mxu3 %v1113_v35  ;;  %1269 = vmatmul.msk.bf16.gmra.mxu0 %vm548_vm0, %v1117_v36 }
  0xb4   :  { %v1787_v38 = vpop.f32.mrf.mxu2 }
  0xb6   :  { %v1789_v39 = vpop.f32.mrf.mxu3  ;;  %v1791_v40 = vpop.f32.mrf.mxu1 }
  0xb8   :  { %v589_v41 = vpop.f32.mrf.mxu0 }
  0xbc   :  { %v1793_v42 = vpop.f32.mrf.mxu2 }
  0xbe   :  { %v1795_v43 = vpop.f32.mrf.mxu3  ;;  %v631_v44 = vpop.f32.mrf.mxu1 }
  0xbf   :  { %v632_v46 = vadd.f32 %v631_v44, %v582_v17 }
  0xc0   :  { %v778_v45 = vpop.f32.mrf.mxu0 }
  0xc4   :  { %v680_v47 = vpop.f32.mrf.mxu2 }
  0xc5   :  { %v681_v48 = vadd.f32 %v680_v47, %v632_v46 }
  0xc6   :  { %v729_v49 = vpop.f32.mrf.mxu3  ;;  %v633_v50 = vpop.f32.mrf.mxu1 }
  0xc7   :  { %v730_v51 = vadd.f32 %v729_v49, %v681_v48  ;;  %v634_v54 = vadd.f32 %v633_v50, %v584_v21 }
  0xc8   :  { %v780_v52 = vpop.f32.mrf.mxu0 }
  0xc9   :  { %v779_v53 = vadd.f32 %v778_v45, %v730_v51 }
  0xcb   :  { %938 = vst [vmem:[%s1883_s2] sm:$0xff] %v779_v53 }
  0xcc   :  { %v682_v55 = vpop.f32.mrf.mxu2 }
  0xcd   :  { %v683_v56 = vadd.f32 %v682_v55, %v634_v54 }
  0xce   :  { %v731_v57 = vpop.f32.mrf.mxu3  ;;  %v636_v58 = vpop.f32.mrf.mxu1 }
  0xcf   :  { %v732_v59 = vadd.f32 %v731_v57, %v683_v56  ;;  %v637_v62 = vadd.f32 %v636_v58, %v587_v37 }
  0xd0   :  { %v783_v60 = vpop.f32.mrf.mxu0 }
  0xd1   :  { %v781_v61 = vadd.f32 %v780_v52, %v732_v59 }
  0xd3   :  { %939 = vst [vmem:[%s1883_s2 + $0x8] sm:$0xff] %v781_v61 }
  0xd4   :  { %v685_v63 = vpop.f32.mrf.mxu2 }
  0xd5   :  { %v686_v0 = vadd.f32 %v685_v63, %v637_v62 }
  0xd6   :  { %v734_v1 = vpop.f32.mrf.mxu3  ;;  %v638_v2 = vpop.f32.mrf.mxu1 }
  0xd7   :  { %v735_v3 = vadd.f32 %v734_v1, %v686_v0  ;;  %v639_v6 = vadd.f32 %v638_v2, %v589_v41 }
  0xd8   :  { %v785_v4 = vpop.f32.mrf.mxu0 }
  0xd9   :  { %v784_v5 = vadd.f32 %v783_v60, %v735_v3 }
  0xdb   :  { %940 = vst [vmem:[%s1883_s2 + $0x10] sm:$0xff] %v784_v5 }
  0xdc   :  { %v687_v7 = vpop.f32.mrf.mxu2 }
  0xdd   :  { %v688_v8 = vadd.f32 %v687_v7, %v639_v6 }
  0xde   :  { %v736_v9 = vpop.f32.mrf.mxu3  ;;  %v641_v10 = vpop.f32.mrf.mxu1 }
  0xdf   :  { %v737_v11 = vadd.f32 %v736_v9, %v688_v8  ;;  %v642_v15 = vadd.f32 %v641_v10, %v1747_v14 }
  0xe0   :  { %v788_v12 = vpop.f32.mrf.mxu0 }
  0xe1   :  { %v786_v13 = vadd.f32 %v785_v4, %v737_v11 }
  0xe3   :  { %941 = vst [vmem:[%s1883_s2 + $0x18] sm:$0xff] %v786_v13 }
  0xe4   :  { %v690_v16 = vpop.f32.mrf.mxu2 }
  0xe5   :  { %v691_v17 = vadd.f32 %v690_v16, %v642_v15 }
  0xe6   :  { %v739_v21 = vpop.f32.mrf.mxu3  ;;  %v643_v22 = vpop.f32.mrf.mxu1 }
  0xe7   :  { %v740_v23 = vadd.f32 %v739_v21, %v691_v17  ;;  %v644_v26 = vadd.f32 %v643_v22, %v1754_v20 }
  0xe8   :  { %v790_v24 = vpop.f32.mrf.mxu0 }
  0xe9   :  { %v789_v25 = vadd.f32 %v788_v12, %v740_v23 }
  0xeb   :  { %942 = vst [vmem:[%s1883_s2 + $0x20] sm:$0xff] %v789_v25 }
  0xec   :  { %v692_v27 = vpop.f32.mrf.mxu2 }
  0xed   :  { %v693_v28 = vadd.f32 %v692_v27, %v644_v26 }
  0xee   :  { %v741_v29 = vpop.f32.mrf.mxu3  ;;  %v646_v32 = vpop.f32.mrf.mxu1 }
  0xef   :  { %v742_v33 = vadd.f32 %v741_v29, %v693_v28  ;;  %v647_v36 = vadd.f32 %v646_v32, %v1784_v34 }
  0xf0   :  { %v793_v35 = vpop.f32.mrf.mxu0 }
  0xf1   :  { %v791_v14 = vadd.f32 %v790_v24, %v742_v33 }
  0xf3   :  { %943 = vst [vmem:[%s1883_s2 + $0x28] sm:$0xff] %v791_v14 }
  0xf4   :  { %v695_v37 = vpop.f32.mrf.mxu2 }
  0xf5   :  { %v696_v41 = vadd.f32 %v695_v37, %v647_v36 }
  0xf6   :  { %v744_v44 = vpop.f32.mrf.mxu3  ;;  %v648_v45 = vpop.f32.mrf.mxu1 }
  0xf7   :  { %v745_v46 = vadd.f32 %v744_v44, %v696_v41  ;;  %v649_v48 = vadd.f32 %v648_v45, %v1791_v40 }
  0xf8   :  { %v795_v47 = vpop.f32.mrf.mxu0 }
  0xf9   :  { %v794_v20 = vadd.f32 %v793_v35, %v745_v46 }
  0xfb   :  { %944 = vst [vmem:[%s1883_s2 + $0x30] sm:$0xff] %v794_v20 }
  0xfc   :  { %v697_v49 = vpop.f32.mrf.mxu2 }
  0xfd   :  { %v698_v50 = vadd.f32 %v697_v49, %v649_v48 }
  0xfe   :  { %v746_v51 = vpop.f32.mrf.mxu3  ;;  %v651_v52 = vpop.f32.mrf.mxu1 }
  0xff   :  { %v747_v53 = vadd.f32 %v746_v51, %v698_v50  ;;  %v652_v55 = vadd.f32 %v651_v52, %v1750_v18 }
 0x100   :  { %v798_v54 = vpop.f32.mrf.mxu0 }
 0x101   :  { %v796_v34 = vadd.f32 %v795_v47, %v747_v53 }
 0x103   :  { %945 = vst [vmem:[%s1883_s2 + $0x38] sm:$0xff] %v796_v34 }
 0x104   :  { %v700_v56 = vpop.f32.mrf.mxu2 }
 0x105   :  { %v701_v57 = vadd.f32 %v700_v56, %v652_v55 }
 0x106   :  { %v749_v58 = vpop.f32.mrf.mxu3  ;;  %v653_v59 = vpop.f32.mrf.mxu1 }
 0x107   :  { %v750_v60 = vadd.f32 %v749_v58, %v701_v57  ;;  %v654_v63 = vadd.f32 %v653_v59, %v1780_v30 }
 0x108   :  { %v800_v61 = vpop.f32.mrf.mxu0 }
 0x109   :  { %v799_v40 = vadd.f32 %v798_v54, %v750_v60 }
 0x10b   :  { %v826_v62 = vand.u32 2147483647, %v799_v40  ;;  %v818_v48 = vmax.f32 %v799_v40, 0.0 }
 0x10c   :  { %v702_v0 = vpop.f32.mrf.mxu2 }
 0x10d   :  { %v834_v1 = vsub.f32 0.0, %v826_v62  ;;  %v703_v2 = vadd.f32 %v702_v0, %v654_v63 }
 0x10e   :  { %v751_v3 = vpop.f32.mrf.mxu3  ;;  %v656_v4 = vpop.f32.mrf.mxu1 }
 0x10f   :  { %v842_v5 = vmul.f32 1.442695, %v834_v1  ;;  %v752_v6 = vadd.f32 %v751_v3, %v703_v2  ;;  %v657_v9 = vadd.f32 %v656_v4, %v1787_v38 }
 0x110   :  { %v803_v7 = vpop.f32.mrf.mxu0 }
 0x111   :  { %1370 = vpow2.f32 %v842_v5  ;;  %v1827_v18 = vadd.f32 %v800_v61, %v752_v6 }
 0x113   :  { %v827_v8 = vand.u32 2147483647, %v1827_v18  ;;  %v819_v2 = vmax.f32 %v1827_v18, 0.0 }
 0x114   :  { %v705_v10 = vpop.f32.mrf.mxu2 }
 0x115   :  { %v835_v11 = vsub.f32 0.0, %v827_v8  ;;  %v706_v12 = vadd.f32 %v705_v10, %v657_v9 }
 0x116   :  { %v754_v13 = vpop.f32.mrf.mxu3  ;;  %v658_v30 = vpop.f32.mrf.mxu1 }
 0x117   :  { %v1371_v15 = vpop.eup %1370  ;;  %v844_v16 = vmul.f32 1.442695, %v835_v11  ;;  %v755_v17 = vadd.f32 %v754_v13, %v706_v12  ;;  %v659_v26 = vadd.f32 %v658_v30, %v1793_v42 }
 0x118   :  { %v858_v21 = vadd.f32 1.0, %v1371_v15  ;;  %v861_v22 = vmul.f32 -0.5, %v1371_v15  ;;  %v805_v23 = vpop.f32.mrf.mxu0  ;;  %v864_v33 = vand.u32 2147483647, %v1371_v15 }
 0x119   :  { %1372 = vpow2.f32 %v844_v16  ;;  %v1831_v24 = vadd.f32 %v803_v7, %v755_v17 }
 0x11a   :  { %1374 = vlog2.f32 %v858_v21  ;;  %v862_v38 = vadd.f32 1.0, %v861_v22  ;;  %vm865_vm1 = vcmp.lt.f32.partialorder %v864_v33, 0.0004427343 }
 0x11b   :  { %v828_v25 = vand.u32 2147483647, %v1831_v24 }
 0x11c   :  { %v707_v27 = vpop.f32.mrf.mxu2  ;;  %v863_v44 = vmul.f32 %v1371_v15, %v862_v38 }
 0x11d   :  { %v836_v28 = vsub.f32 0.0, %v828_v25  ;;  %v708_v29 = vadd.f32 %v707_v27, %v659_v26  ;;  %v820_v26 = vmax.f32 %v1831_v24, 0.0 }
 0x11e   :  { %v756_v32 = vpop.f32.mrf.mxu3  ;;  %v661_v35 = vpop.f32.mrf.mxu1 }
 0x11f   :  { %v1373_v14 = vpop.eup %1372  ;;  %v846_v36 = vmul.f32 1.442695, %v836_v28  ;;  %v757_v37 = vadd.f32 %v756_v32, %v708_v29  ;;  %v662_v51 = vadd.f32 %v661_v35, %v1752_v19 }
 0x120   :  { %v1375_v41 = vpop.eup %1374  ;;  %v867_v45 = vadd.f32 1.0, %v1373_v14  ;;  %v870_v47 = vmul.f32 -0.5, %v1373_v14  ;;  %v808_v42 = vpop.f32.mrf.mxu0  ;;  %v873_v57 = vand.u32 2147483647, %v1373_v14 }
 0x121   :  { %v860_v46 = vmul.f32 0.6931472, %v1375_v41  ;;  %1376 = vpow2.f32 %v846_v36  ;;  %v1835_v20 = vadd.f32 %v805_v23, %v757_v37 }
 0x122   :  { %1378 = vlog2.f32 %v867_v45  ;;  %v871_v54 = vadd.f32 1.0, %v870_v47  ;;  %vm874_vm2 = vcmp.lt.f32.partialorder %v873_v57, 0.0004427343 }
 0x123   :  { %v866_v49 = vsel %vm865_vm1, %v863_v44, %v860_v46  ;;  %v829_v50 = vand.u32 2147483647, %v1835_v20 }
 0x124   :  { %v930_v52 = vadd.f32 %v866_v49, %v818_v48  ;;  %v710_v53 = vpop.f32.mrf.mxu2  ;;  %v872_v19 = vmul.f32 %v1373_v14, %v871_v54 }
 0x125   :  { %v837_v34 = vsub.f32 0.0, %v829_v50  ;;  %v711_v55 = vadd.f32 %v710_v53, %v662_v51  ;;  %v821_v51 = vmax.f32 %v1835_v20, 0.0 }
 0x126   :  { %v759_v56 = vpop.f32.mrf.mxu3  ;;  %946 = vst [vmem:[%s1883_s2 + $0x40] sm:$0xff] %v930_v52  ;;  %v663_v58 = vpop.f32.mrf.mxu1 }
 0x127   :  { %v1377_v59 = vpop.eup %1376  ;;  %v848_v60 = vmul.f32 1.442695, %v837_v34  ;;  %v760_v61 = vadd.f32 %v759_v56, %v711_v55  ;;  %v664_v5 = vadd.f32 %v663_v58, %v1782_v31 }
 0x128   :  { %v1379_v40 = vpop.eup %1378  ;;  %v876_v62 = vadd.f32 1.0, %v1377_v59  ;;  %v879_v63 = vmul.f32 -0.5, %v1377_v59  ;;  %v810_v8 = vpop.f32.mrf.mxu0  ;;  %v882_v13 = vand.u32 2147483647, %v1377_v59 }
 0x129   :  { %v869_v0 = vmul.f32 0.6931472, %v1379_v40  ;;  %1380 = vpow2.f32 %v848_v60  ;;  %v1842_v1 = vadd.f32 %v808_v42, %v760_v61 }
 0x12a   :  { %1382 = vlog2.f32 %v876_v62  ;;  %v880_v7 = vadd.f32 1.0, %v879_v63  ;;  %vm883_vm3 = vcmp.lt.f32.partialorder %v882_v13, 0.0004427343 }
 0x12b   :  { %v875_v3 = vsel %vm874_vm2, %v872_v19, %v869_v0  ;;  %v830_v4 = vand.u32 2147483647, %v1842_v1 }
 0x12c   :  { %v931_v6 = vadd.f32 %v875_v3, %v819_v2  ;;  %v712_v9 = vpop.f32.mrf.mxu2  ;;  %v881_v21 = vmul.f32 %v1377_v59, %v880_v7 }
 0x12d   :  { %v838_v10 = vsub.f32 0.0, %v830_v4  ;;  %v713_v11 = vadd.f32 %v712_v9, %v664_v5  ;;  %v822_v4 = vmax.f32 %v1842_v1, 0.0 }
 0x12e   :  { %v761_v12 = vpop.f32.mrf.mxu3  ;;  %947 = vst [vmem:[%s1883_s2 + $0x48] sm:$0xff] %v931_v6  ;;  %v666_v18 = vpop.f32.mrf.mxu1 }
 0x12f   :  { %v1381_v30 = vpop.eup %1380  ;;  %v850_v15 = vmul.f32 1.442695, %v838_v10  ;;  %v762_v16 = vadd.f32 %v761_v12, %v713_v11  ;;  %v667_v28 = vadd.f32 %v666_v18, %v1789_v39 }
 0x130   :  { %v1383_v17 = vpop.eup %1382  ;;  %v885_v22 = vadd.f32 1.0, %v1381_v30  ;;  %v888_v23 = vmul.f32 -0.5, %v1381_v30  ;;  %v891_v37 = vand.u32 2147483647, %v1381_v30  ;;  %v813_v41 = vpop.f32.mrf.mxu0 }
 0x131   :  { %v878_v31 = vmul.f32 0.6931472, %v1383_v17  ;;  %1384 = vpow2.f32 %v850_v15  ;;  %v1850_v25 = vadd.f32 %v810_v8, %v762_v16 }
 0x132   :  { %1386 = vlog2.f32 %v885_v22  ;;  %v889_v33 = vadd.f32 1.0, %v888_v23  ;;  %vm892_vm4 = vcmp.lt.f32.partialorder %v891_v37, 0.0004427343 }
 0x133   :  { %v884_v38 = vsel %vm883_vm3, %v881_v21, %v878_v31  ;;  %v831_v27 = vand.u32 2147483647, %v1850_v25  ;;  %v823_v1 = vmax.f32 %v1850_v25, 0.0 }
 0x134   :  { %v932_v29 = vadd.f32 %v884_v38, %v820_v26  ;;  %v715_v32 = vpop.f32.mrf.mxu2  ;;  %v890_v49 = vmul.f32 %v1381_v30, %v889_v33 }
 0x135   :  { %v839_v35 = vsub.f32 0.0, %v831_v27  ;;  %v716_v14 = vadd.f32 %v715_v32, %v667_v28 }
 0x136   :  { %v764_v36 = vpop.f32.mrf.mxu3  ;;  %948 = vst [vmem:[%s1883_s2 + $0x50] sm:$0xff] %v932_v29  ;;  %v668_v42 = vpop.f32.mrf.mxu1 }
 0x137   :  { %v1385_v24 = vpop.eup %1384  ;;  %v852_v44 = vmul.f32 1.442695, %v839_v35  ;;  %v765_v45 = vadd.f32 %v764_v36, %v716_v14  ;;  %v669_v54 = vadd.f32 %v668_v42, %v1795_v43 }
 0x138   :  { %v1387_v46 = vpop.eup %1386  ;;  %v894_v47 = vadd.f32 1.0, %v1385_v24  ;;  %v897_v48 = vmul.f32 -0.5, %v1385_v24  ;;  %v900_v59 = vand.u32 2147483647, %v1385_v24  ;;  %v815_v19 = vpop.f32.mrf.mxu0 }
 0x139   :  { %v887_v39 = vmul.f32 0.6931472, %v1387_v46  ;;  %1388 = vpow2.f32 %v852_v44  ;;  %v1858_v50 = vadd.f32 %v813_v41, %v765_v45 }
 0x13a   :  { %1390 = vlog2.f32 %v894_v47  ;;  %v898_v55 = vadd.f32 1.0, %v897_v48  ;;  %vm901_vm5 = vcmp.lt.f32.partialorder %v900_v59, 0.0004427343 }
 0x13b   :  { %v893_v52 = vsel %vm892_vm4, %v890_v49, %v887_v39  ;;  %v832_v53 = vand.u32 2147483647, %v1858_v50  ;;  %v824_v32 = vmax.f32 %v1858_v50, 0.0 }
 0x13c   :  { %v933_v34 = vadd.f32 %v893_v52, %v821_v51  ;;  %v717_v56 = vpop.f32.mrf.mxu2  ;;  %v899_v63 = vmul.f32 %v1385_v24, %v898_v55 }
 0x13d   :  { %v840_v57 = vsub.f32 0.0, %v832_v53  ;;  %v718_v58 = vadd.f32 %v717_v56, %v669_v54 }
 0x13e   :  { %949 = vst [vmem:[%s1883_s2 + $0x58] sm:$0xff] %v933_v34  ;;  %v766_v60 = vpop.f32.mrf.mxu3 }
 0x13f   :  { %v1389_v61 = vpop.eup %1388  ;;  %v854_v20 = vmul.f32 1.442695, %v840_v57  ;;  %v767_v40 = vadd.f32 %v766_v60, %v718_v58 }
 0x140   :  { %v1391_v62 = vpop.eup %1390  ;;  %v903_v0 = vadd.f32 1.0, %v1389_v61  ;;  %v906_v43 = vmul.f32 -0.5, %v1389_v61  ;;  %v909_v10 = vand.u32 2147483647, %v1389_v61 }
 0x141   :  { %v896_v2 = vmul.f32 0.6931472, %v1391_v62  ;;  %1392 = vpow2.f32 %v854_v20  ;;  %v816_v3 = vadd.f32 %v815_v19, %v767_v40 }
 0x142   :  { %1394 = vlog2.f32 %v903_v0  ;;  %v907_v8 = vadd.f32 1.0, %v906_v43  ;;  %vm910_vm6 = vcmp.lt.f32.partialorder %v909_v10, 0.0004427343 }
 0x143   :  { %v902_v5 = vsel %vm901_vm5, %v899_v63, %v896_v2  ;;  %v833_v6 = vand.u32 2147483647, %v816_v3  ;;  %v825_v24 = vmax.f32 %v816_v3, 0.0 }
 0x144   :  { %v934_v7 = vadd.f32 %v902_v5, %v822_v4  ;;  %v908_v15 = vmul.f32 %v1389_v61, %v907_v8 }
 0x145   :  { %v841_v9 = vsub.f32 0.0, %v833_v6 }
 0x146   :  { %950 = vst [vmem:[%s1883_s2 + $0x60] sm:$0xff] %v934_v7 }
 0x147   :  { %v1393_v11 = vpop.eup %1392  ;;  %v856_v12 = vmul.f32 1.442695, %v841_v9 }
 0x148   :  { %v1395_v13 = vpop.eup %1394  ;;  %v912_v18 = vadd.f32 1.0, %v1393_v11  ;;  %v915_v16 = vmul.f32 -0.5, %v1393_v11  ;;  %v918_v31 = vand.u32 2147483647, %v1393_v11 }
 0x149   :  { %v905_v30 = vmul.f32 0.6931472, %v1395_v13  ;;  %1396 = vpow2.f32 %v856_v12 }
 0x14a   :  { %1398 = vlog2.f32 %v912_v18  ;;  %v916_v22 = vadd.f32 1.0, %v915_v16  ;;  %vm919_vm7 = vcmp.lt.f32.partialorder %v918_v31, 0.0004427343 }
 0x14b   :  { %v911_v17 = vsel %vm910_vm6, %v908_v15, %v905_v30 }
 0x14c   :  { %v935_v21 = vadd.f32 %v911_v17, %v823_v1  ;;  %v917_v28 = vmul.f32 %v1393_v11, %v916_v22 }
 0x14e   :  { %951 = vst [vmem:[%s1883_s2 + $0x68] sm:$0xff] %v935_v21 }
 0x14f   :  { %v1397_v23 = vpop.eup %1396 }
 0x150   :  { %v1399_v26 = vpop.eup %1398  ;;  %v921_v38 = vadd.f32 1.0, %v1397_v23  ;;  %v924_v29 = vmul.f32 -0.5, %v1397_v23  ;;  %v927_v14 = vand.u32 2147483647, %v1397_v23 }
 0x151   :  { %v914_v27 = vmul.f32 0.6931472, %v1399_v26 }
 0x152   :  { %1400 = vlog2.f32 %v921_v38  ;;  %v925_v35 = vadd.f32 1.0, %v924_v29  ;;  %vm928_vm8 = vcmp.lt.f32.partialorder %v927_v14, 0.0004427343 }
 0x153   :  { %v920_v25 = vsel %vm919_vm7, %v917_v28, %v914_v27 }
 0x154   :  { %v936_v33 = vadd.f32 %v920_v25, %v824_v32  ;;  %v926_v41 = vmul.f32 %v1397_v23, %v925_v35 }
 0x156   :  { %952 = vst [vmem:[%s1883_s2 + $0x70] sm:$0xff] %v936_v33 }
 0x158   :  { %v1401_v36 = vpop.eup %1400 }
 0x159   :  { %v923_v37 = vmul.f32 0.6931472, %v1401_v36 }
 0x15b   :  { %v929_v44 = vsel %vm928_vm8, %v926_v41, %v923_v37 }
 0x15c   :  { %v937_v45 = vadd.f32 %v929_v44, %v825_v24 }
 0x15e   :  { %953 = vst [vmem:[%s1883_s2 + $0x78] sm:$0xff] %v937_v45 }

// kernel: encoder_forward.21
= control target key start
LH: loop header
LB: loop body
LE: loop exit
PB: predicated region body
PF: predicated region fallthrough
CT: control target
= control target key end

     0   :  { %vm433_vm0 = vcmask 523264   ;;  %vm659_vm1 = vcmask 7168   ;;  %s1736_s0 = inlined_call_operand.vmem [shape: bf16[576,128], index: 0, kind: input, shape index: {}]   ;;  %s1737_s1 = inlined_call_operand.vmem [shape: bf16[64,576], index: 1, kind: input, shape index: {}]   ;;  %s1738_s4 = inlined_call_operand.vmem [shape: f32[64,128], index: 4, kind: output, shape index: {0}]   ;;  %s1739_s2 = inlined_call_operand.vmem [shape: f32[64,1], index: 2, kind: input, shape index: {}]   ;;  %s1740_s3 = inlined_call_operand.vmem [shape: f32[64,1], index: 3, kind: input, shape index: {}]   ;;  %s1741_s5 = inlined_call_operand.vmem [shape: f32[64,1], index: 5, kind: output, shape index: {1}]   ;;  %s1742_s6 = inlined_call_operand.vmem [shape: f32[64,1], index: 6, kind: output, shape index: {2}]  }
   0x1   :  { %v1230_v0 = vld [vmem:[%s1736_s0 + $0x38] sm:$0xff]  ;;  %v1229_v1 = vld [vmem:[%s1736_s0 + $0x30] sm:$0xff]  ;;  %v1228_v4 = vld [vmem:[%s1736_s0 + $0x28] sm:$0xff] }
   0x2   :  { %1259 = vmatpush.bf16.msra.mxu1 %v1230_v0  ;;  %1260 = vmatpush.bf16.msra.mxu2 %v1230_v0  ;;  %v1254_v2 = vld [vmem:[%s1736_s0 + $0xf8] sm:$0xff]  ;;  %v1253_v3 = vld [vmem:[%s1736_s0 + $0xf0] sm:$0xff]  ;;  %v1252_v5 = vld [vmem:[%s1736_s0 + $0xe8] sm:$0xff] }
   0x3   :  { %446 = vmatpush.bf16.msra.mxu0 %v1230_v0  ;;  %533 = vmatpush.bf16.msra.mxu3 %v1254_v2  ;;  %v1227_v6 = vld [vmem:[%s1736_s0 + $0x20] sm:$0xff]  ;;  %v1226_v8 = vld [vmem:[%s1736_s0 + $0x18] sm:$0xff]  ;;  %v1225_v10 = vld [vmem:[%s1736_s0 + $0x10] sm:$0xff] }
   0x4   :  { %v1251_v7 = vld [vmem:[%s1736_s0 + $0xe0] sm:$0xff]  ;;  %v1250_v9 = vld [vmem:[%s1736_s0 + $0xd8] sm:$0xff]  ;;  %v1249_v11 = vld [vmem:[%s1736_s0 + $0xd0] sm:$0xff] }
   0x5   :  { %v1224_v12 = vld [vmem:[%s1736_s0 + $0x8] sm:$0xff]  ;;  %v1223_v14 = vld [vmem:[%s1736_s0] sm:$0xff]  ;;  %v1210_v16 = vld [vmem:[%s1737_s1 + $0x38] sm:$0xf0] }
   0x6   :  { %1261 = vmatpush.bf16.msra.mxu1 %v1229_v1  ;;  %1262 = vmatpush.bf16.msra.mxu2 %v1229_v1  ;;  %v1248_v13 = vld [vmem:[%s1736_s0 + $0xc8] sm:$0xff]  ;;  %v1037_v17 = vld [vmem:[%s1737_s1 + $0x78] sm:$0xf]  ;;  %v977_v21 = vld [vmem:[%s1737_s1] sm:$0xf] }
   0x7   :  { %447 = vmatpush.bf16.msra.mxu0 %v1229_v1  ;;  %534 = vmatpush.bf16.msra.mxu3 %v1253_v3  ;;  %v997_v15 = vld [vmem:[%s1737_s1 + $0x28] sm:$0xf]  ;;  %v1220_v18 = vld [vmem:[%s1737_s1 + $0x88] sm:$0xf0]  ;;  %v1246_v19 = vld [vmem:[%s1736_s0 + $0xb8] sm:$0xff] }
   0x8   :  { %v1238_v20 = vld [vmem:[%s1736_s0 + $0x78] sm:$0xff]  ;;  %v1247_v22 = vld [vmem:[%s1736_s0 + $0xc0] sm:$0xff]  ;;  %v998_v23 = vor.u32 %v1210_v16, %v997_v15  ;;  %v1038_v24 = vor.u32 %v1220_v18, %v1037_v17  ;;  %v1205_v25 = vld [vmem:[%s1737_s1 + $0x10] sm:$0xf0] }
   0x9   :  { %v1204_v26 = vld [vmem:[%s1737_s1 + $0xc] sm:$0xf]  ;;  %v987_v27 = vld [vmem:[%s1737_s1 + $0x1c] sm:$0xf0]  ;;  %v1258_v28 = vld [vmem:[%s1736_s0 + $0x118] sm:$0xff]  ;;  %v978_v31 = vor.u32 %v1205_v25, %v977_v21 }
   0xa   :  { %1263 = vmatpush.bf16.msra.mxu1 %v1228_v4  ;;  %1264 = vmatpush.bf16.msra.mxu2 %v1228_v4  ;;  %v1245_v29 = vld [vmem:[%s1736_s0 + $0xb0] sm:$0xff]  ;;  %v990_v32 = vor.u32 %v1204_v26, %v987_v27  ;;  %v1244_v34 = vld [vmem:[%s1736_s0 + $0xa8] sm:$0xff]  ;;  %v1243_v37 = vld [vmem:[%s1736_s0 + $0xa0] sm:$0xff] }
   0xb   :  { %448 = vmatpush.bf16.msra.mxu0 %v1228_v4  ;;  %535 = vmatpush.bf16.msra.mxu3 %v1252_v5  ;;  %v1237_v30 = vld [vmem:[%s1736_s0 + $0x70] sm:$0xff]  ;;  %v1236_v35 = vld [vmem:[%s1736_s0 + $0x68] sm:$0xff]  ;;  %v1235_v38 = vld [vmem:[%s1736_s0 + $0x60] sm:$0xff] }
   0xc   :  { %v1257_v33 = vld [vmem:[%s1736_s0 + $0x110] sm:$0xff]  ;;  %v1256_v36 = vld [vmem:[%s1736_s0 + $0x108] sm:$0xff]  ;;  %v1215_v40 = vld [vmem:[%s1737_s1 + $0x60] sm:$0xf0] }
   0xd   :  { %v1017_v39 = vld [vmem:[%s1737_s1 + $0x50] sm:$0xf]  ;;  %v1255_v41 = vld [vmem:[%s1736_s0 + $0x100] sm:$0xff]  ;;  %v1242_v42 = vld [vmem:[%s1736_s0 + $0x98] sm:$0xff] }
   0xe   :  { %1265 = vmatpush.bf16.msra.mxu1 %v1227_v6  ;;  %1266 = vmatpush.bf16.msra.mxu2 %v1227_v6  ;;  %v1234_v43 = vld [vmem:[%s1736_s0 + $0x58] sm:$0xff]  ;;  %v993_v44 = vld [vmem:[%s1737_s1 + $0x10] sm:$0xf]  ;;  %v1018_v45 = vor.u32 %v1215_v40, %v1017_v39  ;;  %v1207_v46 = vld [vmem:[%s1737_s1 + $0x20] sm:$0xf0] }
   0xf   :  { %449 = vmatpush.bf16.msra.mxu0 %v1227_v6  ;;  %536 = vmatpush.bf16.msra.mxu3 %v1251_v7  ;;  %v1209_v47 = vld [vmem:[%s1737_s1 + $0x34] sm:$0xf]  ;;  %v1007_v48 = vld [vmem:[%s1737_s1 + $0x44] sm:$0xf0]  ;;  %v994_v51 = vor.u32 %v1207_v46, %v993_v44  ;;  %v1239_v55 = vld [vmem:[%s1736_s0 + $0x80] sm:$0xff] }
  0x10   :  { %v1241_v49 = vld [vmem:[%s1736_s0 + $0x90] sm:$0xff]  ;;  %v1010_v52 = vor.u32 %v1209_v47, %v1007_v48  ;;  %v1240_v53 = vld [vmem:[%s1736_s0 + $0x88] sm:$0xff]  ;;  %v1231_v56 = vld [vmem:[%s1736_s0 + $0x40] sm:$0xff] }
  0x11   :  { %v1233_v50 = vld [vmem:[%s1736_s0 + $0x50] sm:$0xff]  ;;  %v1232_v54 = vld [vmem:[%s1736_s0 + $0x48] sm:$0xff]  ;;  %v1206_v58 = vld [vmem:[%s1737_s1 + $0x18] sm:$0xf0] }
  0x12   :  { %1267 = vmatpush.bf16.msra.mxu1 %v1226_v8  ;;  %1268 = vmatpush.bf16.msra.mxu2 %v1226_v8  ;;  %v985_v57 = vld [vmem:[%s1737_s1 + $0x8] sm:$0xf]  ;;  %v1203_v60 = vld [vmem:[%s1737_s1 + $0x4] sm:$0xf]  ;;  %v979_v61 = vld [vmem:[%s1737_s1 + $0x14] sm:$0xf0] }
  0x13   :  { %450 = vmatpush.bf16.msra.mxu0 %v1226_v8  ;;  %537 = vmatpush.bf16.msra.mxu3 %v1250_v9  ;;  %v986_v59 = vor.u32 %v1206_v58, %v985_v57  ;;  %v1013_v62 = vld [vmem:[%s1737_s1 + $0x38] sm:$0xf]  ;;  %v982_v63 = vor.u32 %v1203_v60, %v979_v61  ;;  %v1212_v0 = vld [vmem:[%s1737_s1 + $0x48] sm:$0xf0]  ;;  %v1214_v1 = vld [vmem:[%s1737_s1 + $0x5c] sm:$0xf] }
  0x14   :  { %v1027_v2 = vld [vmem:[%s1737_s1 + $0x6c] sm:$0xf0]  ;;  %v1014_v3 = vor.u32 %v1212_v0, %v1013_v62  ;;  %v1211_v6 = vld [vmem:[%s1737_s1 + $0x40] sm:$0xf0]  ;;  %v1208_v8 = vld [vmem:[%s1737_s1 + $0x2c] sm:$0xf] }
  0x15   :  { %v1030_v4 = vor.u32 %v1214_v1, %v1027_v2  ;;  %v1005_v5 = vld [vmem:[%s1737_s1 + $0x30] sm:$0xf]  ;;  %v999_v9 = vld [vmem:[%s1737_s1 + $0x3c] sm:$0xf0]  ;;  %v1025_v17 = vld [vmem:[%s1737_s1 + $0x58] sm:$0xf] }
  0x16   :  { %1269 = vmatpush.bf16.msra.mxu1 %v1225_v10  ;;  %1270 = vmatpush.bf16.msra.mxu2 %v1225_v10  ;;  %v1006_v7 = vor.u32 %v1211_v6, %v1005_v5  ;;  %v1216_v18 = vld [vmem:[%s1737_s1 + $0x68] sm:$0xf0]  ;;  %v1019_v21 = vld [vmem:[%s1737_s1 + $0x64] sm:$0xf0]  ;;  %v1045_v26 = vld [vmem:[%s1737_s1 + $0x80] sm:$0xf] }
  0x17   :  { %451 = vmatpush.bf16.msra.mxu0 %v1225_v10  ;;  %538 = vmatpush.bf16.msra.mxu3 %v1249_v11  ;;  %v1033_v10 = vld [vmem:[%s1737_s1 + $0x60] sm:$0xf]  ;;  %v1002_v11 = vor.u32 %v1208_v8, %v999_v9  ;;  %v1221_v27 = vld [vmem:[%s1737_s1 + $0x90] sm:$0xf0] }
  0x1a   :  { %1271 = vmatpush.bf16.msra.mxu1 %v1224_v12  ;;  %1272 = vmatpush.bf16.msra.mxu2 %v1224_v12 }
  0x1b   :  { %452 = vmatpush.bf16.msra.mxu0 %v1224_v12  ;;  %539 = vmatpush.bf16.msra.mxu3 %v1248_v13  ;;  %v1217_v12 = vld [vmem:[%s1737_s1 + $0x70] sm:$0xf0]  ;;  %v1219_v13 = vld [vmem:[%s1737_s1 + $0x84] sm:$0xf] }
  0x1c   :  { %v1034_v15 = vor.u32 %v1217_v12, %v1033_v10 }
  0x1e   :  { %1273 = vmatpush.bf16.msra.mxu1 %v1223_v14  ;;  %1274 = vmatpush.bf16.msra.mxu2 %v1223_v14 }
  0x1f   :  { %453 = vmatpush.bf16.msra.mxu0 %v1223_v14  ;;  %540 = vmatpush.bf16.msra.mxu3 %v1247_v22  ;;  %v1047_v14 = vld [vmem:[%s1737_s1 + $0x94] sm:$0xf0] }
  0x20   :  { %v1050_v16 = vor.u32 %v1219_v13, %v1047_v14 }
  0x21   :  { %459 = vmatmul.bf16.vlgmr.msra.gmra.mxu1 %v998_v23  ;;  %469 = vmatmul.bf16.vlgmr.msra.gmra.mxu2 %v1038_v24  ;;  %v1053_v23 = vld [vmem:[%s1737_s1 + $0x88] sm:$0xf]  ;;  %v1222_v24 = vld [vmem:[%s1737_s1 + $0x98] sm:$0xf0] }
  0x22   :  { %504 = vmatpush.bf16.msrb.mxu2 %v1246_v19  ;;  %475 = vmatpush.bf16.msrb.mxu1 %v1238_v20  ;;  %v1026_v19 = vor.u32 %v1216_v18, %v1025_v17  ;;  %v1213_v20 = vld [vmem:[%s1737_s1 + $0x54] sm:$0xf]  ;;  %v1054_v25 = vor.u32 %v1222_v24, %v1053_v23 }
  0x23   :  { %566 = vmatpush.bf16.msrb.mxu0 %v1258_v28  ;;  %541 = vmatmul.bf16.vlgmr.msra.gmra.mxu3 %v990_v32  ;;  %v1022_v22 = vor.u32 %v1213_v20, %v1019_v21  ;;  %v1046_v28 = vor.u32 %v1221_v27, %v1045_v26 }
  0x24   :  { %454 = vmatmul.bf16.vlgmr.msra.gmra.mxu0 %v978_v31 }
  0x26   :  { %505 = vmatpush.bf16.msrb.mxu2 %v1245_v29  ;;  %476 = vmatpush.bf16.msrb.mxu1 %v1237_v30  ;;  %v1218_v29 = vld [vmem:[%s1737_s1 + $0x7c] sm:$0xf]  ;;  %v1039_v30 = vld [vmem:[%s1737_s1 + $0x8c] sm:$0xf0] }
  0x27   :  { %567 = vmatpush.bf16.msrb.mxu0 %v1257_v33  ;;  %v1042_v31 = vor.u32 %v1218_v29, %v1039_v30 }
  0x2a   :  { %506 = vmatpush.bf16.msrb.mxu2 %v1244_v34  ;;  %477 = vmatpush.bf16.msrb.mxu1 %v1236_v35 }
  0x2b   :  { %568 = vmatpush.bf16.msrb.mxu0 %v1256_v36 }
  0x2e   :  { %507 = vmatpush.bf16.msrb.mxu2 %v1243_v37  ;;  %478 = vmatpush.bf16.msrb.mxu1 %v1235_v38 }
  0x2f   :  { %569 = vmatpush.bf16.msrb.mxu0 %v1255_v41 }
  0x31   :  { %464 = vmatmul.bf16.gmra.mxu1 %v1018_v45 }
  0x32   :  { %508 = vmatpush.bf16.msrb.mxu2 %v1242_v42  ;;  %479 = vmatpush.bf16.msrb.mxu1 %v1234_v43 }
  0x33   :  { %546 = vmatmul.bf16.gmra.mxu3 %v1010_v52 }
  0x34   :  { %1199 = vmatmul.msk.bf16.vlgmr.msrb.gmra.mxu0 %vm433_vm0, %v994_v51 }
  0x36   :  { %509 = vmatpush.bf16.msrb.mxu2 %v1241_v49  ;;  %480 = vmatpush.bf16.msrb.mxu1 %v1233_v50 }
  0x3a   :  { %510 = vmatpush.bf16.msrb.mxu2 %v1240_v53  ;;  %481 = vmatpush.bf16.msrb.mxu1 %v1232_v54 }
  0x3e   :  { %511 = vmatpush.bf16.msrb.mxu2 %v1239_v55  ;;  %482 = vmatpush.bf16.msrb.mxu1 %v1231_v56 }
  0x41   :  { %512 = vmatmul.bf16.vlgmr.msrb.gmra.mxu2 %v986_v59  ;;  %483 = vmatmul.bf16.vlgmr.msrb.gmra.mxu1 %v982_v63 }
  0x43   :  { %551 = vmatmul.bf16.gmra.mxu3 %v1030_v4 }
  0x44   :  { %1200 = vmatmul.msk.bf16.gmra.mxu0 %vm433_vm0, %v1014_v3 }
  0x51   :  { %517 = vmatmul.bf16.gmra.mxu2 %v1006_v7  ;;  %488 = vmatmul.bf16.gmra.mxu1 %v1002_v11 }
  0x53   :  { %556 = vmatmul.bf16.gmra.mxu3 %v1050_v16 }
  0x54   :  { %1201 = vmatmul.msk.bf16.gmra.mxu0 %vm433_vm0, %v1034_v15 }
  0x61   :  { %522 = vmatmul.bf16.gmra.mxu2 %v1026_v19  ;;  %493 = vmatmul.bf16.gmra.mxu1 %v1022_v22 }
  0x64   :  { %1202 = vmatmul.msk.bf16.gmra.mxu0 %vm433_vm0, %v1054_v25 }
  0x71   :  { %527 = vmatmul.bf16.gmra.mxu2 %v1046_v28  ;;  %498 = vmatmul.bf16.gmra.mxu1 %v1042_v31 }
  0x9e   :  { %v460_v32 = vpop.f32.mrf.mxu1 }
  0xa1   :  { %v455_v33 = vpop.f32.mrf.mxu0 }
  0xa4   :  { %v1558_v37 = vpop.f32.mrf.mxu2 }
  0xa6   :  { %v462_v34 = vpop.f32.mrf.mxu1  ;;  %v542_v38 = vpop.f32.mrf.mxu3 }
  0xa9   :  { %v457_v35 = vpop.f32.mrf.mxu0 }
  0xac   :  { %v1560_v41 = vpop.f32.mrf.mxu2 }
  0xae   :  { %v465_v36 = vpop.f32.mrf.mxu1  ;;  %v544_v44 = vpop.f32.mrf.mxu3 }
  0xb1   :  { %v571_v40 = vpop.f32.mrf.mxu0 }
  0xb6   :  { %v467_v39 = vpop.f32.mrf.mxu1  ;;  %v547_v53 = vpop.f32.mrf.mxu3 }
  0xb9   :  { %v573_v46 = vpop.f32.mrf.mxu0 }
  0xbe   :  { %v484_v42 = vpop.f32.mrf.mxu1  ;;  %v549_v62 = vpop.f32.mrf.mxu3 }
  0xbf   :  { %v485_v43 = vadd.f32 %v484_v42, %v455_v33 }
  0xc1   :  { %v576_v55 = vpop.f32.mrf.mxu0 }
  0xc4   :  { %v513_v45 = vpop.f32.mrf.mxu2 }
  0xc5   :  { %v514_v47 = vadd.f32 %v513_v45, %v485_v43 }
  0xc6   :  { %v486_v49 = vpop.f32.mrf.mxu1  ;;  %v552_v7 = vpop.f32.mrf.mxu3 }
  0xc7   :  { %v543_v48 = vadd.f32 %v542_v38, %v514_v47  ;;  %v487_v51 = vadd.f32 %v486_v49, %v457_v35 }
  0xc9   :  { %v1562_v50 = vadd.f32 %v571_v40, %v543_v48  ;;  %v578_v0 = vpop.f32.mrf.mxu0 }
  0xcb   :  { %599 = vadd.xlane.f32.xlu0 %v1562_v50  ;;  %591 = vst [vmem:[%s1738_s4] sm:$0xff] %v1562_v50 }
  0xcc   :  { %v515_v52 = vpop.f32.mrf.mxu2 }
  0xcd   :  { %v516_v54 = vadd.f32 %v515_v52, %v487_v51 }
  0xce   :  { %v489_v57 = vpop.f32.mrf.mxu1  ;;  %v554_v17 = vpop.f32.mrf.mxu3 }
  0xcf   :  { %v545_v56 = vadd.f32 %v544_v44, %v516_v54  ;;  %v490_v59 = vadd.f32 %v489_v57, %v460_v32 }
  0xd1   :  { %v1569_v58 = vadd.f32 %v573_v46, %v545_v56  ;;  %v581_v10 = vpop.f32.mrf.mxu0 }
  0xd3   :  { %601 = vadd.xlane.f32.xlu0 %v1569_v58  ;;  %592 = vst [vmem:[%s1738_s4 + $0x8] sm:$0xff] %v1569_v58 }
  0xd4   :  { %v518_v60 = vpop.f32.mrf.mxu2 }
  0xd5   :  { %v519_v61 = vadd.f32 %v518_v60, %v490_v59 }
  0xd6   :  { %v491_v1 = vpop.f32.mrf.mxu1  ;;  %v557_v26 = vpop.f32.mrf.mxu3 }
  0xd7   :  { %v548_v63 = vadd.f32 %v547_v53, %v519_v61  ;;  %v492_v3 = vadd.f32 %v491_v1, %v462_v34 }
  0xd9   :  { %v1576_v2 = vadd.f32 %v576_v55, %v548_v63  ;;  %v583_v19 = vpop.f32.mrf.mxu0 }
  0xdb   :  { %603 = vadd.xlane.f32.xlu1 %v1576_v2  ;;  %593 = vst [vmem:[%s1738_s4 + $0x10] sm:$0xff] %v1576_v2 }
  0xdc   :  { %v520_v4 = vpop.f32.mrf.mxu2 }
  0xdd   :  { %v521_v5 = vadd.f32 %v520_v4, %v492_v3 }
  0xde   :  { %v494_v8 = vpop.f32.mrf.mxu1 }
  0xdf   :  { %v550_v6 = vadd.f32 %v549_v62, %v521_v5  ;;  %v495_v11 = vadd.f32 %v494_v8, %v465_v36  ;;  %v559_v36 = vpop.f32.mrf.mxu3 }
  0xe1   :  { %v1583_v9 = vadd.f32 %v578_v0, %v550_v6  ;;  %v586_v29 = vpop.f32.mrf.mxu0 }
  0xe3   :  { %594 = vst [vmem:[%s1738_s4 + $0x18] sm:$0xff] %v1583_v9  ;;  %605 = vadd.xlane.f32.xlu1 %v1583_v9 }
  0xe4   :  { %v523_v12 = vpop.f32.mrf.mxu2 }
  0xe5   :  { %v524_v13 = vadd.f32 %v523_v12, %v495_v11 }
  0xe6   :  { %v496_v15 = vpop.f32.mrf.mxu1 }
  0xe7   :  { %v553_v14 = vadd.f32 %v552_v7, %v524_v13  ;;  %v497_v18 = vadd.f32 %v496_v15, %v467_v39 }
  0xe9   :  { %v582_v16 = vadd.f32 %v581_v10, %v553_v14  ;;  %v588_v38 = vpop.f32.mrf.mxu0 }
  0xeb   :  { %607 = vadd.xlane.f32.xlu2 %v582_v16  ;;  %595 = vst [vmem:[%s1738_s4 + $0x20] sm:$0xff] %v582_v16 }
  0xec   :  { %v525_v20 = vpop.f32.mrf.mxu2 }
  0xed   :  { %v526_v21 = vadd.f32 %v525_v20, %v497_v18 }
  0xee   :  { %v499_v23 = vpop.f32.mrf.mxu1 }
  0xef   :  { %v555_v22 = vadd.f32 %v554_v17, %v526_v21  ;;  %v500_v25 = vadd.f32 %v499_v23, %v1558_v37 }
  0xf1   :  { %v584_v24 = vadd.f32 %v583_v19, %v555_v22 }
  0xf3   :  { %596 = vst [vmem:[%s1738_s4 + $0x28] sm:$0xff] %v584_v24  ;;  %609 = vadd.xlane.f32.xlu2 %v584_v24 }
  0xf4   :  { %v528_v27 = vpop.f32.mrf.mxu2 }
  0xf5   :  { %v529_v28 = vadd.f32 %v528_v27, %v500_v25  ;;  %v810_v27 = vld [vmem:[%s1739_s2] sm:$0xff] }
  0xf6   :  { %v501_v31 = vpop.f32.mrf.mxu1 }
  0xf7   :  { %v558_v30 = vadd.f32 %v557_v26, %v529_v28  ;;  %v502_v33 = vadd.f32 %v501_v31, %v1560_v41 }
  0xf9   :  { %v587_v32 = vadd.f32 %v586_v29, %v558_v30 }
  0xfb   :  { %597 = vst [vmem:[%s1738_s4 + $0x30] sm:$0xff] %v587_v32  ;;  %611 = vadd.xlane.f32.xlu0 %v587_v32 }
  0xfc   :  { %v530_v34 = vpop.f32.mrf.mxu2 }
  0xfd   :  { %v531_v35 = vadd.f32 %v530_v34, %v502_v33  ;;  %v923_v34 = vld [vmem:[%s1740_s3] sm:$0xff] }
  0xff   :  { %v560_v37 = vadd.f32 %v559_v36, %v531_v35 }
 0x101   :  { %v589_v39 = vadd.f32 %v588_v38, %v560_v37 }
 0x103   :  { %598 = vst [vmem:[%s1738_s4 + $0x38] sm:$0xff] %v589_v39  ;;  %613 = vadd.xlane.f32.xlu1 %v589_v39 }
 0x13e   :  { %v600_v40 = vpop.xlane.xlu0 %599 }
 0x13f   :  { %v615_v42 = vmul.f32 0.0078125, %v600_v40 }
 0x141   :  { %660 = vst.msk [vmem:[#allocation2] sm:$0xff] %vm659_vm1, %v615_v42  ;;  %v623_v41 = vsub.f32 %v1562_v50, %v615_v42 }
 0x143   :  { %v631_v43 = vmul.f32 %v623_v41, %v623_v41 }
 0x145   :  { %639 = vadd.xlane.f32.xlu2 %v631_v43 }
 0x146   :  { %v602_v44 = vpop.xlane.xlu0 %601 }
 0x147   :  { %v616_v45 = vmul.f32 0.0078125, %v602_v44  ;;  %v811_v44 = vld [vmem:[%s1739_s2 + $0x8] sm:$0xff] }
 0x148   :  { %v931_v33 = vld [vmem:[#allocation2] sm:$0xff] }
 0x149   :  { %661 = vst.msk [vmem:[#allocation2 + $0x8] sm:$0xff] %vm659_vm1, %v616_v45  ;;  %v624_v46 = vsub.f32 %v1569_v58, %v616_v45 }
 0x14b   :  { %v632_v47 = vmul.f32 %v624_v46, %v624_v46 }
 0x14d   :  { %641 = vadd.xlane.f32.xlu0 %v632_v47 }
 0x14e   :  { %v604_v48 = vpop.xlane.xlu1 %603 }
 0x14f   :  { %v617_v49 = vmul.f32 0.0078125, %v604_v48 }
 0x151   :  { %662 = vst.msk [vmem:[#allocation2 + $0x10] sm:$0xff] %vm659_vm1, %v617_v49  ;;  %v625_v51 = vsub.f32 %v1576_v2, %v617_v49 }
 0x153   :  { %v633_v52 = vmul.f32 %v625_v51, %v625_v51  ;;  %v932_v51 = vld [vmem:[#allocation2 + $0x8] sm:$0xff] }
 0x155   :  { %643 = vadd.xlane.f32.xlu1 %v633_v52  ;;  %v924_v52 = vld [vmem:[%s1740_s3 + $0x8] sm:$0xff] }
 0x156   :  { %v606_v53 = vpop.xlane.xlu1 %605 }
 0x157   :  { %v618_v50 = vmul.f32 0.0078125, %v606_v53 }
 0x159   :  { %663 = vst.msk [vmem:[#allocation2 + $0x18] sm:$0xff] %vm659_vm1, %v618_v50  ;;  %v626_v54 = vsub.f32 %v1583_v9, %v618_v50 }
 0x15b   :  { %v634_v55 = vmul.f32 %v626_v54, %v626_v54 }
 0x15d   :  { %645 = vadd.xlane.f32.xlu2 %v634_v55 }
 0x15e   :  { %v608_v56 = vpop.xlane.xlu2 %607 }
 0x15f   :  { %v619_v57 = vmul.f32 0.0078125, %v608_v56 }
 0x161   :  { %664 = vst.msk [vmem:[#allocation2 + $0x20] sm:$0xff] %vm659_vm1, %v619_v57  ;;  %v627_v58 = vsub.f32 %v582_v16, %v619_v57 }
 0x163   :  { %v635_v59 = vmul.f32 %v627_v58, %v627_v58 }
 0x165   :  { %647 = vadd.xlane.f32.xlu0 %v635_v59 }
 0x166   :  { %v610_v60 = vpop.xlane.xlu2 %609 }
 0x167   :  { %v620_v61 = vmul.f32 0.0078125, %v610_v60  ;;  %v812_v60 = vld [vmem:[%s1739_s2 + $0x10] sm:$0xff] }
 0x169   :  { %665 = vst.msk [vmem:[#allocation2 + $0x28] sm:$0xff] %vm659_vm1, %v620_v61  ;;  %v628_v62 = vsub.f32 %v584_v24, %v620_v61 }
 0x16b   :  { %v636_v63 = vmul.f32 %v628_v62, %v628_v62 }
 0x16d   :  { %649 = vadd.xlane.f32.xlu1 %v636_v63 }
 0x16e   :  { %v612_v0 = vpop.xlane.xlu0 %611 }
 0x16f   :  { %v621_v1 = vmul.f32 0.0078125, %v612_v0 }
 0x171   :  { %666 = vst.msk [vmem:[#allocation2 + $0x30] sm:$0xff] %vm659_vm1, %v621_v1  ;;  %v629_v2 = vsub.f32 %v587_v32, %v621_v1 }
 0x173   :  { %v637_v3 = vmul.f32 %v629_v2, %v629_v2 }
 0x175   :  { %651 = vadd.xlane.f32.xlu2 %v637_v3  ;;  %v933_v3 = vld [vmem:[#allocation2 + $0x10] sm:$0xff] }
 0x176   :  { %v614_v4 = vpop.xlane.xlu1 %613 }
 0x177   :  { %v622_v5 = vmul.f32 0.0078125, %v614_v4  ;;  %v925_v4 = vld [vmem:[%s1740_s3 + $0x10] sm:$0xff] }
 0x179   :  { %667 = vst.msk [vmem:[#allocation2 + $0x38] sm:$0xff] %vm659_vm1, %v622_v5  ;;  %v630_v6 = vsub.f32 %v589_v39, %v622_v5 }
 0x17b   :  { %v638_v7 = vmul.f32 %v630_v6, %v630_v6 }
 0x17d   :  { %653 = vadd.xlane.f32.xlu0 %v638_v7 }
 0x1b8   :  { %v640_v8 = vpop.xlane.xlu2 %639 }
 0x1b9   :  { %668 = vst.msk [vmem:[#allocation3] sm:$0xff] %vm659_vm1, %v640_v8 }
 0x1c0   :  { %v794_v9 = vld [vmem:[#allocation3] sm:$0xff]  ;;  %v642_v10 = vpop.xlane.xlu0 %641 }
 0x1c1   :  { %v802_v11 = vmul.f32 0.0078125, %v794_v9  ;;  %669 = vst.msk [vmem:[#allocation3 + $0x8] sm:$0xff] %vm659_vm1, %v642_v10 }
 0x1c3   :  { %v818_v12 = vadd.f32 1e-05, %v802_v11 }
 0x1c5   :  { %1275 = vrsqrt.f32 %v818_v12  ;;  %vm832_vm3 = vweird.f32 %v818_v12 }
 0x1c8   :  { %v795_v13 = vld [vmem:[#allocation3 + $0x8] sm:$0xff]  ;;  %v644_v14 = vpop.xlane.xlu1 %643 }
 0x1c9   :  { %v803_v15 = vmul.f32 0.0078125, %v795_v13  ;;  %670 = vst.msk [vmem:[#allocation3 + $0x10] sm:$0xff] %vm659_vm1, %v644_v14  ;;  %v813_v13 = vld [vmem:[%s1739_s2 + $0x18] sm:$0xff] }
 0x1cb   :  { %v1276_v16 = vpop.eup %1275  ;;  %v819_v17 = vadd.f32 1e-05, %v803_v15 }
 0x1cc   :  { %v827_v18 = vmul.f32 %v1276_v16, %v818_v12  ;;  %vm833_vm2 = vweird.f32 %v1276_v16 }
 0x1cd   :  { %1277 = vrsqrt.f32 %v819_v17  ;;  %vm834_vm4 = vmor %vm832_vm3, %vm833_vm2  ;;  %vm842_vm6 = vweird.f32 %v819_v17 }
 0x1ce   :  { %v828_v19 = vmul.f32 %v1276_v16, %v827_v18 }
 0x1d0   :  { %v829_v20 = vmul.f32 0.5, %v828_v19  ;;  %v796_v21 = vld [vmem:[#allocation3 + $0x10] sm:$0xff]  ;;  %v646_v22 = vpop.xlane.xlu2 %645 }
 0x1d1   :  { %v804_v23 = vmul.f32 0.0078125, %v796_v21  ;;  %671 = vst.msk [vmem:[#allocation3 + $0x18] sm:$0xff] %vm659_vm1, %v646_v22  ;;  %v926_v21 = vld [vmem:[%s1740_s3 + $0x18] sm:$0xff] }
 0x1d2   :  { %v830_v24 = vsub.f32 1.5, %v829_v20  ;;  %v934_v20 = vld [vmem:[#allocation2 + $0x18] sm:$0xff] }
 0x1d3   :  { %v1278_v25 = vpop.eup %1277  ;;  %v820_v26 = vadd.f32 1e-05, %v804_v23 }
 0x1d4   :  { %v831_v28 = vmul.f32 %v1276_v16, %v830_v24  ;;  %v837_v29 = vmul.f32 %v1278_v25, %v819_v17  ;;  %vm843_vm5 = vweird.f32 %v1278_v25 }
 0x1d5   :  { %1279 = vrsqrt.f32 %v820_v26  ;;  %vm844_vm7 = vmor %vm842_vm6, %vm843_vm5  ;;  %vm852_vm9 = vweird.f32 %v820_v26 }
 0x1d6   :  { %v835_v30 = vsel %vm834_vm4, %v1276_v16, %v831_v28  ;;  %v838_v31 = vmul.f32 %v1278_v25, %v837_v29 }
 0x1d7   :  { %v906_v32 = vmul.f32 %v835_v30, %v810_v27 }
 0x1d8   :  { %v839_v35 = vmul.f32 0.5, %v838_v31  ;;  %v797_v36 = vld [vmem:[#allocation3 + $0x18] sm:$0xff]  ;;  %v648_v37 = vpop.xlane.xlu0 %647  ;;  %v814_v31 = vld [vmem:[%s1739_s2 + $0x20] sm:$0xff] }
 0x1d9   :  { %915 = vst.msk [vmem:[%s1741_s5] sm:$0xff] %vm659_vm1, %v906_v32  ;;  %v939_v38 = vmul.f32 %v931_v33, %v906_v32  ;;  %v805_v39 = vmul.f32 0.0078125, %v797_v36 }
 0x1da   :  { %v840_v40 = vsub.f32 1.5, %v839_v35  ;;  %672 = vst.msk [vmem:[#allocation3 + $0x20] sm:$0xff] %vm659_vm1, %v648_v37  ;;  %v935_v37 = vld [vmem:[#allocation2 + $0x20] sm:$0xff] }
 0x1db   :  { %v1280_v42 = vpop.eup %1279  ;;  %v947_v41 = vsub.f32 %v923_v34, %v939_v38  ;;  %v821_v43 = vadd.f32 1e-05, %v805_v39  ;;  %v927_v38 = vld [vmem:[%s1740_s3 + $0x20] sm:$0xff] }
 0x1dc   :  { %v841_v45 = vmul.f32 %v1278_v25, %v840_v40  ;;  %v847_v46 = vmul.f32 %v1280_v42, %v820_v26  ;;  %vm853_vm8 = vweird.f32 %v1280_v42 }
 0x1dd   :  { %955 = vst.msk [vmem:[%s1742_s6] sm:$0xff] %vm659_vm1, %v947_v41  ;;  %1281 = vrsqrt.f32 %v821_v43  ;;  %vm854_vm10 = vmor %vm852_vm9, %vm853_vm8  ;;  %vm862_vm12 = vweird.f32 %v821_v43 }
 0x1de   :  { %v845_v47 = vsel %vm844_vm7, %v1278_v25, %v841_v45  ;;  %v848_v48 = vmul.f32 %v1280_v42, %v847_v46 }
 0x1df   :  { %v907_v49 = vmul.f32 %v845_v47, %v811_v44  ;;  %v815_v47 = vld [vmem:[%s1739_s2 + $0x28] sm:$0xff] }
 0x1e0   :  { %v849_v53 = vmul.f32 0.5, %v848_v48  ;;  %v650_v50 = vpop.xlane.xlu1 %649 }
 0x1e1   :  { %916 = vst.msk [vmem:[%s1741_s5 + $0x8] sm:$0xff] %vm659_vm1, %v907_v49  ;;  %v940_v54 = vmul.f32 %v932_v51, %v907_v49  ;;  %v798_v55 = vld [vmem:[#allocation3 + $0x20] sm:$0xff] }
 0x1e2   :  { %v850_v56 = vsub.f32 1.5, %v849_v53  ;;  %v806_v57 = vmul.f32 0.0078125, %v798_v55  ;;  %673 = vst.msk [vmem:[#allocation3 + $0x28] sm:$0xff] %vm659_vm1, %v650_v50  ;;  %v936_v50 = vld [vmem:[#allocation2 + $0x28] sm:$0xff] }
 0x1e3   :  { %v1282_v58 = vpop.eup %1281  ;;  %v948_v59 = vsub.f32 %v924_v52, %v940_v54  ;;  %v928_v54 = vld [vmem:[%s1740_s3 + $0x28] sm:$0xff] }
 0x1e4   :  { %v851_v61 = vmul.f32 %v1280_v42, %v850_v56  ;;  %v857_v62 = vmul.f32 %v1282_v58, %v821_v43  ;;  %v822_v63 = vadd.f32 1e-05, %v806_v57  ;;  %vm863_vm11 = vweird.f32 %v1282_v58 }
 0x1e5   :  { %956 = vst.msk [vmem:[%s1742_s6 + $0x8] sm:$0xff] %vm659_vm1, %v948_v59  ;;  %vm864_vm13 = vmor %vm862_vm12, %vm863_vm11 }
 0x1e6   :  { %v855_v0 = vsel %vm854_vm10, %v1280_v42, %v851_v61  ;;  %v858_v1 = vmul.f32 %v1282_v58, %v857_v62  ;;  %1283 = vrsqrt.f32 %v822_v63  ;;  %vm872_vm15 = vweird.f32 %v822_v63 }
 0x1e7   :  { %v908_v2 = vmul.f32 %v855_v0, %v812_v60  ;;  %v816_v60 = vld [vmem:[%s1739_s2 + $0x30] sm:$0xff] }
 0x1e8   :  { %v859_v5 = vmul.f32 0.5, %v858_v1  ;;  %v652_v6 = vpop.xlane.xlu2 %651 }
 0x1e9   :  { %917 = vst.msk [vmem:[%s1741_s5 + $0x10] sm:$0xff] %vm659_vm1, %v908_v2  ;;  %v941_v7 = vmul.f32 %v933_v3, %v908_v2  ;;  %v799_v8 = vld [vmem:[#allocation3 + $0x28] sm:$0xff]  ;;  %v937_v2 = vld [vmem:[#allocation2 + $0x30] sm:$0xff] }
 0x1ea   :  { %v860_v9 = vsub.f32 1.5, %v859_v5  ;;  %v807_v10 = vmul.f32 0.0078125, %v799_v8  ;;  %674 = vst.msk [vmem:[#allocation3 + $0x30] sm:$0xff] %vm659_vm1, %v652_v6  ;;  %v929_v3 = vld [vmem:[%s1740_s3 + $0x30] sm:$0xff]  ;;  %v817_v8 = vld [vmem:[%s1739_s2 + $0x38] sm:$0xff] }
 0x1eb   :  { %v949_v11 = vsub.f32 %v925_v4, %v941_v7 }
 0x1ec   :  { %v1284_v12 = vpop.eup %1283  ;;  %v861_v14 = vmul.f32 %v1282_v58, %v860_v9  ;;  %v823_v15 = vadd.f32 1e-05, %v807_v10 }
 0x1ed   :  { %957 = vst.msk [vmem:[%s1742_s6 + $0x10] sm:$0xff] %vm659_vm1, %v949_v11  ;;  %v867_v16 = vmul.f32 %v1284_v12, %v822_v63  ;;  %vm873_vm14 = vweird.f32 %v1284_v12 }
 0x1ee   :  { %v865_v17 = vsel %vm864_vm13, %v1282_v58, %v861_v14  ;;  %1285 = vrsqrt.f32 %v823_v15  ;;  %vm874_vm0 = vmor %vm872_vm15, %vm873_vm14  ;;  %vm882_vm3 = vweird.f32 %v823_v15 }
 0x1ef   :  { %v909_v18 = vmul.f32 %v865_v17, %v813_v13  ;;  %v868_v19 = vmul.f32 %v1284_v12, %v867_v16  ;;  %v930_v13 = vld [vmem:[%s1740_s3 + $0x38] sm:$0xff] }
 0x1f0   :  { %v654_v22 = vpop.xlane.xlu0 %653 }
 0x1f1   :  { %918 = vst.msk [vmem:[%s1741_s5 + $0x18] sm:$0xff] %vm659_vm1, %v909_v18  ;;  %v942_v23 = vmul.f32 %v934_v20, %v909_v18  ;;  %v869_v24 = vmul.f32 0.5, %v868_v19  ;;  %v800_v25 = vld [vmem:[#allocation3 + $0x30] sm:$0xff] }
 0x1f2   :  { %v808_v26 = vmul.f32 0.0078125, %v800_v25  ;;  %675 = vst.msk [vmem:[#allocation3 + $0x38] sm:$0xff] %vm659_vm1, %v654_v22 }
 0x1f3   :  { %v950_v27 = vsub.f32 %v926_v21, %v942_v23  ;;  %v870_v28 = vsub.f32 1.5, %v869_v24 }
 0x1f4   :  { %v1286_v29 = vpop.eup %1285  ;;  %v824_v30 = vadd.f32 1e-05, %v808_v26 }
 0x1f5   :  { %958 = vst.msk [vmem:[%s1742_s6 + $0x18] sm:$0xff] %vm659_vm1, %v950_v27  ;;  %v871_v32 = vmul.f32 %v1284_v12, %v870_v28  ;;  %v877_v33 = vmul.f32 %v1286_v29, %v823_v15  ;;  %vm883_vm2 = vweird.f32 %v1286_v29 }
 0x1f6   :  { %1287 = vrsqrt.f32 %v824_v30  ;;  %vm884_vm4 = vmor %vm882_vm3, %vm883_vm2  ;;  %vm892_vm6 = vweird.f32 %v824_v30 }
 0x1f7   :  { %v875_v34 = vsel %vm874_vm0, %v1284_v12, %v871_v32  ;;  %v878_v35 = vmul.f32 %v1286_v29, %v877_v33  ;;  %v938_v12 = vld [vmem:[#allocation2 + $0x38] sm:$0xff] }
 0x1f8   :  { %v910_v36 = vmul.f32 %v875_v34, %v814_v31 }
 0x1f9   :  { %v879_v39 = vmul.f32 0.5, %v878_v35  ;;  %v801_v40 = vld [vmem:[#allocation3 + $0x38] sm:$0xff] }
 0x1fa   :  { %919 = vst.msk [vmem:[%s1741_s5 + $0x20] sm:$0xff] %vm659_vm1, %v910_v36  ;;  %v943_v42 = vmul.f32 %v935_v37, %v910_v36  ;;  %v809_v41 = vmul.f32 0.0078125, %v801_v40 }
 0x1fb   :  { %v880_v43 = vsub.f32 1.5, %v879_v39 }
 0x1fc   :  { %v1288_v44 = vpop.eup %1287  ;;  %v951_v45 = vsub.f32 %v927_v38, %v943_v42  ;;  %v825_v46 = vadd.f32 1e-05, %v809_v41 }
 0x1fd   :  { %v881_v48 = vmul.f32 %v1286_v29, %v880_v43  ;;  %v887_v49 = vmul.f32 %v1288_v44, %v824_v30  ;;  %vm893_vm5 = vweird.f32 %v1288_v44 }
 0x1fe   :  { %959 = vst.msk [vmem:[%s1742_s6 + $0x20] sm:$0xff] %vm659_vm1, %v951_v45  ;;  %1289 = vrsqrt.f32 %v825_v46  ;;  %vm894_vm7 = vmor %vm892_vm6, %vm893_vm5  ;;  %vm902_vm9 = vweird.f32 %v825_v46 }
 0x1ff   :  { %v885_v51 = vsel %vm884_vm4, %v1286_v29, %v881_v48  ;;  %v888_v52 = vmul.f32 %v1288_v44, %v887_v49 }
 0x200   :  { %v911_v53 = vmul.f32 %v885_v51, %v815_v47 }
 0x201   :  { %v889_v55 = vmul.f32 0.5, %v888_v52 }
 0x202   :  { %920 = vst.msk [vmem:[%s1741_s5 + $0x28] sm:$0xff] %vm659_vm1, %v911_v53  ;;  %v944_v56 = vmul.f32 %v936_v50, %v911_v53 }
 0x203   :  { %v890_v57 = vsub.f32 1.5, %v889_v55 }
 0x204   :  { %v1290_v58 = vpop.eup %1289  ;;  %v952_v59 = vsub.f32 %v928_v54, %v944_v56 }
 0x205   :  { %v891_v61 = vmul.f32 %v1288_v44, %v890_v57  ;;  %v897_v62 = vmul.f32 %v1290_v58, %v825_v46  ;;  %vm903_vm8 = vweird.f32 %v1290_v58 }
 0x206   :  { %960 = vst.msk [vmem:[%s1742_s6 + $0x28] sm:$0xff] %vm659_vm1, %v952_v59  ;;  %vm904_vm10 = vmor %vm902_vm9, %vm903_vm8 }
 0x207   :  { %v895_v63 = vsel %vm894_vm7, %v1288_v44, %v891_v61  ;;  %v898_v0 = vmul.f32 %v1290_v58, %v897_v62 }
 0x208   :  { %v912_v1 = vmul.f32 %v895_v63, %v816_v60 }
 0x209   :  { %v899_v4 = vmul.f32 0.5, %v898_v0 }
 0x20a   :  { %921 = vst.msk [vmem:[%s1741_s5 + $0x30] sm:$0xff] %vm659_vm1, %v912_v1  ;;  %v945_v5 = vmul.f32 %v937_v2, %v912_v1 }
 0x20b   :  { %v900_v6 = vsub.f32 1.5, %v899_v4 }
 0x20c   :  { %v953_v7 = vsub.f32 %v929_v3, %v945_v5 }
 0x20d   :  { %v901_v9 = vmul.f32 %v1290_v58, %v900_v6 }
 0x20e   :  { %961 = vst.msk [vmem:[%s1742_s6 + $0x30] sm:$0xff] %vm659_vm1, %v953_v7 }
 0x20f   :  { %v905_v10 = vsel %vm904_vm10, %v1290_v58, %v901_v9 }
 0x210   :  { %v913_v11 = vmul.f32 %v905_v10, %v817_v8 }
 0x212   :  { %922 = vst.msk [vmem:[%s1741_s5 + $0x38] sm:$0xff] %vm659_vm1, %v913_v11  ;;  %v946_v14 = vmul.f32 %v938_v12, %v913_v11 }
 0x214   :  { %v954_v15 = vsub.f32 %v930_v13, %v946_v14 }
 0x216   :  { %962 = vst.msk [vmem:[%s1742_s6 + $0x38] sm:$0xff] %vm659_vm1, %v954_v15 }

</bundles_post_ra>
